<compile_context>
chip_gen: v7x
topology: tpu7x:2x2x1
jax: 0.10.0
libtpu: 0.0.40
codegen_flags: <defaults>
</compile_context>

<pallas_src>
import math

import jax
import jax.numpy as jnp
from jax import lax
from jax.experimental import pallas as pl
from jax.experimental.pallas import tpu as pltpu


# Geometry for a 28x28 MNIST input with two 3x3 VALID convs + 2x2 pool.
_Y1 = 26                       # conv1 output spatial size
_PL = 12                       # pooled spatial size
_PLANE = 13 * 13               # rows per (h%2, w%2) parity plane of y1 (169)
_ROWS = 12 * 13 - 1            # pooled rows incl. junk cols at pw==12  (155)
_FLAT = _ROWS * 64             # flattened feature length fed to fc1   (9920)


# ----------------------------- Pallas kernels ------------------------------

def _conv_stack_kernel(p1_ref, w1_ref, b1_ref, w2_ref, b2_ref, o_ref, y1_ref):
    """Fused conv1 + ReLU + conv2 + ReLU + 2x2/2 max-pool for G images.

    p1_ref : (G, 676, 9)   bf16  conv1 im2col patches, rows ordered
                                 (h%2, w%2, h//2, w//2) -> 4 parity planes
    w1_ref : (9, 32)       bf16  conv1 weight, rows (kh, kw)
    b1_ref : (1, 32)       f32
    w2_ref : (288, 64)     bf16  conv2 weight, rows (kh, kw, in_c)
    b2_ref : (1, 64)       f32
    o_ref  : (G, 155, 64)  bf16  pooled NHWC activation, row = ph*13 + pw
                                 (rows with pw == 12 are junk; matching fc1
                                 weight rows are zero)
    y1_ref : (676, 32)     f32   VMEM scratch: one image's conv1 output
    """
    g_imgs = p1_ref.shape[0]
    w1 = w1_ref[...]
    b1 = b1_ref[...]
    b2 = b2_ref[...]

    def per_image(g, carry):
        # conv1: (676, 9) @ (9, 32) + bias + ReLU; rows already parity-ordered
        # so y1 is 4 contiguous 169-row planes in VMEM.
        y1_ref[...] = jnp.maximum(
            jnp.dot(p1_ref[g], w1, preferred_element_type=jnp.float32) + b1,
            0.0)

        # conv2 + ReLU with in-kernel patch formation: per pooling parity
        # (hp, wp), output row r = ph*13 + pw needs y1 parity-plane row
        # r + (oh*13 + ow) -- a contiguous 155-row slice per (kh, kw) shift.
        pooled = None
        for hp in range(2):
            for wp in range(2):
                acc = jnp.zeros((_ROWS, 64), jnp.float32)
                for di in range(3):
                    for dj in range(3):
                        src_h, oh = (hp + di) % 2, (hp + di) // 2
                        src_w, ow = (wp + dj) % 2, (wp + dj) // 2
                        start = (src_h * 2 + src_w) * _PLANE + oh * 13 + ow
                        lhs = y1_ref[pl.ds(start, _ROWS), :].astype(jnp.bfloat16)
                        k = di * 3 + dj
                        acc = acc + jnp.dot(
                            lhs, w2_ref[pl.ds(k * 32, 32), :],
                            preferred_element_type=jnp.float32)
                y2p = jnp.maximum(acc + b2, 0.0)
                # 2x2 max-pool == elementwise max over the four parities.
                pooled = y2p if pooled is None else jnp.maximum(pooled, y2p)

        o_ref[g] = pooled.astype(o_ref.dtype)
        return carry

    lax.fori_loop(0, g_imgs, per_image, 0)


def _fc_head_kernel(x_ref, w1_ref, b1_ref, w2_ref, b2_ref, o_ref):
    # fc1 + ReLU + fc2 + log_softmax fused (dropout == identity at eval).
    h = jnp.dot(x_ref[...], w1_ref[...], preferred_element_type=jnp.float32)
    h = jnp.maximum(h + b1_ref[...], 0.0)
    z = jnp.dot(h.astype(w2_ref.dtype), w2_ref[...],
                preferred_element_type=jnp.float32) + b2_ref[...]
    m = jnp.max(z, axis=-1, keepdims=True)
    s = z - m
    o_ref[...] = s - jnp.log(jnp.sum(jnp.exp(s), axis=-1, keepdims=True))


# ----------------------------- Pallas wrappers ------------------------------

def _conv_stack(p1, pp):
    """Single pallas_call for conv1 -> conv2 -> ReLU -> pool, G images/step."""
    B = p1.shape[0]
    G = math.gcd(B, 8)
    flops = B * (2 * 676 * 9 * 32 + 4 * 9 * 2 * _ROWS * 32 * 64)
    bytes_acc = (B * (676 * 9 * 2 + _ROWS * 64 * 2)
                 + (9 * 32 + 288 * 64) * 2 + (32 + 64) * 4)
    return pl.pallas_call(
        _conv_stack_kernel,
        out_shape=jax.ShapeDtypeStruct((B, _ROWS, 64), jnp.bfloat16),
        grid=(B // G,),
        in_specs=[
            pl.BlockSpec((G, 676, 9), lambda i: (i, 0, 0)),
            pl.BlockSpec((9, 32), lambda i: (0, 0)),
            pl.BlockSpec((1, 32), lambda i: (0, 0)),
            pl.BlockSpec((288, 64), lambda i: (0, 0)),
            pl.BlockSpec((1, 64), lambda i: (0, 0)),
        ],
        out_specs=pl.BlockSpec((G, _ROWS, 64), lambda i: (i, 0, 0)),
        scratch_shapes=[pltpu.VMEM((676, 32), jnp.float32)],
        compiler_params=pltpu.CompilerParams(
            dimension_semantics=("parallel",)),
        cost_estimate=pl.CostEstimate(
            flops=flops, transcendentals=0, bytes_accessed=bytes_acc),
    )(p1, pp["conv1_w"], pp["conv1_b"], pp["conv2_w"], pp["conv2_b"])


def _fc_head(flat, pp):
    """Fused fc1 + ReLU + fc2 + log_softmax; batch-tiled parallel grid."""
    B, K1 = flat.shape
    Bt = math.gcd(B, 8)
    N1, N2 = 128, 10
    flops = B * 2 * (K1 * N1 + N1 * N2)
    bytes_acc = (B * (K1 * 2 + N2 * 4)
                 + (K1 * N1 + N1 * N2) * 2 + (N1 + N2) * 4)
    return pl.pallas_call(
        _fc_head_kernel,
        out_shape=jax.ShapeDtypeStruct((B, N2), jnp.float32),
        grid=(B // Bt,),
        in_specs=[
            pl.BlockSpec((Bt, K1), lambda i: (i, 0)),
            pl.BlockSpec((K1, N1), lambda i: (0, 0)),   # weights stay resident
            pl.BlockSpec((1, N1), lambda i: (0, 0)),
            pl.BlockSpec((N1, N2), lambda i: (0, 0)),
            pl.BlockSpec((1, N2), lambda i: (0, 0)),
        ],
        out_specs=pl.BlockSpec((Bt, N2), lambda i: (i, 0)),
        compiler_params=pltpu.CompilerParams(
            dimension_semantics=("parallel",)),
        cost_estimate=pl.CostEstimate(
            flops=flops, transcendentals=B * (N2 + 1),
            bytes_accessed=bytes_acc),
    )(flat, pp["fc1_w"], pp["fc1_b"], pp["fc2_w"], pp["fc2_b"])


# --------------------------------- params -----------------------------------

def init_params(key):
    """Deterministic synthetic parameters with PyTorch-native shapes."""
    ks = jax.random.split(key, 8)

    def t(k, shape, scale):
        return jax.random.normal(k, shape, jnp.float32) * scale

    return {
        "conv1_w": t(ks[0], (32, 1, 3, 3), 0.10),   # (out_c, in_c, kh, kw)
        "conv1_b": t(ks[1], (32,), 0.10),
        "conv2_w": t(ks[2], (64, 32, 3, 3), 0.05),
        "conv2_b": t(ks[3], (64,), 0.05),
        "fc1_w":   t(ks[4], (128, 9216), 0.02),     # (out, in), in = (c,h,w)
        "fc1_b":   t(ks[5], (128,), 0.02),
        "fc2_w":   t(ks[6], (10, 128), 0.05),
        "fc2_b":   t(ks[7], (10,), 0.05),
    }


def prepare_params(params):
    """One-time weight prep: every transpose / layout fold / cast lives here,
    not in the per-call forward path."""
    # conv weights -> (kh*kw*in_c, out_c) matmul layout, bf16.
    w1 = jnp.transpose(params["conv1_w"], (2, 3, 1, 0)).reshape(9, 32)
    w2 = jnp.transpose(params["conv2_w"], (2, 3, 1, 0)).reshape(288, 64)
    # fc1: fold torch's (c, h, w) flatten order into the weight so it consumes
    # the kernel's (ph*13 + pw, c) pooled layout directly; the pw == 12 junk
    # rows map to zero weight rows.
    wf1 = params["fc1_w"].T.reshape(64, _PL, _PL, 128)        # (c, h, w, n)
    wf1 = jnp.transpose(wf1, (1, 2, 0, 3))                    # (h, w, c, n)
    wf1 = jnp.pad(wf1, ((0, 0), (0, 1), (0, 0), (0, 0)))      # (12, 13, 64, n)
    wf1 = wf1.reshape(12 * 13 * 64, 128)[:_FLAT]              # (9920, n)
    return {
        "conv1_w": w1.astype(jnp.bfloat16),
        "conv1_b": params["conv1_b"].reshape(1, 32).astype(jnp.float32),
        "conv2_w": w2.astype(jnp.bfloat16),
        "conv2_b": params["conv2_b"].reshape(1, 64).astype(jnp.float32),
        "fc1_w": wf1.astype(jnp.bfloat16),
        "fc1_b": params["fc1_b"].reshape(1, 128).astype(jnp.float32),
        "fc2_w": params["fc2_w"].T.astype(jnp.bfloat16),      # (128, 10)
        "fc2_b": params["fc2_b"].reshape(1, 10).astype(jnp.float32),
    }


# --------------------------------- forward ----------------------------------

def cnn_mnist_forward(prepped, x_nchw):
    """CNNMnist forward pass (eval-mode dropout) using prepared params."""
    B = x_nchw.shape[0]
    x = jnp.transpose(x_nchw, (0, 2, 3, 1)).astype(jnp.bfloat16)   # (B,28,28,1)

    # conv1 im2col (3x3 / stride 1 / VALID), ~12 KB/image.  Rows pre-ordered
    # by pooling parity (h%2, w%2, h//2, w//2) so the kernel's y1 scratch is
    # 4 contiguous 13x13 parity planes.  (The large conv2 im2col is gone.)
    cols = [x[:, di:di + _Y1, dj:dj + _Y1, 0]
            for di in range(3) for dj in range(3)]
    p1 = jnp.stack(cols, axis=-1)                                  # (B,26,26,9)
    p1 = p1.reshape(B, 13, 2, 13, 2, 9)
    p1 = jnp.transpose(p1, (0, 2, 4, 1, 3, 5)).reshape(B, 676, 9)

    # Fused conv1 -> ReLU -> conv2 -> ReLU -> max_pool2d(2): one pallas_call.
    pooled = _conv_stack(p1, prepped)                              # (B,155,64)

    # dropout1 / dropout2: identity at inference (eval-mode semantics).

    # flatten(1): contiguous reshape only; torch's (c,h,w) flatten permutation
    # and the 13-column junk rows are pre-folded into the fc1 weight.
    flat = pooled.reshape(B, _FLAT)

    # fc1 + ReLU + fc2 + log_softmax(dim=1), fused.
    return _fc_head(flat, prepped)                                 # (B, 10)


def _reference_forward(params, x_nchw):
    """Pure-JAX f32 reference matching the PyTorch module (eval mode)."""
    y = lax.conv_general_dilated(x_nchw, params["conv1_w"], (1, 1), "VALID",
                                 dimension_numbers=("NCHW", "OIHW", "NCHW"))
    y = jax.nn.relu(y + params["conv1_b"][None, :, None, None])
    y = lax.conv_general_dilated(y, params["conv2_w"], (1, 1), "VALID",
                                 dimension_numbers=("NCHW", "OIHW", "NCHW"))
    y = jax.nn.relu(y + params["conv2_b"][None, :, None, None])
    y = lax.reduce_window(y, -jnp.inf, lax.max,
                          (1, 1, 2, 2), (1, 1, 2, 2), "VALID")
    y = y.reshape(y.shape[0], -1)
    y = jax.nn.relu(y @ params["fc1_w"].T + params["fc1_b"])
    y = y @ params["fc2_w"].T + params["fc2_b"]
    return jax.nn.log_softmax(y, axis=-1)


if __name__ == "__main__":
    key = jax.random.PRNGKey(0)
    pkey, xkey = jax.random.split(key)
    params = init_params(pkey)
    prepped = prepare_params(params)        # one-time weight prep

    # MNIST-shaped input (B, 1, 28, 28) so fc1 sees 9216 features.
    x = jax.random.normal(xkey, (2, 1, 28, 28), jnp.float32)

    out = jax.jit(cnn_mnist_forward)(prepped, x)
    out = jax.block_until_ready(out)

    assert out.shape == (2, 10)
    assert bool(jnp.all(jnp.isfinite(out)))
    # rows of log_softmax must exp-sum to ~1
    assert bool(jnp.allclose(jnp.sum(jnp.exp(out), axis=1), 1.0, atol=1e-4))
    # bf16-level agreement with a pure-JAX f32 reference
    ref = _reference_forward(params, x)
    err = float(jnp.max(jnp.abs(out - ref)))
    assert err < 5e-2, f"max |pallas - reference| = {err}"
    print("KERNEL_OK")
</pallas_src>

<mosaic_0001>
module attributes {stable_mosaic.version = 11 : i64} {
  func.func @_conv_stack_kernel(%arg0: i32, %arg1: memref<2x676x9xbf16, #tpu.memory_space<vmem>>, %arg2: memref<9x32xbf16, #tpu.memory_space<vmem>>, %arg3: memref<1x32xf32, #tpu.memory_space<vmem>>, %arg4: memref<288x64xbf16, #tpu.memory_space<vmem>>, %arg5: memref<1x64xf32, #tpu.memory_space<vmem>>, %arg6: memref<2x155x64xbf16, #tpu.memory_space<vmem>>, %arg7: memref<676x32xf32, #tpu.memory_space<vmem>>) attributes {dimension_semantics = [#tpu.dimension_semantics<parallel>], iteration_bounds = array<i64: 1>, scalar_prefetch = 0 : i64, scratch_operands = 1 : i64, tpu.core_type = #tpu.core_type<tc>, window_params = [{transform_indices = @transform_0, window_bounds = array<i64: 2, 676, 9>}, {pipeline_mode = #tpu.pipeline_mode<synchronous>, transform_indices = @transform_1, window_bounds = array<i64: 9, 32>}, {pipeline_mode = #tpu.pipeline_mode<synchronous>, transform_indices = @transform_2, window_bounds = array<i64: 1, 32>}, {pipeline_mode = #tpu.pipeline_mode<synchronous>, transform_indices = @transform_3, window_bounds = array<i64: 288, 64>}, {pipeline_mode = #tpu.pipeline_mode<synchronous>, transform_indices = @transform_4, window_bounds = array<i64: 1, 64>}, {transform_indices = @transform_5, window_bounds = array<i64: 2, 155, 64>}]} {
    %c0 = arith.constant 0 : index
    %c0_0 = arith.constant 0 : index
    %0 = vector.load %arg2[%c0, %c0_0] : memref<9x32xbf16, #tpu.memory_space<vmem>>, vector<9x32xbf16>
    %c0_1 = arith.constant 0 : index
    %c0_2 = arith.constant 0 : index
    %1 = vector.load %arg3[%c0_1, %c0_2] : memref<1x32xf32, #tpu.memory_space<vmem>>, vector<1x32xf32>
    %c0_3 = arith.constant 0 : index
    %c0_4 = arith.constant 0 : index
    %2 = vector.load %arg5[%c0_3, %c0_4] : memref<1x64xf32, #tpu.memory_space<vmem>>, vector<1x64xf32>
    %c0_i32 = arith.constant 0 : i32
    %c2_i32 = arith.constant 2 : i32
    %3 = arith.addi %c0_i32, %c2_i32 : i32
    %c1_i32 = arith.constant 1 : i32
    scf.for %arg8 = %c0_i32 to %3 step %c1_i32  : i32 {
      %4 = arith.index_cast %arg8 : i32 to index
      %c0_6 = arith.constant 0 : index
      %c0_7 = arith.constant 0 : index
      %5 = vector.load %arg1[%4, %c0_6, %c0_7] : memref<2x676x9xbf16, #tpu.memory_space<vmem>>, vector<1x676x9xbf16>
      %6 = vector.shape_cast %5 : vector<1x676x9xbf16> to vector<676x9xbf16>
      %cst = arith.constant dense<0.000000e+00> : vector<676x32xf32>
      %7 = tpu.matmul %6, %0, %cst {dimension_numbers = #tpu.dot_dimension_numbers<[1], [0], [0], [1], [0, 0, 1, 1], [], []>} : vector<676x9xbf16>, vector<9x32xbf16>, vector<676x32xf32> -> vector<676x32xf32>
      %8 = vector.broadcast %1 : vector<1x32xf32> to vector<676x32xf32>
      %9 = arith.addf %7, %8 : vector<676x32xf32>
      %cst_8 = arith.constant 0.000000e+00 : f32
      %10 = vector.broadcast %cst_8 : f32 to vector<676x32xf32>
      %11 = arith.maximumf %9, %10 : vector<676x32xf32>
      %c0_9 = arith.constant 0 : index
      %c0_10 = arith.constant 0 : index
      %12 = vector.load %arg7[%c0_9, %c0_10] : memref<676x32xf32, #tpu.memory_space<vmem>>, vector<676x32xf32>
      tpu.vector_store %arg7[%c0_9, %c0_10], %11 {strides = array<i32>} : memref<676x32xf32, #tpu.memory_space<vmem>>, vector<676x32xf32>,
      %cst_11 = arith.constant 0.000000e+00 : f32
      %13 = vector.broadcast %cst_11 : f32 to vector<155x64xf32>
      %c0_12 = arith.constant 0 : index
      %c0_13 = arith.constant 0 : index
      %14 = vector.load %arg7[%c0_12, %c0_13] : memref<676x32xf32, #tpu.memory_space<vmem>>, vector<155x32xf32>
      %15 = arith.truncf %14 : vector<155x32xf32> to vector<155x32xbf16>
      %c0_14 = arith.constant 0 : index
      %c0_15 = arith.constant 0 : index
      %16 = vector.load %arg4[%c0_14, %c0_15] : memref<288x64xbf16, #tpu.memory_space<vmem>>, vector<32x64xbf16>
      %cst_16 = arith.constant dense<0.000000e+00> : vector<155x64xf32>
      %17 = tpu.matmul %15, %16, %cst_16 {dimension_numbers = #tpu.dot_dimension_numbers<[1], [0], [0], [1], [0, 0, 1, 1], [], []>} : vector<155x32xbf16>, vector<32x64xbf16>, vector<155x64xf32> -> vector<155x64xf32>
      %18 = arith.addf %13, %17 : vector<155x64xf32>
      %c169 = arith.constant 169 : index
      %c0_17 = arith.constant 0 : index
      %19 = vector.load %arg7[%c169, %c0_17] : memref<676x32xf32, #tpu.memory_space<vmem>>, vector<155x32xf32>
      %20 = arith.truncf %19 : vector<155x32xf32> to vector<155x32xbf16>
      %c32 = arith.constant 32 : index
      %c0_18 = arith.constant 0 : index
      %21 = vector.load %arg4[%c32, %c0_18] : memref<288x64xbf16, #tpu.memory_space<vmem>>, vector<32x64xbf16>
      %cst_19 = arith.constant dense<0.000000e+00> : vector<155x64xf32>
      %22 = tpu.matmul %20, %21, %cst_19 {dimension_numbers = #tpu.dot_dimension_numbers<[1], [0], [0], [1], [0, 0, 1, 1], [], []>} : vector<155x32xbf16>, vector<32x64xbf16>, vector<155x64xf32> -> vector<155x64xf32>
      %23 = arith.addf %18, %22 : vector<155x64xf32>
      %c1 = arith.constant 1 : index
      %c0_20 = arith.constant 0 : index
      %24 = vector.load %arg7[%c1, %c0_20] : memref<676x32xf32, #tpu.memory_space<vmem>>, vector<155x32xf32>
      %25 = arith.truncf %24 : vector<155x32xf32> to vector<155x32xbf16>
      %c64 = arith.constant 64 : index
      %c0_21 = arith.constant 0 : index
      %26 = vector.load %arg4[%c64, %c0_21] : memref<288x64xbf16, #tpu.memory_space<vmem>>, vector<32x64xbf16>
      %cst_22 = arith.constant dense<0.000000e+00> : vector<155x64xf32>
      %27 = tpu.matmul %25, %26, %cst_22 {dimension_numbers = #tpu.dot_dimension_numbers<[1], [0], [0], [1], [0, 0, 1, 1], [], []>} : vector<155x32xbf16>, vector<32x64xbf16>, vector<155x64xf32> -> vector<155x64xf32>
      %28 = arith.addf %23, %27 : vector<155x64xf32>
      %c338 = arith.constant 338 : index
      %c0_23 = arith.constant 0 : index
      %29 = vector.load %arg7[%c338, %c0_23] : memref<676x32xf32, #tpu.memory_space<vmem>>, vector<155x32xf32>
      %30 = arith.truncf %29 : vector<155x32xf32> to vector<155x32xbf16>
      %c96 = arith.constant 96 : index
      %c0_24 = arith.constant 0 : index
      %31 = vector.load %arg4[%c96, %c0_24] : memref<288x64xbf16, #tpu.memory_space<vmem>>, vector<32x64xbf16>
      %cst_25 = arith.constant dense<0.000000e+00> : vector<155x64xf32>
      %32 = tpu.matmul %30, %31, %cst_25 {dimension_numbers = #tpu.dot_dimension_numbers<[1], [0], [0], [1], [0, 0, 1, 1], [], []>} : vector<155x32xbf16>, vector<32x64xbf16>, vector<155x64xf32> -> vector<155x64xf32>
      %33 = arith.addf %28, %32 : vector<155x64xf32>
      %c507 = arith.constant 507 : index
      %c0_26 = arith.constant 0 : index
      %34 = vector.load %arg7[%c507, %c0_26] : memref<676x32xf32, #tpu.memory_space<vmem>>, vector<155x32xf32>
      %35 = arith.truncf %34 : vector<155x32xf32> to vector<155x32xbf16>
      %c128 = arith.constant 128 : index
      %c0_27 = arith.constant 0 : index
      %36 = vector.load %arg4[%c128, %c0_27] : memref<288x64xbf16, #tpu.memory_space<vmem>>, vector<32x64xbf16>
      %cst_28 = arith.constant dense<0.000000e+00> : vector<155x64xf32>
      %37 = tpu.matmul %35, %36, %cst_28 {dimension_numbers = #tpu.dot_dimension_numbers<[1], [0], [0], [1], [0, 0, 1, 1], [], []>} : vector<155x32xbf16>, vector<32x64xbf16>, vector<155x64xf32> -> vector<155x64xf32>
      %38 = arith.addf %33, %37 : vector<155x64xf32>
      %c339 = arith.constant 339 : index
      %c0_29 = arith.constant 0 : index
      %39 = vector.load %arg7[%c339, %c0_29] : memref<676x32xf32, #tpu.memory_space<vmem>>, vector<155x32xf32>
      %40 = arith.truncf %39 : vector<155x32xf32> to vector<155x32xbf16>
      %c160 = arith.constant 160 : index
      %c0_30 = arith.constant 0 : index
      %41 = vector.load %arg4[%c160, %c0_30] : memref<288x64xbf16, #tpu.memory_space<vmem>>, vector<32x64xbf16>
      %cst_31 = arith.constant dense<0.000000e+00> : vector<155x64xf32>
      %42 = tpu.matmul %40, %41, %cst_31 {dimension_numbers = #tpu.dot_dimension_numbers<[1], [0], [0], [1], [0, 0, 1, 1], [], []>} : vector<155x32xbf16>, vector<32x64xbf16>, vector<155x64xf32> -> vector<155x64xf32>
      %43 = arith.addf %38, %42 : vector<155x64xf32>
      %c13 = arith.constant 13 : index
      %c0_32 = arith.constant 0 : index
      %44 = vector.load %arg7[%c13, %c0_32] : memref<676x32xf32, #tpu.memory_space<vmem>>, vector<155x32xf32>
      %45 = arith.truncf %44 : vector<155x32xf32> to vector<155x32xbf16>
      %c192 = arith.constant 192 : index
      %c0_33 = arith.constant 0 : index
      %46 = vector.load %arg4[%c192, %c0_33] : memref<288x64xbf16, #tpu.memory_space<vmem>>, vector<32x64xbf16>
      %cst_34 = arith.constant dense<0.000000e+00> : vector<155x64xf32>
      %47 = tpu.matmul %45, %46, %cst_34 {dimension_numbers = #tpu.dot_dimension_numbers<[1], [0], [0], [1], [0, 0, 1, 1], [], []>} : vector<155x32xbf16>, vector<32x64xbf16>, vector<155x64xf32> -> vector<155x64xf32>
      %48 = arith.addf %43, %47 : vector<155x64xf32>
      %c182 = arith.constant 182 : index
      %c0_35 = arith.constant 0 : index
      %49 = vector.load %arg7[%c182, %c0_35] : memref<676x32xf32, #tpu.memory_space<vmem>>, vector<155x32xf32>
      %50 = arith.truncf %49 : vector<155x32xf32> to vector<155x32xbf16>
      %c224 = arith.constant 224 : index
      %c0_36 = arith.constant 0 : index
      %51 = vector.load %arg4[%c224, %c0_36] : memref<288x64xbf16, #tpu.memory_space<vmem>>, vector<32x64xbf16>
      %cst_37 = arith.constant dense<0.000000e+00> : vector<155x64xf32>
      %52 = tpu.matmul %50, %51, %cst_37 {dimension_numbers = #tpu.dot_dimension_numbers<[1], [0], [0], [1], [0, 0, 1, 1], [], []>} : vector<155x32xbf16>, vector<32x64xbf16>, vector<155x64xf32> -> vector<155x64xf32>
      %53 = arith.addf %48, %52 : vector<155x64xf32>
      %c14 = arith.constant 14 : index
      %c0_38 = arith.constant 0 : index
      %54 = vector.load %arg7[%c14, %c0_38] : memref<676x32xf32, #tpu.memory_space<vmem>>, vector<155x32xf32>
      %55 = arith.truncf %54 : vector<155x32xf32> to vector<155x32xbf16>
      %c256 = arith.constant 256 : index
      %c0_39 = arith.constant 0 : index
      %56 = vector.load %arg4[%c256, %c0_39] : memref<288x64xbf16, #tpu.memory_space<vmem>>, vector<32x64xbf16>
      %cst_40 = arith.constant dense<0.000000e+00> : vector<155x64xf32>
      %57 = tpu.matmul %55, %56, %cst_40 {dimension_numbers = #tpu.dot_dimension_numbers<[1], [0], [0], [1], [0, 0, 1, 1], [], []>} : vector<155x32xbf16>, vector<32x64xbf16>, vector<155x64xf32> -> vector<155x64xf32>
      %58 = arith.addf %53, %57 : vector<155x64xf32>
      %59 = vector.broadcast %2 : vector<1x64xf32> to vector<155x64xf32>
      %60 = arith.addf %58, %59 : vector<155x64xf32>
      %cst_41 = arith.constant 0.000000e+00 : f32
      %61 = vector.broadcast %cst_41 : f32 to vector<155x64xf32>
      %62 = arith.maximumf %60, %61 : vector<155x64xf32>
      %cst_42 = arith.constant 0.000000e+00 : f32
      %63 = vector.broadcast %cst_42 : f32 to vector<155x64xf32>
      %c169_43 = arith.constant 169 : index
      %c0_44 = arith.constant 0 : index
      %64 = vector.load %arg7[%c169_43, %c0_44] : memref<676x32xf32, #tpu.memory_space<vmem>>, vector<155x32xf32>
      %65 = arith.truncf %64 : vector<155x32xf32> to vector<155x32xbf16>
      %c0_45 = arith.constant 0 : index
      %c0_46 = arith.constant 0 : index
      %66 = vector.load %arg4[%c0_45, %c0_46] : memref<288x64xbf16, #tpu.memory_space<vmem>>, vector<32x64xbf16>
      %cst_47 = arith.constant dense<0.000000e+00> : vector<155x64xf32>
      %67 = tpu.matmul %65, %66, %cst_47 {dimension_numbers = #tpu.dot_dimension_numbers<[1], [0], [0], [1], [0, 0, 1, 1], [], []>} : vector<155x32xbf16>, vector<32x64xbf16>, vector<155x64xf32> -> vector<155x64xf32>
      %68 = arith.addf %63, %67 : vector<155x64xf32>
      %c1_48 = arith.constant 1 : index
      %c0_49 = arith.constant 0 : index
      %69 = vector.load %arg7[%c1_48, %c0_49] : memref<676x32xf32, #tpu.memory_space<vmem>>, vector<155x32xf32>
      %70 = arith.truncf %69 : vector<155x32xf32> to vector<155x32xbf16>
      %c32_50 = arith.constant 32 : index
      %c0_51 = arith.constant 0 : index
      %71 = vector.load %arg4[%c32_50, %c0_51] : memref<288x64xbf16, #tpu.memory_space<vmem>>, vector<32x64xbf16>
      %cst_52 = arith.constant dense<0.000000e+00> : vector<155x64xf32>
      %72 = tpu.matmul %70, %71, %cst_52 {dimension_numbers = #tpu.dot_dimension_numbers<[1], [0], [0], [1], [0, 0, 1, 1], [], []>} : vector<155x32xbf16>, vector<32x64xbf16>, vector<155x64xf32> -> vector<155x64xf32>
      %73 = arith.addf %68, %72 : vector<155x64xf32>
      %c170 = arith.constant 170 : index
      %c0_53 = arith.constant 0 : index
      %74 = vector.load %arg7[%c170, %c0_53] : memref<676x32xf32, #tpu.memory_space<vmem>>, vector<155x32xf32>
      %75 = arith.truncf %74 : vector<155x32xf32> to vector<155x32xbf16>
      %c64_54 = arith.constant 64 : index
      %c0_55 = arith.constant 0 : index
      %76 = vector.load %arg4[%c64_54, %c0_55] : memref<288x64xbf16, #tpu.memory_space<vmem>>, vector<32x64xbf16>
      %cst_56 = arith.constant dense<0.000000e+00> : vector<155x64xf32>
      %77 = tpu.matmul %75, %76, %cst_56 {dimension_numbers = #tpu.dot_dimension_numbers<[1], [0], [0], [1], [0, 0, 1, 1], [], []>} : vector<155x32xbf16>, vector<32x64xbf16>, vector<155x64xf32> -> vector<155x64xf32>
      %78 = arith.addf %73, %77 : vector<155x64xf32>
      %c507_57 = arith.constant 507 : index
      %c0_58 = arith.constant 0 : index
      %79 = vector.load %arg7[%c507_57, %c0_58] : memref<676x32xf32, #tpu.memory_space<vmem>>, vector<155x32xf32>
      %80 = arith.truncf %79 : vector<155x32xf32> to vector<155x32xbf16>
      %c96_59 = arith.constant 96 : index
      %c0_60 = arith.constant 0 : index
      %81 = vector.load %arg4[%c96_59, %c0_60] : memref<288x64xbf16, #tpu.memory_space<vmem>>, vector<32x64xbf16>
      %cst_61 = arith.constant dense<0.000000e+00> : vector<155x64xf32>
      %82 = tpu.matmul %80, %81, %cst_61 {dimension_numbers = #tpu.dot_dimension_numbers<[1], [0], [0], [1], [0, 0, 1, 1], [], []>} : vector<155x32xbf16>, vector<32x64xbf16>, vector<155x64xf32> -> vector<155x64xf32>
      %83 = arith.addf %78, %82 : vector<155x64xf32>
      %c339_62 = arith.constant 339 : index
      %c0_63 = arith.constant 0 : index
      %84 = vector.load %arg7[%c339_62, %c0_63] : memref<676x32xf32, #tpu.memory_space<vmem>>, vector<155x32xf32>
      %85 = arith.truncf %84 : vector<155x32xf32> to vector<155x32xbf16>
      %c128_64 = arith.constant 128 : index
      %c0_65 = arith.constant 0 : index
      %86 = vector.load %arg4[%c128_64, %c0_65] : memref<288x64xbf16, #tpu.memory_space<vmem>>, vector<32x64xbf16>
      %cst_66 = arith.constant dense<0.000000e+00> : vector<155x64xf32>
      %87 = tpu.matmul %85, %86, %cst_66 {dimension_numbers = #tpu.dot_dimension_numbers<[1], [0], [0], [1], [0, 0, 1, 1], [], []>} : vector<155x32xbf16>, vector<32x64xbf16>, vector<155x64xf32> -> vector<155x64xf32>
      %88 = arith.addf %83, %87 : vector<155x64xf32>
      %c508 = arith.constant 508 : index
      %c0_67 = arith.constant 0 : index
      %89 = vector.load %arg7[%c508, %c0_67] : memref<676x32xf32, #tpu.memory_space<vmem>>, vector<155x32xf32>
      %90 = arith.truncf %89 : vector<155x32xf32> to vector<155x32xbf16>
      %c160_68 = arith.constant 160 : index
      %c0_69 = arith.constant 0 : index
      %91 = vector.load %arg4[%c160_68, %c0_69] : memref<288x64xbf16, #tpu.memory_space<vmem>>, vector<32x64xbf16>
      %cst_70 = arith.constant dense<0.000000e+00> : vector<155x64xf32>
      %92 = tpu.matmul %90, %91, %cst_70 {dimension_numbers = #tpu.dot_dimension_numbers<[1], [0], [0], [1], [0, 0, 1, 1], [], []>} : vector<155x32xbf16>, vector<32x64xbf16>, vector<155x64xf32> -> vector<155x64xf32>
      %93 = arith.addf %88, %92 : vector<155x64xf32>
      %c182_71 = arith.constant 182 : index
      %c0_72 = arith.constant 0 : index
      %94 = vector.load %arg7[%c182_71, %c0_72] : memref<676x32xf32, #tpu.memory_space<vmem>>, vector<155x32xf32>
      %95 = arith.truncf %94 : vector<155x32xf32> to vector<155x32xbf16>
      %c192_73 = arith.constant 192 : index
      %c0_74 = arith.constant 0 : index
      %96 = vector.load %arg4[%c192_73, %c0_74] : memref<288x64xbf16, #tpu.memory_space<vmem>>, vector<32x64xbf16>
      %cst_75 = arith.constant dense<0.000000e+00> : vector<155x64xf32>
      %97 = tpu.matmul %95, %96, %cst_75 {dimension_numbers = #tpu.dot_dimension_numbers<[1], [0], [0], [1], [0, 0, 1, 1], [], []>} : vector<155x32xbf16>, vector<32x64xbf16>, vector<155x64xf32> -> vector<155x64xf32>
      %98 = arith.addf %93, %97 : vector<155x64xf32>
      %c14_76 = arith.constant 14 : index
      %c0_77 = arith.constant 0 : index
      %99 = vector.load %arg7[%c14_76, %c0_77] : memref<676x32xf32, #tpu.memory_space<vmem>>, vector<155x32xf32>
      %100 = arith.truncf %99 : vector<155x32xf32> to vector<155x32xbf16>
      %c224_78 = arith.constant 224 : index
      %c0_79 = arith.constant 0 : index
      %101 = vector.load %arg4[%c224_78, %c0_79] : memref<288x64xbf16, #tpu.memory_space<vmem>>, vector<32x64xbf16>
      %cst_80 = arith.constant dense<0.000000e+00> : vector<155x64xf32>
      %102 = tpu.matmul %100, %101, %cst_80 {dimension_numbers = #tpu.dot_dimension_numbers<[1], [0], [0], [1], [0, 0, 1, 1], [], []>} : vector<155x32xbf16>, vector<32x64xbf16>, vector<155x64xf32> -> vector<155x64xf32>
      %103 = arith.addf %98, %102 : vector<155x64xf32>
      %c183 = arith.constant 183 : index
      %c0_81 = arith.constant 0 : index
      %104 = vector.load %arg7[%c183, %c0_81] : memref<676x32xf32, #tpu.memory_space<vmem>>, vector<155x32xf32>
      %105 = arith.truncf %104 : vector<155x32xf32> to vector<155x32xbf16>
      %c256_82 = arith.constant 256 : index
      %c0_83 = arith.constant 0 : index
      %106 = vector.load %arg4[%c256_82, %c0_83] : memref<288x64xbf16, #tpu.memory_space<vmem>>, vector<32x64xbf16>
      %cst_84 = arith.constant dense<0.000000e+00> : vector<155x64xf32>
      %107 = tpu.matmul %105, %106, %cst_84 {dimension_numbers = #tpu.dot_dimension_numbers<[1], [0], [0], [1], [0, 0, 1, 1], [], []>} : vector<155x32xbf16>, vector<32x64xbf16>, vector<155x64xf32> -> vector<155x64xf32>
      %108 = arith.addf %103, %107 : vector<155x64xf32>
      %109 = vector.broadcast %2 : vector<1x64xf32> to vector<155x64xf32>
      %110 = arith.addf %108, %109 : vector<155x64xf32>
      %cst_85 = arith.constant 0.000000e+00 : f32
      %111 = vector.broadcast %cst_85 : f32 to vector<155x64xf32>
      %112 = arith.maximumf %110, %111 : vector<155x64xf32>
      %113 = arith.maximumf %62, %112 : vector<155x64xf32>
      %cst_86 = arith.constant 0.000000e+00 : f32
      %114 = vector.broadcast %cst_86 : f32 to vector<155x64xf32>
      %c338_87 = arith.constant 338 : index
      %c0_88 = arith.constant 0 : index
      %115 = vector.load %arg7[%c338_87, %c0_88] : memref<676x32xf32, #tpu.memory_space<vmem>>, vector<155x32xf32>
      %116 = arith.truncf %115 : vector<155x32xf32> to vector<155x32xbf16>
      %c0_89 = arith.constant 0 : index
      %c0_90 = arith.constant 0 : index
      %117 = vector.load %arg4[%c0_89, %c0_90] : memref<288x64xbf16, #tpu.memory_space<vmem>>, vector<32x64xbf16>
      %cst_91 = arith.constant dense<0.000000e+00> : vector<155x64xf32>
      %118 = tpu.matmul %116, %117, %cst_91 {dimension_numbers = #tpu.dot_dimension_numbers<[1], [0], [0], [1], [0, 0, 1, 1], [], []>} : vector<155x32xbf16>, vector<32x64xbf16>, vector<155x64xf32> -> vector<155x64xf32>
      %119 = arith.addf %114, %118 : vector<155x64xf32>
      %c507_92 = arith.constant 507 : index
      %c0_93 = arith.constant 0 : index
      %120 = vector.load %arg7[%c507_92, %c0_93] : memref<676x32xf32, #tpu.memory_space<vmem>>, vector<155x32xf32>
      %121 = arith.truncf %120 : vector<155x32xf32> to vector<155x32xbf16>
      %c32_94 = arith.constant 32 : index
      %c0_95 = arith.constant 0 : index
      %122 = vector.load %arg4[%c32_94, %c0_95] : memref<288x64xbf16, #tpu.memory_space<vmem>>, vector<32x64xbf16>
      %cst_96 = arith.constant dense<0.000000e+00> : vector<155x64xf32>
      %123 = tpu.matmul %121, %122, %cst_96 {dimension_numbers = #tpu.dot_dimension_numbers<[1], [0], [0], [1], [0, 0, 1, 1], [], []>} : vector<155x32xbf16>, vector<32x64xbf16>, vector<155x64xf32> -> vector<155x64xf32>
      %124 = arith.addf %119, %123 : vector<155x64xf32>
      %c339_97 = arith.constant 339 : index
      %c0_98 = arith.constant 0 : index
      %125 = vector.load %arg7[%c339_97, %c0_98] : memref<676x32xf32, #tpu.memory_space<vmem>>, vector<155x32xf32>
      %126 = arith.truncf %125 : vector<155x32xf32> to vector<155x32xbf16>
      %c64_99 = arith.constant 64 : index
      %c0_100 = arith.constant 0 : index
      %127 = vector.load %arg4[%c64_99, %c0_100] : memref<288x64xbf16, #tpu.memory_space<vmem>>, vector<32x64xbf16>
      %cst_101 = arith.constant dense<0.000000e+00> : vector<155x64xf32>
      %128 = tpu.matmul %126, %127, %cst_101 {dimension_numbers = #tpu.dot_dimension_numbers<[1], [0], [0], [1], [0, 0, 1, 1], [], []>} : vector<155x32xbf16>, vector<32x64xbf16>, vector<155x64xf32> -> vector<155x64xf32>
      %129 = arith.addf %124, %128 : vector<155x64xf32>
      %c13_102 = arith.constant 13 : index
      %c0_103 = arith.constant 0 : index
      %130 = vector.load %arg7[%c13_102, %c0_103] : memref<676x32xf32, #tpu.memory_space<vmem>>, vector<155x32xf32>
      %131 = arith.truncf %130 : vector<155x32xf32> to vector<155x32xbf16>
      %c96_104 = arith.constant 96 : index
      %c0_105 = arith.constant 0 : index
      %132 = vector.load %arg4[%c96_104, %c0_105] : memref<288x64xbf16, #tpu.memory_space<vmem>>, vector<32x64xbf16>
      %cst_106 = arith.constant dense<0.000000e+00> : vector<155x64xf32>
      %133 = tpu.matmul %131, %132, %cst_106 {dimension_numbers = #tpu.dot_dimension_numbers<[1], [0], [0], [1], [0, 0, 1, 1], [], []>} : vector<155x32xbf16>, vector<32x64xbf16>, vector<155x64xf32> -> vector<155x64xf32>
      %134 = arith.addf %129, %133 : vector<155x64xf32>
      %c182_107 = arith.constant 182 : index
      %c0_108 = arith.constant 0 : index
      %135 = vector.load %arg7[%c182_107, %c0_108] : memref<676x32xf32, #tpu.memory_space<vmem>>, vector<155x32xf32>
      %136 = arith.truncf %135 : vector<155x32xf32> to vector<155x32xbf16>
      %c128_109 = arith.constant 128 : index
      %c0_110 = arith.constant 0 : index
      %137 = vector.load %arg4[%c128_109, %c0_110] : memref<288x64xbf16, #tpu.memory_space<vmem>>, vector<32x64xbf16>
      %cst_111 = arith.constant dense<0.000000e+00> : vector<155x64xf32>
      %138 = tpu.matmul %136, %137, %cst_111 {dimension_numbers = #tpu.dot_dimension_numbers<[1], [0], [0], [1], [0, 0, 1, 1], [], []>} : vector<155x32xbf16>, vector<32x64xbf16>, vector<155x64xf32> -> vector<155x64xf32>
      %139 = arith.addf %134, %138 : vector<155x64xf32>
      %c14_112 = arith.constant 14 : index
      %c0_113 = arith.constant 0 : index
      %140 = vector.load %arg7[%c14_112, %c0_113] : memref<676x32xf32, #tpu.memory_space<vmem>>, vector<155x32xf32>
      %141 = arith.truncf %140 : vector<155x32xf32> to vector<155x32xbf16>
      %c160_114 = arith.constant 160 : index
      %c0_115 = arith.constant 0 : index
      %142 = vector.load %arg4[%c160_114, %c0_115] : memref<288x64xbf16, #tpu.memory_space<vmem>>, vector<32x64xbf16>
      %cst_116 = arith.constant dense<0.000000e+00> : vector<155x64xf32>
      %143 = tpu.matmul %141, %142, %cst_116 {dimension_numbers = #tpu.dot_dimension_numbers<[1], [0], [0], [1], [0, 0, 1, 1], [], []>} : vector<155x32xbf16>, vector<32x64xbf16>, vector<155x64xf32> -> vector<155x64xf32>
      %144 = arith.addf %139, %143 : vector<155x64xf32>
      %c351 = arith.constant 351 : index
      %c0_117 = arith.constant 0 : index
      %145 = vector.load %arg7[%c351, %c0_117] : memref<676x32xf32, #tpu.memory_space<vmem>>, vector<155x32xf32>
      %146 = arith.truncf %145 : vector<155x32xf32> to vector<155x32xbf16>
      %c192_118 = arith.constant 192 : index
      %c0_119 = arith.constant 0 : index
      %147 = vector.load %arg4[%c192_118, %c0_119] : memref<288x64xbf16, #tpu.memory_space<vmem>>, vector<32x64xbf16>
      %cst_120 = arith.constant dense<0.000000e+00> : vector<155x64xf32>
      %148 = tpu.matmul %146, %147, %cst_120 {dimension_numbers = #tpu.dot_dimension_numbers<[1], [0], [0], [1], [0, 0, 1, 1], [], []>} : vector<155x32xbf16>, vector<32x64xbf16>, vector<155x64xf32> -> vector<155x64xf32>
      %149 = arith.addf %144, %148 : vector<155x64xf32>
      %c520 = arith.constant 520 : index
      %c0_121 = arith.constant 0 : index
      %150 = vector.load %arg7[%c520, %c0_121] : memref<676x32xf32, #tpu.memory_space<vmem>>, vector<155x32xf32>
      %151 = arith.truncf %150 : vector<155x32xf32> to vector<155x32xbf16>
      %c224_122 = arith.constant 224 : index
      %c0_123 = arith.constant 0 : index
      %152 = vector.load %arg4[%c224_122, %c0_123] : memref<288x64xbf16, #tpu.memory_space<vmem>>, vector<32x64xbf16>
      %cst_124 = arith.constant dense<0.000000e+00> : vector<155x64xf32>
      %153 = tpu.matmul %151, %152, %cst_124 {dimension_numbers = #tpu.dot_dimension_numbers<[1], [0], [0], [1], [0, 0, 1, 1], [], []>} : vector<155x32xbf16>, vector<32x64xbf16>, vector<155x64xf32> -> vector<155x64xf32>
      %154 = arith.addf %149, %153 : vector<155x64xf32>
      %c352 = arith.constant 352 : index
      %c0_125 = arith.constant 0 : index
      %155 = vector.load %arg7[%c352, %c0_125] : memref<676x32xf32, #tpu.memory_space<vmem>>, vector<155x32xf32>
      %156 = arith.truncf %155 : vector<155x32xf32> to vector<155x32xbf16>
      %c256_126 = arith.constant 256 : index
      %c0_127 = arith.constant 0 : index
      %157 = vector.load %arg4[%c256_126, %c0_127] : memref<288x64xbf16, #tpu.memory_space<vmem>>, vector<32x64xbf16>
      %cst_128 = arith.constant dense<0.000000e+00> : vector<155x64xf32>
      %158 = tpu.matmul %156, %157, %cst_128 {dimension_numbers = #tpu.dot_dimension_numbers<[1], [0], [0], [1], [0, 0, 1, 1], [], []>} : vector<155x32xbf16>, vector<32x64xbf16>, vector<155x64xf32> -> vector<155x64xf32>
      %159 = arith.addf %154, %158 : vector<155x64xf32>
      %160 = vector.broadcast %2 : vector<1x64xf32> to vector<155x64xf32>
      %161 = arith.addf %159, %160 : vector<155x64xf32>
      %cst_129 = arith.constant 0.000000e+00 : f32
      %162 = vector.broadcast %cst_129 : f32 to vector<155x64xf32>
      %163 = arith.maximumf %161, %162 : vector<155x64xf32>
      %164 = arith.maximumf %113, %163 : vector<155x64xf32>
      %cst_130 = arith.constant 0.000000e+00 : f32
      %165 = vector.broadcast %cst_130 : f32 to vector<155x64xf32>
      %c507_131 = arith.constant 507 : index
      %c0_132 = arith.constant 0 : index
      %166 = vector.load %arg7[%c507_131, %c0_132] : memref<676x32xf32, #tpu.memory_space<vmem>>, vector<155x32xf32>
      %167 = arith.truncf %166 : vector<155x32xf32> to vector<155x32xbf16>
      %c0_133 = arith.constant 0 : index
      %c0_134 = arith.constant 0 : index
      %168 = vector.load %arg4[%c0_133, %c0_134] : memref<288x64xbf16, #tpu.memory_space<vmem>>, vector<32x64xbf16>
      %cst_135 = arith.constant dense<0.000000e+00> : vector<155x64xf32>
      %169 = tpu.matmul %167, %168, %cst_135 {dimension_numbers = #tpu.dot_dimension_numbers<[1], [0], [0], [1], [0, 0, 1, 1], [], []>} : vector<155x32xbf16>, vector<32x64xbf16>, vector<155x64xf32> -> vector<155x64xf32>
      %170 = arith.addf %165, %169 : vector<155x64xf32>
      %c339_136 = arith.constant 339 : index
      %c0_137 = arith.constant 0 : index
      %171 = vector.load %arg7[%c339_136, %c0_137] : memref<676x32xf32, #tpu.memory_space<vmem>>, vector<155x32xf32>
      %172 = arith.truncf %171 : vector<155x32xf32> to vector<155x32xbf16>
      %c32_138 = arith.constant 32 : index
      %c0_139 = arith.constant 0 : index
      %173 = vector.load %arg4[%c32_138, %c0_139] : memref<288x64xbf16, #tpu.memory_space<vmem>>, vector<32x64xbf16>
      %cst_140 = arith.constant dense<0.000000e+00> : vector<155x64xf32>
      %174 = tpu.matmul %172, %173, %cst_140 {dimension_numbers = #tpu.dot_dimension_numbers<[1], [0], [0], [1], [0, 0, 1, 1], [], []>} : vector<155x32xbf16>, vector<32x64xbf16>, vector<155x64xf32> -> vector<155x64xf32>
      %175 = arith.addf %170, %174 : vector<155x64xf32>
      %c508_141 = arith.constant 508 : index
      %c0_142 = arith.constant 0 : index
      %176 = vector.load %arg7[%c508_141, %c0_142] : memref<676x32xf32, #tpu.memory_space<vmem>>, vector<155x32xf32>
      %177 = arith.truncf %176 : vector<155x32xf32> to vector<155x32xbf16>
      %c64_143 = arith.constant 64 : index
      %c0_144 = arith.constant 0 : index
      %178 = vector.load %arg4[%c64_143, %c0_144] : memref<288x64xbf16, #tpu.memory_space<vmem>>, vector<32x64xbf16>
      %cst_145 = arith.constant dense<0.000000e+00> : vector<155x64xf32>
      %179 = tpu.matmul %177, %178, %cst_145 {dimension_numbers = #tpu.dot_dimension_numbers<[1], [0], [0], [1], [0, 0, 1, 1], [], []>} : vector<155x32xbf16>, vector<32x64xbf16>, vector<155x64xf32> -> vector<155x64xf32>
      %180 = arith.addf %175, %179 : vector<155x64xf32>
      %c182_146 = arith.constant 182 : index
      %c0_147 = arith.constant 0 : index
      %181 = vector.load %arg7[%c182_146, %c0_147] : memref<676x32xf32, #tpu.memory_space<vmem>>, vector<155x32xf32>
      %182 = arith.truncf %181 : vector<155x32xf32> to vector<155x32xbf16>
      %c96_148 = arith.constant 96 : index
      %c0_149 = arith.constant 0 : index
      %183 = vector.load %arg4[%c96_148, %c0_149] : memref<288x64xbf16, #tpu.memory_space<vmem>>, vector<32x64xbf16>
      %cst_150 = arith.constant dense<0.000000e+00> : vector<155x64xf32>
      %184 = tpu.matmul %182, %183, %cst_150 {dimension_numbers = #tpu.dot_dimension_numbers<[1], [0], [0], [1], [0, 0, 1, 1], [], []>} : vector<155x32xbf16>, vector<32x64xbf16>, vector<155x64xf32> -> vector<155x64xf32>
      %185 = arith.addf %180, %184 : vector<155x64xf32>
      %c14_151 = arith.constant 14 : index
      %c0_152 = arith.constant 0 : index
      %186 = vector.load %arg7[%c14_151, %c0_152] : memref<676x32xf32, #tpu.memory_space<vmem>>, vector<155x32xf32>
      %187 = arith.truncf %186 : vector<155x32xf32> to vector<155x32xbf16>
      %c128_153 = arith.constant 128 : index
      %c0_154 = arith.constant 0 : index
      %188 = vector.load %arg4[%c128_153, %c0_154] : memref<288x64xbf16, #tpu.memory_space<vmem>>, vector<32x64xbf16>
      %cst_155 = arith.constant dense<0.000000e+00> : vector<155x64xf32>
      %189 = tpu.matmul %187, %188, %cst_155 {dimension_numbers = #tpu.dot_dimension_numbers<[1], [0], [0], [1], [0, 0, 1, 1], [], []>} : vector<155x32xbf16>, vector<32x64xbf16>, vector<155x64xf32> -> vector<155x64xf32>
      %190 = arith.addf %185, %189 : vector<155x64xf32>
      %c183_156 = arith.constant 183 : index
      %c0_157 = arith.constant 0 : index
      %191 = vector.load %arg7[%c183_156, %c0_157] : memref<676x32xf32, #tpu.memory_space<vmem>>, vector<155x32xf32>
      %192 = arith.truncf %191 : vector<155x32xf32> to vector<155x32xbf16>
      %c160_158 = arith.constant 160 : index
      %c0_159 = arith.constant 0 : index
      %193 = vector.load %arg4[%c160_158, %c0_159] : memref<288x64xbf16, #tpu.memory_space<vmem>>, vector<32x64xbf16>
      %cst_160 = arith.constant dense<0.000000e+00> : vector<155x64xf32>
      %194 = tpu.matmul %192, %193, %cst_160 {dimension_numbers = #tpu.dot_dimension_numbers<[1], [0], [0], [1], [0, 0, 1, 1], [], []>} : vector<155x32xbf16>, vector<32x64xbf16>, vector<155x64xf32> -> vector<155x64xf32>
      %195 = arith.addf %190, %194 : vector<155x64xf32>
      %c520_161 = arith.constant 520 : index
      %c0_162 = arith.constant 0 : index
      %196 = vector.load %arg7[%c520_161, %c0_162] : memref<676x32xf32, #tpu.memory_space<vmem>>, vector<155x32xf32>
      %197 = arith.truncf %196 : vector<155x32xf32> to vector<155x32xbf16>
      %c192_163 = arith.constant 192 : index
      %c0_164 = arith.constant 0 : index
      %198 = vector.load %arg4[%c192_163, %c0_164] : memref<288x64xbf16, #tpu.memory_space<vmem>>, vector<32x64xbf16>
      %cst_165 = arith.constant dense<0.000000e+00> : vector<155x64xf32>
      %199 = tpu.matmul %197, %198, %cst_165 {dimension_numbers = #tpu.dot_dimension_numbers<[1], [0], [0], [1], [0, 0, 1, 1], [], []>} : vector<155x32xbf16>, vector<32x64xbf16>, vector<155x64xf32> -> vector<155x64xf32>
      %200 = arith.addf %195, %199 : vector<155x64xf32>
      %c352_166 = arith.constant 352 : index
      %c0_167 = arith.constant 0 : index
      %201 = vector.load %arg7[%c352_166, %c0_167] : memref<676x32xf32, #tpu.memory_space<vmem>>, vector<155x32xf32>
      %202 = arith.truncf %201 : vector<155x32xf32> to vector<155x32xbf16>
      %c224_168 = arith.constant 224 : index
      %c0_169 = arith.constant 0 : index
      %203 = vector.load %arg4[%c224_168, %c0_169] : memref<288x64xbf16, #tpu.memory_space<vmem>>, vector<32x64xbf16>
      %cst_170 = arith.constant dense<0.000000e+00> : vector<155x64xf32>
      %204 = tpu.matmul %202, %203, %cst_170 {dimension_numbers = #tpu.dot_dimension_numbers<[1], [0], [0], [1], [0, 0, 1, 1], [], []>} : vector<155x32xbf16>, vector<32x64xbf16>, vector<155x64xf32> -> vector<155x64xf32>
      %205 = arith.addf %200, %204 : vector<155x64xf32>
      %c521 = arith.constant 521 : index
      %c0_171 = arith.constant 0 : index
      %206 = vector.load %arg7[%c521, %c0_171] : memref<676x32xf32, #tpu.memory_space<vmem>>, vector<155x32xf32>
      %207 = arith.truncf %206 : vector<155x32xf32> to vector<155x32xbf16>
      %c256_172 = arith.constant 256 : index
      %c0_173 = arith.constant 0 : index
      %208 = vector.load %arg4[%c256_172, %c0_173] : memref<288x64xbf16, #tpu.memory_space<vmem>>, vector<32x64xbf16>
      %cst_174 = arith.constant dense<0.000000e+00> : vector<155x64xf32>
      %209 = tpu.matmul %207, %208, %cst_174 {dimension_numbers = #tpu.dot_dimension_numbers<[1], [0], [0], [1], [0, 0, 1, 1], [], []>} : vector<155x32xbf16>, vector<32x64xbf16>, vector<155x64xf32> -> vector<155x64xf32>
      %210 = arith.addf %205, %209 : vector<155x64xf32>
      %211 = vector.broadcast %2 : vector<1x64xf32> to vector<155x64xf32>
      %212 = arith.addf %210, %211 : vector<155x64xf32>
      %cst_175 = arith.constant 0.000000e+00 : f32
      %213 = vector.broadcast %cst_175 : f32 to vector<155x64xf32>
      %214 = arith.maximumf %212, %213 : vector<155x64xf32>
      %215 = arith.maximumf %164, %214 : vector<155x64xf32>
      %216 = arith.truncf %215 : vector<155x64xf32> to vector<155x64xbf16>
      %217 = arith.index_cast %arg8 : i32 to index
      %c0_176 = arith.constant 0 : index
      %c0_177 = arith.constant 0 : index
      %218 = vector.load %arg6[%217, %c0_176, %c0_177] : memref<2x155x64xbf16, #tpu.memory_space<vmem>>, vector<1x155x64xbf16>
      %219 = vector.shape_cast %218 : vector<1x155x64xbf16> to vector<155x64xbf16>
      %220 = vector.shape_cast %216 : vector<155x64xbf16> to vector<1x155x64xbf16>
      tpu.vector_store %arg6[%217, %c0_176, %c0_177], %220 {strides = array<i32>} : memref<2x155x64xbf16, #tpu.memory_space<vmem>>, vector<1x155x64xbf16>,
    }
    %c2_i32_5 = arith.constant 2 : i32
    return
  }
  func.func @transform_0(%arg0: i32) -> (i32, i32, i32) {
    %c0_i32 = arith.constant 0 : i32
    %c0_i32_0 = arith.constant 0 : i32
    %c0_i32_1 = arith.constant 0 : i32
    return %arg0, %c0_i32, %c0_i32_0 : i32, i32, i32
  }
  func.func @transform_1(%arg0: i32) -> (i32, i32) {
    %c0_i32 = arith.constant 0 : i32
    %c0_i32_0 = arith.constant 0 : i32
    %c0_i32_1 = arith.constant 0 : i32
    return %c0_i32, %c0_i32_0 : i32, i32
  }
  func.func @transform_2(%arg0: i32) -> (i32, i32) {
    %c0_i32 = arith.constant 0 : i32
    %c0_i32_0 = arith.constant 0 : i32
    %c0_i32_1 = arith.constant 0 : i32
    return %c0_i32, %c0_i32_0 : i32, i32
  }
  func.func @transform_3(%arg0: i32) -> (i32, i32) {
    %c0_i32 = arith.constant 0 : i32
    %c0_i32_0 = arith.constant 0 : i32
    %c0_i32_1 = arith.constant 0 : i32
    return %c0_i32, %c0_i32_0 : i32, i32
  }
  func.func @transform_4(%arg0: i32) -> (i32, i32) {
    %c0_i32 = arith.constant 0 : i32
    %c0_i32_0 = arith.constant 0 : i32
    %c0_i32_1 = arith.constant 0 : i32
    return %c0_i32, %c0_i32_0 : i32, i32
  }
  func.func @transform_5(%arg0: i32) -> (i32, i32, i32) {
    %c0_i32 = arith.constant 0 : i32
    %c0_i32_0 = arith.constant 0 : i32
    %c0_i32_1 = arith.constant 0 : i32
    return %arg0, %c0_i32, %c0_i32_0 : i32, i32, i32
  }
}

module attributes {stable_mosaic.version = 11 : i64} {
  func.func @_fc_head_kernel(%arg0: i32, %arg1: memref<2x9920xbf16, #tpu.memory_space<vmem>>, %arg2: memref<9920x128xbf16, #tpu.memory_space<vmem>>, %arg3: memref<1x128xf32, #tpu.memory_space<vmem>>, %arg4: memref<128x10xbf16, #tpu.memory_space<vmem>>, %arg5: memref<1x10xf32, #tpu.memory_space<vmem>>, %arg6: memref<2x10xf32, #tpu.memory_space<vmem>>) attributes {dimension_semantics = [#tpu.dimension_semantics<parallel>], iteration_bounds = array<i64: 1>, scalar_prefetch = 0 : i64, scratch_operands = 0 : i64, tpu.core_type = #tpu.core_type<tc>, window_params = [{transform_indices = @transform_0, window_bounds = array<i64: 2, 9920>}, {pipeline_mode = #tpu.pipeline_mode<synchronous>, transform_indices = @transform_1, window_bounds = array<i64: 9920, 128>}, {pipeline_mode = #tpu.pipeline_mode<synchronous>, transform_indices = @transform_2, window_bounds = array<i64: 1, 128>}, {pipeline_mode = #tpu.pipeline_mode<synchronous>, transform_indices = @transform_3, window_bounds = array<i64: 128, 10>}, {pipeline_mode = #tpu.pipeline_mode<synchronous>, transform_indices = @transform_4, window_bounds = array<i64: 1, 10>}, {transform_indices = @transform_5, window_bounds = array<i64: 2, 10>}]} {
    %c0 = arith.constant 0 : index
    %c0_0 = arith.constant 0 : index
    %0 = vector.load %arg1[%c0, %c0_0] : memref<2x9920xbf16, #tpu.memory_space<vmem>>, vector<2x9920xbf16>
    %c0_1 = arith.constant 0 : index
    %c0_2 = arith.constant 0 : index
    %1 = vector.load %arg2[%c0_1, %c0_2] : memref<9920x128xbf16, #tpu.memory_space<vmem>>, vector<9920x128xbf16>
    %cst = arith.constant dense<0.000000e+00> : vector<2x128xf32>
    %2 = tpu.matmul %0, %1, %cst {dimension_numbers = #tpu.dot_dimension_numbers<[1], [0], [0], [1], [0, 0, 1, 1], [], []>} : vector<2x9920xbf16>, vector<9920x128xbf16>, vector<2x128xf32> -> vector<2x128xf32>
    %c0_3 = arith.constant 0 : index
    %c0_4 = arith.constant 0 : index
    %3 = vector.load %arg3[%c0_3, %c0_4] : memref<1x128xf32, #tpu.memory_space<vmem>>, vector<1x128xf32>
    %4 = vector.broadcast %3 : vector<1x128xf32> to vector<2x128xf32>
    %5 = arith.addf %2, %4 : vector<2x128xf32>
    %cst_5 = arith.constant 0.000000e+00 : f32
    %6 = vector.broadcast %cst_5 : f32 to vector<2x128xf32>
    %7 = arith.maximumf %5, %6 : vector<2x128xf32>
    %8 = arith.truncf %7 : vector<2x128xf32> to vector<2x128xbf16>
    %c0_6 = arith.constant 0 : index
    %c0_7 = arith.constant 0 : index
    %9 = vector.load %arg4[%c0_6, %c0_7] : memref<128x10xbf16, #tpu.memory_space<vmem>>, vector<128x10xbf16>
    %cst_8 = arith.constant dense<0.000000e+00> : vector<2x10xf32>
    %10 = tpu.matmul %8, %9, %cst_8 {dimension_numbers = #tpu.dot_dimension_numbers<[1], [0], [0], [1], [0, 0, 1, 1], [], []>} : vector<2x128xbf16>, vector<128x10xbf16>, vector<2x10xf32> -> vector<2x10xf32>
    %c0_9 = arith.constant 0 : index
    %c0_10 = arith.constant 0 : index
    %11 = vector.load %arg5[%c0_9, %c0_10] : memref<1x10xf32, #tpu.memory_space<vmem>>, vector<1x10xf32>
    %12 = vector.broadcast %11 : vector<1x10xf32> to vector<2x10xf32>
    %13 = arith.addf %10, %12 : vector<2x10xf32>
    %cst_11 = arith.constant dense<0xFF800000> : vector<2xf32>
    %14 = vector.multi_reduction <maximumf>, %13, %cst_11 [1] : vector<2x10xf32> to vector<2xf32>
    %15 = vector.shape_cast %14 : vector<2xf32> to vector<2x1xf32>
    %16 = vector.broadcast %15 : vector<2x1xf32> to vector<2x10xf32>
    %17 = arith.subf %13, %16 : vector<2x10xf32>
    %18 = math.exp %17 : vector<2x10xf32>
    %cst_12 = arith.constant dense<0.000000e+00> : vector<2xf32>
    %19 = vector.multi_reduction <add>, %18, %cst_12 [1] : vector<2x10xf32> to vector<2xf32>
    %20 = vector.shape_cast %19 : vector<2xf32> to vector<2x1xf32>
    %21 = math.log %20 : vector<2x1xf32>
    %22 = vector.broadcast %21 : vector<2x1xf32> to vector<2x10xf32>
    %23 = arith.subf %17, %22 : vector<2x10xf32>
    %c0_13 = arith.constant 0 : index
    %c0_14 = arith.constant 0 : index
    %24 = vector.load %arg6[%c0_13, %c0_14] : memref<2x10xf32, #tpu.memory_space<vmem>>, vector<2x10xf32>
    tpu.vector_store %arg6[%c0_13, %c0_14], %23 {strides = array<i32>} : memref<2x10xf32, #tpu.memory_space<vmem>>, vector<2x10xf32>,
    return
  }
  func.func @transform_0(%arg0: i32) -> (i32, i32) {
    %c0_i32 = arith.constant 0 : i32
    %c0_i32_0 = arith.constant 0 : i32
    return %arg0, %c0_i32 : i32, i32
  }
  func.func @transform_1(%arg0: i32) -> (i32, i32) {
    %c0_i32 = arith.constant 0 : i32
    %c0_i32_0 = arith.constant 0 : i32
    %c0_i32_1 = arith.constant 0 : i32
    return %c0_i32, %c0_i32_0 : i32, i32
  }
  func.func @transform_2(%arg0: i32) -> (i32, i32) {
    %c0_i32 = arith.constant 0 : i32
    %c0_i32_0 = arith.constant 0 : i32
    %c0_i32_1 = arith.constant 0 : i32
    return %c0_i32, %c0_i32_0 : i32, i32
  }
  func.func @transform_3(%arg0: i32) -> (i32, i32) {
    %c0_i32 = arith.constant 0 : i32
    %c0_i32_0 = arith.constant 0 : i32
    %c0_i32_1 = arith.constant 0 : i32
    return %c0_i32, %c0_i32_0 : i32, i32
  }
  func.func @transform_4(%arg0: i32) -> (i32, i32) {
    %c0_i32 = arith.constant 0 : i32
    %c0_i32_0 = arith.constant 0 : i32
    %c0_i32_1 = arith.constant 0 : i32
    return %c0_i32, %c0_i32_0 : i32, i32
  }
  func.func @transform_5(%arg0: i32) -> (i32, i32) {
    %c0_i32 = arith.constant 0 : i32
    %c0_i32_0 = arith.constant 0 : i32
    return %arg0, %c0_i32 : i32, i32
  }
}

</mosaic_0001>

<bundles_post_ra>
// kernel: cnn_mnist_forward.2
= control target key start
LH: loop header
LB: loop body
LE: loop exit
PB: predicated region body
PF: predicated region fallthrough
CT: control target
= control target key end

     0   :  { %10 = vsyncpa [#allocation4], 0  ;;  %s11828_s0 = inlined_call_operand.vmem [shape: bf16[2,676,9], index: 0, kind: input, shape index: {}]   ;;  %s11829_s1 = inlined_call_operand.hbm [shape: bf16[9,32], index: 1, kind: input, shape index: {}]   ;;  %s11830_s2 = inlined_call_operand.hbm [shape: f32[1,32], index: 2, kind: input, shape index: {}]   ;;  %s11831_s3 = inlined_call_operand.vmem [shape: bf16[288,64], index: 3, kind: input, shape index: {}]   ;;  %s11832_s4 = inlined_call_operand.hbm [shape: f32[1,64], index: 4, kind: input, shape index: {}]   ;;  %s11833_s5 = inlined_call_operand.vmem [shape: bf16[2,155,64], index: 5, kind: output, shape index: {}]  }
   0x1   :  { %11 = vsyncpa [#allocation6], 0  ;;  %s9986_s18 = smov [#allocation5]   ;;  %s9987_s20 = smov [#allocation3]  }
   0x2   :  { %s32_s19 = sshll.u32 %s9986_s18, 4  ;;  %s19_s21 = sshll.u32 %s9987_s20, 4  ;;  %s33_s19 = int_to_ptr.vmem [resolvable:$true] %s32_s19  ;;  %s10024_s21 = int_to_ptr.vmem [resolvable:$true] %s19_s21 }
   0x3   :  { %s9908_s24 = scalar_lea.hbm %s11830_s2, 16 }
   0x4   :  { %p9909_p0 = scmp.ne.s32.totalorder %s11830_s2, %s9908_s24  ;;  %p9912_p1 = scmp.lt.u32.totalorder %s9908_s24, %s11830_s2 }
   0x6   :  { %p9914_p2 = pnand %p9912_p1, %p9909_p0 }
   0x8   :  { %9917 = shalt.err (!%p9914_p2)
}
   0x9   :  { %s9918_s29 = scalar_lea.vmem %s33_s19, 16  ;;  %s9922_s30 = scalar_lea.vmem %s33_s19, 32 }
   0xa   :  { %p9919_p3 = scmp.ne.s32.totalorder %s33_s19, %s9918_s29  ;;  %p9923_p4 = scmp.lt.s32.totalorder %s33_s19, %s33_s19 }
   0xb   :  { %p9924_p5 = scmp.lt.s32.totalorder %s9922_s30, %s9918_s29 }
   0xd   :  { %p9925_p6 = por %p9924_p5, %p9923_p4 }
   0xf   :  { %p9926_p7 = pnand %p9925_p6, %p9919_p3 }
  0x11   :  { %9929 = shalt.err (!%p9926_p7)
}
  0x12   :  { %35 = dma.hbm_to_vmem [thread:$0]  %s11830_s2, 16, %s33_s19, [#allocation6]  }
  0x13   :  { %s9930_s10 = scalar_lea.hbm %s11829_s1, 128 }
  0x14   :  { %p9931_p8 = scmp.ne.s32.totalorder %s11829_s1, %s9930_s10  ;;  %p9934_p9 = scmp.lt.u32.totalorder %s9930_s10, %s11829_s1 }
  0x16   :  { %p9936_p10 = pnand %p9934_p9, %p9931_p8 }
  0x18   :  { %9939 = shalt.err (!%p9936_p10)
}
  0x19   :  { %s9940_s15 = scalar_lea.vmem %s10024_s21, 128  ;;  %p9945_p12 = scmp.lt.s32.totalorder %s10024_s21, %s10024_s21 }
  0x1a   :  { %p9941_p11 = scmp.ne.s32.totalorder %s10024_s21, %s9940_s15  ;;  %p9946_p13 = scmp.lt.s32.totalorder %s9940_s15, %s9940_s15 }
  0x1c   :  { %p9947_p0 = por %p9946_p13, %p9945_p12 }
  0x1e   :  { %p9948_p1 = pnand %p9947_p0, %p9941_p11 }
  0x20   :  { %9951 = shalt.err (!%p9948_p1)
}
  0x21   :  { %s9988_s2 = smov 64   ;;  %s9989_s16 = smov 4  }
  0x22   :  { %25 = dma.hbm_to_vmem [thread:$0]  %s11829_s1, 128, %s10024_s21, [#allocation4], %s9988_s2, %s9988_s2, %s9989_s16  }
  0x23   :  { %s9990_s19 = smov [#allocation7]   ;;  %s9952_s24 = scalar_lea.hbm %s11832_s4, 16 }
  0x24   :  { %s44_s20 = sshll.u32 %s9990_s19, 4  ;;  %p9953_p2 = scmp.ne.s32.totalorder %s11832_s4, %s9952_s24  ;;  %s45_s20 = int_to_ptr.vmem [resolvable:$true] %s44_s20 }
  0x25   :  { %p9956_p3 = scmp.lt.u32.totalorder %s9952_s24, %s11832_s4 }
  0x27   :  { %p9958_p4 = pnand %p9956_p3, %p9953_p2 }
  0x29   :  { %9961 = shalt.err (!%p9958_p4)
}
  0x2a   :  { %s9962_s29 = scalar_lea.vmem %s45_s20, 16  ;;  %s9966_s1 = scalar_lea.vmem %s45_s20, 32 }
  0x2b   :  { %p9963_p5 = scmp.ne.s32.totalorder %s45_s20, %s9962_s29  ;;  %p9967_p6 = scmp.lt.s32.totalorder %s45_s20, %s45_s20 }
  0x2c   :  { %p9968_p7 = scmp.lt.s32.totalorder %s9966_s1, %s9962_s29 }
  0x2e   :  { %p9969_p8 = por %p9968_p7, %p9967_p6 }
  0x30   :  { %p9970_p9 = pnand %p9969_p8, %p9963_p5 }
  0x32   :  { %9973 = shalt.err (!%p9970_p9)
}
  0x33   :  { %47 = dma.hbm_to_vmem [thread:$0]  %s11832_s4, 16, %s45_s20, [#allocation6]  }
  0x34   :  { %9978 = dma.done.wait [#allocation4], 128  }
  0x35   :  { %9979 = vsyncadd [#allocation4], 4294967168 }
  0x36   :  { %9980 = dma.done.wait [#allocation6], 32  }
  0x37   :  { %9981 = vsyncadd [#allocation6], 4294967264  ;;  %v10067_v0 = vld [vmem:[#allocation3] sm:$0xf]  ;;  %v10069_v1 = vld [vmem:[#allocation3 + $0x4] sm:$0x1] }
  0x38   :  { %11873 = vst [vmem:[#allocation10_spill] sm:$0xff] %v10067_v0  ;;  %11874 = vst [vmem:[#allocation11_spill] sm:$0xff] %v10069_v1  ;;  %v10071_v2 = vld [vmem:[#allocation5] ss:$0 sm:$0xff]  ;;  %v10073_v3 = vld [vmem:[#allocation7] ss:$0 sm:$0xff] }
  0x39   :  { %11875 = vst [vmem:[#allocation12_spill] sm:$0xff] %v10071_v2  ;;  %11876 = vst [vmem:[#allocation13_spill] sm:$0xff] %v10073_v3  ;;  %s10075_s6 = smov 0  }
  0x3a LB: > { %vm510_vm0 = vcmask 1043456   ;;  %vm511_vm1 = vcmask 1044480   ;;  %v9991_v5 = vmov 0.0   ;;  %v9992_v6 = vmov 65535   ;;  %s7636_s4 = smul.u32 340, %s9984_s6  ;;  %v9864_v21 = vld [vmem:[%s11831_s3 + $0x10] sm:$0xff]   ;;  %s9984_s6 = sphi %s10075_s6, %s67_s6  }
  0x3b   : > { %8134 = vmatprep.subr.bf16.mxu0 %v9991_v5  ;;  %9172 = vmatprep.subr.bf16.mxu1 %v9991_v5  ;;  %v512_v7 = vsel %vm510_vm0, 4294967295, %v9992_v6  ;;  %vm9993_vm2 = vmmov 0   ;;  %vm380_vm3 = vcmask 72704   ;;  %v9872_v39 = vld [vmem:[%s11831_s3 + $0x18] sm:$0xff]   ;;  %v10271_v55 = vld [vmem:[%s11831_s3] sm:$0xff]   ;;  %vm978_vm4 = vcmask 261120  }
  0x3c   : > { %8136 = vmatprep.mubr.msk.bf16.mxu0 %vm9993_vm2, %v9991_v5  ;;  %8224 = vmatprep.mubr.msk.bf16.mxu1 %vm9993_vm2, %v9991_v5  ;;  %v513_v8 = vsel %vm511_vm1, %v512_v7, 0  ;;  %s10092_s9 = scalar_lea.vmem %s11828_s0, %s7636_s4  ;;  %vm1063_vm5 = vcmask 257024   ;;  %s7657_s26 = smul.u32 80, %s9984_s6  ;;  %vm7106_vm6 = vcmask 519168   ;;  %vm7126_vm7 = vcmask 517120  }
  0x3d   : > { %v9830_v10 = vld [vmem:[%s10092_s9] sm:$0xff]   ;;  %v9831_v11 = vld [vmem:[%s10092_s9 + $0x8] sm:$0xff]   ;;  %v9842_v12 = vld [vmem:[%s10092_s9 + $0xb0] sm:$0xff]   ;;  %vm7127_vm8 = vsmask.f32 1280  ;;  %s67_s6 = sadd.s32 1, %s9984_s6  }
  0x3e   : > { %v9832_v13 = vld [vmem:[%s10092_s9 + $0x10] sm:$0xff]   ;;  %v9844_v14 = vld [vmem:[%s10092_s9 + $0xb8] sm:$0xff]   ;;  %v9846_v16 = vld [vmem:[%s10092_s9 + $0xc0] sm:$0xff]   ;;  %s11722_s29 = scalar_lea.vmem %s11833_s5, %s7657_s26  ;;  %p64_p10 = scmp.ge.s32.totalorder %s67_s6, 2  }
  0x3f   : > { %v11878_v1 = vld [vmem:[#allocation11_spill] sm:$0xff]  ;;  %v11879_v0 = vld [vmem:[#allocation10_spill] sm:$0xff]  ;;  %v9848_v18 = vld [vmem:[%s10092_s9 + $0xc8] sm:$0xff]  }
  0x40   : > { %v11877_v2 = vld [vmem:[#allocation12_spill] sm:$0xff]  ;;  %v7192_v4 = vcombine.low %v11879_v0, %v11878_v1  ;;  %v9833_v15 = vld [vmem:[%s10092_s9 + $0x18] sm:$0xff]   ;;  %v9850_v20 = vld [vmem:[%s10092_s9 + $0xd0] sm:$0xff]  }
  0x41   : > { %v9834_v17 = vld [vmem:[%s10092_s9 + $0x20] sm:$0xff]   ;;  %v9835_v19 = vld [vmem:[%s10092_s9 + $0x28] sm:$0xff]   ;;  %v9836_v22 = vld [vmem:[%s10092_s9 + $0x30] sm:$0xff]  }
  0x42   : > { %v515_v9 = vand.u32 %v7192_v4, %v513_v8  ;;  %v9852_v23 = vld [vmem:[%s10092_s9 + $0xd8] sm:$0xff]   ;;  %v9854_v25 = vld [vmem:[%s10092_s9 + $0xe0] sm:$0xff]   ;;  %v9856_v27 = vld [vmem:[%s10092_s9 + $0xe8] sm:$0xff]  }
  0x43   : > { %v9837_v24 = vld [vmem:[%s10092_s9 + $0x38] sm:$0xff]   ;;  %v9838_v26 = vld [vmem:[%s10092_s9 + $0x40] sm:$0xff]   ;;  %v9839_v28 = vld [vmem:[%s10092_s9 + $0x48] sm:$0xff]  }
  0x44   : > { %8135 = vmatpush3.bf16.msra.mxu0 %v515_v9  ;;  %9173 = vmatpush3.bf16.msra.mxu1 %v515_v9  ;;  %v9858_v29 = vld [vmem:[%s10092_s9 + $0xf0] sm:$0xff]   ;;  %v9860_v31 = vld [vmem:[%s10092_s9 + $0xf8] sm:$0xff]   ;;  %v9862_v33 = vld [vmem:[%s10092_s9 + $0x100] sm:$0xff]  }
  0x45   : > { %8524 = vmatprep.subr.bf16.mxu0 %v9864_v21  ;;  %8308 = vmatprep.subr.bf16.mxu1 %v9864_v21  ;;  %v9840_v30 = vld [vmem:[%s10092_s9 + $0x50] sm:$0xff]   ;;  %v9841_v32 = vld [vmem:[%s10092_s9 + $0x58] sm:$0xff]   ;;  %v9843_v34 = vld [vmem:[%s10092_s9 + $0x60] sm:$0xff]  }
  0x46   : > { %v9863_v35 = vld [vmem:[%s10092_s9 + $0x108] sm:$0xff]   ;;  %v9865_v37 = vld [vmem:[%s10092_s9 + $0x110] sm:$0xff]   ;;  %v9866_v40 = vld [vmem:[%s10092_s9 + $0x118] sm:$0xff]  }
  0x47   : > { %8137 = vmatmul.mubr.msk.bf16.vlgmr.msra.gmra.mrb[0].mxu0 %vm380_vm3, %v9830_v10  ;;  %8225 = vmatmul.mubr.msk.bf16.vlgmr.msra.gmra.mrb[0].mxu1 %vm380_vm3, %v9842_v12  ;;  %v9845_v36 = vld [vmem:[%s10092_s9 + $0x68] sm:$0xff]   ;;  %v9847_v38 = vld [vmem:[%s10092_s9 + $0x70] sm:$0xff]   ;;  %v9849_v41 = vld [vmem:[%s10092_s9 + $0x78] sm:$0xff]  }
  0x48   : > { %8140 = vmatprep.mubr.msk.bf16.mxu0 %vm9993_vm2, %v9991_v5  ;;  %8228 = vmatprep.mubr.msk.bf16.mxu1 %vm9993_vm2, %v9991_v5  ;;  %v9867_v42 = vld [vmem:[%s10092_s9 + $0x120] sm:$0xff]   ;;  %v9868_v44 = vld [vmem:[%s10092_s9 + $0x128] sm:$0xff]   ;;  %v9869_v46 = vld [vmem:[%s10092_s9 + $0x130] sm:$0xff]  }
  0x49   : > { %8525 = vmatpush3.bf16.msra.mxu0 %v9864_v21  ;;  %8309 = vmatpush3.bf16.msra.mxu1 %v9864_v21  ;;  %v9851_v43 = vld [vmem:[%s10092_s9 + $0x80] sm:$0xff]   ;;  %v9853_v45 = vld [vmem:[%s10092_s9 + $0x88] sm:$0xff]   ;;  %v9855_v47 = vld [vmem:[%s10092_s9 + $0x90] sm:$0xff]  }
  0x4a   : > { %8526 = vmatprep.subr.bf16.mxu0 %v9872_v39  ;;  %8310 = vmatprep.subr.bf16.mxu1 %v9872_v39  ;;  %v9870_v48 = vld [vmem:[%s10092_s9 + $0x138] sm:$0xff]   ;;  %v9871_v50 = vld [vmem:[%s10092_s9 + $0x140] sm:$0xff]   ;;  %v9873_v52 = vld [vmem:[%s10092_s9 + $0x148] sm:$0xff]  }
  0x4b   : > { %v9857_v49 = vld [vmem:[%s10092_s9 + $0x98] sm:$0xff]   ;;  %v9859_v51 = vld [vmem:[%s10092_s9 + $0xa0] sm:$0xff]   ;;  %v9861_v53 = vld [vmem:[%s10092_s9 + $0xa8] sm:$0xff]  }
  0x4c   : > { %v9874_v54 = vld [vmem:[%s10092_s9 + $0x150] ss:$0 sps:$4 sm:$0x33]   ;;  %vm7128_vm9 = vmand %vm7126_vm7, %vm7127_vm8 }
  0x4d   : > { %8527 = vmatpush3.bf16.msra.mxu0 %v9872_v39  ;;  %8311 = vmatpush3.bf16.msra.mxu1 %v9872_v39 }
  0x4e   : > { %8548 = vmatprep.subr.bf16.mxu0 %v10271_v55  ;;  %8332 = vmatprep.subr.bf16.mxu1 %v10271_v55 }
  0x4f   : > { %8141 = vmatmul.mubr.msk.bf16.gmra.mrb[4].mxu0 %vm380_vm3, %v9831_v11  ;;  %8229 = vmatmul.mubr.msk.bf16.gmra.mrb[4].mxu1 %vm380_vm3, %v9844_v14 }
  0x50   : > { %8144 = vmatprep.mubr.msk.bf16.mxu0 %vm9993_vm2, %v9991_v5  ;;  %8232 = vmatprep.mubr.msk.bf16.mxu1 %vm9993_vm2, %v9991_v5 }
  0x57   : > { %8145 = vmatmul.mubr.msk.bf16.gmra.mrb[8].mxu0 %vm380_vm3, %v9832_v13  ;;  %8233 = vmatmul.mubr.msk.bf16.gmra.mrb[8].mxu1 %vm380_vm3, %v9846_v16 }
  0x58   : > { %8148 = vmatprep.mubr.msk.bf16.mxu0 %vm9993_vm2, %v9991_v5  ;;  %8236 = vmatprep.mubr.msk.bf16.mxu1 %vm9993_vm2, %v9991_v5 }
  0x5f   : > { %8149 = vmatmul.mubr.msk.bf16.gmra.mrb[12].mxu0 %vm380_vm3, %v9833_v15  ;;  %8237 = vmatmul.mubr.msk.bf16.gmra.mrb[12].mxu1 %vm380_vm3, %v9848_v18 }
  0x60   : > { %8152 = vmatprep.mubr.msk.bf16.mxu0 %vm9993_vm2, %v9991_v5  ;;  %8240 = vmatprep.mubr.msk.bf16.mxu1 %vm9993_vm2, %v9991_v5 }
  0x67   : > { %8153 = vmatmul.mubr.msk.bf16.gmra.mrb[16].mxu0 %vm380_vm3, %v9834_v17  ;;  %8241 = vmatmul.mubr.msk.bf16.gmra.mrb[16].mxu1 %vm380_vm3, %v9850_v20 }
  0x68   : > { %8156 = vmatprep.mubr.msk.bf16.mxu0 %vm9993_vm2, %v9991_v5  ;;  %8244 = vmatprep.mubr.msk.bf16.mxu1 %vm9993_vm2, %v9991_v5 }
  0x6f   : > { %8157 = vmatmul.mubr.msk.bf16.gmra.mrb[20].mxu0 %vm380_vm3, %v9835_v19  ;;  %8245 = vmatmul.mubr.msk.bf16.gmra.mrb[20].mxu1 %vm380_vm3, %v9852_v23 }
  0x70   : > { %8160 = vmatprep.mubr.msk.bf16.mxu0 %vm9993_vm2, %v9991_v5  ;;  %8248 = vmatprep.mubr.msk.bf16.mxu1 %vm9993_vm2, %v9991_v5 }
  0x77   : > { %8161 = vmatmul.mubr.msk.bf16.gmra.mrb[24].mxu0 %vm380_vm3, %v9836_v22  ;;  %8249 = vmatmul.mubr.msk.bf16.gmra.mrb[24].mxu1 %vm380_vm3, %v9854_v25 }
  0x78   : > { %8164 = vmatprep.mubr.msk.bf16.mxu0 %vm9993_vm2, %v9991_v5  ;;  %8252 = vmatprep.mubr.msk.bf16.mxu1 %vm9993_vm2, %v9991_v5 }
  0x7f   : > { %8165 = vmatmul.mubr.msk.bf16.gmra.mrb[28].mxu0 %vm380_vm3, %v9837_v24  ;;  %8253 = vmatmul.mubr.msk.bf16.gmra.mrb[28].mxu1 %vm380_vm3, %v9856_v27 }
  0x80   : > { %8168 = vmatprep.mubr.msk.bf16.mxu0 %vm9993_vm2, %v9991_v5  ;;  %8256 = vmatprep.mubr.msk.bf16.mxu1 %vm9993_vm2, %v9991_v5 }
  0x87   : > { %8169 = vmatmul.mubr.msk.bf16.gmra.mrb[32].mxu0 %vm380_vm3, %v9838_v26  ;;  %8257 = vmatmul.mubr.msk.bf16.gmra.mrb[32].mxu1 %vm380_vm3, %v9858_v29 }
  0x88   : > { %8172 = vmatprep.mubr.msk.bf16.mxu0 %vm9993_vm2, %v9991_v5  ;;  %8260 = vmatprep.mubr.msk.bf16.mxu1 %vm9993_vm2, %v9991_v5 }
  0x8f   : > { %8173 = vmatmul.mubr.msk.bf16.gmra.mrb[36].mxu0 %vm380_vm3, %v9839_v28  ;;  %8261 = vmatmul.mubr.msk.bf16.gmra.mrb[36].mxu1 %vm380_vm3, %v9860_v31 }
  0x90   : > { %8176 = vmatprep.mubr.msk.bf16.mxu0 %vm9993_vm2, %v9991_v5  ;;  %8264 = vmatprep.mubr.msk.bf16.mxu1 %vm9993_vm2, %v9991_v5 }
  0x97   : > { %8177 = vmatmul.mubr.msk.bf16.gmra.mrb[40].mxu0 %vm380_vm3, %v9840_v30  ;;  %8265 = vmatmul.mubr.msk.bf16.gmra.mrb[40].mxu1 %vm380_vm3, %v9862_v33 }
  0x98   : > { %8180 = vmatprep.mubr.msk.bf16.mxu0 %vm9993_vm2, %v9991_v5  ;;  %8268 = vmatprep.mubr.msk.bf16.mxu1 %vm9993_vm2, %v9991_v5 }
  0x9f   : > { %8181 = vmatmul.mubr.msk.bf16.gmra.mrb[44].mxu0 %vm380_vm3, %v9841_v32  ;;  %8269 = vmatmul.mubr.msk.bf16.gmra.mrb[44].mxu1 %vm380_vm3, %v9863_v35 }
  0xa0   : > { %8184 = vmatprep.mubr.msk.bf16.mxu0 %vm9993_vm2, %v9991_v5  ;;  %8272 = vmatprep.mubr.msk.bf16.mxu1 %vm9993_vm2, %v9991_v5 }
  0xa7   : > { %8185 = vmatmul.mubr.msk.bf16.gmra.mrb[48].mxu0 %vm380_vm3, %v9843_v34  ;;  %8273 = vmatmul.mubr.msk.bf16.gmra.mrb[48].mxu1 %vm380_vm3, %v9865_v37 }
  0xa8   : > { %8188 = vmatprep.mubr.msk.bf16.mxu0 %vm9993_vm2, %v9991_v5  ;;  %8276 = vmatprep.mubr.msk.bf16.mxu1 %vm9993_vm2, %v9991_v5 }
  0xaf   : > { %8189 = vmatmul.mubr.msk.bf16.gmra.mrb[52].mxu0 %vm380_vm3, %v9845_v36  ;;  %8277 = vmatmul.mubr.msk.bf16.gmra.mrb[52].mxu1 %vm380_vm3, %v9866_v40 }
  0xb0   : > { %8192 = vmatprep.mubr.msk.bf16.mxu0 %vm9993_vm2, %v9991_v5  ;;  %8280 = vmatprep.mubr.msk.bf16.mxu1 %vm9993_vm2, %v9991_v5 }
  0xb7   : > { %8193 = vmatmul.mubr.msk.bf16.gmra.mrb[56].mxu0 %vm380_vm3, %v9847_v38  ;;  %8281 = vmatmul.mubr.msk.bf16.gmra.mrb[56].mxu1 %vm380_vm3, %v9867_v42 }
  0xb8   : > { %8196 = vmatprep.mubr.msk.bf16.mxu0 %vm9993_vm2, %v9991_v5  ;;  %8284 = vmatprep.mubr.msk.bf16.mxu1 %vm9993_vm2, %v9991_v5 }
  0xbf   : > { %8197 = vmatmul.mubr.msk.bf16.gmra.mrb[60].mxu0 %vm380_vm3, %v9849_v41  ;;  %8285 = vmatmul.mubr.msk.bf16.gmra.mrb[60].mxu1 %vm380_vm3, %v9868_v44 }
  0xc0   : > { %8200 = vmatprep.mubr.msk.bf16.mxu0 %vm9993_vm2, %v9991_v5  ;;  %8288 = vmatprep.mubr.msk.bf16.mxu1 %vm9993_vm2, %v9991_v5 }
  0xc7   : > { %8201 = vmatmul.mubr.msk.bf16.gmra.mrb[64].mxu0 %vm380_vm3, %v9851_v43  ;;  %8289 = vmatmul.mubr.msk.bf16.gmra.mrb[64].mxu1 %vm380_vm3, %v9869_v46 }
  0xc8   : > { %8204 = vmatprep.mubr.msk.bf16.mxu0 %vm9993_vm2, %v9991_v5  ;;  %8292 = vmatprep.mubr.msk.bf16.mxu1 %vm9993_vm2, %v9991_v5 }
  0xcf   : > { %8205 = vmatmul.mubr.msk.bf16.gmra.mrb[68].mxu0 %vm380_vm3, %v9853_v45  ;;  %8293 = vmatmul.mubr.msk.bf16.gmra.mrb[68].mxu1 %vm380_vm3, %v9870_v48 }
  0xd0   : > { %8208 = vmatprep.mubr.msk.bf16.mxu0 %vm9993_vm2, %v9991_v5  ;;  %8296 = vmatprep.mubr.msk.bf16.mxu1 %vm9993_vm2, %v9991_v5 }
  0xd7   : > { %8209 = vmatmul.mubr.msk.bf16.gmra.mrb[72].mxu0 %vm380_vm3, %v9855_v47  ;;  %8297 = vmatmul.mubr.msk.bf16.gmra.mrb[72].mxu1 %vm380_vm3, %v9871_v50 }
  0xd8   : > { %8212 = vmatprep.mubr.msk.bf16.mxu0 %vm9993_vm2, %v9991_v5  ;;  %8300 = vmatprep.mubr.msk.bf16.mxu1 %vm9993_vm2, %v9991_v5 }
  0xdf   : > { %8213 = vmatmul.mubr.msk.bf16.gmra.mrb[76].mxu0 %vm380_vm3, %v9857_v49  ;;  %8301 = vmatmul.mubr.msk.bf16.gmra.mrb[76].mxu1 %vm380_vm3, %v9873_v52 }
  0xe0   : > { %8216 = vmatprep.mubr.msk.bf16.mxu0 %vm9993_vm2, %v9991_v5  ;;  %8304 = vmatprep.mubr.msk.bf16.mxu1 %vm9993_vm2, %v9991_v5 }
  0xe7   : > { %8217 = vmatmul.mubr.msk.bf16.gmra.mrb[80].mxu0 %vm380_vm3, %v9859_v51  ;;  %8305 = vmatmul.mubr.msk.bf16.gmra.mrb[80].mxu1 %vm380_vm3, %v9874_v54  ;;  %v10308_v54 = vld [vmem:[%s11831_s3 + $0x8] sm:$0xff]  }
  0xe8   : > { %8220 = vmatprep.mubr.msk.bf16.mxu0 %vm9993_vm2, %v9991_v5 }
  0xef   : > { %8221 = vmatmul.mubr.msk.bf16.gmra.mrb[84].mxu0 %vm380_vm3, %v9861_v53 }
 0x11a   : > { %v551_v56 = vpop.f32.mrb[0].mxu0  ;;  %v727_v8 = vpop.f32.mrb[0].mxu1 }
 0x11b   : > { %v552_v57 = vadd.f32 %v11877_v2, %v551_v56  ;;  %v8138_v58 = vpop.f32.mrb[1].mxu0  ;;  %v728_v12 = vadd.f32 %v11877_v2, %v727_v8  ;;  %v8226_v13 = vpop.f32.mrb[1].mxu1 }
 0x11c   : > { %v554_v59 = vpop.f32.mrb[2].mxu0  ;;  %v730_v14 = vpop.f32.mrb[2].mxu1 }
 0x11d   : > { %v893_v60 = vmax.f32 %v552_v57, 0.0  ;;  %v555_v61 = vadd.f32 %v11877_v2, %v554_v59  ;;  %v8139_v62 = vpop.f32.mrb[3].mxu0  ;;  %v937_v16 = vmax.f32 %v728_v12, 0.0  ;;  %v731_v17 = vadd.f32 %v11877_v2, %v730_v14  ;;  %v8227_v18 = vpop.f32.mrb[3].mxu1 }
 0x11f   : > { %979 = vst.msk [vmem:[#allocation2] sm:$0xff] %vm978_vm4, %v893_v60  ;;  %v894_v63 = vmax.f32 %v555_v61, 0.0  ;;  %1023 = vst.msk [vmem:[#allocation2 + $0x160] sm:$0xff] %vm978_vm4, %v937_v16  ;;  %v938_v19 = vmax.f32 %v731_v17, 0.0 }
 0x121   : > { %980 = vst.msk [vmem:[#allocation2 + $0x8] sm:$0xff] %vm978_vm4, %v894_v63  ;;  %1024 = vst.msk [vmem:[#allocation2 + $0x168] sm:$0xff] %vm978_vm4, %v938_v19 }
 0x122   : > { %v559_v4 = vpop.f32.mrb[4].mxu0  ;;  %v735_v24 = vpop.f32.mrb[4].mxu1 }
 0x123   : > { %v560_v5 = vadd.f32 %v11877_v2, %v559_v4  ;;  %v8142_v6 = vpop.f32.mrb[5].mxu0  ;;  %v736_v28 = vadd.f32 %v11877_v2, %v735_v24  ;;  %v8230_v29 = vpop.f32.mrb[5].mxu1 }
 0x124   : > { %v562_v7 = vpop.f32.mrb[6].mxu0  ;;  %v738_v32 = vpop.f32.mrb[6].mxu1 }
 0x125   : > { %v895_v9 = vmax.f32 %v560_v5, 0.0  ;;  %v563_v10 = vadd.f32 %v11877_v2, %v562_v7  ;;  %v8143_v11 = vpop.f32.mrb[7].mxu0  ;;  %v939_v35 = vmax.f32 %v736_v28, 0.0  ;;  %v739_v36 = vadd.f32 %v11877_v2, %v738_v32  ;;  %v8231_v37 = vpop.f32.mrb[7].mxu1 }
 0x127   : > { %981 = vst.msk [vmem:[#allocation2 + $0x10] sm:$0xff] %vm978_vm4, %v895_v9  ;;  %v896_v15 = vmax.f32 %v563_v10, 0.0  ;;  %1025 = vst.msk [vmem:[#allocation2 + $0x170] sm:$0xff] %vm978_vm4, %v939_v35  ;;  %v940_v38 = vmax.f32 %v739_v36, 0.0 }
 0x128   : > { %v1443_v30 = vld [vmem:[#allocation2 + $0x1] sm:$0xff] }
 0x129   : > { %982 = vst.msk [vmem:[#allocation2 + $0x18] sm:$0xff] %vm978_vm4, %v896_v15  ;;  %1026 = vst.msk [vmem:[#allocation2 + $0x178] sm:$0xff] %vm978_vm4, %v940_v38  ;;  %v10341_v38 = vld [vmem:[%s11831_s3 + $0x20] sm:$0xff]  }
 0x12a   : > { %v567_v20 = vpop.f32.mrb[8].mxu0  ;;  %v743_v43 = vpop.f32.mrb[8].mxu1 }
 0x12b   : > { %v568_v21 = vadd.f32 %v11877_v2, %v567_v20  ;;  %v8146_v22 = vpop.f32.mrb[9].mxu0  ;;  %v744_v47 = vadd.f32 %v11877_v2, %v743_v43  ;;  %v8234_v48 = vpop.f32.mrb[9].mxu1 }
 0x12c   : > { %v570_v23 = vpop.f32.mrb[10].mxu0  ;;  %v746_v51 = vpop.f32.mrb[10].mxu1 }
 0x12d   : > { %v897_v25 = vmax.f32 %v568_v21, 0.0  ;;  %v571_v26 = vadd.f32 %v11877_v2, %v570_v23  ;;  %v8147_v27 = vpop.f32.mrb[11].mxu0  ;;  %v941_v56 = vmax.f32 %v744_v47, 0.0  ;;  %v747_v57 = vadd.f32 %v11877_v2, %v746_v51  ;;  %v8235_v58 = vpop.f32.mrb[11].mxu1 }
 0x12e   : > { %v1444_v31 = vld [vmem:[#allocation2 + $0x9] sm:$0xff] }
 0x12f   : > { %983 = vst.msk [vmem:[#allocation2 + $0x20] sm:$0xff] %vm978_vm4, %v897_v25  ;;  %v898_v33 = vmax.f32 %v571_v26, 0.0  ;;  %v10291_v34 = vpack.c.bf16 %v1444_v31, %v1443_v30  ;;  %1027 = vst.msk [vmem:[#allocation2 + $0x180] sm:$0xff] %vm978_vm4, %v941_v56  ;;  %v942_v59 = vmax.f32 %v747_v57, 0.0 }
 0x130   : > { %v1445_v49 = vld [vmem:[#allocation2 + $0x11] sm:$0xff] }
 0x131   : > { %984 = vst.msk [vmem:[#allocation2 + $0x28] sm:$0xff] %vm978_vm4, %v898_v33  ;;  %8528 = vmatprep.mubr.msk.bf16.mxu0 %vm978_vm4, %v10291_v34  ;;  %1028 = vst.msk [vmem:[#allocation2 + $0x188] sm:$0xff] %vm978_vm4, %v942_v59  ;;  %v2698_v3 = vld [vmem:[#allocation2 + $0x16] sm:$0xff] }
 0x132   : > { %v575_v39 = vpop.f32.mrb[12].mxu0  ;;  %v751_v4 = vpop.f32.mrb[12].mxu1 }
 0x133   : > { %v576_v40 = vadd.f32 %v11877_v2, %v575_v39  ;;  %v8150_v41 = vpop.f32.mrb[13].mxu0  ;;  %v752_v8 = vadd.f32 %v11877_v2, %v751_v4  ;;  %v8238_v9 = vpop.f32.mrb[13].mxu1 }
 0x134   : > { %v578_v42 = vpop.f32.mrb[14].mxu0  ;;  %v754_v12 = vpop.f32.mrb[14].mxu1 }
 0x135   : > { %v899_v44 = vmax.f32 %v576_v40, 0.0  ;;  %v579_v45 = vadd.f32 %v11877_v2, %v578_v42  ;;  %v8151_v46 = vpop.f32.mrb[15].mxu0  ;;  %v943_v15 = vmax.f32 %v752_v8, 0.0  ;;  %v755_v16 = vadd.f32 %v11877_v2, %v754_v12  ;;  %v8239_v17 = vpop.f32.mrb[15].mxu1 }
 0x136   : > { %v1446_v50 = vld [vmem:[#allocation2 + $0x19] sm:$0xff] }
 0x137   : > { %985 = vst.msk [vmem:[#allocation2 + $0x30] sm:$0xff] %vm978_vm4, %v899_v44  ;;  %v900_v52 = vmax.f32 %v579_v45, 0.0  ;;  %v10303_v53 = vpack.c.bf16 %v1446_v50, %v1445_v49  ;;  %1029 = vst.msk [vmem:[#allocation2 + $0x190] sm:$0xff] %vm978_vm4, %v943_v15  ;;  %v944_v18 = vmax.f32 %v755_v16, 0.0 }
 0x138   : > { %v1447_v10 = vld [vmem:[#allocation2 + $0x21] sm:$0xff] }
 0x139   : > { %986 = vst.msk [vmem:[#allocation2 + $0x38] sm:$0xff] %vm978_vm4, %v900_v52  ;;  %8529 = vmatmul.mubr.msk.bf16.vlgmr.msra.gmra.mrb[88].mxu0 %vm978_vm4, %v10303_v53  ;;  %1030 = vst.msk [vmem:[#allocation2 + $0x198] sm:$0xff] %vm978_vm4, %v944_v18 }
 0x13a   : > { %v583_v60 = vpop.f32.mrb[16].mxu0  ;;  %8549 = vmatpush3.bf16.msra.mxu0 %v10271_v55  ;;  %v759_v23 = vpop.f32.mrb[16].mxu1 }
 0x13b   : > { %v584_v61 = vadd.f32 %v11877_v2, %v583_v60  ;;  %v8154_v62 = vpop.f32.mrb[17].mxu0  ;;  %8550 = vmatprep.subr.bf16.mxu0 %v10308_v54  ;;  %v760_v27 = vadd.f32 %v11877_v2, %v759_v23  ;;  %v8242_v28 = vpop.f32.mrb[17].mxu1 }
 0x13c   : > { %v586_v63 = vpop.f32.mrb[18].mxu0  ;;  %v762_v31 = vpop.f32.mrb[18].mxu1 }
 0x13d   : > { %v901_v5 = vmax.f32 %v584_v61, 0.0  ;;  %v587_v6 = vadd.f32 %v11877_v2, %v586_v63  ;;  %v8155_v7 = vpop.f32.mrb[19].mxu0  ;;  %v945_v35 = vmax.f32 %v760_v27, 0.0  ;;  %v763_v36 = vadd.f32 %v11877_v2, %v762_v31  ;;  %v8243_v37 = vpop.f32.mrb[19].mxu1 }
 0x13e   : > { %v1448_v11 = vld [vmem:[#allocation2 + $0x29] sm:$0xff]  ;;  %8551 = vmatpush3.bf16.msra.mxu0 %v10308_v54 }
 0x13f   : > { %987 = vst.msk [vmem:[#allocation2 + $0x40] sm:$0xff] %vm978_vm4, %v901_v5  ;;  %v902_v13 = vmax.f32 %v587_v6, 0.0  ;;  %v10323_v14 = vpack.c.bf16 %v1448_v11, %v1447_v10  ;;  %1031 = vst.msk [vmem:[#allocation2 + $0x1a0] sm:$0xff] %vm978_vm4, %v945_v35  ;;  %v946_v39 = vmax.f32 %v763_v36, 0.0  ;;  %8572 = vmatprep.subr.bf16.mxu0 %v10341_v38 }
 0x140   : > { %v1449_v29 = vld [vmem:[#allocation2 + $0x31] sm:$0xff] }
 0x141   : > { %988 = vst.msk [vmem:[#allocation2 + $0x48] sm:$0xff] %vm978_vm4, %v902_v13  ;;  %8532 = vmatprep.mubr.msk.bf16.mxu0 %vm978_vm4, %v10323_v14  ;;  %1032 = vst.msk [vmem:[#allocation2 + $0x1a8] sm:$0xff] %vm978_vm4, %v946_v39 }
 0x142   : > { %v591_v19 = vpop.f32.mrb[20].mxu0  ;;  %v767_v44 = vpop.f32.mrb[20].mxu1 }
 0x143   : > { %v592_v20 = vadd.f32 %v11877_v2, %v591_v19  ;;  %v8158_v21 = vpop.f32.mrb[21].mxu0  ;;  %v768_v48 = vadd.f32 %v11877_v2, %v767_v44  ;;  %v8246_v49 = vpop.f32.mrb[21].mxu1 }
 0x144   : > { %v594_v22 = vpop.f32.mrb[22].mxu0  ;;  %v770_v52 = vpop.f32.mrb[22].mxu1 }
 0x145   : > { %v903_v24 = vmax.f32 %v592_v20, 0.0  ;;  %v595_v25 = vadd.f32 %v11877_v2, %v594_v22  ;;  %v8159_v26 = vpop.f32.mrb[23].mxu0  ;;  %v947_v58 = vmax.f32 %v768_v48, 0.0  ;;  %v771_v59 = vadd.f32 %v11877_v2, %v770_v52  ;;  %v8247_v60 = vpop.f32.mrb[23].mxu1 }
 0x146   : > { %v1450_v30 = vld [vmem:[#allocation2 + $0x39] sm:$0xff] }
 0x147   : > { %989 = vst.msk [vmem:[#allocation2 + $0x50] sm:$0xff] %vm978_vm4, %v903_v24  ;;  %v904_v32 = vmax.f32 %v595_v25, 0.0  ;;  %v10335_v33 = vpack.c.bf16 %v1450_v30, %v1449_v29  ;;  %1033 = vst.msk [vmem:[#allocation2 + $0x1b0] sm:$0xff] %vm978_vm4, %v947_v58  ;;  %v948_v61 = vmax.f32 %v771_v59, 0.0 }
 0x148   : > { %v1451_v50 = vld [vmem:[#allocation2 + $0x41] sm:$0xff] }
 0x149   : > { %990 = vst.msk [vmem:[#allocation2 + $0x58] sm:$0xff] %vm978_vm4, %v904_v32  ;;  %8533 = vmatmul.mubr.msk.bf16.gmra.mrb[92].mxu0 %vm978_vm4, %v10335_v33  ;;  %1034 = vst.msk [vmem:[#allocation2 + $0x1b8] sm:$0xff] %vm978_vm4, %v948_v61 }
 0x14a   : > { %v599_v40 = vpop.f32.mrb[24].mxu0  ;;  %v775_v6 = vpop.f32.mrb[24].mxu1 }
 0x14b   : > { %v600_v41 = vadd.f32 %v11877_v2, %v599_v40  ;;  %v8162_v42 = vpop.f32.mrb[25].mxu0  ;;  %v776_v10 = vadd.f32 %v11877_v2, %v775_v6  ;;  %v8250_v11 = vpop.f32.mrb[25].mxu1 }
 0x14c   : > { %v602_v43 = vpop.f32.mrb[26].mxu0  ;;  %v778_v15 = vpop.f32.mrb[26].mxu1 }
 0x14d   : > { %v905_v45 = vmax.f32 %v600_v41, 0.0  ;;  %v603_v46 = vadd.f32 %v11877_v2, %v602_v43  ;;  %v8163_v47 = vpop.f32.mrb[27].mxu0  ;;  %v949_v18 = vmax.f32 %v776_v10, 0.0  ;;  %v779_v19 = vadd.f32 %v11877_v2, %v778_v15  ;;  %v8251_v20 = vpop.f32.mrb[27].mxu1 }
 0x14e   : > { %v1452_v51 = vld [vmem:[#allocation2 + $0x49] sm:$0xff] }
 0x14f   : > { %991 = vst.msk [vmem:[#allocation2 + $0x60] sm:$0xff] %vm978_vm4, %v905_v45  ;;  %v906_v56 = vmax.f32 %v603_v46, 0.0  ;;  %v10353_v57 = vpack.c.bf16 %v1452_v51, %v1451_v50  ;;  %1035 = vst.msk [vmem:[#allocation2 + $0x1c0] sm:$0xff] %vm978_vm4, %v949_v18  ;;  %v950_v21 = vmax.f32 %v779_v19, 0.0 }
 0x150   : > { %v1453_v12 = vld [vmem:[#allocation2 + $0x51] sm:$0xff] }
 0x151   : > { %992 = vst.msk [vmem:[#allocation2 + $0x68] sm:$0xff] %vm978_vm4, %v906_v56  ;;  %8536 = vmatprep.mubr.msk.bf16.mxu0 %vm978_vm4, %v10353_v57  ;;  %1036 = vst.msk [vmem:[#allocation2 + $0x1c8] sm:$0xff] %vm978_vm4, %v950_v21 }
 0x152   : > { %v607_v62 = vpop.f32.mrb[28].mxu0  ;;  %v783_v26 = vpop.f32.mrb[28].mxu1 }
 0x153   : > { %v608_v63 = vadd.f32 %v11877_v2, %v607_v62  ;;  %v8166_v4 = vpop.f32.mrb[29].mxu0  ;;  %v784_v30 = vadd.f32 %v11877_v2, %v783_v26  ;;  %v8254_v31 = vpop.f32.mrb[29].mxu1 }
 0x154   : > { %v610_v5 = vpop.f32.mrb[30].mxu0  ;;  %v786_v36 = vpop.f32.mrb[30].mxu1 }
 0x155   : > { %v907_v7 = vmax.f32 %v608_v63, 0.0  ;;  %v611_v8 = vadd.f32 %v11877_v2, %v610_v5  ;;  %v8167_v9 = vpop.f32.mrb[31].mxu0  ;;  %v951_v40 = vmax.f32 %v784_v30, 0.0  ;;  %v787_v41 = vadd.f32 %v11877_v2, %v786_v36  ;;  %v8255_v42 = vpop.f32.mrb[31].mxu1 }
 0x156   : > { %v1454_v13 = vld [vmem:[#allocation2 + $0x59] sm:$0xff] }
 0x157   : > { %993 = vst.msk [vmem:[#allocation2 + $0x70] sm:$0xff] %vm978_vm4, %v907_v7  ;;  %v908_v16 = vmax.f32 %v611_v8, 0.0  ;;  %v10365_v17 = vpack.c.bf16 %v1454_v13, %v1453_v12  ;;  %1037 = vst.msk [vmem:[#allocation2 + $0x1d0] sm:$0xff] %vm978_vm4, %v951_v40  ;;  %v952_v43 = vmax.f32 %v787_v41, 0.0 }
 0x158   : > { %v1455_v32 = vld [vmem:[#allocation2 + $0x61] sm:$0xff] }
 0x159   : > { %994 = vst.msk [vmem:[#allocation2 + $0x78] sm:$0xff] %vm978_vm4, %v908_v16  ;;  %8537 = vmatmul.mubr.msk.bf16.gmra.mrb[96].mxu0 %vm978_vm4, %v10365_v17  ;;  %1038 = vst.msk [vmem:[#allocation2 + $0x1d8] sm:$0xff] %vm978_vm4, %v952_v43 }
 0x15a   : > { %v615_v22 = vpop.f32.mrb[32].mxu0  ;;  %v791_v48 = vpop.f32.mrb[32].mxu1 }
 0x15b   : > { %v616_v23 = vadd.f32 %v11877_v2, %v615_v22  ;;  %v8170_v24 = vpop.f32.mrb[33].mxu0  ;;  %v792_v52 = vadd.f32 %v11877_v2, %v791_v48  ;;  %v8258_v56 = vpop.f32.mrb[33].mxu1 }
 0x15c   : > { %v618_v25 = vpop.f32.mrb[34].mxu0  ;;  %v794_v60 = vpop.f32.mrb[34].mxu1 }
 0x15d   : > { %v909_v27 = vmax.f32 %v616_v23, 0.0  ;;  %v619_v28 = vadd.f32 %v11877_v2, %v618_v25  ;;  %v8171_v29 = vpop.f32.mrb[35].mxu0  ;;  %v953_v63 = vmax.f32 %v792_v52, 0.0  ;;  %v795_v4 = vadd.f32 %v11877_v2, %v794_v60  ;;  %v8259_v5 = vpop.f32.mrb[35].mxu1 }
 0x15e   : > { %v1456_v35 = vld [vmem:[#allocation2 + $0x69] sm:$0xff] }
 0x15f   : > { %995 = vst.msk [vmem:[#allocation2 + $0x80] sm:$0xff] %vm978_vm4, %v909_v27  ;;  %v910_v37 = vmax.f32 %v619_v28, 0.0  ;;  %v10377_v39 = vpack.c.bf16 %v1456_v35, %v1455_v32  ;;  %1039 = vst.msk [vmem:[#allocation2 + $0x1e0] sm:$0xff] %vm978_vm4, %v953_v63  ;;  %v954_v6 = vmax.f32 %v795_v4, 0.0 }
 0x160   : > { %v1457_v58 = vld [vmem:[#allocation2 + $0x71] sm:$0xff] }
 0x161   : > { %996 = vst.msk [vmem:[#allocation2 + $0x88] sm:$0xff] %vm978_vm4, %v910_v37  ;;  %8540 = vmatprep.mubr.msk.bf16.mxu0 %vm978_vm4, %v10377_v39  ;;  %1040 = vst.msk [vmem:[#allocation2 + $0x1e8] sm:$0xff] %vm978_vm4, %v954_v6 }
 0x162   : > { %v623_v44 = vpop.f32.mrb[36].mxu0  ;;  %v799_v11 = vpop.f32.mrb[36].mxu1 }
 0x163   : > { %v624_v45 = vadd.f32 %v11877_v2, %v623_v44  ;;  %v8174_v46 = vpop.f32.mrb[37].mxu0  ;;  %v800_v16 = vadd.f32 %v11877_v2, %v799_v11  ;;  %v8262_v18 = vpop.f32.mrb[37].mxu1 }
 0x164   : > { %v626_v47 = vpop.f32.mrb[38].mxu0  ;;  %v802_v21 = vpop.f32.mrb[38].mxu1 }
 0x165   : > { %v911_v49 = vmax.f32 %v624_v45, 0.0  ;;  %v627_v50 = vadd.f32 %v11877_v2, %v626_v47  ;;  %v8175_v51 = vpop.f32.mrb[39].mxu0  ;;  %v955_v24 = vmax.f32 %v800_v16, 0.0  ;;  %v803_v25 = vadd.f32 %v11877_v2, %v802_v21  ;;  %v8263_v26 = vpop.f32.mrb[39].mxu1 }
 0x166   : > { %v1458_v59 = vld [vmem:[#allocation2 + $0x79] sm:$0xff] }
 0x167   : > { %997 = vst.msk [vmem:[#allocation2 + $0x90] sm:$0xff] %vm978_vm4, %v911_v49  ;;  %v912_v61 = vmax.f32 %v627_v50, 0.0  ;;  %v10389_v62 = vpack.c.bf16 %v1458_v59, %v1457_v58  ;;  %1041 = vst.msk [vmem:[#allocation2 + $0x1f0] sm:$0xff] %vm978_vm4, %v955_v24  ;;  %v956_v30 = vmax.f32 %v803_v25, 0.0 }
 0x168   : > { %v1459_v19 = vld [vmem:[#allocation2 + $0x81] sm:$0xff] }
 0x169   : > { %998 = vst.msk [vmem:[#allocation2 + $0x98] sm:$0xff] %vm978_vm4, %v912_v61  ;;  %8541 = vmatmul.mubr.msk.bf16.gmra.mrb[100].mxu0 %vm978_vm4, %v10389_v62  ;;  %1042 = vst.msk [vmem:[#allocation2 + $0x1f8] sm:$0xff] %vm978_vm4, %v956_v30 }
 0x16a   : > { %v631_v7 = vpop.f32.mrb[40].mxu0  ;;  %v807_v37 = vpop.f32.mrb[40].mxu1 }
 0x16b   : > { %v632_v8 = vadd.f32 %v11877_v2, %v631_v7  ;;  %v8178_v9 = vpop.f32.mrb[41].mxu0  ;;  %v808_v43 = vadd.f32 %v11877_v2, %v807_v37  ;;  %v8266_v44 = vpop.f32.mrb[41].mxu1 }
 0x16c   : > { %v634_v10 = vpop.f32.mrb[42].mxu0  ;;  %v810_v45 = vpop.f32.mrb[42].mxu1 }
 0x16d   : > { %v913_v12 = vmax.f32 %v632_v8, 0.0  ;;  %v635_v13 = vadd.f32 %v11877_v2, %v634_v10  ;;  %v8179_v15 = vpop.f32.mrb[43].mxu0  ;;  %v957_v47 = vmax.f32 %v808_v43, 0.0  ;;  %v811_v48 = vadd.f32 %v11877_v2, %v810_v45  ;;  %v8267_v49 = vpop.f32.mrb[43].mxu1 }
 0x16e   : > { %v1460_v20 = vld [vmem:[#allocation2 + $0x89] sm:$0xff] }
 0x16f   : > { %999 = vst.msk [vmem:[#allocation2 + $0xa0] sm:$0xff] %vm978_vm4, %v913_v12  ;;  %v914_v22 = vmax.f32 %v635_v13, 0.0  ;;  %v10401_v23 = vpack.c.bf16 %v1460_v20, %v1459_v19  ;;  %1043 = vst.msk [vmem:[#allocation2 + $0x200] sm:$0xff] %vm978_vm4, %v957_v47  ;;  %v958_v50 = vmax.f32 %v811_v48, 0.0 }
 0x170   : > { %v1461_v27 = vld [vmem:[#allocation2 + $0x91] sm:$0xff]  ;;  %v1462_v28 = vld [vmem:[#allocation2 + $0x99] sm:$0x7] }
 0x171   : > { %1000 = vst.msk [vmem:[#allocation2 + $0xa8] sm:$0xff] %vm978_vm4, %v914_v22  ;;  %8544 = vmatprep.mubr.msk.bf16.mxu0 %vm978_vm4, %v10401_v23  ;;  %v10407_v29 = vpack.c.bf16 %v1462_v28, %v1461_v27  ;;  %1044 = vst.msk [vmem:[#allocation2 + $0x208] sm:$0xff] %vm978_vm4, %v958_v50 }
 0x172   : > { %v639_v31 = vpop.f32.mrb[44].mxu0  ;;  %v815_v59 = vpop.f32.mrb[44].mxu1 }
 0x173   : > { %v640_v32 = vadd.f32 %v11877_v2, %v639_v31  ;;  %v8182_v35 = vpop.f32.mrb[45].mxu0  ;;  %8545 = vmatmul.mubr.msk.bf16.gmra.mrb[104].mxu0 %vm978_vm4, %v10407_v29  ;;  %v816_v4 = vadd.f32 %v11877_v2, %v815_v59  ;;  %v8270_v5 = vpop.f32.mrb[45].mxu1 }
 0x174   : > { %v642_v36 = vpop.f32.mrb[46].mxu0  ;;  %v818_v6 = vpop.f32.mrb[46].mxu1 }
 0x175   : > { %v915_v40 = vmax.f32 %v640_v32, 0.0  ;;  %v643_v41 = vadd.f32 %v11877_v2, %v642_v36  ;;  %v8183_v42 = vpop.f32.mrb[47].mxu0  ;;  %v959_v8 = vmax.f32 %v816_v4, 0.0  ;;  %v819_v9 = vadd.f32 %v11877_v2, %v818_v6  ;;  %v8271_v10 = vpop.f32.mrb[47].mxu1 }
 0x177   : > { %1001 = vst.msk [vmem:[#allocation2 + $0xb0] sm:$0xff] %vm978_vm4, %v915_v40  ;;  %v916_v46 = vmax.f32 %v643_v41, 0.0  ;;  %1045 = vst.msk [vmem:[#allocation2 + $0x210] sm:$0xff] %vm978_vm4, %v959_v8  ;;  %v960_v15 = vmax.f32 %v819_v9, 0.0  ;;  %v10440_v41 = vld [vmem:[%s11831_s3 + $0x28] sm:$0xff]  }
 0x179   : > { %1002 = vst.msk [vmem:[#allocation2 + $0xb8] sm:$0xff] %vm978_vm4, %v916_v46  ;;  %1046 = vst.msk [vmem:[#allocation2 + $0x218] sm:$0xff] %vm978_vm4, %v960_v15 }
 0x17a   : > { %v647_v51 = vpop.f32.mrb[48].mxu0  ;;  %v823_v21 = vpop.f32.mrb[48].mxu1 }
 0x17b   : > { %v648_v52 = vadd.f32 %v11877_v2, %v647_v51  ;;  %v8186_v56 = vpop.f32.mrb[49].mxu0  ;;  %v824_v26 = vadd.f32 %v11877_v2, %v823_v21  ;;  %v8274_v27 = vpop.f32.mrb[49].mxu1 }
 0x17c   : > { %v650_v58 = vpop.f32.mrb[50].mxu0  ;;  %v826_v28 = vpop.f32.mrb[50].mxu1  ;;  %v10456_v56 = vld [vmem:[%s11831_s3 + $0x30] sm:$0xff]  }
 0x17d   : > { %v917_v60 = vmax.f32 %v648_v52, 0.0  ;;  %v651_v61 = vadd.f32 %v11877_v2, %v650_v58  ;;  %v8187_v63 = vpop.f32.mrb[51].mxu0  ;;  %v961_v31 = vmax.f32 %v824_v26, 0.0  ;;  %v827_v32 = vadd.f32 %v11877_v2, %v826_v28  ;;  %v8275_v35 = vpop.f32.mrb[51].mxu1 }
 0x17e   : > { %v1099_v11 = vld [vmem:[#allocation2 + $0xa9] sm:$0xff] }
 0x17f   : > { %1003 = vst.msk [vmem:[#allocation2 + $0xc0] sm:$0xff] %vm978_vm4, %v917_v60  ;;  %v918_v7 = vmax.f32 %v651_v61, 0.0  ;;  %1047 = vst.msk [vmem:[#allocation2 + $0x220] sm:$0xff] %vm978_vm4, %v961_v31  ;;  %v962_v42 = vmax.f32 %v827_v32, 0.0 }
 0x180   : > { %v1100_v12 = vld [vmem:[#allocation2 + $0xb1] sm:$0xff] }
 0x181   : > { %1004 = vst.msk [vmem:[#allocation2 + $0xc8] sm:$0xff] %vm978_vm4, %v918_v7  ;;  %v1119_v13 = vpack.c.bf16 %v1100_v12, %v1099_v11  ;;  %1048 = vst.msk [vmem:[#allocation2 + $0x228] sm:$0xff] %vm978_vm4, %v962_v42 }
 0x182   : > { %v655_v16 = vpop.f32.mrb[52].mxu0  ;;  %v831_v47 = vpop.f32.mrb[52].mxu1 }
 0x183   : > { %v656_v18 = vadd.f32 %v11877_v2, %v655_v16  ;;  %v8190_v19 = vpop.f32.mrb[53].mxu0  ;;  %8312 = vmatprep.mubr.msk.bf16.mxu1 %vm978_vm4, %v1119_v13  ;;  %8552 = vmatprep.mubr.msk.bf16.mxu0 %vm978_vm4, %v1119_v13  ;;  %v832_v51 = vadd.f32 %v11877_v2, %v831_v47  ;;  %v8278_v52 = vpop.f32.mrb[53].mxu1 }
 0x184   : > { %v658_v20 = vpop.f32.mrb[54].mxu0 }
 0x185   : > { %v919_v22 = vmax.f32 %v656_v18, 0.0  ;;  %v659_v24 = vadd.f32 %v11877_v2, %v658_v20  ;;  %v8191_v25 = vpop.f32.mrb[55].mxu0  ;;  %v963_v59 = vmax.f32 %v832_v51, 0.0 }
 0x186   : > { %v1101_v36 = vld [vmem:[#allocation2 + $0xb9] sm:$0xff] }
 0x187   : > { %1005 = vst.msk [vmem:[#allocation2 + $0xd0] sm:$0xff] %vm978_vm4, %v919_v22  ;;  %v920_v30 = vmax.f32 %v659_v24, 0.0  ;;  %1049 = vst.msk [vmem:[#allocation2 + $0x230] sm:$0xff] %vm978_vm4, %v963_v59 }
 0x188   : > { %v1102_v37 = vld [vmem:[#allocation2 + $0xc1] sm:$0xff] }
 0x189   : > { %1006 = vst.msk [vmem:[#allocation2 + $0xd8] sm:$0xff] %vm978_vm4, %v920_v30  ;;  %v1120_v40 = vpack.c.bf16 %v1102_v37, %v1101_v36 }
 0x18a   : > { %v663_v43 = vpop.f32.mrb[56].mxu0 }
 0x18b   : > { %v664_v44 = vadd.f32 %v11877_v2, %v663_v43  ;;  %v8194_v45 = vpop.f32.mrb[57].mxu0  ;;  %8313 = vmatmul.mubr.msk.bf16.vlgmr.msra.gmra.mrb[84].mxu1 %vm978_vm4, %v1120_v40  ;;  %8553 = vmatmul.mubr.msk.bf16.vlgmr.msra.gmra.mrb[88].mxu0 %vm978_vm4, %v1120_v40 }
 0x18c   : > { %v666_v46 = vpop.f32.mrb[58].mxu0  ;;  %8333 = vmatpush3.bf16.msra.mxu1 %v10271_v55  ;;  %8573 = vmatpush3.bf16.msra.mxu0 %v10341_v38  ;;  %v834_v55 = vpop.f32.mrb[54].mxu1 }
 0x18d   : > { %v921_v48 = vmax.f32 %v664_v44, 0.0  ;;  %v667_v49 = vadd.f32 %v11877_v2, %v666_v46  ;;  %v8195_v50 = vpop.f32.mrb[59].mxu0  ;;  %8334 = vmatprep.subr.bf16.mxu1 %v10308_v54  ;;  %8574 = vmatprep.subr.bf16.mxu0 %v10440_v41  ;;  %v835_v60 = vadd.f32 %v11877_v2, %v834_v55  ;;  %v8279_v61 = vpop.f32.mrb[55].mxu1 }
 0x18e   : > { %v1103_v63 = vld [vmem:[#allocation2 + $0xc9] sm:$0xff]  ;;  %v839_v10 = vpop.f32.mrb[56].mxu1 }
 0x18f   : > { %1007 = vst.msk [vmem:[#allocation2 + $0xe0] sm:$0xff] %vm978_vm4, %v921_v48  ;;  %v922_v58 = vmax.f32 %v667_v49, 0.0  ;;  %v964_v6 = vmax.f32 %v835_v60, 0.0  ;;  %v840_v15 = vadd.f32 %v11877_v2, %v839_v10  ;;  %v8282_v16 = vpop.f32.mrb[57].mxu1 }
 0x190   : > { %v1104_v4 = vld [vmem:[#allocation2 + $0xd1] sm:$0xff]  ;;  %8335 = vmatpush3.bf16.msra.mxu1 %v10308_v54  ;;  %8575 = vmatpush3.bf16.msra.mxu0 %v10440_v41  ;;  %v842_v18 = vpop.f32.mrb[58].mxu1 }
 0x191   : > { %1008 = vst.msk [vmem:[#allocation2 + $0xe8] sm:$0xff] %vm978_vm4, %v922_v58  ;;  %v1121_v5 = vpack.c.bf16 %v1104_v4, %v1103_v63  ;;  %8356 = vmatprep.subr.bf16.mxu1 %v10341_v38  ;;  %8596 = vmatprep.subr.bf16.mxu0 %v10456_v56  ;;  %1050 = vst.msk [vmem:[#allocation2 + $0x238] sm:$0xff] %vm978_vm4, %v964_v6  ;;  %v965_v20 = vmax.f32 %v840_v15, 0.0  ;;  %v843_v21 = vadd.f32 %v11877_v2, %v842_v18  ;;  %v8283_v22 = vpop.f32.mrb[59].mxu1 }
 0x192   : > { %v671_v7 = vpop.f32.mrb[60].mxu0  ;;  %v847_v35 = vpop.f32.mrb[60].mxu1 }
 0x193   : > { %v672_v8 = vadd.f32 %v11877_v2, %v671_v7  ;;  %v8198_v9 = vpop.f32.mrb[61].mxu0  ;;  %8316 = vmatprep.mubr.msk.bf16.mxu1 %vm978_vm4, %v1121_v5  ;;  %8556 = vmatprep.mubr.msk.bf16.mxu0 %vm978_vm4, %v1121_v5  ;;  %1051 = vst.msk [vmem:[#allocation2 + $0x240] sm:$0xff] %vm978_vm4, %v965_v20  ;;  %v966_v27 = vmax.f32 %v843_v21, 0.0  ;;  %v848_v42 = vadd.f32 %v11877_v2, %v847_v35  ;;  %v8286_v43 = vpop.f32.mrb[61].mxu1 }
 0x194   : > { %v674_v54 = vpop.f32.mrb[62].mxu0  ;;  %v850_v44 = vpop.f32.mrb[62].mxu1 }
 0x195   : > { %v923_v11 = vmax.f32 %v672_v8, 0.0  ;;  %v675_v12 = vadd.f32 %v11877_v2, %v674_v54  ;;  %v8199_v13 = vpop.f32.mrb[63].mxu0  ;;  %1052 = vst.msk [vmem:[#allocation2 + $0x248] sm:$0xff] %vm978_vm4, %v966_v27  ;;  %v967_v46 = vmax.f32 %v848_v42, 0.0  ;;  %v851_v47 = vadd.f32 %v11877_v2, %v850_v44  ;;  %v8287_v48 = vpop.f32.mrb[63].mxu1 }
 0x196   : > { %v1105_v24 = vld [vmem:[#allocation2 + $0xd9] sm:$0xff] }
 0x197   : > { %1009 = vst.msk [vmem:[#allocation2 + $0xf0] sm:$0xff] %vm978_vm4, %v923_v11  ;;  %v924_v19 = vmax.f32 %v675_v12, 0.0  ;;  %1053 = vst.msk [vmem:[#allocation2 + $0x250] sm:$0xff] %vm978_vm4, %v967_v46  ;;  %v968_v52 = vmax.f32 %v851_v47, 0.0 }
 0x198   : > { %v1106_v25 = vld [vmem:[#allocation2 + $0xe1] sm:$0xff] }
 0x199   : > { %1010 = vst.msk [vmem:[#allocation2 + $0xf8] sm:$0xff] %vm978_vm4, %v924_v19  ;;  %v1122_v26 = vpack.c.bf16 %v1106_v25, %v1105_v24  ;;  %1054 = vst.msk [vmem:[#allocation2 + $0x258] sm:$0xff] %vm978_vm4, %v968_v52 }
 0x19a   : > { %v679_v28 = vpop.f32.mrb[64].mxu0  ;;  %v855_v61 = vpop.f32.mrb[64].mxu1 }
 0x19b   : > { %v680_v30 = vadd.f32 %v11877_v2, %v679_v28  ;;  %v8202_v31 = vpop.f32.mrb[65].mxu0  ;;  %8317 = vmatmul.mubr.msk.bf16.gmra.mrb[88].mxu1 %vm978_vm4, %v1122_v26  ;;  %8557 = vmatmul.mubr.msk.bf16.gmra.mrb[92].mxu0 %vm978_vm4, %v1122_v26  ;;  %v856_v6 = vadd.f32 %v11877_v2, %v855_v61  ;;  %v8290_v7 = vpop.f32.mrb[65].mxu1 }
 0x19c   : > { %v682_v32 = vpop.f32.mrb[66].mxu0  ;;  %v858_v8 = vpop.f32.mrb[66].mxu1 }
 0x19d   : > { %v925_v36 = vmax.f32 %v680_v30, 0.0  ;;  %v683_v37 = vadd.f32 %v11877_v2, %v682_v32  ;;  %v8203_v40 = vpop.f32.mrb[67].mxu0  ;;  %v969_v54 = vmax.f32 %v856_v6, 0.0  ;;  %v859_v10 = vadd.f32 %v11877_v2, %v858_v8  ;;  %v8291_v11 = vpop.f32.mrb[67].mxu1 }
 0x19e   : > { %v1107_v49 = vld [vmem:[#allocation2 + $0xe9] sm:$0xff] }
 0x19f   : > { %1011 = vst.msk [vmem:[#allocation2 + $0x100] sm:$0xff] %vm978_vm4, %v925_v36  ;;  %v926_v45 = vmax.f32 %v683_v37, 0.0  ;;  %1055 = vst.msk [vmem:[#allocation2 + $0x260] sm:$0xff] %vm978_vm4, %v969_v54  ;;  %v970_v16 = vmax.f32 %v859_v10, 0.0 }
 0x1a0   : > { %v1108_v50 = vld [vmem:[#allocation2 + $0xf1] sm:$0xff] }
 0x1a1   : > { %1012 = vst.msk [vmem:[#allocation2 + $0x108] sm:$0xff] %vm978_vm4, %v926_v45  ;;  %v1123_v51 = vpack.c.bf16 %v1108_v50, %v1107_v49  ;;  %1056 = vst.msk [vmem:[#allocation2 + $0x268] sm:$0xff] %vm978_vm4, %v970_v16 }
 0x1a2   : > { %v687_v55 = vpop.f32.mrb[68].mxu0  ;;  %v863_v22 = vpop.f32.mrb[68].mxu1 }
 0x1a3   : > { %v688_v58 = vadd.f32 %v11877_v2, %v687_v55  ;;  %v8206_v59 = vpop.f32.mrb[69].mxu0  ;;  %8320 = vmatprep.mubr.msk.bf16.mxu1 %vm978_vm4, %v1123_v51  ;;  %8560 = vmatprep.mubr.msk.bf16.mxu0 %vm978_vm4, %v1123_v51  ;;  %v864_v27 = vadd.f32 %v11877_v2, %v863_v22  ;;  %v8294_v28 = vpop.f32.mrb[69].mxu1 }
 0x1a4   : > { %v690_v60 = vpop.f32.mrb[70].mxu0  ;;  %v866_v30 = vpop.f32.mrb[70].mxu1 }
 0x1a5   : > { %v927_v63 = vmax.f32 %v688_v58, 0.0  ;;  %v691_v4 = vadd.f32 %v11877_v2, %v690_v60  ;;  %v8207_v5 = vpop.f32.mrb[71].mxu0  ;;  %v971_v32 = vmax.f32 %v864_v27, 0.0  ;;  %v867_v35 = vadd.f32 %v11877_v2, %v866_v30  ;;  %v8295_v36 = vpop.f32.mrb[71].mxu1 }
 0x1a6   : > { %v1109_v12 = vld [vmem:[#allocation2 + $0xf9] sm:$0xff] }
 0x1a7   : > { %1013 = vst.msk [vmem:[#allocation2 + $0x110] sm:$0xff] %vm978_vm4, %v927_v63  ;;  %v928_v9 = vmax.f32 %v691_v4, 0.0  ;;  %1057 = vst.msk [vmem:[#allocation2 + $0x270] sm:$0xff] %vm978_vm4, %v971_v32  ;;  %v972_v43 = vmax.f32 %v867_v35, 0.0 }
 0x1a8   : > { %v1110_v13 = vld [vmem:[#allocation2 + $0x101] sm:$0xff] }
 0x1a9   : > { %1014 = vst.msk [vmem:[#allocation2 + $0x118] sm:$0xff] %vm978_vm4, %v928_v9  ;;  %v1124_v15 = vpack.c.bf16 %v1110_v13, %v1109_v12  ;;  %1058 = vst.msk [vmem:[#allocation2 + $0x278] sm:$0xff] %vm978_vm4, %v972_v43  ;;  %v3179_v43 = vld [vmem:[#allocation2 + $0xb2] sm:$0xff] }
 0x1aa   : > { %v695_v18 = vpop.f32.mrb[72].mxu0  ;;  %v871_v48 = vpop.f32.mrb[72].mxu1 }
 0x1ab   : > { %v696_v19 = vadd.f32 %v11877_v2, %v695_v18  ;;  %v8210_v20 = vpop.f32.mrb[73].mxu0  ;;  %8321 = vmatmul.mubr.msk.bf16.gmra.mrb[92].mxu1 %vm978_vm4, %v1124_v15  ;;  %8561 = vmatmul.mubr.msk.bf16.gmra.mrb[96].mxu0 %vm978_vm4, %v1124_v15  ;;  %v872_v52 = vadd.f32 %v11877_v2, %v871_v48  ;;  %v8298_v55 = vpop.f32.mrb[73].mxu1 }
 0x1ac   : > { %v698_v21 = vpop.f32.mrb[74].mxu0  ;;  %v874_v58 = vpop.f32.mrb[74].mxu1  ;;  %v3178_v55 = vld [vmem:[#allocation2 + $0xaa] sm:$0xff] }
 0x1ad   : > { %v929_v24 = vmax.f32 %v696_v19, 0.0  ;;  %v699_v25 = vadd.f32 %v11877_v2, %v698_v21  ;;  %v8211_v26 = vpop.f32.mrb[75].mxu0  ;;  %v973_v60 = vmax.f32 %v872_v52, 0.0  ;;  %v875_v61 = vadd.f32 %v11877_v2, %v874_v58  ;;  %v8299_v63 = vpop.f32.mrb[75].mxu1  ;;  %v1065_v52 = vld [vmem:[#allocation2] sm:$0xff] }
 0x1ae   : > { %v1111_v37 = vld [vmem:[#allocation2 + $0x109] sm:$0xff]  ;;  %v1068_v63 = vld [vmem:[#allocation2 + $0x18] sm:$0xff] }
 0x1af   : > { %1015 = vst.msk [vmem:[#allocation2 + $0x120] sm:$0xff] %vm978_vm4, %v929_v24  ;;  %v930_v31 = vmax.f32 %v699_v25, 0.0  ;;  %1059 = vst.msk [vmem:[#allocation2 + $0x280] sm:$0xff] %vm978_vm4, %v973_v60  ;;  %v974_v7 = vmax.f32 %v875_v61, 0.0  ;;  %v3198_v61 = vpack.c.bf16 %v3179_v43, %v3178_v55  ;;  %v1077_v43 = vld [vmem:[#allocation2 + $0x60] sm:$0xff] }
 0x1b0   : > { %v1112_v40 = vld [vmem:[#allocation2 + $0x111] sm:$0xff] }
 0x1b1   : > { %1016 = vst.msk [vmem:[#allocation2 + $0x128] sm:$0xff] %vm978_vm4, %v930_v31  ;;  %v1125_v42 = vpack.c.bf16 %v1112_v40, %v1111_v37  ;;  %1060 = vst.msk [vmem:[#allocation2 + $0x288] sm:$0xff] %vm978_vm4, %v974_v7  ;;  %v3180_v7 = vld [vmem:[#allocation2 + $0xba] sm:$0xff] }
 0x1b2   : > { %v703_v44 = vpop.f32.mrb[76].mxu0  ;;  %v879_v11 = vpop.f32.mrb[76].mxu1 }
 0x1b3   : > { %v704_v45 = vadd.f32 %v11877_v2, %v703_v44  ;;  %v8214_v46 = vpop.f32.mrb[77].mxu0  ;;  %8324 = vmatprep.mubr.msk.bf16.mxu1 %vm978_vm4, %v1125_v42  ;;  %8564 = vmatprep.mubr.msk.bf16.mxu0 %vm978_vm4, %v1125_v42  ;;  %v880_v16 = vadd.f32 %v11877_v2, %v879_v11  ;;  %v8302_v18 = vpop.f32.mrb[77].mxu1  ;;  %v1066_v42 = vld [vmem:[#allocation2 + $0x8] sm:$0xff] }
 0x1b4   : > { %v706_v47 = vpop.f32.mrb[78].mxu0  ;;  %v882_v19 = vpop.f32.mrb[78].mxu1  ;;  %v1085_v60 = vpack.c.bf16 %v1066_v42, %v1065_v52  ;;  %v3185_v18 = vld [vmem:[#allocation2 + $0xe2] sm:$0xff] }
 0x1b5   : > { %v931_v49 = vmax.f32 %v704_v45, 0.0  ;;  %v707_v50 = vadd.f32 %v11877_v2, %v706_v47  ;;  %v8215_v51 = vpop.f32.mrb[79].mxu0  ;;  %v975_v21 = vmax.f32 %v880_v16, 0.0  ;;  %v883_v22 = vadd.f32 %v11877_v2, %v882_v19  ;;  %v8303_v24 = vpop.f32.mrb[79].mxu1  ;;  %v1072_v16 = vld [vmem:[#allocation2 + $0x38] sm:$0xff]  ;;  %v1074_v19 = vld [vmem:[#allocation2 + $0x48] sm:$0xff] }
 0x1b6   : > { %v1113_v4 = vld [vmem:[#allocation2 + $0x119] sm:$0xff] }
 0x1b7   : > { %1017 = vst.msk [vmem:[#allocation2 + $0x130] sm:$0xff] %vm978_vm4, %v931_v49  ;;  %v932_v59 = vmax.f32 %v707_v50, 0.0  ;;  %1061 = vst.msk [vmem:[#allocation2 + $0x290] sm:$0xff] %vm978_vm4, %v975_v21  ;;  %v976_v28 = vmax.f32 %v883_v22, 0.0  ;;  %v1071_v21 = vld [vmem:[#allocation2 + $0x30] sm:$0xff]  ;;  %v3184_v22 = vld [vmem:[#allocation2 + $0xda] sm:$0xff] }
 0x1b8   : > { %v1114_v5 = vld [vmem:[#allocation2 + $0x121] sm:$0xff]  ;;  %v1088_v24 = vpack.c.bf16 %v1072_v16, %v1071_v21  ;;  %v1867_v21 = vld [vmem:[#allocation2 + $0x22b] sm:$0xff] }
 0x1b9   : > { %1018 = vst.msk [vmem:[#allocation2 + $0x138] sm:$0xff] %vm978_vm4, %v932_v59  ;;  %v1126_v6 = vpack.c.bf16 %v1114_v5, %v1113_v4  ;;  %1062 = vst.msk [vmem:[#allocation2 + $0x298] sm:$0xff] %vm978_vm4, %v976_v28  ;;  %v3181_v4 = vld [vmem:[#allocation2 + $0xc2] sm:$0xff]  ;;  %v3192_v52 = vld [vmem:[#allocation2 + $0x11a] sm:$0xff] }
 0x1ba   : > { %v711_v8 = vpop.f32.mrb[80].mxu0  ;;  %v887_v36 = vpop.f32.mrb[80].mxu1  ;;  %v1070_v5 = vld [vmem:[#allocation2 + $0x28] sm:$0xff]  ;;  %v1865_v16 = vld [vmem:[#allocation2 + $0x21b] sm:$0xff] }
 0x1bb   : > { %v712_v9 = vadd.f32 %v11877_v2, %v711_v8  ;;  %v8218_v54 = vpop.f32.mrb[81].mxu0  ;;  %8325 = vmatmul.mubr.msk.bf16.gmra.mrb[96].mxu1 %vm978_vm4, %v1126_v6  ;;  %8565 = vmatmul.mubr.msk.bf16.gmra.mrb[100].mxu0 %vm978_vm4, %v1126_v6  ;;  %v888_v45 = vadd.f32 %v11877_v2, %v887_v36  ;;  %v8306_v46 = vpop.f32.mrb[81].mxu1  ;;  %v1067_v6 = vld [vmem:[#allocation2 + $0x10] sm:$0xff]  ;;  %v2502_v1 = vld [vmem:[#allocation2 + $0x126] sm:$0xff] }
 0x1bc   : > { %v714_v10 = vpop.f32.mrb[82].mxu0  ;;  %v890_v49 = vpop.f32.mrb[82].mxu1  ;;  %v3183_v8 = vld [vmem:[#allocation2 + $0xd2] sm:$0xff]  ;;  %v3199_v54 = vpack.c.bf16 %v3181_v4, %v3180_v7  ;;  %v1861_v4 = vld [vmem:[#allocation2 + $0x1fb] sm:$0xff] }
 0x1bd   : > { %v933_v12 = vmax.f32 %v712_v9, 0.0  ;;  %v715_v13 = vadd.f32 %v11877_v2, %v714_v10  ;;  %v8219_v15 = vpop.f32.mrb[83].mxu0  ;;  %v977_v58 = vmax.f32 %v888_v45, 0.0  ;;  %v8307_v59 = vpop.f32.mrb[83].mxu1  ;;  %v1086_v9 = vpack.c.bf16 %v1068_v63, %v1067_v6  ;;  %v1069_v10 = vld [vmem:[#allocation2 + $0x20] sm:$0xff]  ;;  %v1075_v36 = vld [vmem:[#allocation2 + $0x50] sm:$0xff] }
 0x1be   : > { %v1115_v25 = vld [vmem:[#allocation2 + $0x129] sm:$0xff]  ;;  %v1087_v11 = vpack.c.bf16 %v1070_v5, %v1069_v10  ;;  %v10543_v15 = vld [vmem:[%s11831_s3 + $0x38] sm:$0xff]   ;;  %v1081_v59 = vld [vmem:[#allocation2 + $0x80] sm:$0xff] }
 0x1bf   : > { %1019 = vst.msk [vmem:[#allocation2 + $0x140] sm:$0xff] %vm978_vm4, %v933_v12  ;;  %v934_v20 = vmax.f32 %v715_v13, 0.0  ;;  %v3182_v12 = vld [vmem:[#allocation2 + $0xca] sm:$0xff]  ;;  %v1084_v6 = vld [vmem:[#allocation2 + $0x98] sm:$0x7] }
 0x1c0   : > { %v1116_v26 = vld [vmem:[#allocation2 + $0x131] sm:$0xff]  ;;  %1064 = vst.msk [vmem:[#allocation2 + $0x2a0] sm:$0xf] %vm1063_vm5, %v977_v58  ;;  %v3200_v13 = vpack.c.bf16 %v3183_v8, %v3182_v12  ;;  %v1082_v49 = vld [vmem:[#allocation2 + $0x88] sm:$0xff] }
 0x1c1   : > { %1020 = vst.msk [vmem:[#allocation2 + $0x148] sm:$0xff] %vm978_vm4, %v934_v20  ;;  %v1127_v27 = vpack.c.bf16 %v1116_v26, %v1115_v25  ;;  %v3187_v20 = vld [vmem:[#allocation2 + $0xf2] sm:$0xff]  ;;  %v1073_v25 = vld [vmem:[#allocation2 + $0x40] sm:$0xff]  ;;  %v3186_v26 = vld [vmem:[#allocation2 + $0xea] sm:$0xff] }
 0x1c2   : > { %v719_v30 = vpop.f32.mrb[84].mxu0  ;;  %v1089_v28 = vpack.c.bf16 %v1074_v19, %v1073_v25  ;;  %v1862_v5 = vld [vmem:[#allocation2 + $0x203] sm:$0xff]  ;;  %v1863_v12 = vld [vmem:[#allocation2 + $0x20b] sm:$0xff] }
 0x1c3   : > { %v720_v31 = vadd.f32 %v11877_v2, %v719_v30  ;;  %v8222_v32 = vpop.f32.mrb[85].mxu0  ;;  %8328 = vmatprep.mubr.msk.bf16.mxu1 %vm978_vm4, %v1127_v27  ;;  %8568 = vmatprep.mubr.msk.bf16.mxu0 %vm978_vm4, %v1127_v27  ;;  %v10556_v27 = vld [vmem:[%s11831_s3 + $0x40] sm:$0xff]   ;;  %v3202_v30 = vpack.c.bf16 %v3187_v20, %v3186_v26 }
 0x1c4   : > { %v722_v35 = vpop.f32.mrb[86].mxu0  ;;  %v1078_v32 = vld [vmem:[#allocation2 + $0x68] sm:$0xff]  ;;  %v1873_v26 = vld [vmem:[#allocation2 + $0x25b] sm:$0xff] }
 0x1c5   : > { %v935_v37 = vmax.f32 %v720_v31, 0.0  ;;  %v723_v40 = vadd.f32 %v11877_v2, %v722_v35  ;;  %v8223_v44 = vpop.f32.mrb[87].mxu0  ;;  %v3189_v31 = vld [vmem:[#allocation2 + $0x102] sm:$0xff]  ;;  %v3191_v35 = vld [vmem:[#allocation2 + $0x112] sm:$0xff]  ;;  %v1091_v45 = vpack.c.bf16 %v1078_v32, %v1077_v43 }
 0x1c6   : > { %v1117_v47 = vld [vmem:[#allocation2 + $0x139] sm:$0xff]  ;;  %v1118_v48 = vld [vmem:[#allocation2 + $0x141] sm:$0x7]  ;;  %v3190_v44 = vld [vmem:[#allocation2 + $0x10a] sm:$0xff] }
 0x1c7   : > { %1021 = vst.msk [vmem:[#allocation2 + $0x150] sm:$0xff] %vm978_vm4, %v935_v37  ;;  %v936_v50 = vmax.f32 %v723_v40, 0.0  ;;  %v1128_v51 = vpack.c.bf16 %v1118_v48, %v1117_v47  ;;  %v3188_v37 = vld [vmem:[#allocation2 + $0xfa] sm:$0xff]  ;;  %v3204_v46 = vpack.c.bf16 %v3191_v35, %v3190_v44  ;;  %v3193_v48 = vld [vmem:[#allocation2 + $0x122] sm:$0xff] }
 0x1c8   : > { %v3203_v42 = vpack.c.bf16 %v3189_v31, %v3188_v37  ;;  %v1080_v47 = vld [vmem:[#allocation2 + $0x78] sm:$0xff]  ;;  %v3205_v58 = vpack.c.bf16 %v3193_v48, %v3192_v52  ;;  %v3197_v8 = vld [vmem:[#allocation2 + $0x142] sm:$0x7]  ;;  %v2073_v48 = vld [vmem:[#allocation2 + $0x16b] sm:$0xff] }
 0x1c9   : > { %1022 = vst.msk [vmem:[#allocation2 + $0x158] sm:$0xff] %vm978_vm4, %v936_v50  ;;  %8329 = vmatmul.mubr.msk.bf16.gmra.mrb[100].mxu1 %vm978_vm4, %v1128_v51  ;;  %8569 = vmatmul.mubr.msk.bf16.gmra.mrb[104].mxu0 %vm978_vm4, %v1128_v51  ;;  %v3195_v50 = vld [vmem:[#allocation2 + $0x132] sm:$0xff]  ;;  %v3196_v7 = vld [vmem:[#allocation2 + $0x13a] sm:$0xff]  ;;  %v1878_v32 = vld [vmem:[#allocation2 + $0x283] sm:$0xff] }
 0x1ca   : > { %8336 = vmatprep.mubr.msk.bf16.mxu1 %vm978_vm4, %v1085_v60  ;;  %8576 = vmatprep.mubr.msk.bf16.mxu0 %vm978_vm4, %v3198_v61  ;;  %v1079_v51 = vld [vmem:[#allocation2 + $0x70] sm:$0xff]  ;;  %v1093_v61 = vpack.c.bf16 %v1082_v49, %v1081_v59  ;;  %v1877_v31 = vld [vmem:[#allocation2 + $0x27b] sm:$0xff] }
 0x1cb   : > { %v1092_v55 = vpack.c.bf16 %v1080_v47, %v1079_v51  ;;  %v3194_v60 = vld [vmem:[#allocation2 + $0x12a] sm:$0xff]  ;;  %v1656_v49 = vld [vmem:[#allocation2 + $0x172] sm:$0xff]  ;;  %v2075_v52 = vld [vmem:[#allocation2 + $0x17b] sm:$0xff] }
 0x1cc   : > { %v3206_v63 = vpack.c.bf16 %v3195_v50, %v3194_v60  ;;  %v2072_v47 = vld [vmem:[#allocation2 + $0x163] sm:$0xff]  ;;  %v1657_v50 = vld [vmem:[#allocation2 + $0x17a] sm:$0xff] }
 0x1cd   : > { %v2074_v51 = vld [vmem:[#allocation2 + $0x173] sm:$0xff]  ;;  %v2505_v0 = vld [vmem:[#allocation2 + $0x13e] sm:$0xff] }
 0x1ce   : > { %v10670_v59 = vpack.c.bf16 %v2075_v52, %v2074_v51  ;;  %v10675_v60 = vld [vmem:[%s11831_s3 + $0x58] sm:$0xff]   ;;  %v2088_v51 = vld [vmem:[#allocation2 + $0x1e3] sm:$0xff]  ;;  %v2089_v52 = vld [vmem:[#allocation2 + $0x1eb] sm:$0x7] }
 0x1cf   : > { %11882 = vst [vmem:[#allocation16_spill] sm:$0xff] %v10675_v60  ;;  %v2280_v2 = vld [vmem:[#allocation2 + $0x15] sm:$0xff] }
 0x1d0   : > { %v1652_v37 = vld [vmem:[#allocation2 + $0x152] sm:$0xff]  ;;  %v2071_v44 = vld [vmem:[#allocation2 + $0x15b] sm:$0xff] }
 0x1d1   : > { %8337 = vmatmul.mubr.msk.bf16.vlgmr.msra.gmra.mrb[84].mxu1 %vm978_vm4, %v1086_v9  ;;  %8577 = vmatmul.mubr.msk.bf16.vlgmr.msra.gmra.mrb[88].mxu0 %vm978_vm4, %v3199_v54  ;;  %v1083_v9 = vld [vmem:[#allocation2 + $0x90] sm:$0xff]  ;;  %v10572_v54 = vpack.c.bf16 %v1862_v5, %v1861_v4 }
 0x1d2   : > { %8357 = vmatpush3.bf16.msra.mxu1 %v10341_v38  ;;  %8340 = vmatprep.mubr.msk.bf16.mxu1 %vm978_vm4, %v1087_v11  ;;  %v3201_v38 = vpack.c.bf16 %v3185_v18, %v3184_v22  ;;  %v1094_v10 = vpack.c.bf16 %v1084_v6, %v1083_v9  ;;  %v3207_v11 = vpack.c.bf16 %v3197_v8, %v3196_v7  ;;  %v1866_v18 = vld [vmem:[#allocation2 + $0x223] sm:$0xff]  ;;  %v1868_v22 = vld [vmem:[#allocation2 + $0x233] sm:$0xff]  ;;  %v2077_v5 = vld [vmem:[#allocation2 + $0x18b] sm:$0xff] }
 0x1d3   : > { %8580 = vmatprep.mubr.msk.bf16.mxu0 %vm978_vm4, %v3200_v13  ;;  %8358 = vmatprep.subr.bf16.mxu1 %v10440_v41  ;;  %v1864_v13 = vld [vmem:[#allocation2 + $0x213] sm:$0xff]  ;;  %v10582_v20 = vpack.c.bf16 %v1866_v18, %v1865_v16  ;;  %v1659_v4 = vld [vmem:[#allocation2 + $0x18a] sm:$0xff]  ;;  %v2079_v9 = vld [vmem:[#allocation2 + $0x19b] sm:$0xff] }
 0x1d4   : > { %8597 = vmatpush3.bf16.msra.mxu0 %v10456_v56  ;;  %v10580_v19 = vpack.c.bf16 %v1864_v13, %v1863_v12  ;;  %v2070_v43 = vld [vmem:[#allocation2 + $0x153] sm:$0xff]  ;;  %v1662_v16 = vld [vmem:[#allocation2 + $0x1a2] sm:$0xff] }
 0x1d5   : > { %8598 = vmatprep.subr.bf16.mxu0 %v10543_v15  ;;  %v1660_v6 = vld [vmem:[#allocation2 + $0x192] sm:$0xff]  ;;  %v1661_v7 = vld [vmem:[#allocation2 + $0x19a] sm:$0xff]  ;;  %v2080_v18 = vld [vmem:[#allocation2 + $0x1a3] sm:$0xff] }
 0x1d6   : > { %8359 = vmatpush3.bf16.msra.mxu1 %v10440_v41  ;;  %v1076_v41 = vld [vmem:[#allocation2 + $0x58] sm:$0xff]  ;;  %v10696_v12 = vpack.c.bf16 %v1661_v7, %v1660_v6  ;;  %v3639_v7 = vld [vmem:[#allocation2 + $0x20c] sm:$0xff] }
 0x1d7   : > { %8380 = vmatprep.subr.bf16.mxu1 %v10456_v56  ;;  %v1090_v40 = vpack.c.bf16 %v1076_v41, %v1075_v36  ;;  %v10636_v36 = vpack.c.bf16 %v1878_v32, %v1877_v31  ;;  %v2078_v8 = vld [vmem:[#allocation2 + $0x193] sm:$0xff]  ;;  %v1666_v31 = vld [vmem:[#allocation2 + $0x1c2] sm:$0xff] }
 0x1d8   : > { %8599 = vmatpush3.bf16.msra.mxu0 %v10543_v15  ;;  %v10698_v13 = vpack.c.bf16 %v2079_v9, %v2078_v8  ;;  %v2084_v32 = vld [vmem:[#allocation2 + $0x1c3] sm:$0xff]  ;;  %v3640_v8 = vld [vmem:[#allocation2 + $0x214] sm:$0xff] }
 0x1d9   : > { %8341 = vmatmul.mubr.msk.bf16.gmra.mrb[88].mxu1 %vm978_vm4, %v1088_v24  ;;  %8581 = vmatmul.mubr.msk.bf16.gmra.mrb[92].mxu0 %vm978_vm4, %v3201_v38  ;;  %v1869_v24 = vld [vmem:[#allocation2 + $0x23b] sm:$0xff]  ;;  %v10600_v38 = vpack.c.bf16 %v1868_v22, %v1867_v21  ;;  %v1663_v21 = vld [vmem:[#allocation2 + $0x1aa] sm:$0xff] }
 0x1da   : > { %8344 = vmatprep.mubr.msk.bf16.mxu1 %vm978_vm4, %v1089_v28  ;;  %8584 = vmatprep.mubr.msk.bf16.mxu0 %vm978_vm4, %v3202_v30  ;;  %v1874_v28 = vld [vmem:[#allocation2 + $0x263] sm:$0xff]  ;;  %v2081_v22 = vld [vmem:[#allocation2 + $0x1ab] sm:$0xff] }
 0x1db   : > { %8620 = vmatprep.subr.bf16.mxu0 %v10556_v27  ;;  %v10624_v41 = vpack.c.bf16 %v1874_v28, %v1873_v26  ;;  %v10710_v26 = vpack.c.bf16 %v1663_v21, %v1662_v16  ;;  %v10712_v28 = vpack.c.bf16 %v2081_v22, %v2080_v18  ;;  %v3641_v9 = vld [vmem:[#allocation2 + $0x21c] sm:$0xff]  ;;  %v3642_v16 = vld [vmem:[#allocation2 + $0x224] sm:$0xff]  ;;  %v10756_v18 = vpack.c.bf16 %v3640_v8, %v3639_v7  ;;  %v3655_v8 = vld [vmem:[#allocation2 + $0x28c] sm:$0xff] }
 0x1dc   : > { %v10762_v21 = vpack.c.bf16 %v3642_v16, %v3641_v9  ;;  %v10767_v22 = vld [vmem:[%s11831_s3 + $0x68] sm:$0xff]   ;;  %v3656_v9 = vld [vmem:[#allocation2 + $0x294] sm:$0x7]  ;;  %v2489_v16 = vld [vmem:[#allocation2 + $0xbe] sm:$0xff] }
 0x1dd   : > { %11888 = vst [vmem:[#allocation22_spill] sm:$0xff] %v10767_v22 }
 0x1e1   : > { %8345 = vmatmul.mubr.msk.bf16.gmra.mrb[92].mxu1 %vm978_vm4, %v1090_v40  ;;  %8585 = vmatmul.mubr.msk.bf16.gmra.mrb[96].mxu0 %vm978_vm4, %v3203_v42  ;;  %v1653_v42 = vld [vmem:[#allocation2 + $0x15a] sm:$0xff] }
 0x1e2   : > { %8348 = vmatprep.mubr.msk.bf16.mxu1 %vm978_vm4, %v1091_v45  ;;  %8588 = vmatprep.mubr.msk.bf16.mxu0 %vm978_vm4, %v3204_v46  ;;  %v10648_v45 = vpack.c.bf16 %v1653_v42, %v1652_v37  ;;  %v1655_v46 = vld [vmem:[#allocation2 + $0x16a] sm:$0xff]  ;;  %v1668_v37 = vld [vmem:[#allocation2 + $0x1d2] sm:$0xff]  ;;  %v1669_v42 = vld [vmem:[#allocation2 + $0x1da] sm:$0xff] }
 0x1e9   : > { %8349 = vmatmul.mubr.msk.bf16.gmra.mrb[96].mxu1 %vm978_vm4, %v1092_v55  ;;  %8589 = vmatmul.mubr.msk.bf16.gmra.mrb[100].mxu0 %vm978_vm4, %v3205_v58  ;;  %v10664_v58 = vpack.c.bf16 %v1657_v50, %v1656_v49  ;;  %v1670_v49 = vld [vmem:[#allocation2 + $0x1e2] sm:$0xff]  ;;  %v1671_v50 = vld [vmem:[#allocation2 + $0x1ea] sm:$0x7] }
 0x1ea   : > { %8352 = vmatprep.mubr.msk.bf16.mxu1 %vm978_vm4, %v1093_v61  ;;  %8592 = vmatprep.mubr.msk.bf16.mxu0 %vm978_vm4, %v3206_v63  ;;  %v1658_v61 = vld [vmem:[#allocation2 + $0x182] sm:$0xff] }
 0x1eb   : > { %v2076_v63 = vld [vmem:[#allocation2 + $0x183] sm:$0xff] }
 0x1f1   : > { %8353 = vmatmul.mubr.msk.bf16.gmra.mrb[100].mxu1 %vm978_vm4, %v1094_v10  ;;  %8593 = vmatmul.mubr.msk.bf16.gmra.mrb[104].mxu0 %vm978_vm4, %v3207_v11  ;;  %v10688_v10 = vpack.c.bf16 %v2077_v5, %v2076_v63  ;;  %v10694_v11 = vld [vmem:[%s11831_s3 + $0x60] sm:$0xff]   ;;  %v10744_v5 = vpack.c.bf16 %v2089_v52, %v2088_v51  ;;  %v3652_v51 = vld [vmem:[#allocation2 + $0x274] sm:$0xff] }
 0x1f2   : > { %8360 = vmatprep.mubr.msk.bf16.mxu1 %vm978_vm4, %v10291_v34  ;;  %8600 = vmatprep.mubr.msk.bf16.mxu0 %vm978_vm4, %v10572_v54  ;;  %v10591_v34 = vld [vmem:[%s11831_s3 + $0x48] sm:$0xff]   ;;  %11883 = vst [vmem:[#allocation17_spill] sm:$0xff] %v10694_v11  ;;  %v3653_v52 = vld [vmem:[#allocation2 + $0x27c] sm:$0xff] }
 0x1f3   : > { %11880 = vst [vmem:[#allocation14_spill] sm:$0xff] %v10591_v34  ;;  %v3638_v63 = vld [vmem:[#allocation2 + $0x204] sm:$0xff] }
 0x1f9   : > { %8361 = vmatmul.mubr.msk.bf16.vlgmr.msra.gmra.mrb[84].mxu1 %vm978_vm4, %v10303_v53  ;;  %8601 = vmatmul.mubr.msk.bf16.vlgmr.msra.gmra.mrb[88].mxu0 %vm978_vm4, %v10580_v19  ;;  %v1870_v53 = vld [vmem:[#allocation2 + $0x243] sm:$0xff] }
 0x1fa   : > { %8381 = vmatpush3.bf16.msra.mxu1 %v10456_v56  ;;  %8364 = vmatprep.mubr.msk.bf16.mxu1 %vm978_vm4, %v10323_v14  ;;  %v10603_v25 = vpack.c.bf16 %v1870_v53, %v1869_v24  ;;  %v10610_v14 = vld [vmem:[%s11831_s3 + $0x50] sm:$0xff]   ;;  %v1665_v53 = vld [vmem:[#allocation2 + $0x1ba] sm:$0xff] }
 0x1fb   : > { %8604 = vmatprep.mubr.msk.bf16.mxu0 %vm978_vm4, %v10582_v20  ;;  %8382 = vmatprep.subr.bf16.mxu1 %v10543_v15  ;;  %11881 = vst [vmem:[#allocation15_spill] sm:$0xff] %v10610_v14  ;;  %v1871_v56 = vld [vmem:[#allocation2 + $0x24b] sm:$0xff] }
 0x1fc   : > { %8621 = vmatpush3.bf16.msra.mxu0 %v10556_v27  ;;  %v1664_v24 = vld [vmem:[#allocation2 + $0x1b2] sm:$0xff] }
 0x1fd   : > { %8622 = vmatprep.subr.bf16.mxu0 %v10591_v34 }
 0x1fe   : > { %8383 = vmatpush3.bf16.msra.mxu1 %v10543_v15  ;;  %v1872_v15 = vld [vmem:[#allocation2 + $0x253] sm:$0xff] }
 0x1ff   : > { %8404 = vmatprep.subr.bf16.mxu1 %v10556_v27  ;;  %v10622_v30 = vpack.c.bf16 %v1872_v15, %v1871_v56  ;;  %v2082_v56 = vld [vmem:[#allocation2 + $0x1b3] sm:$0xff]  ;;  %v2083_v15 = vld [vmem:[#allocation2 + $0x1bb] sm:$0xff] }
 0x200   : > { %8623 = vmatpush3.bf16.msra.mxu0 %v10591_v34 }
 0x201   : > { %8365 = vmatmul.mubr.msk.bf16.gmra.mrb[88].mxu1 %vm978_vm4, %v10335_v33  ;;  %8605 = vmatmul.mubr.msk.bf16.gmra.mrb[92].mxu0 %vm978_vm4, %v10600_v38  ;;  %v1875_v33 = vld [vmem:[#allocation2 + $0x26b] sm:$0xff] }
 0x202   : > { %8368 = vmatprep.mubr.msk.bf16.mxu1 %vm978_vm4, %v10353_v57  ;;  %8608 = vmatprep.mubr.msk.bf16.mxu0 %vm978_vm4, %v10603_v25  ;;  %v1876_v57 = vld [vmem:[#allocation2 + $0x273] sm:$0xff] }
 0x203   : > { %8644 = vmatprep.subr.bf16.mxu0 %v10610_v14  ;;  %v10634_v35 = vpack.c.bf16 %v1876_v57, %v1875_v33  ;;  %v10714_v33 = vpack.c.bf16 %v1665_v53, %v1664_v24  ;;  %v10716_v57 = vpack.c.bf16 %v2083_v15, %v2082_v56  ;;  %v3643_v24 = vld [vmem:[#allocation2 + $0x22c] sm:$0xff]  ;;  %v3644_v53 = vld [vmem:[#allocation2 + $0x234] sm:$0xff]  ;;  %v3645_v56 = vld [vmem:[#allocation2 + $0x23c] sm:$0xff] }
 0x204   : > { %v3646_v15 = vld [vmem:[#allocation2 + $0x244] sm:$0xff] }
 0x205   : > { %11884 = vst [vmem:[#allocation18_spill] sm:$0xff] %v10714_v33 }
 0x209   : > { %8369 = vmatmul.mubr.msk.bf16.gmra.mrb[92].mxu1 %vm978_vm4, %v10365_v17  ;;  %8609 = vmatmul.mubr.msk.bf16.gmra.mrb[96].mxu0 %vm978_vm4, %v10622_v30  ;;  %v1879_v17 = vld [vmem:[#allocation2 + $0x28b] sm:$0xff] }
 0x20a   : > { %8372 = vmatprep.mubr.msk.bf16.mxu1 %vm978_vm4, %v10377_v39  ;;  %8612 = vmatprep.mubr.msk.bf16.mxu0 %vm978_vm4, %v10624_v41  ;;  %v1880_v39 = vld [vmem:[#allocation2 + $0x293] sm:$0x7] }
 0x20b   : > { %v10646_v40 = vpack.c.bf16 %v1880_v39, %v1879_v17  ;;  %v1667_v17 = vld [vmem:[#allocation2 + $0x1ca] sm:$0xff] }
 0x20c   : > { %v2085_v39 = vld [vmem:[#allocation2 + $0x1cb] sm:$0xff] }
 0x211   : > { %8373 = vmatmul.mubr.msk.bf16.gmra.mrb[96].mxu1 %vm978_vm4, %v10389_v62  ;;  %8613 = vmatmul.mubr.msk.bf16.gmra.mrb[100].mxu0 %vm978_vm4, %v10634_v35  ;;  %v10650_v62 = vpack.c.bf16 %v2071_v44, %v2070_v43  ;;  %v2086_v43 = vld [vmem:[#allocation2 + $0x1d3] sm:$0xff]  ;;  %v2087_v44 = vld [vmem:[#allocation2 + $0x1db] sm:$0xff] }
 0x212   : > { %8376 = vmatprep.mubr.msk.bf16.mxu1 %vm978_vm4, %v10401_v23  ;;  %8616 = vmatprep.mubr.msk.bf16.mxu0 %vm978_vm4, %v10636_v36  ;;  %v1654_v23 = vld [vmem:[#allocation2 + $0x162] sm:$0xff] }
 0x213   : > { %v10660_v55 = vpack.c.bf16 %v1655_v46, %v1654_v23  ;;  %v10726_v23 = vpack.c.bf16 %v1667_v17, %v1666_v31  ;;  %v10728_v46 = vpack.c.bf16 %v2085_v39, %v2084_v32  ;;  %v10778_v31 = vpack.c.bf16 %v3644_v53, %v3643_v24  ;;  %v10784_v32 = vld [vmem:[%s11831_s3 + $0x70] sm:$0xff]  }
 0x214   : > { %11889 = vst [vmem:[#allocation23_spill] sm:$0xff] %v10784_v32  ;;  %v10786_v17 = vpack.c.bf16 %v3646_v15, %v3645_v56  ;;  %v3647_v39 = vld [vmem:[#allocation2 + $0x24c] sm:$0xff]  ;;  %v10822_v24 = vpack.c.bf16 %v3656_v9, %v3655_v8  ;;  %v2488_v53 = vld [vmem:[#allocation2 + $0xb6] sm:$0xff] }
 0x215   : > { %11885 = vst [vmem:[#allocation19_spill] sm:$0xff] %v10726_v23  ;;  %v10824_v56 = vpack.c.bf16 %v2489_v16, %v2488_v53  ;;  %v2491_v15 = vld [vmem:[#allocation2 + $0xce] sm:$0xff]  ;;  %v2494_v8 = vld [vmem:[#allocation2 + $0xe6] sm:$0xff]  ;;  %v2496_v16 = vld [vmem:[#allocation2 + $0xf6] sm:$0xff] }
 0x216   : > { %11894 = vst [vmem:[#allocation28_spill] sm:$0xff] %v10822_v24  ;;  %v10862_v53 = vld [vmem:[%s11831_s3 + $0x80] sm:$0xff]  }
 0x219   : > { %8377 = vmatmul.mubr.msk.bf16.gmra.mrb[100].mxu1 %vm978_vm4, %v10407_v29  ;;  %8617 = vmatmul.mubr.msk.bf16.gmra.mrb[104].mxu0 %vm978_vm4, %v10646_v40  ;;  %v10662_v29 = vpack.c.bf16 %v2073_v48, %v2072_v47  ;;  %v10730_v47 = vpack.c.bf16 %v1669_v42, %v1668_v37  ;;  %v10732_v48 = vpack.c.bf16 %v2087_v44, %v2086_v43  ;;  %v3648_v37 = vld [vmem:[#allocation2 + $0x254] sm:$0xff]  ;;  %v3649_v42 = vld [vmem:[#allocation2 + $0x25c] sm:$0xff]  ;;  %v3650_v43 = vld [vmem:[#allocation2 + $0x264] sm:$0xff] }
 0x21a   : > { %8384 = vmatprep.mubr.msk.bf16.mxu1 %vm978_vm4, %v10648_v45  ;;  %8624 = vmatprep.mubr.msk.bf16.mxu0 %vm978_vm4, %v10650_v62  ;;  %v10798_v44 = vpack.c.bf16 %v3648_v37, %v3647_v39  ;;  %v2490_v39 = vld [vmem:[#allocation2 + $0xc6] sm:$0xff]  ;;  %v2493_v37 = vld [vmem:[#allocation2 + $0xde] sm:$0xff] }
 0x21b   : > { %11886 = vst [vmem:[#allocation20_spill] sm:$0xff] %v10730_v47 }
 0x21c   : > { %11890 = vst [vmem:[#allocation24_spill] sm:$0xff] %v10798_v44 }
 0x221   : > { %8385 = vmatmul.mubr.msk.bf16.vlgmr.msra.gmra.mrb[84].mxu1 %vm978_vm4, %v10660_v55  ;;  %8625 = vmatmul.mubr.msk.bf16.vlgmr.msra.gmra.mrb[88].mxu0 %vm978_vm4, %v10662_v29 }
 0x222   : > { %8405 = vmatpush3.bf16.msra.mxu1 %v10556_v27  ;;  %8388 = vmatprep.mubr.msk.bf16.mxu1 %vm978_vm4, %v10664_v58  ;;  %v10686_v27 = vpack.c.bf16 %v1659_v4, %v1658_v61  ;;  %v3637_v61 = vld [vmem:[#allocation2 + $0x1fc] sm:$0xff]  ;;  %v10742_v4 = vpack.c.bf16 %v1671_v50, %v1670_v49  ;;  %v10800_v49 = vpack.c.bf16 %v3650_v43, %v3649_v42  ;;  %v3651_v50 = vld [vmem:[#allocation2 + $0x26c] sm:$0xff] }
 0x223   : > { %8628 = vmatprep.mubr.msk.bf16.mxu0 %vm978_vm4, %v10670_v59  ;;  %8406 = vmatprep.subr.bf16.mxu1 %v10591_v34  ;;  %v10746_v6 = vpack.c.bf16 %v3638_v63, %v3637_v61  ;;  %v3654_v61 = vld [vmem:[#allocation2 + $0x284] sm:$0xff]  ;;  %v10810_v63 = vpack.c.bf16 %v3652_v51, %v3651_v50  ;;  %v10834_v42 = vpack.c.bf16 %v2491_v15, %v2490_v39  ;;  %v2492_v43 = vld [vmem:[#allocation2 + $0xd6] sm:$0xff]  ;;  %v2499_v39 = vld [vmem:[#allocation2 + $0x10e] sm:$0xff] }
 0x224   : > { %8645 = vmatpush3.bf16.msra.mxu0 %v10610_v14  ;;  %11887 = vst [vmem:[#allocation21_spill] sm:$0xff] %v10742_v4  ;;  %11891 = vst [vmem:[#allocation25_spill] sm:$0xff] %v10800_v49  ;;  %v10812_v7 = vpack.c.bf16 %v3654_v61, %v3653_v52  ;;  %v10840_v50 = vpack.c.bf16 %v2493_v37, %v2492_v43  ;;  %v10845_v51 = vld [vmem:[%s11831_s3 + $0x78] sm:$0xff]   ;;  %v2495_v52 = vld [vmem:[#allocation2 + $0xee] sm:$0xff] }
 0x225   : > { %8646 = vmatprep.subr.bf16.mxu0 %v10675_v60  ;;  %11892 = vst [vmem:[#allocation26_spill] sm:$0xff] %v10810_v63  ;;  %11895 = vst [vmem:[#allocation29_spill] sm:$0xff] %v10845_v51  ;;  %v2497_v61 = vld [vmem:[#allocation2 + $0xfe] sm:$0xff]  ;;  %v10856_v9 = vpack.c.bf16 %v2495_v52, %v2494_v8  ;;  %v2498_v43 = vld [vmem:[#allocation2 + $0x106] sm:$0xff] }
 0x226   : > { %8407 = vmatpush3.bf16.msra.mxu1 %v10591_v34  ;;  %11893 = vst [vmem:[#allocation27_spill] sm:$0xff] %v10812_v7  ;;  %v10864_v15 = vpack.c.bf16 %v2497_v61, %v2496_v16  ;;  %v2501_v37 = vld [vmem:[#allocation2 + $0x11e] sm:$0xff]  ;;  %v10876_v52 = vpack.c.bf16 %v2499_v39, %v2498_v43  ;;  %v2500_v61 = vld [vmem:[#allocation2 + $0x116] sm:$0xff]  ;;  %v2503_v16 = vld [vmem:[#allocation2 + $0x12e] sm:$0xff] }
 0x227   : > { %8428 = vmatprep.subr.bf16.mxu1 %v10610_v14  ;;  %v10878_v8 = vpack.c.bf16 %v2501_v37, %v2500_v61  ;;  %v10888_v39 = vpack.c.bf16 %v2503_v16, %v2502_v1  ;;  %v2504_v43 = vld [vmem:[#allocation2 + $0x136] sm:$0xff]  ;;  %v2507_v61 = vld [vmem:[#allocation2 + $0x14e] sm:$0x7]  ;;  %v2506_v1 = vld [vmem:[#allocation2 + $0x146] sm:$0xff] }
 0x228   : > { %8647 = vmatpush3.bf16.msra.mxu0 %v10675_v60  ;;  %v10890_v37 = vpack.c.bf16 %v2505_v0, %v2504_v43  ;;  %v10900_v16 = vpack.c.bf16 %v2507_v61, %v2506_v1  ;;  %v2279_v0 = vld [vmem:[#allocation2 + $0xd] sm:$0xff]  ;;  %v2282_v61 = vld [vmem:[#allocation2 + $0x25] sm:$0xff] }
 0x229   : > { %8389 = vmatmul.mubr.msk.bf16.gmra.mrb[88].mxu1 %vm978_vm4, %v10686_v27  ;;  %8629 = vmatmul.mubr.msk.bf16.gmra.mrb[92].mxu0 %vm978_vm4, %v10688_v10  ;;  %v2697_v43 = vld [vmem:[#allocation2 + $0xe] sm:$0xff]  ;;  %v2700_v1 = vld [vmem:[#allocation2 + $0x26] sm:$0xff] }
 0x22a   : > { %8392 = vmatprep.mubr.msk.bf16.mxu1 %vm978_vm4, %v10696_v12  ;;  %8632 = vmatprep.mubr.msk.bf16.mxu0 %vm978_vm4, %v10698_v13  ;;  %v2283_v34 = vld [vmem:[#allocation2 + $0x2d] sm:$0xff] }
 0x22b   : > { %8668 = vmatprep.subr.bf16.mxu0 %v10694_v11 }
 0x231   : > { %8393 = vmatmul.mubr.msk.bf16.gmra.mrb[92].mxu1 %vm978_vm4, %v10710_v26  ;;  %8633 = vmatmul.mubr.msk.bf16.gmra.mrb[96].mxu0 %vm978_vm4, %v10712_v28 }
 0x232   : > { %8396 = vmatprep.mubr.msk.bf16.mxu1 %vm978_vm4, %v10714_v33  ;;  %8636 = vmatprep.mubr.msk.bf16.mxu0 %vm978_vm4, %v10716_v57 }
 0x239   : > { %8397 = vmatmul.mubr.msk.bf16.gmra.mrb[96].mxu1 %vm978_vm4, %v10726_v23  ;;  %8637 = vmatmul.mubr.msk.bf16.gmra.mrb[100].mxu0 %vm978_vm4, %v10728_v46 }
 0x23a   : > { %8400 = vmatprep.mubr.msk.bf16.mxu1 %vm978_vm4, %v10730_v47  ;;  %8640 = vmatprep.mubr.msk.bf16.mxu0 %vm978_vm4, %v10732_v48 }
 0x241   : > { %8401 = vmatmul.mubr.msk.bf16.gmra.mrb[100].mxu1 %vm978_vm4, %v10742_v4  ;;  %8641 = vmatmul.mubr.msk.bf16.gmra.mrb[104].mxu0 %vm978_vm4, %v10744_v5  ;;  %v2701_v4 = vld [vmem:[#allocation2 + $0x2e] sm:$0xff] }
 0x242   : > { %8408 = vmatprep.mubr.msk.bf16.mxu1 %vm978_vm4, %v10572_v54  ;;  %8648 = vmatprep.mubr.msk.bf16.mxu0 %vm978_vm4, %v10746_v6 }
 0x249   : > { %8409 = vmatmul.mubr.msk.bf16.vlgmr.msra.gmra.mrb[84].mxu1 %vm978_vm4, %v10580_v19  ;;  %8649 = vmatmul.mubr.msk.bf16.vlgmr.msra.gmra.mrb[88].mxu0 %vm978_vm4, %v10756_v18 }
 0x24a   : > { %8429 = vmatpush3.bf16.msra.mxu1 %v10610_v14  ;;  %8412 = vmatprep.mubr.msk.bf16.mxu1 %vm978_vm4, %v10582_v20  ;;  %v2281_v14 = vld [vmem:[#allocation2 + $0x1d] sm:$0xff] }
 0x24b   : > { %8652 = vmatprep.mubr.msk.bf16.mxu0 %vm978_vm4, %v10762_v21  ;;  %8430 = vmatprep.subr.bf16.mxu1 %v10675_v60 }
 0x24c   : > { %8669 = vmatpush3.bf16.msra.mxu0 %v10694_v11 }
 0x24d   : > { %8670 = vmatprep.subr.bf16.mxu0 %v10767_v22 }
 0x24e   : > { %8431 = vmatpush3.bf16.msra.mxu1 %v10675_v60  ;;  %v2284_v60 = vld [vmem:[#allocation2 + $0x35] sm:$0xff] }
 0x24f   : > { %8452 = vmatprep.subr.bf16.mxu1 %v10694_v11 }
 0x250   : > { %8671 = vmatpush3.bf16.msra.mxu0 %v10767_v22 }
 0x251   : > { %8413 = vmatmul.mubr.msk.bf16.gmra.mrb[88].mxu1 %vm978_vm4, %v10600_v38  ;;  %8653 = vmatmul.mubr.msk.bf16.gmra.mrb[92].mxu0 %vm978_vm4, %v10778_v31 }
 0x252   : > { %8416 = vmatprep.mubr.msk.bf16.mxu1 %vm978_vm4, %v10603_v25  ;;  %8656 = vmatprep.mubr.msk.bf16.mxu0 %vm978_vm4, %v10786_v17 }
 0x253   : > { %8692 = vmatprep.subr.bf16.mxu0 %v10784_v32 }
 0x259   : > { %8417 = vmatmul.mubr.msk.bf16.gmra.mrb[92].mxu1 %vm978_vm4, %v10622_v30  ;;  %8657 = vmatmul.mubr.msk.bf16.gmra.mrb[96].mxu0 %vm978_vm4, %v10798_v44 }
 0x25a   : > { %8420 = vmatprep.mubr.msk.bf16.mxu1 %vm978_vm4, %v10624_v41  ;;  %8660 = vmatprep.mubr.msk.bf16.mxu0 %vm978_vm4, %v10800_v49  ;;  %v2713_v49 = vld [vmem:[#allocation2 + $0x8e] sm:$0xff] }
 0x261   : > { %8421 = vmatmul.mubr.msk.bf16.gmra.mrb[96].mxu1 %vm978_vm4, %v10634_v35  ;;  %8661 = vmatmul.mubr.msk.bf16.gmra.mrb[100].mxu0 %vm978_vm4, %v10810_v63 }
 0x262   : > { %8424 = vmatprep.mubr.msk.bf16.mxu1 %vm978_vm4, %v10636_v36  ;;  %8664 = vmatprep.mubr.msk.bf16.mxu0 %vm978_vm4, %v10812_v7  ;;  %v10929_v7 = vld [vmem:[%s11831_s3 + $0x88] sm:$0xff]  }
 0x269   : > { %8425 = vmatmul.mubr.msk.bf16.gmra.mrb[100].mxu1 %vm978_vm4, %v10646_v40  ;;  %8665 = vmatmul.mubr.msk.bf16.gmra.mrb[104].mxu0 %vm978_vm4, %v10822_v24  ;;  %v10918_v24 = vpack.c.bf16 %v2284_v60, %v2283_v34  ;;  %v2286_v34 = vld [vmem:[#allocation2 + $0x45] sm:$0xff]  ;;  %v2288_v60 = vld [vmem:[#allocation2 + $0x55] sm:$0xff] }
 0x26a   : > { %8432 = vmatprep.mubr.msk.bf16.mxu1 %vm978_vm4, %v10650_v62  ;;  %8672 = vmatprep.mubr.msk.bf16.mxu0 %vm978_vm4, %v10824_v56 }
 0x26b   : > { %11898 = vst [vmem:[#allocation32_spill] sm:$0xff] %v10918_v24 }
 0x271   : > { %8433 = vmatmul.mubr.msk.bf16.vlgmr.msra.gmra.mrb[84].mxu1 %vm978_vm4, %v10662_v29  ;;  %8673 = vmatmul.mubr.msk.bf16.vlgmr.msra.gmra.mrb[88].mxu0 %vm978_vm4, %v10834_v42 }
 0x272   : > { %8453 = vmatpush3.bf16.msra.mxu1 %v10694_v11  ;;  %8436 = vmatprep.mubr.msk.bf16.mxu1 %vm978_vm4, %v10670_v59  ;;  %v10904_v11 = vpack.c.bf16 %v2698_v3, %v2697_v43  ;;  %v10914_v3 = vpack.c.bf16 %v2282_v61, %v2281_v14  ;;  %v2704_v14 = vld [vmem:[#allocation2 + $0x46] sm:$0xff]  ;;  %v2285_v61 = vld [vmem:[#allocation2 + $0x3d] sm:$0xff] }
 0x273   : > { %8676 = vmatprep.mubr.msk.bf16.mxu0 %vm978_vm4, %v10840_v50  ;;  %8454 = vmatprep.subr.bf16.mxu1 %v10767_v22 }
 0x274   : > { %8693 = vmatpush3.bf16.msra.mxu0 %v10784_v32  ;;  %11897 = vst [vmem:[#allocation31_spill] sm:$0xff] %v10914_v3 }
 0x275   : > { %8694 = vmatprep.subr.bf16.mxu0 %v10845_v51 }
 0x276   : > { %8455 = vmatpush3.bf16.msra.mxu1 %v10767_v22  ;;  %v10902_v22 = vpack.c.bf16 %v2280_v2, %v2279_v0  ;;  %v2699_v2 = vld [vmem:[#allocation2 + $0x1e] sm:$0xff]  ;;  %v2702_v0 = vld [vmem:[#allocation2 + $0x36] sm:$0xff] }
 0x277   : > { %8476 = vmatprep.subr.bf16.mxu1 %v10784_v32  ;;  %v10916_v43 = vpack.c.bf16 %v2700_v1, %v2699_v2  ;;  %v2703_v1 = vld [vmem:[#allocation2 + $0x3e] sm:$0xff]  ;;  %v10940_v2 = vpack.c.bf16 %v2286_v34, %v2285_v61  ;;  %v2708_v34 = vld [vmem:[#allocation2 + $0x66] sm:$0xff] }
 0x278   : > { %8695 = vmatpush3.bf16.msra.mxu0 %v10845_v51  ;;  %11896 = vst [vmem:[#allocation30_spill] sm:$0xff] %v10902_v22  ;;  %v2707_v61 = vld [vmem:[#allocation2 + $0x5e] sm:$0xff] }
 0x279   : > { %8437 = vmatmul.mubr.msk.bf16.gmra.mrb[88].mxu1 %vm978_vm4, %v10688_v10  ;;  %8677 = vmatmul.mubr.msk.bf16.gmra.mrb[92].mxu0 %vm978_vm4, %v10856_v9  ;;  %11899 = vst [vmem:[#allocation33_spill] sm:$0xff] %v10940_v2 }
 0x27a   : > { %8440 = vmatprep.mubr.msk.bf16.mxu1 %vm978_vm4, %v10698_v13  ;;  %8680 = vmatprep.mubr.msk.bf16.mxu0 %vm978_vm4, %v10864_v15 }
 0x27b   : > { %8716 = vmatprep.subr.bf16.mxu0 %v10862_v53 }
 0x281   : > { %8441 = vmatmul.mubr.msk.bf16.gmra.mrb[92].mxu1 %vm978_vm4, %v10712_v28  ;;  %8681 = vmatmul.mubr.msk.bf16.gmra.mrb[96].mxu0 %vm978_vm4, %v10876_v52 }
 0x282   : > { %8444 = vmatprep.mubr.msk.bf16.mxu1 %vm978_vm4, %v10716_v57  ;;  %8684 = vmatprep.mubr.msk.bf16.mxu0 %vm978_vm4, %v10878_v8 }
 0x289   : > { %8445 = vmatmul.mubr.msk.bf16.gmra.mrb[96].mxu1 %vm978_vm4, %v10728_v46  ;;  %8685 = vmatmul.mubr.msk.bf16.gmra.mrb[100].mxu0 %vm978_vm4, %v10888_v39 }
 0x28a   : > { %8448 = vmatprep.mubr.msk.bf16.mxu1 %vm978_vm4, %v10732_v48  ;;  %8688 = vmatprep.mubr.msk.bf16.mxu0 %vm978_vm4, %v10890_v37 }
 0x291   : > { %8449 = vmatmul.mubr.msk.bf16.gmra.mrb[100].mxu1 %vm978_vm4, %v10744_v5  ;;  %8689 = vmatmul.mubr.msk.bf16.gmra.mrb[104].mxu0 %vm978_vm4, %v10900_v16 }
 0x292   : > { %8456 = vmatprep.mubr.msk.bf16.mxu1 %vm978_vm4, %v10902_v22  ;;  %8696 = vmatprep.mubr.msk.bf16.mxu0 %vm978_vm4, %v10904_v11  ;;  %v10924_v22 = vpack.c.bf16 %v2702_v0, %v2701_v4  ;;  %v2706_v4 = vld [vmem:[#allocation2 + $0x56] sm:$0xff]  ;;  %v10942_v0 = vpack.c.bf16 %v2704_v14, %v2703_v1 }
 0x293   : > { %v2292_v14 = vld [vmem:[#allocation2 + $0x75] sm:$0xff] }
 0x299   : > { %8457 = vmatmul.mubr.msk.bf16.vlgmr.msra.gmra.mrb[84].mxu1 %vm978_vm4, %v10914_v3  ;;  %8697 = vmatmul.mubr.msk.bf16.vlgmr.msra.gmra.mrb[88].mxu0 %vm978_vm4, %v10916_v43 }
 0x29a   : > { %8477 = vmatpush3.bf16.msra.mxu1 %v10784_v32  ;;  %8460 = vmatprep.mubr.msk.bf16.mxu1 %vm978_vm4, %v10918_v24  ;;  %v2287_v32 = vld [vmem:[#allocation2 + $0x4d] sm:$0xff] }
 0x29b   : > { %8700 = vmatprep.mubr.msk.bf16.mxu0 %vm978_vm4, %v10924_v22  ;;  %8478 = vmatprep.subr.bf16.mxu1 %v10845_v51  ;;  %v2705_v24 = vld [vmem:[#allocation2 + $0x4e] sm:$0xff]  ;;  %v10945_v3 = vpack.c.bf16 %v2288_v60, %v2287_v32  ;;  %v2710_v60 = vld [vmem:[#allocation2 + $0x76] sm:$0xff] }
 0x29c   : > { %8717 = vmatpush3.bf16.msra.mxu0 %v10862_v53  ;;  %v10947_v47 = vpack.c.bf16 %v2706_v4, %v2705_v24  ;;  %v10961_v32 = vld [vmem:[%s11831_s3 + $0x10] sm:$0xff]   ;;  %v2290_v24 = vld [vmem:[#allocation2 + $0x65] sm:$0xff]  ;;  %v2289_v4 = vld [vmem:[#allocation2 + $0x5d] sm:$0xff] }
 0x29d   : > { %8718 = vmatprep.subr.bf16.mxu0 %v10929_v7  ;;  %11900 = vst [vmem:[#allocation34_spill] sm:$0xff] %v10945_v3  ;;  %v10964_v1 = vpack.c.bf16 %v2290_v24, %v2289_v4  ;;  %v2294_v24 = vld [vmem:[#allocation2 + $0x85] sm:$0xff]  ;;  %v2296_v4 = vld [vmem:[#allocation2 + $0x95] sm:$0xff] }
 0x29e   : > { %8479 = vmatpush3.bf16.msra.mxu1 %v10845_v51  ;;  %v10966_v51 = vpack.c.bf16 %v2708_v34, %v2707_v61  ;;  %v2712_v34 = vld [vmem:[#allocation2 + $0x86] sm:$0xff]  ;;  %v2714_v61 = vld [vmem:[#allocation2 + $0x96] sm:$0xff] }
 0x29f   : > { %8500 = vmatprep.subr.bf16.mxu1 %v10862_v53  ;;  %11901 = vst [vmem:[#allocation35_spill] sm:$0xff] %v10964_v1  ;;  %v10986_v44 = vpack.c.bf16 %v2714_v61, %v2713_v49  ;;  %v4096_v61 = vld [vmem:[#allocation2 + $0xb7] sm:$0xff] }
 0x2a0   : > { %8719 = vmatpush3.bf16.msra.mxu0 %v10929_v7 }
 0x2a1   : > { %8461 = vmatmul.mubr.msk.bf16.gmra.mrb[88].mxu1 %vm978_vm4, %v10940_v2  ;;  %8701 = vmatmul.mubr.msk.bf16.gmra.mrb[92].mxu0 %vm978_vm4, %v10942_v0  ;;  %v2709_v2 = vld [vmem:[#allocation2 + $0x6e] sm:$0xff] }
 0x2a2   : > { %8464 = vmatprep.mubr.msk.bf16.mxu1 %vm978_vm4, %v10945_v3  ;;  %8704 = vmatprep.mubr.msk.bf16.mxu0 %vm978_vm4, %v10947_v47  ;;  %v2291_v3 = vld [vmem:[#allocation2 + $0x6d] sm:$0xff]  ;;  %v10970_v23 = vpack.c.bf16 %v2710_v60, %v2709_v2 }
 0x2a3   : > { %8956 = vmatprep.subr.bf16.mxu0 %v10961_v32  ;;  %v10968_v63 = vpack.c.bf16 %v2292_v14, %v2291_v3  ;;  %v2293_v3 = vld [vmem:[#allocation2 + $0x7d] sm:$0xff] }
 0x2a4   : > { %v2711_v14 = vld [vmem:[#allocation2 + $0x7e] sm:$0xff]  ;;  %v10980_v2 = vpack.c.bf16 %v2294_v24, %v2293_v3  ;;  %v2716_v3 = vld [vmem:[#allocation2 + $0xa6] sm:$0x7] }
 0x2a5   : > { %v10982_v60 = vpack.c.bf16 %v2712_v34, %v2711_v14  ;;  %v2297_v24 = vld [vmem:[#allocation2 + $0x9d] sm:$0xff]  ;;  %v2298_v34 = vld [vmem:[#allocation2 + $0xa5] sm:$0x7] }
 0x2a6   : > { %11902 = vst [vmem:[#allocation36_spill] sm:$0xff] %v10980_v2  ;;  %v4097_v14 = vld [vmem:[#allocation2 + $0xbf] sm:$0xff] }
 0x2a9   : > { %8465 = vmatmul.mubr.msk.bf16.gmra.mrb[92].mxu1 %vm978_vm4, %v10964_v1  ;;  %8705 = vmatmul.mubr.msk.bf16.gmra.mrb[96].mxu0 %vm978_vm4, %v10966_v51  ;;  %v2295_v1 = vld [vmem:[#allocation2 + $0x8d] sm:$0xff] }
 0x2aa   : > { %8468 = vmatprep.mubr.msk.bf16.mxu1 %vm978_vm4, %v10968_v63  ;;  %8708 = vmatprep.mubr.msk.bf16.mxu0 %vm978_vm4, %v10970_v23  ;;  %v10984_v33 = vpack.c.bf16 %v2296_v4, %v2295_v1  ;;  %v2715_v1 = vld [vmem:[#allocation2 + $0x9e] sm:$0xff]  ;;  %v10996_v4 = vpack.c.bf16 %v2298_v34, %v2297_v24  ;;  %v4098_v24 = vld [vmem:[#allocation2 + $0xc7] sm:$0xff] }
 0x2ab   : > { %v10998_v49 = vpack.c.bf16 %v2716_v3, %v2715_v1  ;;  %v4101_v34 = vld [vmem:[#allocation2 + $0xdf] sm:$0xff]  ;;  %v4100_v1 = vld [vmem:[#allocation2 + $0xd7] sm:$0xff] }
 0x2ac   : > { %11903 = vst [vmem:[#allocation37_spill] sm:$0xff] %v10984_v33  ;;  %11904 = vst [vmem:[#allocation38_spill] sm:$0xff] %v10996_v4 }
 0x2b1   : > { %8469 = vmatmul.mubr.msk.bf16.gmra.mrb[96].mxu1 %vm978_vm4, %v10980_v2  ;;  %8709 = vmatmul.mubr.msk.bf16.gmra.mrb[100].mxu0 %vm978_vm4, %v10982_v60  ;;  %v11000_v2 = vpack.c.bf16 %v4097_v14, %v4096_v61  ;;  %v11016_v14 = vpack.c.bf16 %v4101_v34, %v4100_v1  ;;  %v4105_v61 = vld [vmem:[#allocation2 + $0xff] sm:$0xff]  ;;  %v4102_v34 = vld [vmem:[#allocation2 + $0xe7] sm:$0xff]  ;;  %v4104_v1 = vld [vmem:[#allocation2 + $0xf7] sm:$0xff] }
 0x2b2   : > { %8472 = vmatprep.mubr.msk.bf16.mxu1 %vm978_vm4, %v10984_v33  ;;  %8712 = vmatprep.mubr.msk.bf16.mxu0 %vm978_vm4, %v10986_v44  ;;  %v4099_v33 = vld [vmem:[#allocation2 + $0xcf] sm:$0xff] }
 0x2b3   : > { %11905 = vst [vmem:[#allocation39_spill] sm:$0xff] %v11000_v2  ;;  %v11010_v3 = vpack.c.bf16 %v4099_v33, %v4098_v24  ;;  %11907 = vst [vmem:[#allocation41_spill] sm:$0xff] %v11016_v14  ;;  %v4103_v33 = vld [vmem:[#allocation2 + $0xef] sm:$0xff]  ;;  %v9892_v24 = vld [vmem:[%s11831_s3 + $0x18] sm:$0xff]  }
 0x2b5   : > { %11906 = vst [vmem:[#allocation40_spill] sm:$0xff] %v11010_v3 }
 0x2b9   : > { %8473 = vmatmul.mubr.msk.bf16.gmra.mrb[100].mxu1 %vm978_vm4, %v10996_v4  ;;  %8713 = vmatmul.mubr.msk.bf16.gmra.mrb[104].mxu0 %vm978_vm4, %v10998_v49  ;;  %v4110_v4 = vld [vmem:[#allocation2 + $0x127] sm:$0xff] }
 0x2ba   : > { %8480 = vmatprep.mubr.msk.bf16.mxu1 %vm978_vm4, %v10824_v56  ;;  %8720 = vmatprep.mubr.msk.bf16.mxu0 %vm978_vm4, %v11000_v2 }
 0x2c1   : > { %8481 = vmatmul.mubr.msk.bf16.vlgmr.msra.gmra.mrb[84].mxu1 %vm978_vm4, %v10834_v42  ;;  %8721 = vmatmul.mubr.msk.bf16.vlgmr.msra.gmra.mrb[88].mxu0 %vm978_vm4, %v11010_v3  ;;  %v4108_v3 = vld [vmem:[#allocation2 + $0x117] sm:$0xff] }
 0x2c2   : > { %8501 = vmatpush3.bf16.msra.mxu1 %v10862_v53  ;;  %8484 = vmatprep.mubr.msk.bf16.mxu1 %vm978_vm4, %v10840_v50  ;;  %v11029_v53 = vpack.c.bf16 %v4103_v33, %v4102_v34  ;;  %v4107_v33 = vld [vmem:[#allocation2 + $0x10f] sm:$0xff]  ;;  %v4106_v34 = vld [vmem:[#allocation2 + $0x107] sm:$0xff] }
 0x2c3   : > { %8724 = vmatprep.mubr.msk.bf16.mxu0 %vm978_vm4, %v11016_v14  ;;  %8502 = vmatprep.subr.bf16.mxu1 %v10929_v7  ;;  %v11032_v14 = vpack.c.bf16 %v4105_v61, %v4104_v1  ;;  %v4109_v61 = vld [vmem:[#allocation2 + $0x11f] sm:$0xff]  ;;  %v11045_v1 = vpack.c.bf16 %v4107_v33, %v4106_v34  ;;  %v4112_v34 = vld [vmem:[#allocation2 + $0x137] sm:$0xff] }
 0x2c4   : > { %8957 = vmatpush3.bf16.msra.mxu0 %v10961_v32  ;;  %11908 = vst [vmem:[#allocation42_spill] sm:$0xff] %v11029_v53  ;;  %v11047_v2 = vpack.c.bf16 %v4109_v61, %v4108_v3  ;;  %v4115_v61 = vld [vmem:[#allocation2 + $0x14f] sm:$0x7] }
 0x2c5   : > { %8958 = vmatprep.subr.bf16.mxu0 %v9892_v24  ;;  %11909 = vst [vmem:[#allocation43_spill] sm:$0xff] %v11032_v14  ;;  %11910 = vst [vmem:[#allocation44_spill] sm:$0xff] %v11045_v1 }
 0x2c6   : > { %8503 = vmatpush3.bf16.msra.mxu1 %v10929_v7  ;;  %v9893_v7 = vld [vmem:[%s11831_s3] sm:$0xff]   ;;  %11911 = vst [vmem:[#allocation45_spill] sm:$0xff] %v11047_v2 }
 0x2c7   : > { %8740 = vmatprep.subr.bf16.mxu1 %v10961_v32 }
 0x2c8   : > { %8959 = vmatpush3.bf16.msra.mxu0 %v9892_v24 }
 0x2c9   : > { %8485 = vmatmul.mubr.msk.bf16.gmra.mrb[88].mxu1 %vm978_vm4, %v10856_v9  ;;  %8725 = vmatmul.mubr.msk.bf16.gmra.mrb[92].mxu0 %vm978_vm4, %v11029_v53  ;;  %v4113_v53 = vld [vmem:[#allocation2 + $0x13f] sm:$0xff] }
 0x2ca   : > { %8488 = vmatprep.mubr.msk.bf16.mxu1 %vm978_vm4, %v10864_v15  ;;  %8728 = vmatprep.mubr.msk.bf16.mxu0 %vm978_vm4, %v11032_v14  ;;  %v4111_v14 = vld [vmem:[#allocation2 + $0x12f] sm:$0xff]  ;;  %v11059_v3 = vpack.c.bf16 %v4113_v53, %v4112_v34 }
 0x2cb   : > { %8980 = vmatprep.subr.bf16.mxu0 %v9893_v7  ;;  %v11057_v33 = vpack.c.bf16 %v4111_v14, %v4110_v4  ;;  %v9896_v4 = vld [vmem:[%s11831_s3 + $0x28] sm:$0xff]  }
 0x2cc   : > { %v11932_v53 = vld [vmem:[#allocation37_spill] sm:$0xff] }
 0x2d1   : > { %8489 = vmatmul.mubr.msk.bf16.gmra.mrb[92].mxu1 %vm978_vm4, %v10876_v52  ;;  %8729 = vmatmul.mubr.msk.bf16.gmra.mrb[96].mxu0 %vm978_vm4, %v11045_v1 }
 0x2d2   : > { %8492 = vmatprep.mubr.msk.bf16.mxu1 %vm978_vm4, %v10878_v8  ;;  %8732 = vmatprep.mubr.msk.bf16.mxu0 %vm978_vm4, %v11047_v2  ;;  %v4114_v2 = vld [vmem:[#allocation2 + $0x147] sm:$0xff] }
 0x2d3   : > { %v11069_v1 = vpack.c.bf16 %v4115_v61, %v4114_v2  ;;  %v9894_v2 = vld [vmem:[%s11831_s3 + $0x8] sm:$0xff]  }
 0x2d9   : > { %8493 = vmatmul.mubr.msk.bf16.gmra.mrb[96].mxu1 %vm978_vm4, %v10888_v39  ;;  %8733 = vmatmul.mubr.msk.bf16.gmra.mrb[100].mxu0 %vm978_vm4, %v11057_v33 }
 0x2da   : > { %8496 = vmatprep.mubr.msk.bf16.mxu1 %vm978_vm4, %v10890_v37  ;;  %8736 = vmatprep.mubr.msk.bf16.mxu0 %vm978_vm4, %v11059_v3 }
 0x2e1   : > { %8497 = vmatmul.mubr.msk.bf16.gmra.mrb[100].mxu1 %vm978_vm4, %v10900_v16  ;;  %8737 = vmatmul.mubr.msk.bf16.gmra.mrb[104].mxu0 %vm978_vm4, %v11069_v1 }
 0x2e2   : > { %8504 = vmatprep.mubr.msk.bf16.mxu1 %vm978_vm4, %v10904_v11  ;;  %8960 = vmatprep.mubr.msk.bf16.mxu0 %vm978_vm4, %v10650_v62 }
 0x2e9   : > { %8505 = vmatmul.mubr.msk.bf16.vlgmr.msra.gmra.mrb[84].mxu1 %vm978_vm4, %v10916_v43  ;;  %8961 = vmatmul.mubr.msk.bf16.vlgmr.msra.gmra.mrb[108].mxu0 %vm978_vm4, %v10662_v29 }
 0x2ea   : > { %8741 = vmatpush3.bf16.msra.mxu1 %v10961_v32  ;;  %8508 = vmatprep.mubr.msk.bf16.mxu1 %vm978_vm4, %v10924_v22  ;;  %v9895_v32 = vld [vmem:[%s11831_s3 + $0x20] sm:$0xff]  }
 0x2eb   : > { %8964 = vmatprep.mubr.msk.bf16.mxu0 %vm978_vm4, %v10670_v59  ;;  %8742 = vmatprep.subr.bf16.mxu1 %v9892_v24 }
 0x2ec   : > { %8981 = vmatpush3.bf16.msra.mxu0 %v9893_v7 }
 0x2ed   : > { %8982 = vmatprep.subr.bf16.mxu0 %v9894_v2 }
 0x2ee   : > { %8743 = vmatpush3.bf16.msra.mxu1 %v9892_v24  ;;  %v11931_v24 = vld [vmem:[#allocation36_spill] sm:$0xff] }
 0x2ef   : > { %8764 = vmatprep.subr.bf16.mxu1 %v9893_v7 }
 0x2f0   : > { %8983 = vmatpush3.bf16.msra.mxu0 %v9894_v2 }
 0x2f1   : > { %8509 = vmatmul.mubr.msk.bf16.gmra.mrb[88].mxu1 %vm978_vm4, %v10942_v0  ;;  %8965 = vmatmul.mubr.msk.bf16.gmra.mrb[112].mxu0 %vm978_vm4, %v10688_v10 }
 0x2f2   : > { %8512 = vmatprep.mubr.msk.bf16.mxu1 %vm978_vm4, %v10947_v47  ;;  %8968 = vmatprep.mubr.msk.bf16.mxu0 %vm978_vm4, %v10698_v13 }
 0x2f3   : > { %9004 = vmatprep.subr.bf16.mxu0 %v9895_v32 }
 0x2f9   : > { %8513 = vmatmul.mubr.msk.bf16.gmra.mrb[92].mxu1 %vm978_vm4, %v10966_v51  ;;  %8969 = vmatmul.mubr.msk.bf16.gmra.mrb[116].mxu0 %vm978_vm4, %v10712_v28 }
 0x2fa   : > { %8516 = vmatprep.mubr.msk.bf16.mxu1 %vm978_vm4, %v10970_v23  ;;  %8972 = vmatprep.mubr.msk.bf16.mxu0 %vm978_vm4, %v10716_v57 }
 0x301   : > { %8517 = vmatmul.mubr.msk.bf16.gmra.mrb[96].mxu1 %vm978_vm4, %v10982_v60  ;;  %8973 = vmatmul.mubr.msk.bf16.gmra.mrb[120].mxu0 %vm978_vm4, %v10728_v46 }
 0x302   : > { %8520 = vmatprep.mubr.msk.bf16.mxu1 %vm978_vm4, %v10986_v44  ;;  %8976 = vmatprep.mubr.msk.bf16.mxu0 %vm978_vm4, %v10732_v48 }
 0x309   : > { %8521 = vmatmul.mubr.msk.bf16.gmra.mrb[100].mxu1 %vm978_vm4, %v10998_v49  ;;  %8977 = vmatmul.mubr.msk.bf16.gmra.mrb[124].mxu0 %vm978_vm4, %v10744_v5 }
 0x30a   : > { %8744 = vmatprep.mubr.msk.bf16.mxu1 %vm978_vm4, %v10572_v54  ;;  %8984 = vmatprep.mubr.msk.bf16.mxu0 %vm978_vm4, %v10572_v54  ;;  %v9897_v54 = vld [vmem:[%s11831_s3 + $0x30] sm:$0xff]  }
 0x311   : > { %8745 = vmatmul.mubr.msk.bf16.vlgmr.msra.gmra.mrb[104].mxu1 %vm978_vm4, %v10580_v19  ;;  %8985 = vmatmul.mubr.msk.bf16.vlgmr.msra.gmra.mrb[108].mxu0 %vm978_vm4, %v10580_v19  ;;  %v9898_v19 = vld [vmem:[%s11831_s3 + $0x38] sm:$0xff]  }
 0x312   : > { %8765 = vmatpush3.bf16.msra.mxu1 %v9893_v7  ;;  %8748 = vmatprep.mubr.msk.bf16.mxu1 %vm978_vm4, %v10582_v20 }
 0x313   : > { %8988 = vmatprep.mubr.msk.bf16.mxu0 %vm978_vm4, %v10582_v20  ;;  %8766 = vmatprep.subr.bf16.mxu1 %v9894_v2  ;;  %v9899_v20 = vld [vmem:[%s11831_s3 + $0x40] sm:$0xff]  }
 0x314   : > { %9005 = vmatpush3.bf16.msra.mxu0 %v9895_v32 }
 0x315   : > { %9006 = vmatprep.subr.bf16.mxu0 %v9896_v4 }
 0x316   : > { %8767 = vmatpush3.bf16.msra.mxu1 %v9894_v2  ;;  %v11933_v2 = vld [vmem:[#allocation38_spill] sm:$0xff] }
 0x317   : > { %8788 = vmatprep.subr.bf16.mxu1 %v9895_v32 }
 0x318   : > { %9007 = vmatpush3.bf16.msra.mxu0 %v9896_v4 }
 0x319   : > { %8749 = vmatmul.mubr.msk.bf16.gmra.mrb[108].mxu1 %vm978_vm4, %v10600_v38  ;;  %8989 = vmatmul.mubr.msk.bf16.gmra.mrb[112].mxu0 %vm978_vm4, %v10600_v38  ;;  %v11912_v38 = vld [vmem:[#allocation24_spill] sm:$0xff] }
 0x31a   : > { %8752 = vmatprep.mubr.msk.bf16.mxu1 %vm978_vm4, %v10603_v25  ;;  %8992 = vmatprep.mubr.msk.bf16.mxu0 %vm978_vm4, %v10603_v25  ;;  %v11913_v25 = vld [vmem:[#allocation18_spill] sm:$0xff] }
 0x31b   : > { %9028 = vmatprep.subr.bf16.mxu0 %v9897_v54 }
 0x321   : > { %8753 = vmatmul.mubr.msk.bf16.gmra.mrb[112].mxu1 %vm978_vm4, %v10622_v30  ;;  %8993 = vmatmul.mubr.msk.bf16.gmra.mrb[116].mxu0 %vm978_vm4, %v10622_v30  ;;  %v11914_v30 = vld [vmem:[#allocation25_spill] sm:$0xff] }
 0x322   : > { %8756 = vmatprep.mubr.msk.bf16.mxu1 %vm978_vm4, %v10624_v41  ;;  %8996 = vmatprep.mubr.msk.bf16.mxu0 %vm978_vm4, %v10624_v41  ;;  %v11915_v41 = vld [vmem:[#allocation19_spill] sm:$0xff] }
 0x329   : > { %8757 = vmatmul.mubr.msk.bf16.gmra.mrb[116].mxu1 %vm978_vm4, %v10634_v35  ;;  %8997 = vmatmul.mubr.msk.bf16.gmra.mrb[120].mxu0 %vm978_vm4, %v10634_v35  ;;  %v11916_v35 = vld [vmem:[#allocation26_spill] sm:$0xff] }
 0x32a   : > { %8760 = vmatprep.mubr.msk.bf16.mxu1 %vm978_vm4, %v10636_v36  ;;  %9000 = vmatprep.mubr.msk.bf16.mxu0 %vm978_vm4, %v10636_v36  ;;  %v11917_v36 = vld [vmem:[#allocation20_spill] sm:$0xff] }
 0x331   : > { %8761 = vmatmul.mubr.msk.bf16.gmra.mrb[120].mxu1 %vm978_vm4, %v10646_v40  ;;  %9001 = vmatmul.mubr.msk.bf16.gmra.mrb[124].mxu0 %vm978_vm4, %v10646_v40  ;;  %v11918_v40 = vld [vmem:[#allocation27_spill] sm:$0xff] }
 0x332   : > { %8768 = vmatprep.mubr.msk.bf16.mxu1 %vm978_vm4, %v10648_v45  ;;  %9008 = vmatprep.mubr.msk.bf16.mxu0 %vm978_vm4, %v10746_v6  ;;  %v11919_v45 = vld [vmem:[#allocation21_spill] sm:$0xff] }
 0x339   : > { %8769 = vmatmul.mubr.msk.bf16.vlgmr.msra.gmra.mrb[104].mxu1 %vm978_vm4, %v10660_v55  ;;  %9009 = vmatmul.mubr.msk.bf16.vlgmr.msra.gmra.mrb[108].mxu0 %vm978_vm4, %v10756_v18  ;;  %v11920_v55 = vld [vmem:[#allocation28_spill] sm:$0xff]  ;;  %v11930_v18 = vld [vmem:[#allocation35_spill] sm:$0xff] }
 0x33a   : > { %8789 = vmatpush3.bf16.msra.mxu1 %v9895_v32  ;;  %8772 = vmatprep.mubr.msk.bf16.mxu1 %vm978_vm4, %v10664_v58  ;;  %v11921_v58 = vld [vmem:[#allocation14_spill] sm:$0xff]  ;;  %v11934_v32 = vld [vmem:[#allocation39_spill] sm:$0xff] }
 0x33b   : > { %9012 = vmatprep.mubr.msk.bf16.mxu0 %vm978_vm4, %v10762_v21  ;;  %8790 = vmatprep.subr.bf16.mxu1 %v9896_v4 }
 0x33c   : > { %9029 = vmatpush3.bf16.msra.mxu0 %v9897_v54 }
 0x33d   : > { %9030 = vmatprep.subr.bf16.mxu0 %v9898_v19 }
 0x33e   : > { %8791 = vmatpush3.bf16.msra.mxu1 %v9896_v4 }
 0x33f   : > { %8812 = vmatprep.subr.bf16.mxu1 %v9897_v54 }
 0x340   : > { %9031 = vmatpush3.bf16.msra.mxu0 %v9898_v19 }
 0x341   : > { %8773 = vmatmul.mubr.msk.bf16.gmra.mrb[108].mxu1 %vm978_vm4, %v10686_v27  ;;  %9013 = vmatmul.mubr.msk.bf16.gmra.mrb[112].mxu0 %vm978_vm4, %v10778_v31  ;;  %v11925_v27 = vld [vmem:[#allocation32_spill] sm:$0xff] }
 0x342   : > { %8776 = vmatprep.mubr.msk.bf16.mxu1 %vm978_vm4, %v10696_v12  ;;  %9016 = vmatprep.mubr.msk.bf16.mxu0 %vm978_vm4, %v10786_v17  ;;  %v11926_v12 = vld [vmem:[#allocation16_spill] sm:$0xff] }
 0x343   : > { %9052 = vmatprep.subr.bf16.mxu0 %v9899_v20 }
 0x349   : > { %8777 = vmatmul.mubr.msk.bf16.gmra.mrb[112].mxu1 %vm978_vm4, %v10710_v26  ;;  %9017 = vmatmul.mubr.msk.bf16.gmra.mrb[116].mxu0 %vm978_vm4, %v11912_v38  ;;  %v11927_v26 = vld [vmem:[#allocation33_spill] sm:$0xff]  ;;  %v11935_v38 = vld [vmem:[#allocation40_spill] sm:$0xff] }
 0x34a   : > { %8780 = vmatprep.mubr.msk.bf16.mxu1 %vm978_vm4, %v11913_v25  ;;  %9020 = vmatprep.mubr.msk.bf16.mxu0 %vm978_vm4, %v11914_v30 }
 0x351   : > { %8781 = vmatmul.mubr.msk.bf16.gmra.mrb[116].mxu1 %vm978_vm4, %v11915_v41  ;;  %9021 = vmatmul.mubr.msk.bf16.gmra.mrb[120].mxu0 %vm978_vm4, %v11916_v35  ;;  %v11937_v41 = vld [vmem:[#allocation22_spill] sm:$0xff] }
 0x352   : > { %8784 = vmatprep.mubr.msk.bf16.mxu1 %vm978_vm4, %v11917_v36  ;;  %9024 = vmatprep.mubr.msk.bf16.mxu0 %vm978_vm4, %v11918_v40  ;;  %v11939_v36 = vld [vmem:[#allocation43_spill] sm:$0xff]  ;;  %v11940_v40 = vld [vmem:[#allocation13_spill] sm:$0xff] }
 0x359   : > { %8785 = vmatmul.mubr.msk.bf16.gmra.mrb[120].mxu1 %vm978_vm4, %v11919_v45  ;;  %9025 = vmatmul.mubr.msk.bf16.gmra.mrb[124].mxu0 %vm978_vm4, %v11920_v55  ;;  %v11941_v55 = vld [vmem:[#allocation23_spill] sm:$0xff] }
 0x35a   : > { %8792 = vmatprep.mubr.msk.bf16.mxu1 %vm978_vm4, %v10650_v62  ;;  %9032 = vmatprep.mubr.msk.bf16.mxu0 %vm978_vm4, %v10824_v56  ;;  %v11922_v62 = vld [vmem:[#allocation15_spill] sm:$0xff] }
 0x361   : > { %8793 = vmatmul.mubr.msk.bf16.vlgmr.msra.gmra.mrb[104].mxu1 %vm978_vm4, %v10662_v29  ;;  %9033 = vmatmul.mubr.msk.bf16.vlgmr.msra.gmra.mrb[108].mxu0 %vm978_vm4, %v10834_v42  ;;  %v11923_v29 = vld [vmem:[#allocation30_spill] sm:$0xff] }
 0x362   : > { %8813 = vmatpush3.bf16.msra.mxu1 %v9897_v54  ;;  %8796 = vmatprep.mubr.msk.bf16.mxu1 %vm978_vm4, %v10670_v59  ;;  %v11924_v59 = vld [vmem:[#allocation31_spill] sm:$0xff] }
 0x363   : > { %9036 = vmatprep.mubr.msk.bf16.mxu0 %vm978_vm4, %v10840_v50  ;;  %8814 = vmatprep.subr.bf16.mxu1 %v9898_v19 }
 0x364   : > { %9053 = vmatpush3.bf16.msra.mxu0 %v9899_v20 }
 0x365   : > { %9054 = vmatprep.subr.bf16.mxu0 %v11921_v58 }
 0x366   : > { %8815 = vmatpush3.bf16.msra.mxu1 %v9898_v19 }
 0x367   : > { %8836 = vmatprep.subr.bf16.mxu1 %v9899_v20 }
 0x368   : > { %9055 = vmatpush3.bf16.msra.mxu0 %v11921_v58 }
 0x369   : > { %8797 = vmatmul.mubr.msk.bf16.gmra.mrb[108].mxu1 %vm978_vm4, %v10688_v10  ;;  %9037 = vmatmul.mubr.msk.bf16.gmra.mrb[112].mxu0 %vm978_vm4, %v10856_v9  ;;  %v9900_v10 = vld [vmem:[%s11831_s3 + $0x48] sm:$0xff]  }
 0x36a   : > { %8800 = vmatprep.mubr.msk.bf16.mxu1 %vm978_vm4, %v10698_v13  ;;  %9040 = vmatprep.mubr.msk.bf16.mxu0 %vm978_vm4, %v10864_v15  ;;  %v9901_v13 = vld [vmem:[%s11831_s3 + $0x50] sm:$0xff]  }
 0x36b   : > { %9076 = vmatprep.subr.bf16.mxu0 %v11922_v62 }
 0x371   : > { %8801 = vmatmul.mubr.msk.bf16.gmra.mrb[112].mxu1 %vm978_vm4, %v10712_v28  ;;  %9041 = vmatmul.mubr.msk.bf16.gmra.mrb[116].mxu0 %vm978_vm4, %v10876_v52  ;;  %v11928_v28 = vld [vmem:[#allocation34_spill] sm:$0xff] }
 0x372   : > { %8804 = vmatprep.mubr.msk.bf16.mxu1 %vm978_vm4, %v10716_v57  ;;  %9044 = vmatprep.mubr.msk.bf16.mxu0 %vm978_vm4, %v10878_v8  ;;  %v11929_v57 = vld [vmem:[#allocation17_spill] sm:$0xff] }
 0x379   : > { %8805 = vmatmul.mubr.msk.bf16.gmra.mrb[116].mxu1 %vm978_vm4, %v10728_v46  ;;  %9045 = vmatmul.mubr.msk.bf16.gmra.mrb[120].mxu0 %vm978_vm4, %v10888_v39 }
 0x37a   : > { %8808 = vmatprep.mubr.msk.bf16.mxu1 %vm978_vm4, %v10732_v48  ;;  %9048 = vmatprep.mubr.msk.bf16.mxu0 %vm978_vm4, %v10890_v37 }
 0x381   : > { %8809 = vmatmul.mubr.msk.bf16.gmra.mrb[120].mxu1 %vm978_vm4, %v10744_v5  ;;  %9049 = vmatmul.mubr.msk.bf16.gmra.mrb[124].mxu0 %vm978_vm4, %v10900_v16 }
 0x382   : > { %8816 = vmatprep.mubr.msk.bf16.mxu1 %vm978_vm4, %v11923_v29  ;;  %9056 = vmatprep.mubr.msk.bf16.mxu0 %vm978_vm4, %v10904_v11 }
 0x389   : > { %8817 = vmatmul.mubr.msk.bf16.vlgmr.msra.gmra.mrb[104].mxu1 %vm978_vm4, %v11924_v59  ;;  %9057 = vmatmul.mubr.msk.bf16.vlgmr.msra.gmra.mrb[108].mxu0 %vm978_vm4, %v10916_v43 }
 0x38a   : > { %8837 = vmatpush3.bf16.msra.mxu1 %v9899_v20  ;;  %8820 = vmatprep.mubr.msk.bf16.mxu1 %vm978_vm4, %v11925_v27 }
 0x38b   : > { %9060 = vmatprep.mubr.msk.bf16.mxu0 %vm978_vm4, %v10924_v22  ;;  %8838 = vmatprep.subr.bf16.mxu1 %v9900_v10 }
 0x38c   : > { %9077 = vmatpush3.bf16.msra.mxu0 %v11922_v62 }
 0x38d   : > { %9078 = vmatprep.subr.bf16.mxu0 %v11926_v12 }
 0x38e   : > { %8839 = vmatpush3.bf16.msra.mxu1 %v9900_v10 }
 0x38f   : > { %8860 = vmatprep.subr.bf16.mxu1 %v9901_v13 }
 0x390   : > { %9079 = vmatpush3.bf16.msra.mxu0 %v11926_v12 }
 0x391   : > { %8821 = vmatmul.mubr.msk.bf16.gmra.mrb[108].mxu1 %vm978_vm4, %v11927_v26  ;;  %9061 = vmatmul.mubr.msk.bf16.gmra.mrb[112].mxu0 %vm978_vm4, %v10942_v0 }
 0x392   : > { %8824 = vmatprep.mubr.msk.bf16.mxu1 %vm978_vm4, %v11928_v28  ;;  %9064 = vmatprep.mubr.msk.bf16.mxu0 %vm978_vm4, %v10947_v47 }
 0x393   : > { %9100 = vmatprep.subr.bf16.mxu0 %v11929_v57 }
 0x394   : > { %v8722_v46 = vpop.f32.mrb[88].mxu0 }
 0x395   : > { %v4190_v48 = vpop.f32.mrb[89].mxu0  ;;  %v4291_v45 = vadd.f32 %v8722_v46, %v11940_v40 }
 0x396   : > { %v8723_v5 = vpop.f32.mrb[90].mxu0  ;;  %v4289_v58 = vadd.f32 %v11940_v40, %v4190_v48 }
 0x397   : > { %v4193_v6 = vpop.f32.mrb[91].mxu0  ;;  %v4292_v29 = vadd.f32 %v8723_v5, %v11940_v40 }
 0x398   : > { %v4290_v27 = vadd.f32 %v11940_v40, %v4193_v6  ;;  %v11942_v6 = vld [vmem:[#allocation44_spill] sm:$0xff] }
 0x399   : > { %8825 = vmatmul.mubr.msk.bf16.gmra.mrb[112].mxu1 %vm978_vm4, %v11930_v18  ;;  %9065 = vmatmul.mubr.msk.bf16.gmra.mrb[116].mxu0 %vm978_vm4, %v10966_v51  ;;  %v4312_v18 = vmax.f32 %v4292_v29, 0.0 }
 0x39a   : > { %8828 = vmatprep.mubr.msk.bf16.mxu1 %vm978_vm4, %v10968_v63  ;;  %9068 = vmatprep.mubr.msk.bf16.mxu0 %vm978_vm4, %v10970_v23 }
 0x39c   : > { %v11295_v21 = vpop.f32.mrb[92].mxu0 }
 0x39d   : > { %v11297_v31 = vpop.f32.mrb[93].mxu0 }
 0x39e   : > { %v11299_v17 = vpop.f32.mrb[94].mxu0 }
 0x39f   : > { %v11301_v14 = vpop.f32.mrb[95].mxu0 }
 0x3a1   : > { %8829 = vmatmul.mubr.msk.bf16.gmra.mrb[116].mxu1 %vm978_vm4, %v11931_v24  ;;  %9069 = vmatmul.mubr.msk.bf16.gmra.mrb[120].mxu0 %vm978_vm4, %v10982_v60 }
 0x3a2   : > { %8832 = vmatprep.mubr.msk.bf16.mxu1 %vm978_vm4, %v11932_v53  ;;  %9072 = vmatprep.mubr.msk.bf16.mxu0 %vm978_vm4, %v10986_v44  ;;  %v4310_v53 = vmax.f32 %v4290_v27, 0.0 }
 0x3a4   : > { %v11311_v63 = vpop.f32.mrb[96].mxu0 }
 0x3a5   : > { %v11313_v7 = vpop.f32.mrb[97].mxu0 }
 0x3a6   : > { %v11315_v34 = vpop.f32.mrb[98].mxu0 }
 0x3a7   : > { %v11317_v61 = vpop.f32.mrb[99].mxu0 }
 0x3a9   : > { %8833 = vmatmul.mubr.msk.bf16.gmra.mrb[120].mxu1 %vm978_vm4, %v11933_v2  ;;  %9073 = vmatmul.mubr.msk.bf16.gmra.mrb[124].mxu0 %vm978_vm4, %v10998_v49 }
 0x3aa   : > { %8840 = vmatprep.mubr.msk.bf16.mxu1 %vm978_vm4, %v10824_v56  ;;  %9080 = vmatprep.mubr.msk.bf16.mxu0 %vm978_vm4, %v11934_v32  ;;  %v11936_v56 = vld [vmem:[#allocation41_spill] sm:$0xff] }
 0x3ac   : > { %v11327_v4 = vpop.f32.mrb[100].mxu0 }
 0x3ad   : > { %v11329_v54 = vpop.f32.mrb[101].mxu0 }
 0x3ae   : > { %v11331_v19 = vpop.f32.mrb[102].mxu0 }
 0x3af   : > { %v11333_v20 = vpop.f32.mrb[103].mxu0 }
 0x3b1   : > { %8841 = vmatmul.mubr.msk.bf16.vlgmr.msra.gmra.mrb[104].mxu1 %vm978_vm4, %v10834_v42  ;;  %9081 = vmatmul.mubr.msk.bf16.vlgmr.msra.gmra.mrb[108].mxu0 %vm978_vm4, %v11935_v38  ;;  %v11943_v38 = vld [vmem:[#allocation45_spill] sm:$0xff] }
 0x3b2   : > { %8861 = vmatpush3.bf16.msra.mxu1 %v9901_v13  ;;  %8844 = vmatprep.mubr.msk.bf16.mxu1 %vm978_vm4, %v10840_v50  ;;  %v11938_v50 = vld [vmem:[#allocation42_spill] sm:$0xff] }
 0x3b3   : > { %9084 = vmatprep.mubr.msk.bf16.mxu0 %vm978_vm4, %v11936_v56  ;;  %8862 = vmatprep.subr.bf16.mxu1 %v11926_v12  ;;  %v4295_v56 = vadd.f32 %v11295_v21, %v11940_v40 }
 0x3b4   : > { %v11344_v25 = vpop.f32.mrb[104].mxu0  ;;  %9101 = vmatpush3.bf16.msra.mxu0 %v11929_v57 }
 0x3b5   : > { %v11347_v30 = vpop.f32.mrb[105].mxu0  ;;  %9102 = vmatprep.subr.bf16.mxu0 %v11937_v41  ;;  %v4315_v29 = vmax.f32 %v4295_v56, 0.0 }
 0x3b6   : > { %v11350_v42 = vpop.f32.mrb[106].mxu0  ;;  %8863 = vmatpush3.bf16.msra.mxu1 %v11926_v12  ;;  %v4311_v12 = vmax.f32 %v4291_v45, 0.0  ;;  %v4296_v45 = vadd.f32 %v11299_v17, %v11940_v40 }
 0x3b7   : > { %v11353_v35 = vpop.f32.mrb[107].mxu0  ;;  %8884 = vmatprep.subr.bf16.mxu1 %v11929_v57  ;;  %v4309_v57 = vmax.f32 %v4289_v58, 0.0  ;;  %v4294_v58 = vadd.f32 %v11940_v40, %v11301_v14 }
 0x3b8   : > { %9103 = vmatpush3.bf16.msra.mxu0 %v11937_v41 }
 0x3b9   : > { %8845 = vmatmul.mubr.msk.bf16.gmra.mrb[108].mxu1 %vm978_vm4, %v10856_v9  ;;  %9085 = vmatmul.mubr.msk.bf16.gmra.mrb[112].mxu0 %vm978_vm4, %v11938_v50  ;;  %v4314_v14 = vmax.f32 %v4294_v58, 0.0 }
 0x3ba   : > { %8848 = vmatprep.mubr.msk.bf16.mxu1 %vm978_vm4, %v10864_v15  ;;  %9088 = vmatprep.mubr.msk.bf16.mxu0 %vm978_vm4, %v11939_v36 }
 0x3bb   : > { %9124 = vmatprep.subr.bf16.mxu0 %v11941_v55 }
 0x3bc   : > { %v8506_v62 = vpop.f32.mrb[84].mxu1 }
 0x3bd   : > { %v2914_v9 = vadd.f32 %v8506_v62, %v11940_v40  ;;  %v2807_v59 = vpop.f32.mrb[85].mxu1 }
 0x3be   : > { %v2912_v10 = vadd.f32 %v11940_v40, %v2807_v59  ;;  %v8507_v15 = vpop.f32.mrb[86].mxu1 }
 0x3bf   : > { %v2934_v13 = vmax.f32 %v2914_v9, 0.0  ;;  %v2915_v26 = vadd.f32 %v8507_v15, %v11940_v40  ;;  %v2810_v28 = vpop.f32.mrb[87].mxu1 }
 0x3c0   : > { %v2932_v46 = vmax.f32 %v2912_v10, 0.0  ;;  %v2913_v48 = vadd.f32 %v11940_v40, %v2810_v28 }
 0x3c1   : > { %v11374_v24 = vmax.f32 %v2934_v13, %v4311_v12  ;;  %v2935_v5 = vmax.f32 %v2915_v26, 0.0  ;;  %8849 = vmatmul.mubr.msk.bf16.gmra.mrb[112].mxu1 %vm978_vm4, %v10876_v52  ;;  %9089 = vmatmul.mubr.msk.bf16.gmra.mrb[116].mxu0 %vm978_vm4, %v11942_v6  ;;  %v4293_v52 = vadd.f32 %v11940_v40, %v11297_v31  ;;  %v4316_v12 = vmax.f32 %v4296_v45, 0.0  ;;  %v5300_v6 = vld [vmem:[#allocation2 + $0x208] sm:$0xff] }
 0x3c2   : > { %v11380_v2 = vmax.f32 %v2932_v46, %v4309_v57  ;;  %v2933_v32 = vmax.f32 %v2913_v48, 0.0  ;;  %8852 = vmatprep.mubr.msk.bf16.mxu1 %vm978_vm4, %v10878_v8  ;;  %9092 = vmatprep.mubr.msk.bf16.mxu0 %vm978_vm4, %v11943_v38  ;;  %v4299_v57 = vadd.f32 %v11311_v63, %v11940_v40 }
 0x3c3   : > { %v11388_v41 = vmax.f32 %v2935_v5, %v4312_v18  ;;  %v4313_v27 = vmax.f32 %v4293_v52, 0.0  ;;  %v4300_v18 = vadd.f32 %v11315_v34, %v11940_v40 }
 0x3c4   : > { %v11392_v50 = vmax.f32 %v2933_v32, %v4310_v53  ;;  %v8510_v36 = vpop.f32.mrb[88].mxu1  ;;  %v5301_v53 = vld [vmem:[#allocation2 + $0x210] sm:$0xff]  ;;  %v4319_v38 = vmax.f32 %v4299_v57, 0.0 }
 0x3c5   : > { %v2918_v55 = vadd.f32 %v8510_v36, %v11940_v40  ;;  %v2823_v8 = vpop.f32.mrb[89].mxu1  ;;  %v5305_v57 = vld [vmem:[#allocation2 + $0x230] sm:$0xff] }
 0x3c6   : > { %v2916_v62 = vadd.f32 %v11940_v40, %v2823_v8  ;;  %v8511_v21 = vpop.f32.mrb[90].mxu1  ;;  %v4320_v8 = vmax.f32 %v4300_v18, 0.0 }
 0x3c7   : > { %v2938_v9 = vmax.f32 %v2918_v55, 0.0  ;;  %v2919_v59 = vadd.f32 %v8511_v21, %v11940_v40  ;;  %v2826_v31 = vpop.f32.mrb[91].mxu1  ;;  %v11430_v55 = vpack.c.bf16 %v5301_v53, %v5300_v6 }
 0x3c8   : > { %v2936_v10 = vmax.f32 %v2916_v62, 0.0  ;;  %v2917_v15 = vadd.f32 %v11940_v40, %v2826_v31 }
 0x3c9   : > { %v11402_v17 = vmax.f32 %v2938_v9, %v4315_v29  ;;  %v2939_v13 = vmax.f32 %v2919_v59, 0.0  ;;  %8853 = vmatmul.mubr.msk.bf16.gmra.mrb[116].mxu1 %vm978_vm4, %v10888_v39  ;;  %9093 = vmatmul.mubr.msk.bf16.gmra.mrb[120].mxu0 %vm978_vm4, %v11057_v33  ;;  %v4297_v39 = vadd.f32 %v11940_v40, %v11313_v7  ;;  %v4303_v9 = vadd.f32 %v11327_v4, %v11940_v40 }
 0x3ca   : > { %v11408_v26 = vmax.f32 %v2936_v10, %v4313_v27  ;;  %v2937_v28 = vmax.f32 %v2917_v15, 0.0  ;;  %8856 = vmatprep.mubr.msk.bf16.mxu1 %vm978_vm4, %v10890_v37  ;;  %9096 = vmatprep.mubr.msk.bf16.mxu0 %vm978_vm4, %v11059_v3  ;;  %v4298_v3 = vadd.f32 %v11940_v40, %v11317_v61  ;;  %v5302_v27 = vld [vmem:[#allocation2 + $0x218] sm:$0xff]  ;;  %v5303_v10 = vld [vmem:[#allocation2 + $0x220] sm:$0xff]  ;;  %v4304_v15 = vadd.f32 %v11331_v19, %v11940_v40 }
 0x3cb   : > { %v11416_v46 = vmax.f32 %v2939_v13, %v4316_v12  ;;  %v4317_v36 = vmax.f32 %v4297_v39, 0.0  ;;  %v4302_v13 = vadd.f32 %v11940_v40, %v11333_v20 }
 0x3cc   : > { %v11420_v48 = vmax.f32 %v2937_v28, %v4314_v14  ;;  %v8514_v33 = vpop.f32.mrb[92].mxu1  ;;  %v4318_v61 = vmax.f32 %v4298_v3, 0.0  ;;  %v5304_v28 = vld [vmem:[#allocation2 + $0x228] sm:$0xff]  ;;  %v4324_v53 = vmax.f32 %v4304_v15, 0.0 }
 0x3cd   : > { %v2922_v5 = vadd.f32 %v8514_v33, %v11940_v40  ;;  %v2839_v37 = vpop.f32.mrb[93].mxu1 }
 0x3ce   : > { %v2920_v63 = vadd.f32 %v11940_v40, %v2839_v37  ;;  %v8515_v32 = vpop.f32.mrb[94].mxu1 }
 0x3cf   : > { %v2942_v56 = vmax.f32 %v2922_v5, 0.0  ;;  %v2923_v7 = vadd.f32 %v8515_v32, %v11940_v40  ;;  %v2842_v52 = vpop.f32.mrb[95].mxu1  ;;  %v11459_v5 = vpack.c.bf16 %v5303_v10, %v5302_v27  ;;  %v4322_v32 = vmax.f32 %v4302_v13, 0.0 }
 0x3d0   : > { %v2940_v45 = vmax.f32 %v2920_v63, 0.0  ;;  %v2921_v34 = vadd.f32 %v11940_v40, %v2842_v52  ;;  %v11468_v63 = vpack.c.bf16 %v5305_v57, %v5304_v28  ;;  %v4306_v27 = vadd.f32 %v11940_v40, %v11353_v35  ;;  %v11513_v35 = vld [vmem:[%s11831_s3 + $0x78] sm:$0xff]  }
 0x3d1   : > { %v11432_v58 = vmax.f32 %v2942_v56, %v4319_v38  ;;  %v2943_v62 = vmax.f32 %v2923_v7, 0.0  ;;  %8857 = vmatmul.mubr.msk.bf16.gmra.mrb[120].mxu1 %vm978_vm4, %v10900_v16  ;;  %9097 = vmatmul.mubr.msk.bf16.gmra.mrb[124].mxu0 %vm978_vm4, %v11069_v1  ;;  %v4301_v16 = vadd.f32 %v11940_v40, %v11329_v54  ;;  %v4323_v54 = vmax.f32 %v4303_v9, 0.0  ;;  %v9902_v7 = vld [vmem:[%s11831_s3 + $0x60] sm:$0xff]  }
 0x3d2   : > { %v11438_v21 = vmax.f32 %v2940_v45, %v4317_v36  ;;  %v2941_v29 = vmax.f32 %v2921_v34, 0.0  ;;  %8864 = vmatprep.mubr.msk.bf16.mxu1 %vm978_vm4, %v10904_v11  ;;  %9104 = vmatprep.mubr.msk.bf16.mxu0 %vm978_vm4, %v11430_v55  ;;  %v9903_v36 = vld [vmem:[%s11831_s3 + $0x68] sm:$0xff]   ;;  %v4305_v45 = vadd.f32 %v11940_v40, %v11347_v30  ;;  %v5309_v30 = vld [vmem:[#allocation2 + $0x250] sm:$0xff] }
 0x3d3   : > { %v11446_v59 = vmax.f32 %v2943_v62, %v4320_v8  ;;  %v4321_v37 = vmax.f32 %v4301_v16, 0.0  ;;  %v5307_v62 = vld [vmem:[#allocation2 + $0x240] sm:$0xff]  ;;  %v5308_v16 = vld [vmem:[#allocation2 + $0x248] sm:$0xff] }
 0x3d4   : > { %v11450_v31 = vmax.f32 %v2941_v29, %v4318_v61  ;;  %v8518_v1 = vpop.f32.mrb[96].mxu1  ;;  %v4308_v61 = vadd.f32 %v11350_v42, %v11940_v40 }
 0x3d5   : > { %v2926_v11 = vadd.f32 %v8518_v1, %v11940_v40  ;;  %v2855_v12 = vpop.f32.mrb[97].mxu1  ;;  %v11944_v1 = vld [vmem:[#allocation29_spill] sm:$0xff] }
 0x3d6   : > { %v2924_v4 = vadd.f32 %v11940_v40, %v2855_v12  ;;  %v8519_v14 = vpop.f32.mrb[98].mxu1 }
 0x3d7   : > { %v2946_v39 = vmax.f32 %v2926_v11, 0.0  ;;  %v2927_v33 = vadd.f32 %v8519_v14, %v11940_v40  ;;  %v2858_v18 = vpop.f32.mrb[99].mxu1  ;;  %v4325_v14 = vmax.f32 %v4305_v45, 0.0  ;;  %v5314_v45 = vld [vmem:[#allocation2 + $0x278] sm:$0xff] }
 0x3d8   : > { %v2944_v19 = vmax.f32 %v2924_v4, 0.0  ;;  %v2925_v6 = vadd.f32 %v11940_v40, %v2858_v18 }
 0x3d9   : > { %v11462_v3 = vmax.f32 %v2946_v39, %v4323_v54  ;;  %v2947_v20 = vmax.f32 %v2927_v33, 0.0  ;;  %8865 = vmatmul.mubr.msk.bf16.vlgmr.msra.gmra.mrb[104].mxu1 %vm978_vm4, %v10916_v43  ;;  %9105 = vmatmul.mubr.msk.bf16.vlgmr.msra.gmra.mrb[108].mxu0 %vm978_vm4, %v11459_v5  ;;  %v4307_v43 = vadd.f32 %v11344_v25, %v11940_v40  ;;  %v11493_v25 = vld [vmem:[%s11831_s3 + $0x70] sm:$0xff]   ;;  %v11508_v54 = vpack.c.bf16 %v5309_v30, %v5308_v16  ;;  %v5493_v16 = vld [vmem:[#allocation2 + $0x160] sm:$0xff]  ;;  %v5494_v30 = vld [vmem:[#allocation2 + $0x168] sm:$0xff] }
 0x3da   : > { %v11470_v38 = vmax.f32 %v2944_v19, %v4321_v37  ;;  %v2945_v56 = vmax.f32 %v2925_v6, 0.0  ;;  %8885 = vmatpush3.bf16.msra.mxu1 %v9902_v7  ;;  %8868 = vmatprep.mubr.msk.bf16.mxu1 %vm978_vm4, %v10924_v22  ;;  %v5306_v22 = vld [vmem:[#allocation2 + $0x238] sm:$0xff]  ;;  %v4328_v39 = vmax.f32 %v4308_v61, 0.0  ;;  %v4326_v37 = vmax.f32 %v4306_v27, 0.0  ;;  %v5312_v7 = vld [vmem:[#allocation2 + $0x268] sm:$0xff] }
 0x3db   : > { %v11479_v52 = vmax.f32 %v2947_v20, %v4324_v53  ;;  %9108 = vmatprep.mubr.msk.bf16.mxu0 %vm978_vm4, %v11468_v63  ;;  %8886 = vmatprep.subr.bf16.mxu1 %v9903_v36  ;;  %v4327_v11 = vmax.f32 %v4307_v43, 0.0  ;;  %v11504_v42 = vpack.c.bf16 %v5307_v62, %v5306_v22  ;;  %v11533_v20 = vld [vmem:[%s11831_s3 + $0x80] sm:$0xff]   ;;  %v5313_v43 = vld [vmem:[#allocation2 + $0x270] sm:$0xff]  ;;  %v5316_v22 = vld [vmem:[#allocation2 + $0x288] sm:$0xff] }
 0x3dc   : > { %v11488_v34 = vmax.f32 %v2945_v56, %v4322_v32  ;;  %v8522_v8 = vpop.f32.mrb[100].mxu1  ;;  %9125 = vmatpush3.bf16.msra.mxu0 %v11493_v25  ;;  %v5310_v32 = vld [vmem:[#allocation2 + $0x258] sm:$0xff]  ;;  %v5311_v56 = vld [vmem:[#allocation2 + $0x260] sm:$0xff]  ;;  %v5317_v62 = vld [vmem:[#allocation2 + $0x290] sm:$0xff] }
 0x3dd   : > { %v2930_v29 = vadd.f32 %v8522_v8, %v11940_v40  ;;  %v2871_v9 = vpop.f32.mrb[101].mxu1  ;;  %9126 = vmatprep.subr.bf16.mxu0 %v11944_v1  ;;  %v5315_v8 = vld [vmem:[#allocation2 + $0x280] sm:$0xff] }
 0x3de   : > { %v2928_v10 = vadd.f32 %v11940_v40, %v2871_v9  ;;  %v8523_v15 = vpop.f32.mrb[102].mxu1  ;;  %8887 = vmatpush3.bf16.msra.mxu1 %v9903_v36  ;;  %v11538_v36 = vpack.c.bf16 %v5311_v56, %v5310_v32  ;;  %v11550_v61 = vpack.c.bf16 %v5315_v8, %v5314_v45  ;;  %v5107_v9 = vld [vmem:[#allocation2 + $0x15f] sm:$0xff]  ;;  %v5108_v27 = vld [vmem:[#allocation2 + $0x167] sm:$0xff]  ;;  %v5499_v32 = vld [vmem:[#allocation2 + $0x190] sm:$0xff] }
 0x3df   : > { %v2950_v12 = vmax.f32 %v2930_v29, 0.0  ;;  %v2931_v13 = vadd.f32 %v8523_v15, %v11940_v40  ;;  %v2874_v4 = vpop.f32.mrb[103].mxu1  ;;  %8908 = vmatprep.subr.bf16.mxu1 %v11493_v25  ;;  %v11552_v29 = vpack.c.bf16 %v5317_v62, %v5316_v22  ;;  %v11564_v15 = vpack.c.bf16 %v5494_v30, %v5493_v16  ;;  %v5500_v56 = vld [vmem:[#allocation2 + $0x198] sm:$0xff]  ;;  %v5501_v45 = vld [vmem:[#allocation2 + $0x1a0] sm:$0xff]  ;;  %v5502_v8 = vld [vmem:[#allocation2 + $0x1a8] sm:$0xff] }
 0x3e0   : > { %v2948_v28 = vmax.f32 %v2928_v10, 0.0  ;;  %v2929_v57 = vadd.f32 %v11940_v40, %v2874_v4  ;;  %9127 = vmatpush3.bf16.msra.mxu0 %v11513_v35  ;;  %v5127_v10 = vpack.c.bf16 %v5108_v27, %v5107_v9  ;;  %v5112_v4 = vld [vmem:[#allocation2 + $0x187] sm:$0xff]  ;;  %v11593_v62 = vpack.c.bf16 %v5500_v56, %v5499_v32  ;;  %v5118_v9 = vld [vmem:[#allocation2 + $0x1b7] sm:$0xff]  ;;  %v5119_v27 = vld [vmem:[#allocation2 + $0x1bf] sm:$0xff] }
 0x3e1   : > { %v11516_v33 = vmax.f32 %v2950_v12, %v4327_v11  ;;  %v2951_v18 = vmax.f32 %v2931_v13, 0.0  ;;  %8869 = vmatmul.mubr.msk.bf16.gmra.mrb[108].mxu1 %vm978_vm4, %v10942_v0  ;;  %9109 = vmatmul.mubr.msk.bf16.gmra.mrb[112].mxu0 %vm978_vm4, %v11504_v42  ;;  %v5495_v11 = vld [vmem:[#allocation2 + $0x170] sm:$0xff]  ;;  %v5496_v12 = vld [vmem:[#allocation2 + $0x178] sm:$0xff]  ;;  %v5509_v32 = vld [vmem:[#allocation2 + $0x1e0] sm:$0xff] }
 0x3e2   : > { %v11522_v19 = vmax.f32 %v2948_v28, %v4325_v14  ;;  %v2949_v6 = vmax.f32 %v2929_v57, 0.0  ;;  %8872 = vmatprep.mubr.msk.bf16.mxu1 %vm978_vm4, %v10947_v47  ;;  %9112 = vmatprep.mubr.msk.bf16.mxu0 %vm978_vm4, %v11508_v54  ;;  %v11540_v47 = vpack.c.bf16 %v5313_v43, %v5312_v7  ;;  %v5111_v13 = vld [vmem:[#allocation2 + $0x17f] sm:$0xff]  ;;  %v5498_v28 = vld [vmem:[#allocation2 + $0x188] sm:$0xff]  ;;  %v5503_v16 = vld [vmem:[#allocation2 + $0x1b0] sm:$0xff] }
 0x3e3   : > { %v11528_v53 = vmax.f32 %v2951_v18, %v4328_v39  ;;  %9148 = vmatprep.subr.bf16.mxu0 %v11533_v20  ;;  %v5497_v14 = vld [vmem:[#allocation2 + $0x180] sm:$0xff]  ;;  %v11573_v39 = vpack.c.bf16 %v5496_v12, %v5495_v11  ;;  %v5504_v30 = vld [vmem:[#allocation2 + $0x1b8] sm:$0xff]  ;;  %v5510_v56 = vld [vmem:[#allocation2 + $0x1e8] sm:$0xff] }
 0x3e4   : > { %v11536_v0 = vmax.f32 %v2949_v6, %v4326_v37  ;;  %v11578_v18 = vpack.c.bf16 %v5498_v28, %v5497_v14  ;;  %v5113_v37 = vld [vmem:[#allocation2 + $0x18f] sm:$0xff]  ;;  %v5114_v6 = vld [vmem:[#allocation2 + $0x197] sm:$0xff]  ;;  %v5115_v7 = vld [vmem:[#allocation2 + $0x19f] sm:$0xff]  ;;  %v11605_v12 = vpack.c.bf16 %v5504_v30, %v5503_v16 }
 0x3e5   : > { %v5116_v43 = vld [vmem:[#allocation2 + $0x1a7] sm:$0xff]  ;;  %v5130_v22 = vpack.c.bf16 %v5114_v6, %v5113_v37  ;;  %v5121_v14 = vld [vmem:[#allocation2 + $0x1cf] sm:$0xff]  ;;  %v5122_v28 = vld [vmem:[#allocation2 + $0x1d7] sm:$0xff] }
 0x3e6   : > { %v5123_v37 = vld [vmem:[#allocation2 + $0x1df] sm:$0xff]  ;;  %v5124_v6 = vld [vmem:[#allocation2 + $0x1e7] sm:$0xff]  ;;  %v6771_v30 = vld [vmem:[#allocation2 + $0x211] sm:$0xff] }
 0x3e7   : > { %v6770_v16 = vld [vmem:[#allocation2 + $0x209] sm:$0xff] }
 0x3e9   : > { %8873 = vmatmul.mubr.msk.bf16.gmra.mrb[112].mxu1 %vm978_vm4, %v10966_v51  ;;  %9113 = vmatmul.mubr.msk.bf16.gmra.mrb[116].mxu0 %vm978_vm4, %v11538_v36  ;;  %v5319_v51 = vld [vmem:[#allocation2 + $0x2a0] sm:$0x7] }
 0x3ea   : > { %8876 = vmatprep.mubr.msk.bf16.mxu1 %vm978_vm4, %v10970_v23  ;;  %9116 = vmatprep.mubr.msk.bf16.mxu0 %vm978_vm4, %v11540_v47  ;;  %v5318_v23 = vld [vmem:[#allocation2 + $0x298] sm:$0xff] }
 0x3eb   : > { %v11562_v1 = vpack.c.bf16 %v5319_v51, %v5318_v23  ;;  %v5131_v23 = vpack.c.bf16 %v5116_v43, %v5115_v7  ;;  %v11596_v51 = vpack.c.bf16 %v5502_v8, %v5501_v45  ;;  %v5134_v7 = vpack.c.bf16 %v5122_v28, %v5121_v14  ;;  %v6775_v14 = vld [vmem:[#allocation2 + $0x231] sm:$0xff] }
 0x3ec   : > { %v5135_v45 = vpack.c.bf16 %v5124_v6, %v5123_v37  ;;  %v11617_v8 = vpack.c.bf16 %v5510_v56, %v5509_v32  ;;  %v6778_v37 = vld [vmem:[#allocation2 + $0x249] sm:$0xff]  ;;  %v6779_v6 = vld [vmem:[#allocation2 + $0x251] sm:$0xff] }
 0x3ed   : > { %v6782_v56 = vld [vmem:[#allocation2 + $0x269] sm:$0xff] }
 0x3f1   : > { %8877 = vmatmul.mubr.msk.bf16.gmra.mrb[116].mxu1 %vm978_vm4, %v10982_v60  ;;  %9117 = vmatmul.mubr.msk.bf16.gmra.mrb[120].mxu0 %vm978_vm4, %v11550_v61  ;;  %v5110_v60 = vld [vmem:[#allocation2 + $0x177] sm:$0xff] }
 0x3f2   : > { %8880 = vmatprep.mubr.msk.bf16.mxu1 %vm978_vm4, %v10986_v44  ;;  %9120 = vmatprep.mubr.msk.bf16.mxu0 %vm978_vm4, %v11552_v29  ;;  %v5109_v44 = vld [vmem:[#allocation2 + $0x16f] sm:$0xff] }
 0x3f3   : > { %v5128_v57 = vpack.c.bf16 %v5110_v60, %v5109_v44  ;;  %v5505_v44 = vld [vmem:[#allocation2 + $0x1c0] sm:$0xff]  ;;  %v5506_v60 = vld [vmem:[#allocation2 + $0x1c8] sm:$0xff] }
 0x3f9   : > { %8881 = vmatmul.mubr.msk.bf16.gmra.mrb[120].mxu1 %vm978_vm4, %v10998_v49  ;;  %9121 = vmatmul.mubr.msk.bf16.gmra.mrb[124].mxu0 %vm978_vm4, %v11562_v1  ;;  %v5129_v49 = vpack.c.bf16 %v5112_v4, %v5111_v13  ;;  %v11607_v4 = vpack.c.bf16 %v5506_v60, %v5505_v44  ;;  %v6790_v44 = vpack.c.bf16 %v6771_v30, %v6770_v16  ;;  %v6772_v60 = vld [vmem:[#allocation2 + $0x219] sm:$0xff] }
 0x3fa   : > { %8888 = vmatprep.mubr.msk.bf16.mxu1 %vm978_vm4, %v5127_v10  ;;  %9128 = vmatprep.mubr.msk.bf16.mxu0 %vm978_vm4, %v11564_v15  ;;  %v5120_v10 = vld [vmem:[#allocation2 + $0x1c7] sm:$0xff] }
 0x3fb   : > { %v5133_v13 = vpack.c.bf16 %v5120_v10, %v5119_v27 }
 0x401   : > { %8889 = vmatmul.mubr.msk.bf16.vlgmr.msra.gmra.mrb[104].mxu1 %vm978_vm4, %v5128_v57  ;;  %9129 = vmatmul.mubr.msk.bf16.vlgmr.msra.gmra.mrb[108].mxu0 %vm978_vm4, %v11573_v39  ;;  %v5507_v57 = vld [vmem:[#allocation2 + $0x1d0] sm:$0xff] }
 0x402   : > { %8909 = vmatpush3.bf16.msra.mxu1 %v11493_v25  ;;  %8892 = vmatprep.mubr.msk.bf16.mxu1 %vm978_vm4, %v5129_v49  ;;  %v11589_v25 = vld [vmem:[%s11831_s3 + $0x88] sm:$0xff]   ;;  %v5508_v49 = vld [vmem:[#allocation2 + $0x1d8] sm:$0xff] }
 0x403   : > { %9132 = vmatprep.mubr.msk.bf16.mxu0 %vm978_vm4, %v11578_v18  ;;  %8910 = vmatprep.subr.bf16.mxu1 %v11513_v35  ;;  %v11615_v43 = vpack.c.bf16 %v5508_v49, %v5507_v57  ;;  %v6777_v49 = vld [vmem:[#allocation2 + $0x241] sm:$0xff] }
 0x404   : > { %9149 = vmatpush3.bf16.msra.mxu0 %v11533_v20 }
 0x405   : > { %9150 = vmatprep.subr.bf16.mxu0 %v11589_v25 }
 0x406   : > { %8911 = vmatpush3.bf16.msra.mxu1 %v11513_v35  ;;  %v5117_v35 = vld [vmem:[#allocation2 + $0x1af] sm:$0xff] }
 0x407   : > { %8932 = vmatprep.subr.bf16.mxu1 %v11533_v20  ;;  %v5132_v11 = vpack.c.bf16 %v5118_v9, %v5117_v35  ;;  %v5511_v35 = vld [vmem:[#allocation2 + $0x1f0] sm:$0xff]  ;;  %v5512_v9 = vld [vmem:[#allocation2 + $0x1f8] sm:$0x7] }
 0x408   : > { %9151 = vmatpush3.bf16.msra.mxu0 %v11589_v25  ;;  %v11625_v10 = vpack.c.bf16 %v5512_v9, %v5511_v35 }
 0x409   : > { %8893 = vmatmul.mubr.msk.bf16.gmra.mrb[108].mxu1 %vm978_vm4, %v5130_v22  ;;  %9133 = vmatmul.mubr.msk.bf16.gmra.mrb[112].mxu0 %vm978_vm4, %v11593_v62  ;;  %v5125_v22 = vld [vmem:[#allocation2 + $0x1ef] sm:$0xff] }
 0x40a   : > { %8896 = vmatprep.mubr.msk.bf16.mxu1 %vm978_vm4, %v5131_v23  ;;  %9136 = vmatprep.mubr.msk.bf16.mxu0 %vm978_vm4, %v11596_v51  ;;  %v5126_v23 = vld [vmem:[#allocation2 + $0x1f7] sm:$0x7] }
 0x40b   : > { %v5136_v27 = vpack.c.bf16 %v5126_v23, %v5125_v22  ;;  %v6787_v23 = vld [vmem:[#allocation2 + $0x291] sm:$0xff] }
 0x411   : > { %8897 = vmatmul.mubr.msk.bf16.gmra.mrb[112].mxu1 %vm978_vm4, %v5132_v11  ;;  %9137 = vmatmul.mubr.msk.bf16.gmra.mrb[116].mxu0 %vm978_vm4, %v11605_v12  ;;  %v6773_v11 = vld [vmem:[#allocation2 + $0x221] sm:$0xff] }
 0x412   : > { %8900 = vmatprep.mubr.msk.bf16.mxu1 %vm978_vm4, %v5133_v13  ;;  %9140 = vmatprep.mubr.msk.bf16.mxu0 %vm978_vm4, %v11607_v4  ;;  %v6774_v13 = vld [vmem:[#allocation2 + $0x229] sm:$0xff]  ;;  %v6791_v28 = vpack.c.bf16 %v6773_v11, %v6772_v60 }
 0x413   : > { %v6792_v57 = vpack.c.bf16 %v6775_v14, %v6774_v13 }
 0x419   : > { %8901 = vmatmul.mubr.msk.bf16.gmra.mrb[116].mxu1 %vm978_vm4, %v5134_v7  ;;  %9141 = vmatmul.mubr.msk.bf16.gmra.mrb[120].mxu0 %vm978_vm4, %v11615_v43  ;;  %v6783_v7 = vld [vmem:[#allocation2 + $0x271] sm:$0xff] }
 0x41a   : > { %8904 = vmatprep.mubr.msk.bf16.mxu1 %vm978_vm4, %v5135_v45  ;;  %9144 = vmatprep.mubr.msk.bf16.mxu0 %vm978_vm4, %v11617_v8  ;;  %v6796_v22 = vpack.c.bf16 %v6783_v7, %v6782_v56 }
 0x421   : > { %8905 = vmatmul.mubr.msk.bf16.gmra.mrb[120].mxu1 %vm978_vm4, %v5136_v27  ;;  %9145 = vmatmul.mubr.msk.bf16.gmra.mrb[124].mxu0 %vm978_vm4, %v11625_v10 }
 0x422   : > { %8912 = vmatprep.mubr.msk.bf16.mxu1 %vm978_vm4, %v11430_v55  ;;  %9152 = vmatprep.mubr.msk.bf16.mxu0 %vm978_vm4, %v6790_v44  ;;  %v6776_v55 = vld [vmem:[#allocation2 + $0x239] sm:$0xff] }
 0x423   : > { %v6793_v32 = vpack.c.bf16 %v6777_v49, %v6776_v55 }
 0x429   : > { %8913 = vmatmul.mubr.msk.bf16.vlgmr.msra.gmra.mrb[104].mxu1 %vm978_vm4, %v11459_v5  ;;  %9153 = vmatmul.mubr.msk.bf16.vlgmr.msra.gmra.mrb[108].mxu0 %vm978_vm4, %v6791_v28  ;;  %v6794_v5 = vpack.c.bf16 %v6779_v6, %v6778_v37 }
 0x42a   : > { %8933 = vmatpush3.bf16.msra.mxu1 %v11533_v20  ;;  %8916 = vmatprep.mubr.msk.bf16.mxu1 %vm978_vm4, %v11468_v63  ;;  %v6780_v63 = vld [vmem:[#allocation2 + $0x259] sm:$0xff]  ;;  %v6781_v20 = vld [vmem:[#allocation2 + $0x261] sm:$0xff] }
 0x42b   : > { %9156 = vmatprep.mubr.msk.bf16.mxu0 %vm978_vm4, %v6792_v57  ;;  %8934 = vmatprep.subr.bf16.mxu1 %v11589_v25  ;;  %v6795_v45 = vpack.c.bf16 %v6781_v20, %v6780_v63 }
 0x42e   : > { %8935 = vmatpush3.bf16.msra.mxu1 %v11589_v25  ;;  %v6786_v25 = vld [vmem:[#allocation2 + $0x289] sm:$0xff] }
 0x42f   : > { %v6798_v9 = vpack.c.bf16 %v6787_v23, %v6786_v25 }
 0x431   : > { %8917 = vmatmul.mubr.msk.bf16.gmra.mrb[108].mxu1 %vm978_vm4, %v11504_v42  ;;  %9157 = vmatmul.mubr.msk.bf16.gmra.mrb[112].mxu0 %vm978_vm4, %v6793_v32  ;;  %v6784_v42 = vld [vmem:[#allocation2 + $0x279] sm:$0xff] }
 0x432   : > { %8920 = vmatprep.mubr.msk.bf16.mxu1 %vm978_vm4, %v11508_v54  ;;  %9160 = vmatprep.mubr.msk.bf16.mxu0 %vm978_vm4, %v6794_v5  ;;  %v6785_v54 = vld [vmem:[#allocation2 + $0x281] sm:$0xff] }
 0x433   : > { %v6797_v35 = vpack.c.bf16 %v6785_v54, %v6784_v42 }
 0x439   : > { %8921 = vmatmul.mubr.msk.bf16.gmra.mrb[112].mxu1 %vm978_vm4, %v11538_v36  ;;  %9161 = vmatmul.mubr.msk.bf16.gmra.mrb[116].mxu0 %vm978_vm4, %v6795_v45  ;;  %v6788_v36 = vld [vmem:[#allocation2 + $0x299] sm:$0xff] }
 0x43a   : > { %8924 = vmatprep.mubr.msk.bf16.mxu1 %vm978_vm4, %v11540_v47  ;;  %9164 = vmatprep.mubr.msk.bf16.mxu0 %vm978_vm4, %v6796_v22  ;;  %v6789_v47 = vld [vmem:[#allocation2 + $0x2a1] sm:$0x7] }
 0x43b   : > { %v6799_v16 = vpack.c.bf16 %v6789_v47, %v6788_v36 }
 0x441   : > { %8925 = vmatmul.mubr.msk.bf16.gmra.mrb[116].mxu1 %vm978_vm4, %v11550_v61  ;;  %9165 = vmatmul.mubr.msk.bf16.gmra.mrb[120].mxu0 %vm978_vm4, %v6797_v35 }
 0x442   : > { %8928 = vmatprep.mubr.msk.bf16.mxu1 %vm978_vm4, %v11552_v29  ;;  %9168 = vmatprep.mubr.msk.bf16.mxu0 %vm978_vm4, %v6798_v9 }
 0x449   : > { %8929 = vmatmul.mubr.msk.bf16.gmra.mrb[120].mxu1 %vm978_vm4, %v11562_v1  ;;  %9169 = vmatmul.mubr.msk.bf16.gmra.mrb[124].mxu0 %vm978_vm4, %v6799_v16 }
 0x44a   : > { %8936 = vmatprep.mubr.msk.bf16.mxu1 %vm978_vm4, %v11564_v15 }
 0x451   : > { %8937 = vmatmul.mubr.msk.bf16.vlgmr.msra.gmra.mrb[104].mxu1 %vm978_vm4, %v11573_v39 }
 0x452   : > { %8940 = vmatprep.mubr.msk.bf16.mxu1 %vm978_vm4, %v11578_v18 }
 0x459   : > { %8941 = vmatmul.mubr.msk.bf16.gmra.mrb[108].mxu1 %vm978_vm4, %v11593_v62 }
 0x45a   : > { %8944 = vmatprep.mubr.msk.bf16.mxu1 %vm978_vm4, %v11596_v51 }
 0x461   : > { %8945 = vmatmul.mubr.msk.bf16.gmra.mrb[112].mxu1 %vm978_vm4, %v11605_v12 }
 0x462   : > { %8948 = vmatprep.mubr.msk.bf16.mxu1 %vm978_vm4, %v11607_v4 }
 0x469   : > { %8949 = vmatmul.mubr.msk.bf16.gmra.mrb[116].mxu1 %vm978_vm4, %v11615_v43 }
 0x46a   : > { %8952 = vmatprep.mubr.msk.bf16.mxu1 %vm978_vm4, %v11617_v8 }
 0x471   : > { %8953 = vmatmul.mubr.msk.bf16.gmra.mrb[120].mxu1 %vm978_vm4, %v11625_v10 }
 0x4fc   : > { %v9154_v61 = vpop.f32.mrb[108].mxu0 }
 0x4fd   : > { %v6864_v29 = vpop.f32.mrb[109].mxu0  ;;  %v6965_v57 = vadd.f32 %v9154_v61, %v11940_v40 }
 0x4fe   : > { %v9155_v1 = vpop.f32.mrb[110].mxu0  ;;  %v6963_v37 = vadd.f32 %v11940_v40, %v6864_v29 }
 0x4ff   : > { %v6867_v15 = vpop.f32.mrb[111].mxu0  ;;  %v6966_v5 = vadd.f32 %v9155_v1, %v11940_v40  ;;  %v6985_v42 = vmax.f32 %v6965_v57, 0.0 }
 0x500   : > { %v6964_v7 = vadd.f32 %v11940_v40, %v6867_v15  ;;  %v6983_v23 = vmax.f32 %v6963_v37, 0.0 }
 0x501   : > { %v6986_v36 = vmax.f32 %v6966_v5, 0.0 }
 0x502   : > { %v6984_v61 = vmax.f32 %v6964_v7, 0.0 }
 0x504   : > { %v9158_v39 = vpop.f32.mrb[112].mxu0 }
 0x505   : > { %v6880_v18 = vpop.f32.mrb[113].mxu0  ;;  %v6969_v15 = vadd.f32 %v9158_v39, %v11940_v40 }
 0x506   : > { %v9159_v62 = vpop.f32.mrb[114].mxu0 }
 0x507   : > { %v6883_v51 = vpop.f32.mrb[115].mxu0  ;;  %v6970_v5 = vadd.f32 %v9159_v62, %v11940_v40 }
 0x50c   : > { %v11683_v12 = vpop.f32.mrb[116].mxu0 }
 0x50d   : > { %v11685_v4 = vpop.f32.mrb[117].mxu0 }
 0x50e   : > { %v11687_v30 = vpop.f32.mrb[118].mxu0 }
 0x50f   : > { %v11689_v43 = vpop.f32.mrb[119].mxu0 }
 0x514   : > { %v11691_v8 = vpop.f32.mrb[120].mxu0 }
 0x515   : > { %v11693_v27 = vpop.f32.mrb[121].mxu0 }
 0x516   : > { %v11695_v10 = vpop.f32.mrb[122].mxu0 }
 0x517   : > { %v11697_v44 = vpop.f32.mrb[123].mxu0 }
 0x51c   : > { %v11699_v60 = vpop.f32.mrb[124].mxu0 }
 0x51d   : > { %v11701_v11 = vpop.f32.mrb[125].mxu0 }
 0x51e   : > { %v11703_v13 = vpop.f32.mrb[126].mxu0 }
 0x51f   : > { %v11705_v14 = vpop.f32.mrb[127].mxu0 }
 0x524   : > { %v8938_v28 = vpop.f32.mrb[104].mxu1 }
 0x525   : > { %v5688_v55 = vadd.f32 %v8938_v28, %v11940_v40  ;;  %v5587_v49 = vpop.f32.mrb[105].mxu1 }
 0x526   : > { %v5686_v6 = vadd.f32 %v11940_v40, %v5587_v49  ;;  %v8939_v32 = vpop.f32.mrb[106].mxu1 }
 0x527   : > { %v5708_v63 = vmax.f32 %v5688_v55, 0.0  ;;  %v5689_v20 = vadd.f32 %v8939_v32, %v11940_v40  ;;  %v5590_v56 = vpop.f32.mrb[107].mxu1  ;;  %v6967_v55 = vadd.f32 %v11940_v40, %v6880_v18 }
 0x528   : > { %v5706_v45 = vmax.f32 %v5686_v6, 0.0  ;;  %v5687_v22 = vadd.f32 %v11940_v40, %v5590_v56  ;;  %v6968_v56 = vadd.f32 %v11940_v40, %v6883_v51 }
 0x529   : > { %v5728_v54 = vmax.f32 %v11374_v24, %v5708_v63  ;;  %v5709_v25 = vmax.f32 %v5689_v20, 0.0 }
 0x52a   : > { %v5726_v35 = vmax.f32 %v11380_v2, %v5706_v45  ;;  %v5707_v9 = vmax.f32 %v5687_v22, 0.0  ;;  %v6989_v22 = vmax.f32 %v6969_v15, 0.0  ;;  %v6971_v15 = vadd.f32 %v11940_v40, %v11685_v4 }
 0x52b   : > { %v7005_v47 = vmax.f32 %v5728_v54, %v6985_v42  ;;  %v5729_v16 = vmax.f32 %v11388_v41, %v5709_v25  ;;  %v6987_v54 = vmax.f32 %v6967_v55, 0.0  ;;  %v6972_v4 = vadd.f32 %v11940_v40, %v11689_v43 }
 0x52c   : > { %v7003_v29 = vmax.f32 %v5726_v35, %v6983_v23  ;;  %v5727_v24 = vmax.f32 %v11392_v50, %v5707_v9  ;;  %v8942_v1 = vpop.f32.mrb[108].mxu1  ;;  %v6990_v35 = vmax.f32 %v6970_v5, 0.0 }
 0x52d   : > { %v7639_v2 = vpack.c.bf16 %v7005_v47, %v7005_v47  ;;  %v7006_v28 = vmax.f32 %v5729_v16, %v6986_v36  ;;  %v5692_v57 = vadd.f32 %v8942_v1, %v11940_v40  ;;  %v5603_v41 = vpop.f32.mrb[109].mxu1  ;;  %v6988_v36 = vmax.f32 %v6968_v56, 0.0 }
 0x52e   : > { %v7637_v49 = vpack.c.bf16 %v7003_v29, %v7003_v29  ;;  %v7004_v37 = vmax.f32 %v5727_v24, %v6984_v61  ;;  %v5690_v6 = vadd.f32 %v11940_v40, %v5603_v41  ;;  %v8943_v32 = vpop.f32.mrb[110].mxu1 }
 0x52f   : > { %7109 = vst.msk [vmem:[%s11722_s29 + $0x8] sm:$0xf] %vm7106_vm6, %v7639_v2  ;;  %v7640_v50 = vpack.c.bf16 %v7006_v28, %v7006_v28  ;;  %v5712_v39 = vmax.f32 %v5692_v57, 0.0  ;;  %v5693_v63 = vadd.f32 %v8943_v32, %v11940_v40  ;;  %v5606_v20 = vpop.f32.mrb[111].mxu1 }
 0x530   : > { %7107 = vst.msk [vmem:[%s11722_s29] sm:$0xf] %vm7106_vm6, %v7637_v49  ;;  %v7638_v18 = vpack.c.bf16 %v7004_v37, %v7004_v37  ;;  %v5710_v7 = vmax.f32 %v5690_v6, 0.0  ;;  %v5691_v45 = vadd.f32 %v11940_v40, %v5606_v20 }
 0x531   : > { %7110 = vst.msk [vmem:[%s11722_s29 + $0xc] sm:$0xf] %vm7106_vm6, %v7640_v50  ;;  %v5732_v62 = vmax.f32 %v11402_v17, %v5712_v39  ;;  %v5713_v42 = vmax.f32 %v5693_v63, 0.0  ;;  %v6973_v17 = vadd.f32 %v11683_v12, %v11940_v40  ;;  %v6991_v39 = vmax.f32 %v6971_v15, 0.0 }
 0x532   : > { %7108 = vst.msk [vmem:[%s11722_s29 + $0x4] sm:$0xf] %vm7106_vm6, %v7638_v18  ;;  %v5730_v25 = vmax.f32 %v11408_v26, %v5710_v7  ;;  %v5711_v23 = vmax.f32 %v5691_v45, 0.0  ;;  %v6992_v7 = vmax.f32 %v6972_v4, 0.0 }
 0x533   : > { %v7009_v51 = vmax.f32 %v5732_v62, %v6989_v22  ;;  %v5733_v9 = vmax.f32 %v11416_v46, %v5713_v42  ;;  %v6993_v5 = vmax.f32 %v6973_v17, 0.0 }
 0x534   : > { %v7007_v47 = vmax.f32 %v5730_v25, %v6987_v54  ;;  %v5731_v16 = vmax.f32 %v11420_v48, %v5711_v23  ;;  %v8946_v61 = vpop.f32.mrb[112].mxu1  ;;  %v6974_v48 = vadd.f32 %v11687_v30, %v11940_v40  ;;  %v6975_v23 = vadd.f32 %v11940_v40, %v11693_v27 }
 0x535   : > { %v7643_v29 = vpack.c.bf16 %v7009_v51, %v7009_v51  ;;  %v7010_v24 = vmax.f32 %v5733_v9, %v6990_v35  ;;  %v5696_v1 = vadd.f32 %v8946_v61, %v11940_v40  ;;  %v5619_v26 = vpop.f32.mrb[113].mxu1  ;;  %v6976_v27 = vadd.f32 %v11940_v40, %v11697_v44 }
 0x536   : > { %v7641_v2 = vpack.c.bf16 %v7007_v47, %v7007_v47  ;;  %v7008_v46 = vmax.f32 %v5731_v16, %v6988_v36  ;;  %v5694_v28 = vadd.f32 %v11940_v40, %v5619_v26  ;;  %v8947_v57 = vpop.f32.mrb[114].mxu1  ;;  %v6994_v56 = vmax.f32 %v6974_v48, 0.0 }
 0x537   : > { %7113 = vst.msk [vmem:[%s11722_s29 + $0x18] sm:$0xf] %vm7106_vm6, %v7643_v29  ;;  %v7644_v12 = vpack.c.bf16 %v7010_v24, %v7010_v24  ;;  %v5716_v41 = vmax.f32 %v5696_v1, 0.0  ;;  %v5697_v55 = vadd.f32 %v8947_v57, %v11940_v40  ;;  %v5622_v49 = vpop.f32.mrb[115].mxu1  ;;  %v6995_v26 = vmax.f32 %v6975_v23, 0.0 }
 0x538   : > { %7111 = vst.msk [vmem:[%s11722_s29 + $0x10] sm:$0xf] %vm7106_vm6, %v7641_v2  ;;  %v7642_v37 = vpack.c.bf16 %v7008_v46, %v7008_v46  ;;  %v5714_v6 = vmax.f32 %v5694_v28, 0.0  ;;  %v5695_v32 = vadd.f32 %v11940_v40, %v5622_v49  ;;  %v6996_v57 = vmax.f32 %v6976_v27, 0.0 }
 0x539   : > { %7114 = vst.msk [vmem:[%s11722_s29 + $0x1c] sm:$0xf] %vm7106_vm6, %v7644_v12  ;;  %v5736_v30 = vmax.f32 %v11432_v58, %v5716_v41  ;;  %v5717_v50 = vmax.f32 %v5697_v55, 0.0  ;;  %v6977_v58 = vadd.f32 %v11691_v8, %v11940_v40 }
 0x53a   : > { %7112 = vst.msk [vmem:[%s11722_s29 + $0x14] sm:$0xf] %vm7106_vm6, %v7642_v37  ;;  %v5734_v63 = vmax.f32 %v11438_v21, %v5714_v6  ;;  %v5715_v20 = vmax.f32 %v5695_v32, 0.0  ;;  %v6979_v37 = vadd.f32 %v11940_v40, %v11701_v11  ;;  %v6980_v11 = vadd.f32 %v11940_v40, %v11705_v14 }
 0x53b   : > { %v7013_v43 = vmax.f32 %v5736_v30, %v6993_v5  ;;  %v5737_v18 = vmax.f32 %v11446_v59, %v5717_v50  ;;  %v6997_v24 = vmax.f32 %v6977_v58, 0.0 }
 0x53c   : > { %v7011_v45 = vmax.f32 %v5734_v63, %v6991_v39  ;;  %v5735_v22 = vmax.f32 %v11450_v31, %v5715_v20  ;;  %v8950_v62 = vpop.f32.mrb[116].mxu1  ;;  %v6978_v31 = vadd.f32 %v11695_v10, %v11940_v40 }
 0x53d   : > { %v7647_v42 = vpack.c.bf16 %v7013_v43, %v7013_v43  ;;  %v7014_v54 = vmax.f32 %v5737_v18, %v6994_v56  ;;  %v5700_v25 = vadd.f32 %v8950_v62, %v11940_v40  ;;  %v5635_v21 = vpop.f32.mrb[117].mxu1 }
 0x53e   : > { %v7645_v35 = vpack.c.bf16 %v7011_v45, %v7011_v45  ;;  %v7012_v59 = vmax.f32 %v5735_v22, %v6992_v7  ;;  %v5698_v51 = vadd.f32 %v11940_v40, %v5635_v21  ;;  %v8951_v9 = vpop.f32.mrb[118].mxu1  ;;  %v6998_v46 = vmax.f32 %v6978_v31, 0.0 }
 0x53f   : > { %7117 = vst.msk [vmem:[%s11722_s29 + $0x28] sm:$0xf] %vm7106_vm6, %v7647_v42  ;;  %v7648_v8 = vpack.c.bf16 %v7014_v54, %v7014_v54  ;;  %v5720_v36 = vmax.f32 %v5700_v25, 0.0  ;;  %v5701_v47 = vadd.f32 %v8951_v9, %v11940_v40  ;;  %v5638_v16 = vpop.f32.mrb[119].mxu1  ;;  %v6999_v7 = vmax.f32 %v6979_v37, 0.0 }
 0x540   : > { %7115 = vst.msk [vmem:[%s11722_s29 + $0x20] sm:$0xf] %vm7106_vm6, %v7645_v35  ;;  %v7646_v61 = vpack.c.bf16 %v7012_v59, %v7012_v59  ;;  %v5718_v17 = vmax.f32 %v5698_v51, 0.0  ;;  %v5699_v29 = vadd.f32 %v11940_v40, %v5638_v16  ;;  %v7000_v42 = vmax.f32 %v6980_v11, 0.0 }
 0x541   : > { %7118 = vst.msk [vmem:[%s11722_s29 + $0x2c] sm:$0xf] %vm7106_vm6, %v7648_v8  ;;  %v5740_v10 = vmax.f32 %v11462_v3, %v5720_v36  ;;  %v5721_v1 = vmax.f32 %v5701_v47, 0.0  ;;  %v6981_v3 = vadd.f32 %v11699_v60, %v11940_v40 }
 0x542   : > { %7116 = vst.msk [vmem:[%s11722_s29 + $0x24] sm:$0xf] %vm7106_vm6, %v7646_v61  ;;  %v5738_v15 = vmax.f32 %v11470_v38, %v5718_v17  ;;  %v5719_v2 = vmax.f32 %v5699_v29, 0.0 }
 0x543   : > { %v7017_v44 = vmax.f32 %v5740_v10, %v6997_v24  ;;  %v5741_v28 = vmax.f32 %v11479_v52, %v5721_v1  ;;  %v7001_v43 = vmax.f32 %v6981_v3, 0.0 }
 0x544   : > { %v7015_v48 = vmax.f32 %v5738_v15, %v6995_v26  ;;  %v5739_v12 = vmax.f32 %v11488_v34, %v5719_v2  ;;  %v8954_v41 = vpop.f32.mrb[120].mxu1  ;;  %v6982_v34 = vadd.f32 %v11703_v13, %v11940_v40 }
 0x545   : > { %v7651_v55 = vpack.c.bf16 %v7017_v44, %v7017_v44  ;;  %v7018_v49 = vmax.f32 %v5741_v28, %v6998_v46  ;;  %v5704_v4 = vadd.f32 %v8954_v41, %v11940_v40  ;;  %v5651_v38 = vpop.f32.mrb[121].mxu1 }
 0x546   : > { %v7649_v6 = vpack.c.bf16 %v7015_v48, %v7015_v48  ;;  %v7016_v52 = vmax.f32 %v5739_v12, %v6996_v57  ;;  %v5702_v32 = vadd.f32 %v11940_v40, %v5651_v38  ;;  %v8955_v5 = vpop.f32.mrb[122].mxu1  ;;  %v7002_v22 = vmax.f32 %v6982_v34, 0.0 }
 0x547   : > { %7121 = vst.msk [vmem:[%s11722_s29 + $0x38] sm:$0xf] %vm7106_vm6, %v7651_v55  ;;  %v7652_v60 = vpack.c.bf16 %v7018_v49, %v7018_v49  ;;  %v5724_v30 = vmax.f32 %v5704_v4, 0.0  ;;  %v5705_v50 = vadd.f32 %v8955_v5, %v11940_v40  ;;  %v5654_v39 = vpop.f32.mrb[123].mxu1 }
 0x548   : > { %7119 = vst.msk [vmem:[%s11722_s29 + $0x30] sm:$0xf] %vm7106_vm6, %v7649_v6  ;;  %v7650_v63 = vpack.c.bf16 %v7016_v52, %v7016_v52  ;;  %v5722_v20 = vmax.f32 %v5702_v32, 0.0  ;;  %v5703_v56 = vadd.f32 %v11940_v40, %v5654_v39 }
 0x549   : > { %7122 = vst.msk [vmem:[%s11722_s29 + $0x3c] sm:$0xf] %vm7106_vm6, %v7652_v60  ;;  %v5744_v13 = vmax.f32 %v11516_v33, %v5724_v30  ;;  %v5725_v18 = vmax.f32 %v5705_v50, 0.0 }
 0x54a   : > { %7120 = vst.msk [vmem:[%s11722_s29 + $0x34] sm:$0xf] %vm7106_vm6, %v7650_v63  ;;  %v5742_v45 = vmax.f32 %v11522_v19, %v5722_v20  ;;  %v5723_v14 = vmax.f32 %v5703_v56, 0.0  ;;  %v7129_v19 = vld [vmem:[%s11722_s29 + $0x4c] sm:$0x3] }
 0x54b   : > { %v7021_v62 = vmax.f32 %v5744_v13, %v7001_v43  ;;  %v5745_v58 = vmax.f32 %v11528_v53, %v5725_v18 }
 0x54c   : > { %v7019_v33 = vmax.f32 %v5742_v45, %v6999_v7  ;;  %v5743_v54 = vmax.f32 %v11536_v0, %v5723_v14  ;;  %66 = sbr.rel (!%p64_p10) target bundleno = 58 (0x3a), region = 61 }
 0x54d   : > { %v7655_v25 = vpack.c.bf16 %v7021_v62, %v7021_v62  ;;  %v7022_v21 = vmax.f32 %v5745_v58, %v7002_v22 }
 0x54e   : > { %v7653_v23 = vpack.c.bf16 %v7019_v33, %v7019_v33  ;;  %v7020_v35 = vmax.f32 %v5743_v54, %v7000_v42 }
 0x54f   : > { %7125 = vst.msk [vmem:[%s11722_s29 + $0x48] sm:$0xf] %vm7106_vm6, %v7655_v25  ;;  %v7656_v59 = vpack.c.bf16 %v7022_v21, %v7022_v21 }
 0x550   : > { %7123 = vst.msk [vmem:[%s11722_s29 + $0x40] sm:$0xf] %vm7106_vm6, %v7653_v23  ;;  %v7654_v51 = vpack.c.bf16 %v7020_v35, %v7020_v35 }
 0x551   : > { %v7130_v53 = vsel %vm7128_vm9, %v7656_v59, %v7129_v19 }
 0x552   : > { %7131 = vst [vmem:[%s11722_s29 + $0x4c] sm:$0x3] %v7130_v53  ;;  %7124 = vst.msk [vmem:[%s11722_s29 + $0x44] sm:$0xf] %vm7106_vm6, %v7654_v51 }
 0x553   :  { %7136 = vsyncpa [#allocation4], 1 }
 0x554   :  { %7137 = vsyncpa [#allocation6], 1 }

// kernel: cnn_mnist_forward.3
= control target key start
LH: loop header
LB: loop body
LE: loop exit
PB: predicated region body
PF: predicated region fallthrough
CT: control target
= control target key end

     0   :  { %v1293_v27 = vlaneseq  ;;  %v9446_v35 = vmov 1966171168   ;;  %vm5574_vm0 = vcmask 523264   ;;  %s11561_s0 = inlined_call_operand.vmem [shape: bf16[2,9920], index: 0, kind: input, shape index: {}]   ;;  %s11562_s1 = inlined_call_operand.vmem [shape: bf16[9920,128], index: 1, kind: input, shape index: {}]   ;;  %s11563_s2 = inlined_call_operand.vmem [shape: f32[1,128], index: 2, kind: input, shape index: {}]   ;;  %s11564_s3 = inlined_call_operand.vmem [shape: bf16[128,10], index: 3, kind: input, shape index: {}]   ;;  %s11565_s4 = inlined_call_operand.vmem [shape: f32[1,10], index: 4, kind: input, shape index: {}]   ;;  %s11566_s5 = inlined_call_operand.hbm [shape: f32[2,10], index: 5, kind: output, shape index: {}]  }
   0x1   :  { %v8780_v0 = vld [vmem:[%s11562_s1 + $0x40] sm:$0xff]   ;;  %v8784_v4 = vld [vmem:[%s11562_s1 + $0x48] sm:$0xff]   ;;  %v8788_v8 = vld [vmem:[%s11562_s1 + $0x50] sm:$0xff]   ;;  %v1291_v36 = vunpack.c.l.s4 %v9446_v35 }
   0x2   :  { %v8781_v1 = vld [vmem:[%s11562_s1] sm:$0xff]   ;;  %7910 = vmatprep.subr.bf16.mxu0 %v8780_v0  ;;  %v8785_v5 = vld [vmem:[%s11562_s1 + $0x8] sm:$0xff]   ;;  %v8789_v9 = vld [vmem:[%s11562_s1 + $0x10] sm:$0xff]   ;;  %v1294_v32 = vshrl.u32 %v1293_v27, 7 }
   0x3   :  { %v8782_v2 = vld [vmem:[%s11562_s1 + $0xc0] sm:$0xff]   ;;  %7911 = vmatpush3.bf16.msra.mxu0 %v8781_v1  ;;  %v8786_v6 = vld [vmem:[%s11562_s1 + $0xc8] sm:$0xff]   ;;  %v8790_v10 = vld [vmem:[%s11562_s1 + $0xd0] sm:$0xff]   ;;  %v1292_v39 = vunpack.c.0.s8 %v1291_v36 }
   0x4   :  { %v8783_v3 = vld [vmem:[%s11562_s1 + $0x80] sm:$0xff]   ;;  %7932 = vmatprep.subr.bf16.mxu1 %v8782_v2  ;;  %7912 = vmatprep.subr.bf16.mxu0 %v8784_v4  ;;  %v8787_v7 = vld [vmem:[%s11562_s1 + $0x88] sm:$0xff]   ;;  %v8791_v11 = vld [vmem:[%s11562_s1 + $0x90] sm:$0xff]  }
   0x5   :  { %7933 = vmatpush3.bf16.msra.mxu1 %v8783_v3  ;;  %v8792_v12 = vld [vmem:[%s11562_s1 + $0x58] sm:$0xff]   ;;  %v8796_v16 = vld [vmem:[%s11562_s1 + $0x60] sm:$0xff]   ;;  %v8800_v20 = vld [vmem:[%s11562_s1 + $0x68] sm:$0xff]   ;;  %v9586_v41 = vsub.s32 %v1292_v39, %v1294_v32 }
   0x6   :  { %7934 = vmatprep.subr.bf16.mxu1 %v8786_v6  ;;  %v8793_v13 = vld [vmem:[%s11562_s1 + $0x18] sm:$0xff]   ;;  %v8797_v17 = vld [vmem:[%s11562_s1 + $0x20] sm:$0xff]   ;;  %v8801_v21 = vld [vmem:[%s11562_s1 + $0x28] sm:$0xff]  }
   0x7   :  { %7913 = vmatpush3.bf16.msra.mxu0 %v8785_v5  ;;  %v8794_v14 = vld [vmem:[%s11562_s1 + $0xd8] sm:$0xff]   ;;  %v8798_v18 = vld [vmem:[%s11562_s1 + $0xe0] sm:$0xff]   ;;  %v8802_v22 = vld [vmem:[%s11562_s1 + $0xe8] sm:$0xff]  }
   0x8   :  { %7914 = vmatprep.subr.bf16.mxu0 %v8788_v8  ;;  %v8795_v15 = vld [vmem:[%s11562_s1 + $0x98] sm:$0xff]   ;;  %v8799_v19 = vld [vmem:[%s11562_s1 + $0xa0] sm:$0xff]   ;;  %v8803_v23 = vld [vmem:[%s11562_s1 + $0xa8] sm:$0xff]  }
   0x9   :  { %7935 = vmatpush3.bf16.msra.mxu1 %v8787_v7  ;;  %v8804_v24 = vld [vmem:[%s11562_s1 + $0x70] sm:$0xff]   ;;  %v8808_v29 = vld [vmem:[%s11562_s1 + $0x78] sm:$0xff]   ;;  %v22_v33 = vld [vmem:[%s11561_s0] sm:$0xff] }
   0xa   :  { %7936 = vmatprep.subr.bf16.mxu1 %v8790_v10  ;;  %v8805_v25 = vld [vmem:[%s11562_s1 + $0x30] sm:$0xff]   ;;  %v8809_v30 = vld [vmem:[%s11562_s1 + $0x38] sm:$0xff]   ;;  %v8813_v37 = vld [vmem:[%s11562_s1 + $0x140] sm:$0xff]   ;;  %v1289_v38 = vcombine.high %v22_v33, %v22_v33  ;;  %v1296_v42 = vrot.slane %v22_v33, %v9586_v41 }
   0xb   :  { %7915 = vmatpush3.bf16.msra.mxu0 %v8789_v9  ;;  %v8806_v26 = vld [vmem:[%s11562_s1 + $0xf0] sm:$0xff]   ;;  %v8810_v31 = vld [vmem:[%s11562_s1 + $0xf8] sm:$0xff]   ;;  %v8815_v40 = vld [vmem:[%s11562_s1 + $0x1c0] sm:$0xff]  }
   0xc   :  { %7916 = vmatprep.subr.bf16.mxu0 %v8792_v12  ;;  %v8807_v28 = vld [vmem:[%s11562_s1 + $0xb0] sm:$0xff]   ;;  %v8812_v34 = vld [vmem:[%s11562_s1 + $0xb8] sm:$0xff]   ;;  %v9590_v43 = vrot.slane %v1289_v38, %v9586_v41  ;;  %v1304_v44 = vcombine.high %v1296_v42, %v1296_v42  ;;  %v1312_v45 = vrot.slane %v1296_v42, %v9586_v41  ;;  %v8814_v47 = vld [vmem:[%s11562_s1 + $0x100] sm:$0xff]  }
   0xd   :  { %7937 = vmatpush3.bf16.msra.mxu1 %v8791_v11  ;;  %v8816_v49 = vld [vmem:[%s11562_s1 + $0x180] sm:$0xff]   ;;  %v8817_v52 = vld [vmem:[%s11562_s1 + $0x148] sm:$0xff]   ;;  %v8821_v58 = vld [vmem:[%s11562_s1 + $0x150] sm:$0xff]  }
   0xe   :  { %7938 = vmatprep.subr.bf16.mxu1 %v8794_v14  ;;  %v1305_v46 = vcombine.high %v9590_v43, %v9590_v43  ;;  %v1326_v48 = vrot.slane %v1304_v44, %v9586_v41  ;;  %v1334_v51 = vcombine.high %v1312_v45, %v1312_v45  ;;  %v8818_v54 = vld [vmem:[%s11562_s1 + $0x108] sm:$0xff]   ;;  %v8822_v59 = vld [vmem:[%s11562_s1 + $0x110] sm:$0xff]   ;;  %v8825_v62 = vld [vmem:[%s11562_s1 + $0x158] sm:$0xff]  }
   0xf   :  { %7917 = vmatpush3.bf16.msra.mxu0 %v8793_v13  ;;  %v8819_v55 = vld [vmem:[%s11562_s1 + $0x1c8] sm:$0xff]   ;;  %v8823_v60 = vld [vmem:[%s11562_s1 + $0x1d0] sm:$0xff]   ;;  %v8826_v63 = vld [vmem:[%s11562_s1 + $0x118] sm:$0xff]  }
  0x10   :  { %7918 = vmatprep.subr.bf16.mxu0 %v8796_v16  ;;  %v1333_v50 = vrot.slane %v1305_v46, %v9586_v41  ;;  %5610 = vmatprep.mubr.bf16.mxu0 %v1326_v48  ;;  %v1336_v53 = vcombine.high %v1326_v48, %v1326_v48  ;;  %v8820_v57 = vld [vmem:[%s11562_s1 + $0x188] sm:$0xff]   ;;  %v8824_v61 = vld [vmem:[%s11562_s1 + $0x190] sm:$0xff]   ;;  %v8827_v0 = vld [vmem:[%s11562_s1 + $0x1d8] sm:$0xff]  }
  0x11   :  { %7939 = vmatpush3.bf16.msra.mxu1 %v8795_v15  ;;  %v8828_v1 = vld [vmem:[%s11562_s1 + $0x198] sm:$0xff]   ;;  %v8829_v2 = vld [vmem:[%s11562_s1 + $0x160] sm:$0xff]   ;;  %v8833_v6 = vld [vmem:[%s11562_s1 + $0x168] sm:$0xff]  }
  0x12   :  { %7940 = vmatprep.subr.bf16.mxu1 %v8798_v18  ;;  %v1337_v56 = vcombine.high %v1333_v50, %v1333_v50  ;;  %5650 = vmatprep.mubr.bf16.mxu1 %v1336_v53  ;;  %v8830_v3 = vld [vmem:[%s11562_s1 + $0x120] sm:$0xff]   ;;  %v8834_v7 = vld [vmem:[%s11562_s1 + $0x128] sm:$0xff]   ;;  %v8837_v10 = vld [vmem:[%s11562_s1 + $0x170] sm:$0xff]   ;;  %v1319_v18 = vrot.slane %v9590_v43, %v9586_v41 }
  0x13   :  { %7919 = vmatpush3.bf16.msra.mxu0 %v8797_v17  ;;  %v8831_v4 = vld [vmem:[%s11562_s1 + $0x1e0] sm:$0xff]   ;;  %v8835_v8 = vld [vmem:[%s11562_s1 + $0x1e8] sm:$0xff]   ;;  %v8838_v11 = vld [vmem:[%s11562_s1 + $0x130] sm:$0xff]  }
  0x14   :  { %7920 = vmatprep.subr.bf16.mxu0 %v8800_v20  ;;  %v8832_v5 = vld [vmem:[%s11562_s1 + $0x1a0] sm:$0xff]   ;;  %v8836_v9 = vld [vmem:[%s11562_s1 + $0x1a8] sm:$0xff]   ;;  %v8839_v12 = vld [vmem:[%s11562_s1 + $0x1f0] sm:$0xff]  }
  0x15   :  { %7941 = vmatpush3.bf16.msra.mxu1 %v8799_v19  ;;  %v8840_v13 = vld [vmem:[%s11562_s1 + $0x1b0] sm:$0xff]   ;;  %v8841_v14 = vld [vmem:[%s11562_s1 + $0x178] sm:$0xff]   ;;  %v8845_v19 = vld [vmem:[%s11562_s1 + $0x240] sm:$0xff]  }
  0x16   :  { %7942 = vmatprep.subr.bf16.mxu1 %v8802_v22  ;;  %v8842_v15 = vld [vmem:[%s11562_s1 + $0x138] sm:$0xff]   ;;  %v8846_v20 = vld [vmem:[%s11562_s1 + $0x200] sm:$0xff]   ;;  %v8852_v27 = vld [vmem:[%s11562_s1 + $0x288] sm:$0xff]  }
  0x17   :  { %7921 = vmatpush3.bf16.msra.mxu0 %v8801_v21  ;;  %v8843_v16 = vld [vmem:[%s11562_s1 + $0x1f8] sm:$0xff]   ;;  %v8847_v21 = vld [vmem:[%s11562_s1 + $0x2c0] sm:$0xff]   ;;  %v8866_v42 = vld [vmem:[%s11562_s1 + $0x228] sm:$0xff]  }
  0x18   :  { %7922 = vmatprep.subr.bf16.mxu0 %v8804_v24  ;;  %v8844_v17 = vld [vmem:[%s11562_s1 + $0x1b8] sm:$0xff]   ;;  %v8848_v22 = vld [vmem:[%s11562_s1 + $0x280] sm:$0xff]   ;;  %v8849_v24 = vld [vmem:[%s11562_s1 + $0x248] sm:$0xff]  }
  0x19   :  { %7943 = vmatpush3.bf16.msra.mxu1 %v8803_v23  ;;  %v1335_v23 = vcombine.high %v1319_v18, %v1319_v18  ;;  %v8857_v32 = vld [vmem:[%s11562_s1 + $0x258] sm:$0xff]   ;;  %v8861_v36 = vld [vmem:[%s11562_s1 + $0x260] sm:$0xff]   ;;  %v8867_v43 = vld [vmem:[%s11562_s1 + $0x2e8] sm:$0xff]  }
  0x1a   :  { %7944 = vmatprep.subr.bf16.mxu1 %v8806_v26  ;;  %v8851_v26 = vld [vmem:[%s11562_s1 + $0x2c8] sm:$0xff]   ;;  %v8858_v33 = vld [vmem:[%s11562_s1 + $0x218] sm:$0xff]   ;;  %v8863_v38 = vld [vmem:[%s11562_s1 + $0x2e0] sm:$0xff]  }
  0x1b   :  { %7923 = vmatpush3.bf16.msra.mxu0 %v8805_v25  ;;  %v8850_v25 = vld [vmem:[%s11562_s1 + $0x208] sm:$0xff]   ;;  %v8860_v35 = vld [vmem:[%s11562_s1 + $0x298] sm:$0xff]   ;;  %v8864_v39 = vld [vmem:[%s11562_s1 + $0x2a0] sm:$0xff]  }
  0x1c   :  { %7924 = vmatprep.subr.bf16.mxu0 %v8808_v29  ;;  %v8854_v29 = vld [vmem:[%s11562_s1 + $0x210] sm:$0xff]   ;;  %v8868_v44 = vld [vmem:[%s11562_s1 + $0x2a8] sm:$0xff]  }
  0x1d   :  { %7945 = vmatpush3.bf16.msra.mxu1 %v8807_v28  ;;  %v8853_v28 = vld [vmem:[%s11562_s1 + $0x250] sm:$0xff]   ;;  %v23_v46 = vld [vmem:[%s11561_s0 + $0x8] sm:$0xff] }
  0x1e   :  { %7946 = vmatprep.subr.bf16.mxu1 %v8810_v31  ;;  %v8856_v31 = vld [vmem:[%s11562_s1 + $0x290] sm:$0xff]   ;;  %v1345_v48 = vrot.slane %v23_v46, %v9586_v41 }
  0x1f   :  { %7925 = vmatpush3.bf16.msra.mxu0 %v8809_v30  ;;  %v8855_v30 = vld [vmem:[%s11562_s1 + $0x2d0] sm:$0xff]  }
  0x20   :  { %7954 = vmatprep.subr.bf16.mxu0 %v8813_v37  ;;  %v8862_v37 = vld [vmem:[%s11562_s1 + $0x220] sm:$0xff]  }
  0x21   :  { %7947 = vmatpush3.bf16.msra.mxu1 %v8812_v34  ;;  %v8859_v34 = vld [vmem:[%s11562_s1 + $0x2d8] sm:$0xff]  }
  0x22   :  { %7976 = vmatprep.subr.bf16.mxu1 %v8815_v40  ;;  %5611 = vmatmul.mubr.bf16.vlgmr.msra.gmra.mrb[0].mxu0 %v1312_v45  ;;  %v8865_v40 = vld [vmem:[%s11562_s1 + $0x268] sm:$0xff]   ;;  %v8869_v45 = vld [vmem:[%s11562_s1 + $0x270] sm:$0xff]  }
  0x23   :  { %7955 = vmatpush3.bf16.msra.mxu0 %v8814_v47  ;;  %5690 = vmatprep.mubr.bf16.mxu0 %v1333_v50  ;;  %v8870_v47 = vld [vmem:[%s11562_s1 + $0x230] sm:$0xff]  }
  0x24   :  { %5651 = vmatmul.mubr.bf16.vlgmr.msra.gmra.mrb[0].mxu1 %v1334_v51  ;;  %7956 = vmatprep.subr.bf16.mxu0 %v8817_v52  ;;  %v8871_v50 = vld [vmem:[%s11562_s1 + $0x2f0] sm:$0xff]   ;;  %v1353_v52 = vcombine.high %v1345_v48, %v1345_v48 }
  0x25   :  { %7977 = vmatpush3.bf16.msra.mxu1 %v8816_v49  ;;  %5730 = vmatprep.mubr.bf16.mxu1 %v1337_v56  ;;  %v1338_v49 = vcombine.high %v23_v46, %v23_v46  ;;  %v8872_v51 = vld [vmem:[%s11562_s1 + $0x2b0] sm:$0xff]  }
  0x26   :  { %7978 = vmatprep.subr.bf16.mxu1 %v8819_v55  ;;  %v8874_v55 = vld [vmem:[%s11562_s1 + $0x238] sm:$0xff]   ;;  %v1375_v56 = vrot.slane %v1353_v52, %v9586_v41  ;;  %v8920_v46 = vld [vmem:[%s11562_s1 + $0x4d0] sm:$0xff]   ;;  %v8926_v52 = vld [vmem:[%s11562_s1 + $0x460] sm:$0xff]  }
  0x27   :  { %7957 = vmatpush3.bf16.msra.mxu0 %v8818_v54  ;;  %v9778_v53 = vrot.slane %v1338_v49, %v9586_v41  ;;  %v8873_v54 = vld [vmem:[%s11562_s1 + $0x278] sm:$0xff]  }
  0x28   :  { %7958 = vmatprep.subr.bf16.mxu0 %v8821_v58  ;;  %v8875_v58 = vld [vmem:[%s11562_s1 + $0x2f8] sm:$0xff]  }
  0x29   :  { %7979 = vmatpush3.bf16.msra.mxu1 %v8820_v57  ;;  %v1354_v57 = vcombine.high %v9778_v53, %v9778_v53  ;;  %v8923_v49 = vld [vmem:[%s11562_s1 + $0x418] sm:$0xff]  }
  0x2a   :  { %7980 = vmatprep.subr.bf16.mxu1 %v8823_v60  ;;  %v1385_v60 = vcombine.high %v1375_v56, %v1375_v56 }
  0x2b   :  { %7959 = vmatpush3.bf16.msra.mxu0 %v8822_v59  ;;  %v8876_v59 = vld [vmem:[%s11562_s1 + $0x2b8] sm:$0xff]  }
  0x2c   :  { %7960 = vmatprep.subr.bf16.mxu0 %v8825_v62  ;;  %v8877_v62 = vld [vmem:[%s11562_s1 + $0x340] sm:$0xff]  }
  0x2d   :  { %7981 = vmatpush3.bf16.msra.mxu1 %v8824_v61  ;;  %v1361_v61 = vrot.slane %v1345_v48, %v9586_v41  ;;  %v8922_v48 = vld [vmem:[%s11562_s1 + $0x458] sm:$0xff]  }
  0x2e   :  { %7982 = vmatprep.subr.bf16.mxu1 %v8827_v0  ;;  %v1382_v0 = vrot.slane %v1354_v57, %v9586_v41  ;;  %v8931_v57 = vld [vmem:[%s11562_s1 + $0x428] sm:$0xff]  }
  0x2f   :  { %7961 = vmatpush3.bf16.msra.mxu0 %v8826_v63  ;;  %v8878_v63 = vld [vmem:[%s11562_s1 + $0x300] sm:$0xff]  }
  0x30   :  { %7962 = vmatprep.subr.bf16.mxu0 %v8829_v2  ;;  %v8880_v2 = vld [vmem:[%s11562_s1 + $0x380] sm:$0xff]  }
  0x31   :  { %7983 = vmatpush3.bf16.msra.mxu1 %v8828_v1  ;;  %v8879_v1 = vld [vmem:[%s11562_s1 + $0x3c0] sm:$0xff]  }
  0x32   :  { %7984 = vmatprep.subr.bf16.mxu1 %v8831_v4  ;;  %v8881_v4 = vld [vmem:[%s11562_s1 + $0x348] sm:$0xff]  }
  0x33   :  { %7963 = vmatpush3.bf16.msra.mxu0 %v8830_v3  ;;  %v1383_v3 = vcombine.high %v1361_v61, %v1361_v61 }
  0x34   :  { %7964 = vmatprep.subr.bf16.mxu0 %v8833_v6  ;;  %v1386_v6 = vcombine.high %v1382_v0, %v1382_v0 }
  0x35   :  { %7985 = vmatpush3.bf16.msra.mxu1 %v8832_v5  ;;  %v8882_v5 = vld [vmem:[%s11562_s1 + $0x308] sm:$0xff]  }
  0x36   :  { %7986 = vmatprep.subr.bf16.mxu1 %v8835_v8  ;;  %v8884_v8 = vld [vmem:[%s11562_s1 + $0x388] sm:$0xff]  }
  0x37   :  { %7965 = vmatpush3.bf16.msra.mxu0 %v8834_v7  ;;  %v8883_v7 = vld [vmem:[%s11562_s1 + $0x3c8] sm:$0xff]  }
  0x38   :  { %7966 = vmatprep.subr.bf16.mxu0 %v8837_v10  ;;  %v8886_v10 = vld [vmem:[%s11562_s1 + $0x310] sm:$0xff]  }
  0x39   :  { %7987 = vmatpush3.bf16.msra.mxu1 %v8836_v9  ;;  %v8885_v9 = vld [vmem:[%s11562_s1 + $0x350] sm:$0xff]  }
  0x3a   :  { %7988 = vmatprep.subr.bf16.mxu1 %v8839_v12  ;;  %v8888_v12 = vld [vmem:[%s11562_s1 + $0x390] sm:$0xff]  }
  0x3b   :  { %7967 = vmatpush3.bf16.msra.mxu0 %v8838_v11  ;;  %v8887_v11 = vld [vmem:[%s11562_s1 + $0x3d0] sm:$0xff]  }
  0x3c   :  { %7968 = vmatprep.subr.bf16.mxu0 %v8841_v14  ;;  %v8890_v14 = vld [vmem:[%s11562_s1 + $0x318] sm:$0xff]  }
  0x3d   :  { %7989 = vmatpush3.bf16.msra.mxu1 %v8840_v13  ;;  %v8889_v13 = vld [vmem:[%s11562_s1 + $0x358] sm:$0xff]  }
  0x3e   :  { %7990 = vmatprep.subr.bf16.mxu1 %v8843_v16  ;;  %v8892_v16 = vld [vmem:[%s11562_s1 + $0x398] sm:$0xff]  }
  0x3f   :  { %7969 = vmatpush3.bf16.msra.mxu0 %v8842_v15  ;;  %v8891_v15 = vld [vmem:[%s11562_s1 + $0x3d8] sm:$0xff]  }
  0x40   :  { %7998 = vmatprep.subr.bf16.mxu0 %v8845_v19  ;;  %v8895_v19 = vld [vmem:[%s11562_s1 + $0x3e0] sm:$0xff]  }
  0x41   :  { %7991 = vmatpush3.bf16.msra.mxu1 %v8844_v17  ;;  %v8893_v17 = vld [vmem:[%s11562_s1 + $0x360] sm:$0xff]  }
  0x42   :  { %5691 = vmatmul.mubr.bf16.vlgmr.msra.gmra.mrb[4].mxu0 %v1319_v18  ;;  %8020 = vmatprep.subr.bf16.mxu1 %v8847_v21  ;;  %v8894_v18 = vld [vmem:[%s11562_s1 + $0x320] sm:$0xff]   ;;  %v8897_v21 = vld [vmem:[%s11562_s1 + $0x368] sm:$0xff]  }
  0x43   :  { %7999 = vmatpush3.bf16.msra.mxu0 %v8846_v20  ;;  %5770 = vmatprep.mubr.bf16.mxu0 %v1375_v56  ;;  %v8896_v20 = vld [vmem:[%s11562_s1 + $0x3a0] sm:$0xff]   ;;  %v8930_v56 = vld [vmem:[%s11562_s1 + $0x468] sm:$0xff]  }
  0x44   :  { %5731 = vmatmul.mubr.bf16.vlgmr.msra.gmra.mrb[4].mxu1 %v1335_v23  ;;  %8000 = vmatprep.subr.bf16.mxu0 %v8849_v24  ;;  %v8899_v23 = vld [vmem:[%s11562_s1 + $0x3e8] sm:$0xff]  }
  0x45   :  { %8021 = vmatpush3.bf16.msra.mxu1 %v8848_v22  ;;  %5810 = vmatprep.mubr.bf16.mxu1 %v1385_v60  ;;  %v8898_v22 = vld [vmem:[%s11562_s1 + $0x328] sm:$0xff]   ;;  %v8934_v60 = vld [vmem:[%s11562_s1 + $0x470] sm:$0xff]  }
  0x46   :  { %8022 = vmatprep.subr.bf16.mxu1 %v8851_v26  ;;  %v8900_v24 = vld [vmem:[%s11562_s1 + $0x3a8] sm:$0xff]   ;;  %v8902_v26 = vld [vmem:[%s11562_s1 + $0x330] sm:$0xff]  }
  0x47   :  { %8001 = vmatpush3.bf16.msra.mxu0 %v8850_v25  ;;  %v8901_v25 = vld [vmem:[%s11562_s1 + $0x370] sm:$0xff]  }
  0x48   :  { %8002 = vmatprep.subr.bf16.mxu0 %v8853_v28  ;;  %v8904_v28 = vld [vmem:[%s11562_s1 + $0x3b0] sm:$0xff]  }
  0x49   :  { %8023 = vmatpush3.bf16.msra.mxu1 %v8852_v27  ;;  %v8903_v27 = vld [vmem:[%s11562_s1 + $0x3f0] sm:$0xff]  }
  0x4a   :  { %8024 = vmatprep.subr.bf16.mxu1 %v8855_v30  ;;  %v8906_v30 = vld [vmem:[%s11562_s1 + $0x338] sm:$0xff]  }
  0x4b   :  { %8003 = vmatpush3.bf16.msra.mxu0 %v8854_v29  ;;  %v8905_v29 = vld [vmem:[%s11562_s1 + $0x378] sm:$0xff]  }
  0x4c   :  { %8004 = vmatprep.subr.bf16.mxu0 %v8857_v32  ;;  %v8909_v32 = vld [vmem:[%s11562_s1 + $0x3b8] sm:$0xff]  }
  0x4d   :  { %8025 = vmatpush3.bf16.msra.mxu1 %v8856_v31  ;;  %v8907_v31 = vld [vmem:[%s11562_s1 + $0x3f8] sm:$0xff]  }
  0x4e   :  { %8026 = vmatprep.subr.bf16.mxu1 %v8859_v34  ;;  %v8910_v34 = vld [vmem:[%s11562_s1 + $0x440] sm:$0xff]  }
  0x4f   :  { %8005 = vmatpush3.bf16.msra.mxu0 %v8858_v33  ;;  %v1368_v33 = vrot.slane %v9778_v53, %v9586_v41  ;;  %v8927_v53 = vld [vmem:[%s11562_s1 + $0x420] sm:$0xff]  }
  0x50   :  { %8006 = vmatprep.subr.bf16.mxu0 %v8861_v36  ;;  %v8912_v36 = vld [vmem:[%s11562_s1 + $0x4c0] sm:$0xff]  }
  0x51   :  { %8027 = vmatpush3.bf16.msra.mxu1 %v8860_v35  ;;  %v8911_v35 = vld [vmem:[%s11562_s1 + $0x400] sm:$0xff]  }
  0x52   :  { %8028 = vmatprep.subr.bf16.mxu1 %v8863_v38  ;;  %v1384_v38 = vcombine.high %v1368_v33, %v1368_v33 }
  0x53   :  { %8007 = vmatpush3.bf16.msra.mxu0 %v8862_v37  ;;  %v8913_v37 = vld [vmem:[%s11562_s1 + $0x480] sm:$0xff]  }
  0x54   :  { %8008 = vmatprep.subr.bf16.mxu0 %v8865_v40  ;;  %v8915_v40 = vld [vmem:[%s11562_s1 + $0x408] sm:$0xff]  }
  0x55   :  { %8029 = vmatpush3.bf16.msra.mxu1 %v8864_v39  ;;  %v8914_v39 = vld [vmem:[%s11562_s1 + $0x448] sm:$0xff]  }
  0x56   :  { %8030 = vmatprep.subr.bf16.mxu1 %v8867_v43  ;;  %v8917_v43 = vld [vmem:[%s11562_s1 + $0x488] sm:$0xff]  }
  0x57   :  { %8009 = vmatpush3.bf16.msra.mxu0 %v8866_v42  ;;  %v8916_v42 = vld [vmem:[%s11562_s1 + $0x4c8] sm:$0xff]  }
  0x58   :  { %8010 = vmatprep.subr.bf16.mxu0 %v8869_v45  ;;  %v8919_v45 = vld [vmem:[%s11562_s1 + $0x410] sm:$0xff]  }
  0x59   :  { %8031 = vmatpush3.bf16.msra.mxu1 %v8868_v44  ;;  %v8918_v44 = vld [vmem:[%s11562_s1 + $0x450] sm:$0xff]  }
  0x5a   :  { %8032 = vmatprep.subr.bf16.mxu1 %v8871_v50  ;;  %v8924_v50 = vld [vmem:[%s11562_s1 + $0x4d8] sm:$0xff]  }
  0x5b   :  { %8011 = vmatpush3.bf16.msra.mxu0 %v8870_v47  ;;  %v8921_v47 = vld [vmem:[%s11562_s1 + $0x490] sm:$0xff]  }
  0x5c   :  { %8012 = vmatprep.subr.bf16.mxu0 %v8873_v54  ;;  %v8928_v54 = vld [vmem:[%s11562_s1 + $0x4e0] sm:$0xff]  }
  0x5d   :  { %8033 = vmatpush3.bf16.msra.mxu1 %v8872_v51  ;;  %v8925_v51 = vld [vmem:[%s11562_s1 + $0x498] sm:$0xff]  }
  0x5e   :  { %8034 = vmatprep.subr.bf16.mxu1 %v8875_v58  ;;  %v8932_v58 = vld [vmem:[%s11562_s1 + $0x4e8] sm:$0xff]  }
  0x5f   :  { %8013 = vmatpush3.bf16.msra.mxu0 %v8874_v55  ;;  %v8929_v55 = vld [vmem:[%s11562_s1 + $0x4a0] sm:$0xff]  }
  0x60   :  { %8042 = vmatprep.subr.bf16.mxu0 %v8877_v62  ;;  %v8935_v62 = vld [vmem:[%s11562_s1 + $0x430] sm:$0xff]  }
  0x61   :  { %8035 = vmatpush3.bf16.msra.mxu1 %v8876_v59  ;;  %v8933_v59 = vld [vmem:[%s11562_s1 + $0x4a8] sm:$0xff]  }
  0x62   :  { %5771 = vmatmul.mubr.bf16.vlgmr.msra.gmra.mrb[8].mxu0 %v1361_v61  ;;  %8064 = vmatprep.subr.bf16.mxu1 %v8879_v1  ;;  %v24_v61 = vld [vmem:[%s11561_s0 + $0x10] sm:$0xff] }
  0x63   :  { %8043 = vmatpush3.bf16.msra.mxu0 %v8878_v63  ;;  %5850 = vmatprep.mubr.bf16.mxu0 %v1382_v0  ;;  %v1394_v63 = vrot.slane %v24_v61, %v9586_v41  ;;  %v1387_v0 = vcombine.high %v24_v61, %v24_v61  ;;  %v8936_v1 = vld [vmem:[%s11562_s1 + $0x4f0] sm:$0xff]  }
  0x64   :  { %5811 = vmatmul.mubr.bf16.vlgmr.msra.gmra.mrb[8].mxu1 %v1383_v3  ;;  %8044 = vmatprep.subr.bf16.mxu0 %v8881_v4  ;;  %v8985_v61 = vld [vmem:[%s11562_s1 + $0x6d0] sm:$0xff]  }
  0x65   :  { %8065 = vmatpush3.bf16.msra.mxu1 %v8880_v2  ;;  %5890 = vmatprep.mubr.bf16.mxu1 %v1386_v6  ;;  %v8937_v2 = vld [vmem:[%s11562_s1 + $0x4b0] sm:$0xff]   ;;  %v1402_v3 = vcombine.high %v1394_v63, %v1394_v63  ;;  %v9984_v4 = vrot.slane %v1387_v0, %v9586_v41  ;;  %v8939_v6 = vld [vmem:[%s11562_s1 + $0x438] sm:$0xff]  }
  0x66   :  { %8066 = vmatprep.subr.bf16.mxu1 %v8883_v7  ;;  %v8988_v0 = vld [vmem:[%s11562_s1 + $0x618] sm:$0xff]  }
  0x67   :  { %8045 = vmatpush3.bf16.msra.mxu0 %v8882_v5  ;;  %v8938_v5 = vld [vmem:[%s11562_s1 + $0x478] sm:$0xff]   ;;  %v1424_v7 = vrot.slane %v1402_v3, %v9586_v41  ;;  %v8991_v3 = vld [vmem:[%s11562_s1 + $0x660] sm:$0xff]  }
  0x68   :  { %8046 = vmatprep.subr.bf16.mxu0 %v8885_v9  ;;  %v8940_v9 = vld [vmem:[%s11562_s1 + $0x4f8] sm:$0xff]  }
  0x69   :  { %8067 = vmatpush3.bf16.msra.mxu1 %v8884_v8  ;;  %v1403_v8 = vcombine.high %v9984_v4, %v9984_v4 }
  0x6a   :  { %8068 = vmatprep.subr.bf16.mxu1 %v8887_v11  ;;  %v1434_v11 = vcombine.high %v1424_v7, %v1424_v7 }
  0x6b   :  { %8047 = vmatpush3.bf16.msra.mxu0 %v8886_v10  ;;  %v8941_v10 = vld [vmem:[%s11562_s1 + $0x4b8] sm:$0xff]  }
  0x6c   :  { %8048 = vmatprep.subr.bf16.mxu0 %v8889_v13  ;;  %v8942_v13 = vld [vmem:[%s11562_s1 + $0x540] sm:$0xff]  }
  0x6d   :  { %8069 = vmatpush3.bf16.msra.mxu1 %v8888_v12  ;;  %v1410_v12 = vrot.slane %v1394_v63, %v9586_v41  ;;  %v8987_v63 = vld [vmem:[%s11562_s1 + $0x658] sm:$0xff]  }
  0x6e   :  { %8070 = vmatprep.subr.bf16.mxu1 %v8891_v15  ;;  %v1431_v15 = vrot.slane %v1403_v8, %v9586_v41  ;;  %v8996_v8 = vld [vmem:[%s11562_s1 + $0x628] sm:$0xff]  }
  0x6f   :  { %8049 = vmatpush3.bf16.msra.mxu0 %v8890_v14  ;;  %v8943_v14 = vld [vmem:[%s11562_s1 + $0x500] sm:$0xff]  }
  0x70   :  { %8050 = vmatprep.subr.bf16.mxu0 %v8893_v17  ;;  %v8945_v17 = vld [vmem:[%s11562_s1 + $0x580] sm:$0xff]  }
  0x71   :  { %8071 = vmatpush3.bf16.msra.mxu1 %v8892_v16  ;;  %v8944_v16 = vld [vmem:[%s11562_s1 + $0x5c0] sm:$0xff]  }
  0x72   :  { %8072 = vmatprep.subr.bf16.mxu1 %v8895_v19  ;;  %v8946_v19 = vld [vmem:[%s11562_s1 + $0x548] sm:$0xff]  }
  0x73   :  { %8051 = vmatpush3.bf16.msra.mxu0 %v8894_v18  ;;  %v1432_v18 = vcombine.high %v1410_v12, %v1410_v12 }
  0x74   :  { %8052 = vmatprep.subr.bf16.mxu0 %v8897_v21  ;;  %v1435_v21 = vcombine.high %v1431_v15, %v1431_v15 }
  0x75   :  { %8073 = vmatpush3.bf16.msra.mxu1 %v8896_v20  ;;  %v8947_v20 = vld [vmem:[%s11562_s1 + $0x508] sm:$0xff]  }
  0x76   :  { %8074 = vmatprep.subr.bf16.mxu1 %v8899_v23  ;;  %v8949_v23 = vld [vmem:[%s11562_s1 + $0x588] sm:$0xff]  }
  0x77   :  { %8053 = vmatpush3.bf16.msra.mxu0 %v8898_v22  ;;  %v8948_v22 = vld [vmem:[%s11562_s1 + $0x5c8] sm:$0xff]  }
  0x78   :  { %8054 = vmatprep.subr.bf16.mxu0 %v8901_v25  ;;  %v8951_v25 = vld [vmem:[%s11562_s1 + $0x510] sm:$0xff]  }
  0x79   :  { %8075 = vmatpush3.bf16.msra.mxu1 %v8900_v24  ;;  %v8950_v24 = vld [vmem:[%s11562_s1 + $0x550] sm:$0xff]  }
  0x7a   :  { %8076 = vmatprep.subr.bf16.mxu1 %v8903_v27  ;;  %v8953_v27 = vld [vmem:[%s11562_s1 + $0x590] sm:$0xff]  }
  0x7b   :  { %8055 = vmatpush3.bf16.msra.mxu0 %v8902_v26  ;;  %v8952_v26 = vld [vmem:[%s11562_s1 + $0x5d0] sm:$0xff]  }
  0x7c   :  { %8056 = vmatprep.subr.bf16.mxu0 %v8905_v29  ;;  %v8955_v29 = vld [vmem:[%s11562_s1 + $0x518] sm:$0xff]  }
  0x7d   :  { %8077 = vmatpush3.bf16.msra.mxu1 %v8904_v28  ;;  %v8954_v28 = vld [vmem:[%s11562_s1 + $0x558] sm:$0xff]  }
  0x7e   :  { %8078 = vmatprep.subr.bf16.mxu1 %v8907_v31  ;;  %v8957_v31 = vld [vmem:[%s11562_s1 + $0x598] sm:$0xff]  }
  0x7f   :  { %8057 = vmatpush3.bf16.msra.mxu0 %v8906_v30  ;;  %v8956_v30 = vld [vmem:[%s11562_s1 + $0x5d8] sm:$0xff]  }
  0x80   :  { %8086 = vmatprep.subr.bf16.mxu0 %v8910_v34  ;;  %v8960_v34 = vld [vmem:[%s11562_s1 + $0x5e0] sm:$0xff]  }
  0x81   :  { %8079 = vmatpush3.bf16.msra.mxu1 %v8909_v32  ;;  %v8958_v32 = vld [vmem:[%s11562_s1 + $0x560] sm:$0xff]  }
  0x82   :  { %5851 = vmatmul.mubr.bf16.vlgmr.msra.gmra.mrb[12].mxu0 %v1368_v33  ;;  %8108 = vmatprep.subr.bf16.mxu1 %v8912_v36  ;;  %v8959_v33 = vld [vmem:[%s11562_s1 + $0x520] sm:$0xff]   ;;  %v8962_v36 = vld [vmem:[%s11562_s1 + $0x568] sm:$0xff]  }
  0x83   :  { %8087 = vmatpush3.bf16.msra.mxu0 %v8911_v35  ;;  %5930 = vmatprep.mubr.bf16.mxu0 %v1424_v7  ;;  %v8961_v35 = vld [vmem:[%s11562_s1 + $0x5a0] sm:$0xff]   ;;  %v8995_v7 = vld [vmem:[%s11562_s1 + $0x668] sm:$0xff]  }
  0x84   :  { %5891 = vmatmul.mubr.bf16.vlgmr.msra.gmra.mrb[12].mxu1 %v1384_v38  ;;  %8088 = vmatprep.subr.bf16.mxu0 %v8914_v39  ;;  %v8964_v38 = vld [vmem:[%s11562_s1 + $0x5e8] sm:$0xff]  }
  0x85   :  { %8109 = vmatpush3.bf16.msra.mxu1 %v8913_v37  ;;  %5970 = vmatprep.mubr.bf16.mxu1 %v1434_v11  ;;  %v8963_v37 = vld [vmem:[%s11562_s1 + $0x528] sm:$0xff]   ;;  %v8999_v11 = vld [vmem:[%s11562_s1 + $0x670] sm:$0xff]  }
  0x86   :  { %8110 = vmatprep.subr.bf16.mxu1 %v8916_v42  ;;  %v8965_v39 = vld [vmem:[%s11562_s1 + $0x5a8] sm:$0xff]   ;;  %v8967_v42 = vld [vmem:[%s11562_s1 + $0x530] sm:$0xff]  }
  0x87   :  { %8089 = vmatpush3.bf16.msra.mxu0 %v8915_v40  ;;  %v8966_v40 = vld [vmem:[%s11562_s1 + $0x570] sm:$0xff]  }
  0x88   :  { %8090 = vmatprep.subr.bf16.mxu0 %v8918_v44  ;;  %v8969_v44 = vld [vmem:[%s11562_s1 + $0x5b0] sm:$0xff]  }
  0x89   :  { %8111 = vmatpush3.bf16.msra.mxu1 %v8917_v43  ;;  %v8968_v43 = vld [vmem:[%s11562_s1 + $0x5f0] sm:$0xff]  }
  0x8a   :  { %8112 = vmatprep.subr.bf16.mxu1 %v8920_v46  ;;  %v8971_v46 = vld [vmem:[%s11562_s1 + $0x538] sm:$0xff]  }
  0x8b   :  { %8091 = vmatpush3.bf16.msra.mxu0 %v8919_v45  ;;  %v8970_v45 = vld [vmem:[%s11562_s1 + $0x578] sm:$0xff]  }
  0x8c   :  { %8092 = vmatprep.subr.bf16.mxu0 %v8922_v48  ;;  %v8974_v48 = vld [vmem:[%s11562_s1 + $0x5b8] sm:$0xff]  }
  0x8d   :  { %8113 = vmatpush3.bf16.msra.mxu1 %v8921_v47  ;;  %v8972_v47 = vld [vmem:[%s11562_s1 + $0x5f8] sm:$0xff]  }
  0x8e   :  { %8114 = vmatprep.subr.bf16.mxu1 %v8924_v50  ;;  %v8975_v50 = vld [vmem:[%s11562_s1 + $0x640] sm:$0xff]  }
  0x8f   :  { %8093 = vmatpush3.bf16.msra.mxu0 %v8923_v49  ;;  %v1417_v49 = vrot.slane %v9984_v4, %v9586_v41  ;;  %v8992_v4 = vld [vmem:[%s11562_s1 + $0x620] sm:$0xff]  }
  0x90   :  { %8094 = vmatprep.subr.bf16.mxu0 %v8926_v52  ;;  %v8977_v52 = vld [vmem:[%s11562_s1 + $0x6c0] sm:$0xff]  }
  0x91   :  { %8115 = vmatpush3.bf16.msra.mxu1 %v8925_v51  ;;  %v8976_v51 = vld [vmem:[%s11562_s1 + $0x600] sm:$0xff]  }
  0x92   :  { %8116 = vmatprep.subr.bf16.mxu1 %v8928_v54  ;;  %v1433_v54 = vcombine.high %v1417_v49, %v1417_v49 }
  0x93   :  { %8095 = vmatpush3.bf16.msra.mxu0 %v8927_v53  ;;  %v8978_v53 = vld [vmem:[%s11562_s1 + $0x680] sm:$0xff]  }
  0x94   :  { %8096 = vmatprep.subr.bf16.mxu0 %v8930_v56  ;;  %v8980_v56 = vld [vmem:[%s11562_s1 + $0x608] sm:$0xff]  }
  0x95   :  { %8117 = vmatpush3.bf16.msra.mxu1 %v8929_v55  ;;  %v8979_v55 = vld [vmem:[%s11562_s1 + $0x648] sm:$0xff]  }
  0x96   :  { %8118 = vmatprep.subr.bf16.mxu1 %v8932_v58  ;;  %v8982_v58 = vld [vmem:[%s11562_s1 + $0x688] sm:$0xff]  }
  0x97   :  { %8097 = vmatpush3.bf16.msra.mxu0 %v8931_v57  ;;  %v8981_v57 = vld [vmem:[%s11562_s1 + $0x6c8] sm:$0xff]  }
  0x98   :  { %8098 = vmatprep.subr.bf16.mxu0 %v8934_v60  ;;  %v8984_v60 = vld [vmem:[%s11562_s1 + $0x610] sm:$0xff]  }
  0x99   :  { %8119 = vmatpush3.bf16.msra.mxu1 %v8933_v59  ;;  %v8983_v59 = vld [vmem:[%s11562_s1 + $0x650] sm:$0xff]  }
  0x9a   :  { %8120 = vmatprep.subr.bf16.mxu1 %v8936_v1  ;;  %v8989_v1 = vld [vmem:[%s11562_s1 + $0x6d8] sm:$0xff]  }
  0x9b   :  { %8099 = vmatpush3.bf16.msra.mxu0 %v8935_v62  ;;  %v8986_v62 = vld [vmem:[%s11562_s1 + $0x690] sm:$0xff]  }
  0x9c   :  { %8100 = vmatprep.subr.bf16.mxu0 %v8938_v5  ;;  %v8993_v5 = vld [vmem:[%s11562_s1 + $0x6e0] sm:$0xff]  }
  0x9d   :  { %8121 = vmatpush3.bf16.msra.mxu1 %v8937_v2  ;;  %v8990_v2 = vld [vmem:[%s11562_s1 + $0x698] sm:$0xff]  }
  0x9e   :  { %8122 = vmatprep.subr.bf16.mxu1 %v8940_v9  ;;  %v8997_v9 = vld [vmem:[%s11562_s1 + $0x6e8] sm:$0xff]  }
  0x9f   :  { %8101 = vmatpush3.bf16.msra.mxu0 %v8939_v6  ;;  %v8994_v6 = vld [vmem:[%s11562_s1 + $0x6a0] sm:$0xff]  }
  0xa0   :  { %8130 = vmatprep.subr.bf16.mxu0 %v8942_v13  ;;  %v9001_v13 = vld [vmem:[%s11562_s1 + $0x6f0] sm:$0xff]  }
  0xa1   :  { %8123 = vmatpush3.bf16.msra.mxu1 %v8941_v10  ;;  %v8998_v10 = vld [vmem:[%s11562_s1 + $0x6a8] sm:$0xff]  }
  0xa2   :  { %5931 = vmatmul.mubr.bf16.vlgmr.msra.gmra.mrb[16].mxu0 %v1410_v12  ;;  %8152 = vmatprep.subr.bf16.mxu1 %v8944_v16  ;;  %v25_v12 = vld [vmem:[%s11561_s0 + $0x18] sm:$0xff]  ;;  %v9000_v16 = vld [vmem:[%s11562_s1 + $0x630] sm:$0xff]  }
  0xa3   :  { %8131 = vmatpush3.bf16.msra.mxu0 %v8943_v14  ;;  %6010 = vmatprep.mubr.bf16.mxu0 %v1431_v15  ;;  %v1443_v14 = vrot.slane %v25_v12, %v9586_v41  ;;  %v1436_v15 = vcombine.high %v25_v12, %v25_v12  ;;  %v9039_v12 = vld [vmem:[%s11562_s1 + $0x7b8] sm:$0xff]  }
  0xa4   :  { %5971 = vmatmul.mubr.bf16.vlgmr.msra.gmra.mrb[16].mxu1 %v1432_v18  ;;  %8132 = vmatprep.subr.bf16.mxu0 %v8946_v19 }
  0xa5   :  { %8153 = vmatpush3.bf16.msra.mxu1 %v8945_v17  ;;  %6050 = vmatprep.mubr.bf16.mxu1 %v1435_v21  ;;  %v9003_v17 = vld [vmem:[%s11562_s1 + $0x678] sm:$0xff]   ;;  %v1451_v18 = vcombine.high %v1443_v14, %v1443_v14  ;;  %v10190_v19 = vrot.slane %v1436_v15, %v9586_v41  ;;  %v9041_v15 = vld [vmem:[%s11562_s1 + $0x800] sm:$0xff]  }
  0xa6   :  { %8154 = vmatprep.subr.bf16.mxu1 %v8948_v22  ;;  %v9005_v21 = vld [vmem:[%s11562_s1 + $0x6f8] sm:$0xff]  }
  0xa7   :  { %8133 = vmatpush3.bf16.msra.mxu0 %v8947_v20  ;;  %v9002_v20 = vld [vmem:[%s11562_s1 + $0x6b0] sm:$0xff]   ;;  %v1473_v22 = vrot.slane %v1451_v18, %v9586_v41 }
  0xa8   :  { %8134 = vmatprep.subr.bf16.mxu0 %v8950_v24  ;;  %v9004_v24 = vld [vmem:[%s11562_s1 + $0x638] sm:$0xff]  }
  0xa9   :  { %8155 = vmatpush3.bf16.msra.mxu1 %v8949_v23  ;;  %v1452_v23 = vcombine.high %v10190_v19, %v10190_v19 }
  0xaa   :  { %8156 = vmatprep.subr.bf16.mxu1 %v8952_v26  ;;  %v9007_v26 = vld [vmem:[%s11562_s1 + $0x740] sm:$0xff]  }
  0xab   :  { %8135 = vmatpush3.bf16.msra.mxu0 %v8951_v25  ;;  %v1459_v25 = vrot.slane %v1443_v14, %v9586_v41  ;;  %v9040_v14 = vld [vmem:[%s11562_s1 + $0x840] sm:$0xff]  }
  0xac   :  { %8136 = vmatprep.subr.bf16.mxu0 %v8954_v28  ;;  %v9006_v28 = vld [vmem:[%s11562_s1 + $0x6b8] sm:$0xff]  }
  0xad   :  { %8157 = vmatpush3.bf16.msra.mxu1 %v8953_v27  ;;  %v1483_v27 = vcombine.high %v1473_v22, %v1473_v22 }
  0xae   :  { %8158 = vmatprep.subr.bf16.mxu1 %v8956_v30  ;;  %v9009_v30 = vld [vmem:[%s11562_s1 + $0x7c0] sm:$0xff]  }
  0xaf   :  { %8137 = vmatpush3.bf16.msra.mxu0 %v8955_v29  ;;  %v1480_v29 = vrot.slane %v1452_v23, %v9586_v41  ;;  %v9048_v23 = vld [vmem:[%s11562_s1 + $0x850] sm:$0xff]  }
  0xb0   :  { %8138 = vmatprep.subr.bf16.mxu0 %v8958_v32  ;;  %v1481_v32 = vcombine.high %v1459_v25, %v1459_v25 }
  0xb1   :  { %8159 = vmatpush3.bf16.msra.mxu1 %v8957_v31  ;;  %v9008_v31 = vld [vmem:[%s11562_s1 + $0x700] sm:$0xff]  }
  0xb2   :  { %8160 = vmatprep.subr.bf16.mxu1 %v8960_v34  ;;  %v9010_v34 = vld [vmem:[%s11562_s1 + $0x780] sm:$0xff]  }
  0xb3   :  { %8139 = vmatpush3.bf16.msra.mxu0 %v8959_v33  ;;  %v9011_v33 = vld [vmem:[%s11562_s1 + $0x748] sm:$0xff]  }
  0xb4   :  { %8140 = vmatprep.subr.bf16.mxu0 %v8962_v36  ;;  %v9013_v36 = vld [vmem:[%s11562_s1 + $0x7c8] sm:$0xff]  }
  0xb5   :  { %8161 = vmatpush3.bf16.msra.mxu1 %v8961_v35  ;;  %v1484_v35 = vcombine.high %v1480_v29, %v1480_v29 }
  0xb6   :  { %8162 = vmatprep.subr.bf16.mxu1 %v8964_v38  ;;  %v9015_v38 = vld [vmem:[%s11562_s1 + $0x750] sm:$0xff]  }
  0xb7   :  { %8141 = vmatpush3.bf16.msra.mxu0 %v8963_v37  ;;  %v9012_v37 = vld [vmem:[%s11562_s1 + $0x708] sm:$0xff]  }
  0xb8   :  { %8142 = vmatprep.subr.bf16.mxu0 %v8966_v40  ;;  %v9017_v40 = vld [vmem:[%s11562_s1 + $0x7d0] sm:$0xff]  }
  0xb9   :  { %8163 = vmatpush3.bf16.msra.mxu1 %v8965_v39  ;;  %v9014_v39 = vld [vmem:[%s11562_s1 + $0x788] sm:$0xff]  }
  0xba   :  { %8164 = vmatprep.subr.bf16.mxu1 %v8968_v43  ;;  %v9019_v43 = vld [vmem:[%s11562_s1 + $0x758] sm:$0xff]  }
  0xbb   :  { %8143 = vmatpush3.bf16.msra.mxu0 %v8967_v42  ;;  %v9016_v42 = vld [vmem:[%s11562_s1 + $0x710] sm:$0xff]  }
  0xbc   :  { %8144 = vmatprep.subr.bf16.mxu0 %v8970_v45  ;;  %v9020_v45 = vld [vmem:[%s11562_s1 + $0x718] sm:$0xff]  }
  0xbd   :  { %8165 = vmatpush3.bf16.msra.mxu1 %v8969_v44  ;;  %v9018_v44 = vld [vmem:[%s11562_s1 + $0x790] sm:$0xff]  }
  0xbe   :  { %8166 = vmatprep.subr.bf16.mxu1 %v8972_v47  ;;  %v9022_v47 = vld [vmem:[%s11562_s1 + $0x798] sm:$0xff]  }
  0xbf   :  { %8145 = vmatpush3.bf16.msra.mxu0 %v8971_v46  ;;  %v9021_v46 = vld [vmem:[%s11562_s1 + $0x7d8] sm:$0xff]  }
  0xc0   :  { %8174 = vmatprep.subr.bf16.mxu0 %v8975_v50  ;;  %v9025_v50 = vld [vmem:[%s11562_s1 + $0x7e0] sm:$0xff]  }
  0xc1   :  { %8167 = vmatpush3.bf16.msra.mxu1 %v8974_v48  ;;  %v9023_v48 = vld [vmem:[%s11562_s1 + $0x760] sm:$0xff]  }
  0xc2   :  { %6011 = vmatmul.mubr.bf16.vlgmr.msra.gmra.mrb[20].mxu0 %v1417_v49  ;;  %8196 = vmatprep.subr.bf16.mxu1 %v8977_v52  ;;  %v9024_v49 = vld [vmem:[%s11562_s1 + $0x720] sm:$0xff]   ;;  %v9027_v52 = vld [vmem:[%s11562_s1 + $0x768] sm:$0xff]  }
  0xc3   :  { %8175 = vmatpush3.bf16.msra.mxu0 %v8976_v51  ;;  %6090 = vmatprep.mubr.bf16.mxu0 %v1473_v22  ;;  %v9026_v51 = vld [vmem:[%s11562_s1 + $0x7a0] sm:$0xff]   ;;  %v9047_v22 = vld [vmem:[%s11562_s1 + $0x888] sm:$0xff]  }
  0xc4   :  { %6051 = vmatmul.mubr.bf16.vlgmr.msra.gmra.mrb[20].mxu1 %v1433_v54  ;;  %8176 = vmatprep.subr.bf16.mxu0 %v8979_v55  ;;  %v9029_v54 = vld [vmem:[%s11562_s1 + $0x7e8] sm:$0xff]  }
  0xc5   :  { %8197 = vmatpush3.bf16.msra.mxu1 %v8978_v53  ;;  %6130 = vmatprep.mubr.bf16.mxu1 %v1483_v27  ;;  %v9028_v53 = vld [vmem:[%s11562_s1 + $0x728] sm:$0xff]   ;;  %v9052_v27 = vld [vmem:[%s11562_s1 + $0x858] sm:$0xff]  }
  0xc6   :  { %8198 = vmatprep.subr.bf16.mxu1 %v8981_v57  ;;  %v9030_v55 = vld [vmem:[%s11562_s1 + $0x7a8] sm:$0xff]   ;;  %v9031_v57 = vld [vmem:[%s11562_s1 + $0x770] sm:$0xff]  }
  0xc7   :  { %8177 = vmatpush3.bf16.msra.mxu0 %v8980_v56  ;;  %v7279_v56 = vld [vmem:[%s11563_s2] ss:$0 sm:$0xff] }
  0xc8   :  { %8178 = vmatprep.subr.bf16.mxu0 %v8983_v59  ;;  %v9032_v59 = vld [vmem:[%s11562_s1 + $0x730] sm:$0xff]  }
  0xc9   :  { %8199 = vmatpush3.bf16.msra.mxu1 %v8982_v58 }
  0xca   :  { %8200 = vmatprep.subr.bf16.mxu1 %v8985_v61  ;;  %v9033_v61 = vld [vmem:[%s11562_s1 + $0x7f0] sm:$0xff]  }
  0xcb   :  { %8179 = vmatpush3.bf16.msra.mxu0 %v8984_v60 }
  0xcc   :  { %8180 = vmatprep.subr.bf16.mxu0 %v8987_v63 }
  0xcd   :  { %8201 = vmatpush3.bf16.msra.mxu1 %v8986_v62 }
  0xce   :  { %8202 = vmatprep.subr.bf16.mxu1 %v8989_v1  ;;  %v9034_v1 = vld [vmem:[%s11562_s1 + $0x7b0] sm:$0xff]  }
  0xcf   :  { %8181 = vmatpush3.bf16.msra.mxu0 %v8988_v0 }
  0xd0   :  { %8182 = vmatprep.subr.bf16.mxu0 %v8991_v3 }
  0xd1   :  { %8203 = vmatpush3.bf16.msra.mxu1 %v8990_v2  ;;  %v9035_v2 = vld [vmem:[%s11562_s1 + $0x778] sm:$0xff]  }
  0xd2   :  { %8204 = vmatprep.subr.bf16.mxu1 %v8993_v5 }
  0xd3   :  { %8183 = vmatpush3.bf16.msra.mxu0 %v8992_v4 }
  0xd4   :  { %8184 = vmatprep.subr.bf16.mxu0 %v8995_v7  ;;  %v9036_v7 = vld [vmem:[%s11562_s1 + $0x738] sm:$0xff]  }
  0xd5   :  { %8205 = vmatpush3.bf16.msra.mxu1 %v8994_v6 }
  0xd6   :  { %8206 = vmatprep.subr.bf16.mxu1 %v8997_v9  ;;  %v9037_v9 = vld [vmem:[%s11562_s1 + $0x7f8] sm:$0xff]  }
  0xd7   :  { %8185 = vmatpush3.bf16.msra.mxu0 %v8996_v8 }
  0xd8   :  { %8186 = vmatprep.subr.bf16.mxu0 %v8999_v11 }
  0xd9   :  { %8207 = vmatpush3.bf16.msra.mxu1 %v8998_v10 }
  0xda   :  { %8208 = vmatprep.subr.bf16.mxu1 %v9001_v13  ;;  %v1466_v13 = vrot.slane %v10190_v19, %v9586_v41  ;;  %v9044_v19 = vld [vmem:[%s11562_s1 + $0x848] sm:$0xff]  }
  0xdb   :  { %8187 = vmatpush3.bf16.msra.mxu0 %v9000_v16  ;;  %v9042_v16 = vld [vmem:[%s11562_s1 + $0x8c0] sm:$0xff]  }
  0xdc   :  { %8188 = vmatprep.subr.bf16.mxu0 %v9003_v17  ;;  %v9043_v17 = vld [vmem:[%s11562_s1 + $0x880] sm:$0xff]   ;;  %v1482_v18 = vcombine.high %v1466_v13, %v1466_v13 }
  0xdd   :  { %8209 = vmatpush3.bf16.msra.mxu1 %v9002_v20  ;;  %v9045_v20 = vld [vmem:[%s11562_s1 + $0x808] sm:$0xff]  }
  0xde   :  { %8210 = vmatprep.subr.bf16.mxu1 %v9005_v21  ;;  %v9046_v21 = vld [vmem:[%s11562_s1 + $0x8c8] sm:$0xff]  }
  0xdf   :  { %8189 = vmatpush3.bf16.msra.mxu0 %v9004_v24  ;;  %v9049_v24 = vld [vmem:[%s11562_s1 + $0x810] sm:$0xff]  }
  0xe0   :  { %8218 = vmatprep.subr.bf16.mxu0 %v9007_v26  ;;  %v9051_v26 = vld [vmem:[%s11562_s1 + $0x890] sm:$0xff]  }
  0xe1   :  { %8211 = vmatpush3.bf16.msra.mxu1 %v9006_v28  ;;  %v9053_v28 = vld [vmem:[%s11562_s1 + $0x818] sm:$0xff]  }
  0xe2   :  { %6091 = vmatmul.mubr.bf16.vlgmr.msra.gmra.mrb[24].mxu0 %v1459_v25  ;;  %8240 = vmatprep.subr.bf16.mxu1 %v9009_v30  ;;  %v9050_v25 = vld [vmem:[%s11562_s1 + $0x8d0] sm:$0xff]   ;;  %v9055_v30 = vld [vmem:[%s11562_s1 + $0x898] sm:$0xff]  }
  0xe3   :  { %8219 = vmatpush3.bf16.msra.mxu0 %v9008_v31  ;;  %6170 = vmatprep.mubr.bf16.mxu0 %v1480_v29  ;;  %v9054_v29 = vld [vmem:[%s11562_s1 + $0x8d8] sm:$0xff]   ;;  %v9056_v31 = vld [vmem:[%s11562_s1 + $0x860] sm:$0xff]  }
  0xe4   :  { %6131 = vmatmul.mubr.bf16.vlgmr.msra.gmra.mrb[24].mxu1 %v1481_v32  ;;  %8220 = vmatprep.subr.bf16.mxu0 %v9011_v33  ;;  %v9057_v32 = vld [vmem:[%s11562_s1 + $0x820] sm:$0xff]  }
  0xe5   :  { %8241 = vmatpush3.bf16.msra.mxu1 %v9010_v34  ;;  %6210 = vmatprep.mubr.bf16.mxu1 %v1484_v35  ;;  %v9058_v33 = vld [vmem:[%s11562_s1 + $0x8e0] sm:$0xff]   ;;  %v9060_v35 = vld [vmem:[%s11562_s1 + $0x868] sm:$0xff]  }
  0xe6   :  { %8242 = vmatprep.subr.bf16.mxu1 %v9013_v36  ;;  %v9059_v34 = vld [vmem:[%s11562_s1 + $0x8a0] sm:$0xff]   ;;  %v9061_v36 = vld [vmem:[%s11562_s1 + $0x828] sm:$0xff]  }
  0xe7   :  { %8221 = vmatpush3.bf16.msra.mxu0 %v9012_v37  ;;  %v9062_v37 = vld [vmem:[%s11562_s1 + $0x8e8] sm:$0xff]  }
  0xe8   :  { %8222 = vmatprep.subr.bf16.mxu0 %v9015_v38  ;;  %v9063_v38 = vld [vmem:[%s11562_s1 + $0x8a8] sm:$0xff]  }
  0xe9   :  { %8243 = vmatpush3.bf16.msra.mxu1 %v9014_v39  ;;  %v9064_v39 = vld [vmem:[%s11562_s1 + $0x870] sm:$0xff]  }
  0xea   :  { %8244 = vmatprep.subr.bf16.mxu1 %v9017_v40 }
  0xeb   :  { %8223 = vmatpush3.bf16.msra.mxu0 %v9016_v42  ;;  %v9065_v42 = vld [vmem:[%s11562_s1 + $0x830] sm:$0xff]  }
  0xec   :  { %8224 = vmatprep.subr.bf16.mxu0 %v9019_v43  ;;  %v9066_v43 = vld [vmem:[%s11562_s1 + $0x8f0] sm:$0xff]  }
  0xed   :  { %8245 = vmatpush3.bf16.msra.mxu1 %v9018_v44 }
  0xee   :  { %8246 = vmatprep.subr.bf16.mxu1 %v9021_v46 }
  0xef   :  { %8225 = vmatpush3.bf16.msra.mxu0 %v9020_v45  ;;  %v26_v45 = vld [vmem:[%s11561_s0 + $0x20] sm:$0xff] }
  0xf0   :  { %8226 = vmatprep.subr.bf16.mxu0 %v9023_v48 }
  0xf1   :  { %8247 = vmatpush3.bf16.msra.mxu1 %v9022_v47 }
  0xf2   :  { %8248 = vmatprep.subr.bf16.mxu1 %v9025_v50  ;;  %v9068_v50 = vld [vmem:[%s11562_s1 + $0x878] sm:$0xff]  }
  0xf3   :  { %8227 = vmatpush3.bf16.msra.mxu0 %v9024_v49  ;;  %v9067_v49 = vld [vmem:[%s11562_s1 + $0x8b0] sm:$0xff]  }
  0xf4   :  { %8228 = vmatprep.subr.bf16.mxu0 %v9027_v52  ;;  %v1485_v52 = vcombine.high %v26_v45, %v26_v45 }
  0xf5   :  { %v7926_v58 = vpop.f32.mrb[0].mxu0  ;;  %8249 = vmatpush3.bf16.msra.mxu1 %v9026_v51  ;;  %v1492_v51 = vrot.slane %v26_v45, %v9586_v41 }
  0xf6   :  { %v7927_v60 = vpop.f32.mrb[1].mxu0  ;;  %8250 = vmatprep.subr.bf16.mxu1 %v9029_v54 }
  0xf7   :  { %v7928_v62 = vadd.f32 %v7927_v60, %v7926_v58  ;;  %v7929_v63 = vpop.f32.mrb[2].mxu0  ;;  %v7948_v0 = vpop.f32.mrb[0].mxu1  ;;  %8229 = vmatpush3.bf16.msra.mxu0 %v9028_v53  ;;  %v1500_v58 = vcombine.high %v1492_v51, %v1492_v51  ;;  %v9070_v60 = vld [vmem:[%s11562_s1 + $0x8f8] sm:$0xff]  }
  0xf8   :  { %v7930_v3 = vpop.f32.mrb[3].mxu0  ;;  %v7949_v4 = vpop.f32.mrb[1].mxu1  ;;  %8230 = vmatprep.subr.bf16.mxu0 %v9031_v57  ;;  %v9069_v57 = vld [vmem:[%s11562_s1 + $0x838] sm:$0xff]  }
  0xf9   :  { %v5613_v5 = vadd.f32 %v7928_v62, %v7279_v56  ;;  %v7950_v6 = vadd.f32 %v7949_v4, %v7948_v0  ;;  %8251 = vmatpush3.bf16.msra.mxu1 %v9030_v55  ;;  %v7951_v8 = vpop.f32.mrb[2].mxu1  ;;  %v10411_v62 = vrot.slane %v1485_v52, %v9586_v41  ;;  %v1522_v0 = vrot.slane %v1500_v58, %v9586_v41  ;;  %v9072_v3 = vld [vmem:[%s11562_s1 + $0x940] sm:$0xff]   ;;  %v9104_v52 = vld [vmem:[%s11562_s1 + $0x9b8] sm:$0xff]  }
  0xfa   :  { %8252 = vmatprep.subr.bf16.mxu1 %v9033_v61  ;;  %v7952_v10 = vpop.f32.mrb[3].mxu1 }
  0xfb   :  { %v10305_v11 = vadd.f32 %v7950_v6, %v5613_v5  ;;  %8231 = vmatpush3.bf16.msra.mxu0 %v9032_v59  ;;  %v1501_v4 = vcombine.high %v10411_v62, %v10411_v62  ;;  %v1532_v5 = vcombine.high %v1522_v0, %v1522_v0  ;;  %v9073_v6 = vld [vmem:[%s11562_s1 + $0x900] sm:$0xff]  }
  0xfc   :  { %8232 = vmatprep.subr.bf16.mxu0 %v9035_v2  ;;  %v1508_v2 = vrot.slane %v1492_v51, %v9586_v41 }
  0xfd   :  { %8253 = vmatpush3.bf16.msra.mxu1 %v9034_v1  ;;  %v9071_v1 = vld [vmem:[%s11562_s1 + $0x8b8] sm:$0xff]   ;;  %v1529_v8 = vrot.slane %v1501_v4, %v9586_v41 }
  0xfe   :  { %8254 = vmatprep.subr.bf16.mxu1 %v9037_v9  ;;  %v9075_v9 = vld [vmem:[%s11562_s1 + $0x980] sm:$0xff]   ;;  %v1530_v10 = vcombine.high %v1508_v2, %v1508_v2  ;;  %v9118_v4 = vld [vmem:[%s11562_s1 + $0xa18] sm:$0xff]  }
  0xff   :  { %8233 = vmatpush3.bf16.msra.mxu0 %v9036_v7  ;;  %v9074_v7 = vld [vmem:[%s11562_s1 + $0x9c0] sm:$0xff]  }
 0x100   :  { %8262 = vmatprep.subr.bf16.mxu0 %v9040_v14  ;;  %v9078_v14 = vld [vmem:[%s11562_s1 + $0x9c8] sm:$0xff]  }
 0x101   :  { %8255 = vmatpush3.bf16.msra.mxu1 %v9039_v12  ;;  %v9077_v12 = vld [vmem:[%s11562_s1 + $0x908] sm:$0xff]  }
 0x102   :  { %6171 = vmatmul.mubr.bf16.vlgmr.msra.gmra.mrb[28].mxu0 %v1466_v13  ;;  %8284 = vmatprep.subr.bf16.mxu1 %v9042_v16  ;;  %v1533_v13 = vcombine.high %v1529_v8, %v1529_v8  ;;  %v9080_v16 = vld [vmem:[%s11562_s1 + $0x950] sm:$0xff]  }
 0x103   :  { %8263 = vmatpush3.bf16.msra.mxu0 %v9041_v15  ;;  %6250 = vmatprep.mubr.bf16.mxu0 %v1522_v0  ;;  %v9079_v15 = vld [vmem:[%s11562_s1 + $0x988] sm:$0xff]   ;;  %v9114_v0 = vld [vmem:[%s11562_s1 + $0xa10] sm:$0xff]  }
 0x104   :  { %6211 = vmatmul.mubr.bf16.vlgmr.msra.gmra.mrb[28].mxu1 %v1482_v18  ;;  %8264 = vmatprep.subr.bf16.mxu0 %v9044_v19  ;;  %v9082_v18 = vld [vmem:[%s11562_s1 + $0x9d0] sm:$0xff]  }
 0x105   :  { %8285 = vmatpush3.bf16.msra.mxu1 %v9043_v17  ;;  %6290 = vmatprep.mubr.bf16.mxu1 %v1532_v5  ;;  %v9081_v17 = vld [vmem:[%s11562_s1 + $0x910] sm:$0xff]   ;;  %v9119_v5 = vld [vmem:[%s11562_s1 + $0xad8] sm:$0xff]  }
 0x106   :  { %8286 = vmatprep.subr.bf16.mxu1 %v9046_v21  ;;  %v9083_v19 = vld [vmem:[%s11562_s1 + $0x990] sm:$0xff]   ;;  %v9085_v21 = vld [vmem:[%s11562_s1 + $0x918] sm:$0xff]  }
 0x107   :  { %8265 = vmatpush3.bf16.msra.mxu0 %v9045_v20  ;;  %v9084_v20 = vld [vmem:[%s11562_s1 + $0x958] sm:$0xff]  }
 0x108   :  { %8266 = vmatprep.subr.bf16.mxu0 %v9048_v23  ;;  %v9087_v23 = vld [vmem:[%s11562_s1 + $0x998] sm:$0xff]  }
 0x109   :  { %8287 = vmatpush3.bf16.msra.mxu1 %v9047_v22  ;;  %v9086_v22 = vld [vmem:[%s11562_s1 + $0x9d8] sm:$0xff]  }
 0x10a   :  { %8288 = vmatprep.subr.bf16.mxu1 %v9050_v25  ;;  %v9089_v25 = vld [vmem:[%s11562_s1 + $0x920] sm:$0xff]  }
 0x10b   :  { %8267 = vmatpush3.bf16.msra.mxu0 %v9049_v24  ;;  %v9088_v24 = vld [vmem:[%s11562_s1 + $0x960] sm:$0xff]  }
 0x10c   :  { %8268 = vmatprep.subr.bf16.mxu0 %v9052_v27  ;;  %v9091_v27 = vld [vmem:[%s11562_s1 + $0x9a0] sm:$0xff]  }
 0x10d   :  { %8289 = vmatpush3.bf16.msra.mxu1 %v9051_v26  ;;  %v9090_v26 = vld [vmem:[%s11562_s1 + $0x9e0] sm:$0xff]  }
 0x10e   :  { %8290 = vmatprep.subr.bf16.mxu1 %v9054_v29  ;;  %v9093_v29 = vld [vmem:[%s11562_s1 + $0x928] sm:$0xff]  }
 0x10f   :  { %8269 = vmatpush3.bf16.msra.mxu0 %v9053_v28  ;;  %v9092_v28 = vld [vmem:[%s11562_s1 + $0x968] sm:$0xff]  }
 0x110   :  { %8270 = vmatprep.subr.bf16.mxu0 %v9056_v31  ;;  %v9095_v31 = vld [vmem:[%s11562_s1 + $0x9a8] sm:$0xff]  }
 0x111   :  { %8291 = vmatpush3.bf16.msra.mxu1 %v9055_v30  ;;  %v9094_v30 = vld [vmem:[%s11562_s1 + $0x9e8] sm:$0xff]  }
 0x112   :  { %8292 = vmatprep.subr.bf16.mxu1 %v9058_v33 }
 0x113   :  { %8271 = vmatpush3.bf16.msra.mxu0 %v9057_v32  ;;  %v9096_v32 = vld [vmem:[%s11562_s1 + $0x970] sm:$0xff]  }
 0x114   :  { %8272 = vmatprep.subr.bf16.mxu0 %v9060_v35 }
 0x115   :  { %v7970_v40 = vpop.f32.mrb[4].mxu0  ;;  %8293 = vmatpush3.bf16.msra.mxu1 %v9059_v34  ;;  %v9097_v34 = vld [vmem:[%s11562_s1 + $0x930] sm:$0xff]  }
 0x116   :  { %v7971_v44 = vpop.f32.mrb[5].mxu0  ;;  %8294 = vmatprep.subr.bf16.mxu1 %v9062_v37 }
 0x117   :  { %v7972_v46 = vadd.f32 %v7971_v44, %v7970_v40  ;;  %v7973_v47 = vpop.f32.mrb[6].mxu0  ;;  %v7992_v48 = vpop.f32.mrb[4].mxu1  ;;  %8273 = vmatpush3.bf16.msra.mxu0 %v9061_v36  ;;  %v9098_v36 = vld [vmem:[%s11562_s1 + $0x9f0] sm:$0xff]  }
 0x118   :  { %v7974_v53 = vpop.f32.mrb[7].mxu0  ;;  %v7993_v54 = vpop.f32.mrb[5].mxu1  ;;  %8274 = vmatprep.subr.bf16.mxu0 %v9064_v39  ;;  %v9099_v40 = vld [vmem:[%s11562_s1 + $0x9b0] sm:$0xff]   ;;  %v9101_v47 = vld [vmem:[%s11562_s1 + $0x938] sm:$0xff]  }
 0x119   :  { %v5693_v55 = vadd.f32 %v7972_v46, %v10305_v11  ;;  %v7994_v56 = vadd.f32 %v7993_v54, %v7992_v48  ;;  %8295 = vmatpush3.bf16.msra.mxu1 %v9063_v38  ;;  %v7995_v59 = vpop.f32.mrb[6].mxu1  ;;  %v9076_v11 = vld [vmem:[%s11562_s1 + $0x948] sm:$0xff]   ;;  %v1515_v53 = vrot.slane %v10411_v62, %v9586_v41  ;;  %v9105_v54 = vld [vmem:[%s11562_s1 + $0xa40] sm:$0xff]  }
 0x11a   :  { %8296 = vmatprep.subr.bf16.mxu1 %v9066_v43  ;;  %v7996_v61 = vpop.f32.mrb[7].mxu1  ;;  %v9109_v59 = vld [vmem:[%s11562_s1 + $0xa48] sm:$0xff]  }
 0x11b   :  { %v10413_v63 = vadd.f32 %v7994_v56, %v5693_v55  ;;  %8275 = vmatpush3.bf16.msra.mxu0 %v9065_v42  ;;  %v9100_v42 = vld [vmem:[%s11562_s1 + $0x978] sm:$0xff]   ;;  %v9106_v55 = vld [vmem:[%s11562_s1 + $0xa00] sm:$0xff]   ;;  %v1531_v58 = vcombine.high %v1515_v53, %v1515_v53  ;;  %v9111_v61 = vld [vmem:[%s11562_s1 + $0xac8] sm:$0xff]  }
 0x11c   :  { %8276 = vmatprep.subr.bf16.mxu0 %v9068_v50  ;;  %v9107_v56 = vld [vmem:[%s11562_s1 + $0xac0] sm:$0xff]   ;;  %v9112_v62 = vld [vmem:[%s11562_s1 + $0xa88] sm:$0xff]  }
 0x11d   :  { %8297 = vmatpush3.bf16.msra.mxu1 %v9067_v49  ;;  %v9102_v49 = vld [vmem:[%s11562_s1 + $0x9f8] sm:$0xff]  }
 0x11e   :  { %8298 = vmatprep.subr.bf16.mxu1 %v9070_v60  ;;  %v9110_v60 = vld [vmem:[%s11562_s1 + $0xa08] sm:$0xff]  }
 0x11f   :  { %8277 = vmatpush3.bf16.msra.mxu0 %v9069_v57  ;;  %v9108_v57 = vld [vmem:[%s11562_s1 + $0xa80] sm:$0xff]  }
 0x120   :  { %8306 = vmatprep.subr.bf16.mxu0 %v9072_v3  ;;  %v9117_v3 = vld [vmem:[%s11562_s1 + $0xa58] sm:$0xff]  }
 0x121   :  { %8299 = vmatpush3.bf16.msra.mxu1 %v9071_v1  ;;  %v9115_v1 = vld [vmem:[%s11562_s1 + $0xad0] sm:$0xff]  }
 0x122   :  { %6251 = vmatmul.mubr.bf16.vlgmr.msra.gmra.mrb[32].mxu0 %v1508_v2  ;;  %8328 = vmatprep.subr.bf16.mxu1 %v9074_v7  ;;  %v9116_v2 = vld [vmem:[%s11562_s1 + $0xa90] sm:$0xff]   ;;  %v9121_v7 = vld [vmem:[%s11562_s1 + $0xa60] sm:$0xff]  }
 0x123   :  { %8307 = vmatpush3.bf16.msra.mxu0 %v9073_v6  ;;  %6330 = vmatprep.mubr.bf16.mxu0 %v1529_v8  ;;  %v9120_v6 = vld [vmem:[%s11562_s1 + $0xa98] sm:$0xff]   ;;  %v9122_v8 = vld [vmem:[%s11562_s1 + $0xa20] sm:$0xff]  }
 0x124   :  { %6291 = vmatmul.mubr.bf16.vlgmr.msra.gmra.mrb[32].mxu1 %v1530_v10  ;;  %8308 = vmatprep.subr.bf16.mxu0 %v9076_v11  ;;  %v9124_v10 = vld [vmem:[%s11562_s1 + $0xaa0] sm:$0xff]   ;;  %v9125_v11 = vld [vmem:[%s11562_s1 + $0xa68] sm:$0xff]  }
 0x125   :  { %8329 = vmatpush3.bf16.msra.mxu1 %v9075_v9  ;;  %6370 = vmatprep.mubr.bf16.mxu1 %v1533_v13  ;;  %v9123_v9 = vld [vmem:[%s11562_s1 + $0xae0] sm:$0xff]   ;;  %v9127_v13 = vld [vmem:[%s11562_s1 + $0xae8] sm:$0xff]  }
 0x126   :  { %8330 = vmatprep.subr.bf16.mxu1 %v9078_v14  ;;  %v9128_v14 = vld [vmem:[%s11562_s1 + $0xaa8] sm:$0xff]  }
 0x127   :  { %8309 = vmatpush3.bf16.msra.mxu0 %v9077_v12  ;;  %v9126_v12 = vld [vmem:[%s11562_s1 + $0xa28] sm:$0xff]  }
 0x128   :  { %8310 = vmatprep.subr.bf16.mxu0 %v9080_v16 }
 0x129   :  { %8331 = vmatpush3.bf16.msra.mxu1 %v9079_v15  ;;  %v9129_v15 = vld [vmem:[%s11562_s1 + $0xa70] sm:$0xff]  }
 0x12a   :  { %8332 = vmatprep.subr.bf16.mxu1 %v9082_v18 }
 0x12b   :  { %8311 = vmatpush3.bf16.msra.mxu0 %v9081_v17  ;;  %v9130_v17 = vld [vmem:[%s11562_s1 + $0xa30] sm:$0xff]  }
 0x12c   :  { %8312 = vmatprep.subr.bf16.mxu0 %v9084_v20 }
 0x12d   :  { %8333 = vmatpush3.bf16.msra.mxu1 %v9083_v19  ;;  %v9131_v19 = vld [vmem:[%s11562_s1 + $0xaf0] sm:$0xff]  }
 0x12e   :  { %8334 = vmatprep.subr.bf16.mxu1 %v9086_v22 }
 0x12f   :  { %8313 = vmatpush3.bf16.msra.mxu0 %v9085_v21 }
 0x130   :  { %8314 = vmatprep.subr.bf16.mxu0 %v9088_v24  ;;  %v9133_v24 = vld [vmem:[%s11562_s1 + $0xa78] sm:$0xff]  }
 0x131   :  { %8335 = vmatpush3.bf16.msra.mxu1 %v9087_v23  ;;  %v9132_v23 = vld [vmem:[%s11562_s1 + $0xab0] sm:$0xff]  }
 0x132   :  { %8336 = vmatprep.subr.bf16.mxu1 %v9090_v26 }
 0x133   :  { %8315 = vmatpush3.bf16.msra.mxu0 %v9089_v25  ;;  %v27_v25 = vld [vmem:[%s11561_s0 + $0x28] sm:$0xff] }
 0x134   :  { %8316 = vmatprep.subr.bf16.mxu0 %v9092_v28  ;;  %v1541_v28 = vrot.slane %v27_v25, %v9586_v41 }
 0x135   :  { %v8014_v33 = vpop.f32.mrb[8].mxu0  ;;  %8337 = vmatpush3.bf16.msra.mxu1 %v9091_v27 }
 0x136   :  { %v8015_v35 = vpop.f32.mrb[9].mxu0  ;;  %8338 = vmatprep.subr.bf16.mxu1 %v9094_v30 }
 0x137   :  { %v8016_v37 = vadd.f32 %v8015_v35, %v8014_v33  ;;  %v8017_v38 = vpop.f32.mrb[10].mxu0  ;;  %v8036_v39 = vpop.f32.mrb[8].mxu1  ;;  %8317 = vmatpush3.bf16.msra.mxu0 %v9093_v29  ;;  %v1534_v29 = vcombine.high %v27_v25, %v27_v25  ;;  %v1549_v35 = vcombine.high %v1541_v28, %v1541_v28 }
 0x138   :  { %v8018_v43 = vpop.f32.mrb[11].mxu0  ;;  %v8037_v44 = vpop.f32.mrb[9].mxu1  ;;  %8318 = vmatprep.subr.bf16.mxu0 %v9096_v32  ;;  %v9134_v32 = vld [vmem:[%s11562_s1 + $0xa38] sm:$0xff]  }
 0x139   :  { %v5773_v45 = vadd.f32 %v8016_v37, %v10413_v63  ;;  %v8038_v46 = vadd.f32 %v8037_v44, %v8036_v39  ;;  %8339 = vmatpush3.bf16.msra.mxu1 %v9095_v31  ;;  %v8039_v48 = vpop.f32.mrb[10].mxu1  ;;  %v9113_v63 = vld [vmem:[%s11562_s1 + $0xa50] sm:$0xff]   ;;  %v10623_v37 = vrot.slane %v1534_v29, %v9586_v41  ;;  %v9136_v39 = vld [vmem:[%s11562_s1 + $0xab8] sm:$0xff]   ;;  %v9137_v43 = vld [vmem:[%s11562_s1 + $0xb40] sm:$0xff]  }
 0x13a   :  { %8340 = vmatprep.subr.bf16.mxu1 %v9098_v36  ;;  %v8040_v50 = vpop.f32.mrb[11].mxu1  ;;  %v9170_v29 = vld [vmem:[%s11562_s1 + $0xc40] sm:$0xff]  }
 0x13b   :  { %v10517_v51 = vadd.f32 %v8038_v46, %v5773_v45  ;;  %8319 = vmatpush3.bf16.msra.mxu0 %v9097_v34  ;;  %v9135_v34 = vld [vmem:[%s11562_s1 + $0xaf8] sm:$0xff]   ;;  %v1550_v44 = vcombine.high %v10623_v37, %v10623_v37  ;;  %v9138_v45 = vld [vmem:[%s11562_s1 + $0xb00] sm:$0xff]  }
 0x13c   :  { %8320 = vmatprep.subr.bf16.mxu0 %v9100_v42  ;;  %v1557_v42 = vrot.slane %v1541_v28, %v9586_v41  ;;  %v1564_v28 = vrot.slane %v10623_v37, %v9586_v41  ;;  %v9177_v37 = vld [vmem:[%s11562_s1 + $0xc88] sm:$0xff]  }
 0x13d   :  { %8341 = vmatpush3.bf16.msra.mxu1 %v9099_v40  ;;  %v1571_v40 = vrot.slane %v1549_v35, %v9586_v41  ;;  %v1578_v48 = vrot.slane %v1550_v44, %v9586_v41  ;;  %v9175_v35 = vld [vmem:[%s11562_s1 + $0xc08] sm:$0xff]   ;;  %v9183_v44 = vld [vmem:[%s11562_s1 + $0xc18] sm:$0xff]  }
 0x13e   :  { %8342 = vmatprep.subr.bf16.mxu1 %v9102_v49  ;;  %v9140_v49 = vld [vmem:[%s11562_s1 + $0xb80] sm:$0xff]   ;;  %v1579_v50 = vcombine.high %v1557_v42, %v1557_v42 }
 0x13f   :  { %8321 = vmatpush3.bf16.msra.mxu0 %v9101_v47  ;;  %v1581_v46 = vcombine.high %v1571_v40, %v1571_v40  ;;  %v9139_v47 = vld [vmem:[%s11562_s1 + $0xbc0] sm:$0xff]  }
 0x140   :  { %8350 = vmatprep.subr.bf16.mxu0 %v9105_v54  ;;  %v9143_v54 = vld [vmem:[%s11562_s1 + $0xbc8] sm:$0xff]  }
 0x141   :  { %8343 = vmatpush3.bf16.msra.mxu1 %v9104_v52  ;;  %v9142_v52 = vld [vmem:[%s11562_s1 + $0xb08] sm:$0xff]  }
 0x142   :  { %6331 = vmatmul.mubr.bf16.vlgmr.msra.gmra.mrb[36].mxu0 %v1515_v53  ;;  %8372 = vmatprep.subr.bf16.mxu1 %v9107_v56  ;;  %v1582_v53 = vcombine.high %v1578_v48, %v1578_v48  ;;  %v9145_v56 = vld [vmem:[%s11562_s1 + $0xb50] sm:$0xff]  }
 0x143   :  { %8351 = vmatpush3.bf16.msra.mxu0 %v9106_v55  ;;  %6410 = vmatprep.mubr.bf16.mxu0 %v1571_v40  ;;  %v9144_v55 = vld [vmem:[%s11562_s1 + $0xb88] sm:$0xff]   ;;  %v9180_v40 = vld [vmem:[%s11562_s1 + $0xcd0] sm:$0xff]  }
 0x144   :  { %6371 = vmatmul.mubr.bf16.vlgmr.msra.gmra.mrb[36].mxu1 %v1531_v58  ;;  %8352 = vmatprep.subr.bf16.mxu0 %v9109_v59  ;;  %v9147_v58 = vld [vmem:[%s11562_s1 + $0xbd0] sm:$0xff]  }
 0x145   :  { %8373 = vmatpush3.bf16.msra.mxu1 %v9108_v57  ;;  %6450 = vmatprep.mubr.bf16.mxu1 %v1581_v46  ;;  %v9146_v57 = vld [vmem:[%s11562_s1 + $0xb10] sm:$0xff]   ;;  %v9185_v46 = vld [vmem:[%s11562_s1 + $0xc98] sm:$0xff]  }
 0x146   :  { %8374 = vmatprep.subr.bf16.mxu1 %v9111_v61  ;;  %v9148_v59 = vld [vmem:[%s11562_s1 + $0xb90] sm:$0xff]   ;;  %v9150_v61 = vld [vmem:[%s11562_s1 + $0xb18] sm:$0xff]  }
 0x147   :  { %8353 = vmatpush3.bf16.msra.mxu0 %v9110_v60  ;;  %v9149_v60 = vld [vmem:[%s11562_s1 + $0xb58] sm:$0xff]  }
 0x148   :  { %8354 = vmatprep.subr.bf16.mxu0 %v9113_v63  ;;  %v9152_v63 = vld [vmem:[%s11562_s1 + $0xb98] sm:$0xff]  }
 0x149   :  { %8375 = vmatpush3.bf16.msra.mxu1 %v9112_v62  ;;  %v9151_v62 = vld [vmem:[%s11562_s1 + $0xbd8] sm:$0xff]  }
 0x14a   :  { %8376 = vmatprep.subr.bf16.mxu1 %v9115_v1  ;;  %v9154_v1 = vld [vmem:[%s11562_s1 + $0xb20] sm:$0xff]  }
 0x14b   :  { %8355 = vmatpush3.bf16.msra.mxu0 %v9114_v0  ;;  %v9153_v0 = vld [vmem:[%s11562_s1 + $0xb60] sm:$0xff]  }
 0x14c   :  { %8356 = vmatprep.subr.bf16.mxu0 %v9117_v3  ;;  %v9156_v3 = vld [vmem:[%s11562_s1 + $0xba0] sm:$0xff]  }
 0x14d   :  { %8377 = vmatpush3.bf16.msra.mxu1 %v9116_v2  ;;  %v9155_v2 = vld [vmem:[%s11562_s1 + $0xbe0] sm:$0xff]  }
 0x14e   :  { %8378 = vmatprep.subr.bf16.mxu1 %v9119_v5  ;;  %v9158_v5 = vld [vmem:[%s11562_s1 + $0xb28] sm:$0xff]  }
 0x14f   :  { %8357 = vmatpush3.bf16.msra.mxu0 %v9118_v4  ;;  %v9157_v4 = vld [vmem:[%s11562_s1 + $0xb68] sm:$0xff]  }
 0x150   :  { %8358 = vmatprep.subr.bf16.mxu0 %v9121_v7  ;;  %v9160_v7 = vld [vmem:[%s11562_s1 + $0xba8] sm:$0xff]  }
 0x151   :  { %8379 = vmatpush3.bf16.msra.mxu1 %v9120_v6  ;;  %v9159_v6 = vld [vmem:[%s11562_s1 + $0xbe8] sm:$0xff]  }
 0x152   :  { %8380 = vmatprep.subr.bf16.mxu1 %v9123_v9 }
 0x153   :  { %8359 = vmatpush3.bf16.msra.mxu0 %v9122_v8  ;;  %v9161_v8 = vld [vmem:[%s11562_s1 + $0xb70] sm:$0xff]  }
 0x154   :  { %8360 = vmatprep.subr.bf16.mxu0 %v9125_v11 }
 0x155   :  { %v8058_v16 = vpop.f32.mrb[12].mxu0  ;;  %8381 = vmatpush3.bf16.msra.mxu1 %v9124_v10  ;;  %v9162_v10 = vld [vmem:[%s11562_s1 + $0xb30] sm:$0xff]  }
 0x156   :  { %v8059_v18 = vpop.f32.mrb[13].mxu0  ;;  %8382 = vmatprep.subr.bf16.mxu1 %v9127_v13 }
 0x157   :  { %v8060_v20 = vadd.f32 %v8059_v18, %v8058_v16  ;;  %v8061_v21 = vpop.f32.mrb[14].mxu0  ;;  %v8080_v22 = vpop.f32.mrb[12].mxu1  ;;  %8361 = vmatpush3.bf16.msra.mxu0 %v9126_v12  ;;  %v9163_v12 = vld [vmem:[%s11562_s1 + $0xbf0] sm:$0xff]  }
 0x158   :  { %v8062_v26 = vpop.f32.mrb[15].mxu0  ;;  %v8081_v27 = vpop.f32.mrb[13].mxu1  ;;  %8362 = vmatprep.subr.bf16.mxu0 %v9129_v15  ;;  %v9164_v16 = vld [vmem:[%s11562_s1 + $0xbb0] sm:$0xff]  }
 0x159   :  { %v5853_v30 = vadd.f32 %v8060_v20, %v10517_v51  ;;  %v8082_v31 = vadd.f32 %v8081_v27, %v8080_v22  ;;  %8383 = vmatpush3.bf16.msra.mxu1 %v9128_v14  ;;  %v8083_v33 = vpop.f32.mrb[14].mxu1  ;;  %v9141_v51 = vld [vmem:[%s11562_s1 + $0xb48] sm:$0xff]   ;;  %v9166_v22 = vld [vmem:[%s11562_s1 + $0xb38] sm:$0xff]  }
 0x15a   :  { %8384 = vmatprep.subr.bf16.mxu1 %v9131_v19  ;;  %v8084_v36 = vpop.f32.mrb[15].mxu1  ;;  %v9169_v27 = vld [vmem:[%s11562_s1 + $0xbb8] sm:$0xff]   ;;  %v1580_v33 = vcombine.high %v1564_v28, %v1564_v28 }
 0x15b   :  { %v10625_v38 = vadd.f32 %v8082_v31, %v5853_v30  ;;  %8363 = vmatpush3.bf16.msra.mxu0 %v9130_v17  ;;  %v9165_v17 = vld [vmem:[%s11562_s1 + $0xb78] sm:$0xff]   ;;  %v9171_v30 = vld [vmem:[%s11562_s1 + $0xc00] sm:$0xff]   ;;  %v9176_v36 = vld [vmem:[%s11562_s1 + $0xcc8] sm:$0xff]  }
 0x15c   :  { %8364 = vmatprep.subr.bf16.mxu0 %v9133_v24  ;;  %v9167_v24 = vld [vmem:[%s11562_s1 + $0xbf8] sm:$0xff]   ;;  %v9172_v31 = vld [vmem:[%s11562_s1 + $0xcc0] sm:$0xff]  }
 0x15d   :  { %8385 = vmatpush3.bf16.msra.mxu1 %v9132_v23 }
 0x15e   :  { %8386 = vmatprep.subr.bf16.mxu1 %v9135_v34  ;;  %v9174_v34 = vld [vmem:[%s11562_s1 + $0xc48] sm:$0xff]  }
 0x15f   :  { %8365 = vmatpush3.bf16.msra.mxu0 %v9134_v32  ;;  %v9173_v32 = vld [vmem:[%s11562_s1 + $0xc80] sm:$0xff]  }
 0x160   :  { %8394 = vmatprep.subr.bf16.mxu0 %v9137_v43  ;;  %v9182_v43 = vld [vmem:[%s11562_s1 + $0xc58] sm:$0xff]  }
 0x161   :  { %8387 = vmatpush3.bf16.msra.mxu1 %v9136_v39  ;;  %v9179_v39 = vld [vmem:[%s11562_s1 + $0xc10] sm:$0xff]  }
 0x162   :  { %6411 = vmatmul.mubr.bf16.vlgmr.msra.gmra.mrb[40].mxu0 %v1557_v42  ;;  %8416 = vmatprep.subr.bf16.mxu1 %v9139_v47  ;;  %v9181_v42 = vld [vmem:[%s11562_s1 + $0xc90] sm:$0xff]   ;;  %v9186_v47 = vld [vmem:[%s11562_s1 + $0xc60] sm:$0xff]  }
 0x163   :  { %8395 = vmatpush3.bf16.msra.mxu0 %v9138_v45  ;;  %6490 = vmatprep.mubr.bf16.mxu0 %v1578_v48  ;;  %v9184_v45 = vld [vmem:[%s11562_s1 + $0xcd8] sm:$0xff]   ;;  %v9187_v48 = vld [vmem:[%s11562_s1 + $0xc20] sm:$0xff]  }
 0x164   :  { %6451 = vmatmul.mubr.bf16.vlgmr.msra.gmra.mrb[40].mxu1 %v1579_v50  ;;  %8396 = vmatprep.subr.bf16.mxu0 %v9141_v51  ;;  %v9189_v50 = vld [vmem:[%s11562_s1 + $0xca0] sm:$0xff]   ;;  %v9190_v51 = vld [vmem:[%s11562_s1 + $0xc68] sm:$0xff]  }
 0x165   :  { %8417 = vmatpush3.bf16.msra.mxu1 %v9140_v49  ;;  %6530 = vmatprep.mubr.bf16.mxu1 %v1582_v53  ;;  %v9188_v49 = vld [vmem:[%s11562_s1 + $0xce0] sm:$0xff]   ;;  %v9192_v53 = vld [vmem:[%s11562_s1 + $0xce8] sm:$0xff]  }
 0x166   :  { %8418 = vmatprep.subr.bf16.mxu1 %v9143_v54  ;;  %v9193_v54 = vld [vmem:[%s11562_s1 + $0xca8] sm:$0xff]  }
 0x167   :  { %8397 = vmatpush3.bf16.msra.mxu0 %v9142_v52  ;;  %v9191_v52 = vld [vmem:[%s11562_s1 + $0xc28] sm:$0xff]  }
 0x168   :  { %8398 = vmatprep.subr.bf16.mxu0 %v9145_v56 }
 0x169   :  { %8419 = vmatpush3.bf16.msra.mxu1 %v9144_v55  ;;  %v9194_v55 = vld [vmem:[%s11562_s1 + $0xc70] sm:$0xff]  }
 0x16a   :  { %8420 = vmatprep.subr.bf16.mxu1 %v9147_v58 }
 0x16b   :  { %8399 = vmatpush3.bf16.msra.mxu0 %v9146_v57  ;;  %v9195_v57 = vld [vmem:[%s11562_s1 + $0xc30] sm:$0xff]  }
 0x16c   :  { %8400 = vmatprep.subr.bf16.mxu0 %v9149_v60 }
 0x16d   :  { %8421 = vmatpush3.bf16.msra.mxu1 %v9148_v59  ;;  %v9196_v59 = vld [vmem:[%s11562_s1 + $0xcf0] sm:$0xff]  }
 0x16e   :  { %8422 = vmatprep.subr.bf16.mxu1 %v9151_v62 }
 0x16f   :  { %8401 = vmatpush3.bf16.msra.mxu0 %v9150_v61 }
 0x170   :  { %8402 = vmatprep.subr.bf16.mxu0 %v9153_v0 }
 0x171   :  { %8423 = vmatpush3.bf16.msra.mxu1 %v9152_v63  ;;  %v9197_v63 = vld [vmem:[%s11562_s1 + $0xcb0] sm:$0xff]  }
 0x172   :  { %8424 = vmatprep.subr.bf16.mxu1 %v9155_v2  ;;  %v9198_v2 = vld [vmem:[%s11562_s1 + $0xc78] sm:$0xff]  }
 0x173   :  { %8403 = vmatpush3.bf16.msra.mxu0 %v9154_v1 }
 0x174   :  { %8404 = vmatprep.subr.bf16.mxu0 %v9157_v4 }
 0x175   :  { %v8102_v9 = vpop.f32.mrb[16].mxu0  ;;  %8425 = vmatpush3.bf16.msra.mxu1 %v9156_v3  ;;  %v28_v3 = vld [vmem:[%s11561_s0 + $0x30] sm:$0xff] }
 0x176   :  { %v8103_v11 = vpop.f32.mrb[17].mxu0  ;;  %8426 = vmatprep.subr.bf16.mxu1 %v9159_v6  ;;  %v9199_v6 = vld [vmem:[%s11562_s1 + $0xc38] sm:$0xff]  }
 0x177   :  { %v8104_v13 = vadd.f32 %v8103_v11, %v8102_v9  ;;  %v8105_v14 = vpop.f32.mrb[18].mxu0  ;;  %v8124_v15 = vpop.f32.mrb[16].mxu1  ;;  %8405 = vmatpush3.bf16.msra.mxu0 %v9158_v5  ;;  %v1583_v9 = vcombine.high %v28_v3, %v28_v3 }
 0x178   :  { %v8106_v18 = vpop.f32.mrb[19].mxu0  ;;  %v8125_v19 = vpop.f32.mrb[17].mxu1  ;;  %8406 = vmatprep.subr.bf16.mxu0 %v9161_v8  ;;  %v9201_v14 = vld [vmem:[%s11562_s1 + $0xcb8] sm:$0xff]  }
 0x179   :  { %v5933_v20 = vadd.f32 %v8104_v13, %v10625_v38  ;;  %v8126_v21 = vadd.f32 %v8125_v19, %v8124_v15  ;;  %8427 = vmatpush3.bf16.msra.mxu1 %v9160_v7  ;;  %v8127_v23 = vpop.f32.mrb[18].mxu1  ;;  %v9178_v38 = vld [vmem:[%s11562_s1 + $0xc50] sm:$0xff]   ;;  %v1590_v7 = vrot.slane %v28_v3, %v9586_v41  ;;  %v10840_v15 = vrot.slane %v1583_v9, %v9586_v41  ;;  %v9203_v19 = vld [vmem:[%s11562_s1 + $0xd00] sm:$0xff]   ;;  %v9234_v3 = vld [vmem:[%s11562_s1 + $0xdb8] sm:$0xff]  }
 0x17a   :  { %8428 = vmatprep.subr.bf16.mxu1 %v9163_v12  ;;  %v8128_v25 = vpop.f32.mrb[19].mxu1  ;;  %v9205_v23 = vld [vmem:[%s11562_s1 + $0xd80] sm:$0xff]  }
 0x17b   :  { %v10729_v26 = vadd.f32 %v8126_v21, %v5933_v20  ;;  %8407 = vmatpush3.bf16.msra.mxu0 %v9162_v10  ;;  %v9200_v10 = vld [vmem:[%s11562_s1 + $0xcf8] sm:$0xff]   ;;  %v1598_v13 = vcombine.high %v1590_v7, %v1590_v7  ;;  %v1599_v20 = vcombine.high %v10840_v15, %v10840_v15  ;;  %v9204_v21 = vld [vmem:[%s11562_s1 + $0xdc0] sm:$0xff]  }
 0x17c   :  { %8408 = vmatprep.subr.bf16.mxu0 %v9165_v17  ;;  %v9202_v17 = vld [vmem:[%s11562_s1 + $0xd40] sm:$0xff]  }
 0x17d   :  { %8429 = vmatpush3.bf16.msra.mxu1 %v9164_v16  ;;  %v1606_v16 = vrot.slane %v1590_v7, %v9586_v41  ;;  %v1620_v18 = vrot.slane %v1598_v13, %v9586_v41  ;;  %v9237_v7 = vld [vmem:[%s11562_s1 + $0xec0] sm:$0xff]   ;;  %v9242_v13 = vld [vmem:[%s11562_s1 + $0xe88] sm:$0xff]  }
 0x17e   :  { %8430 = vmatprep.subr.bf16.mxu1 %v9167_v24  ;;  %v1627_v24 = vrot.slane %v1599_v20, %v9586_v41  ;;  %v9249_v20 = vld [vmem:[%s11562_s1 + $0xed8] sm:$0xff]  }
 0x17f   :  { %8409 = vmatpush3.bf16.msra.mxu0 %v9166_v22  ;;  %v1630_v22 = vcombine.high %v1620_v18, %v1620_v18  ;;  %v1628_v25 = vcombine.high %v1606_v16, %v1606_v16 }
 0x180   :  { %8438 = vmatprep.subr.bf16.mxu0 %v9170_v29  ;;  %v9208_v29 = vld [vmem:[%s11562_s1 + $0xdc8] sm:$0xff]  }
 0x181   :  { %8431 = vmatpush3.bf16.msra.mxu1 %v9169_v27  ;;  %v9207_v27 = vld [vmem:[%s11562_s1 + $0xd08] sm:$0xff]  }
 0x182   :  { %6491 = vmatmul.mubr.bf16.vlgmr.msra.gmra.mrb[44].mxu0 %v1564_v28  ;;  %8460 = vmatprep.subr.bf16.mxu1 %v9172_v31  ;;  %v1631_v28 = vcombine.high %v1627_v24, %v1627_v24  ;;  %v9210_v31 = vld [vmem:[%s11562_s1 + $0xd50] sm:$0xff]  }
 0x183   :  { %8439 = vmatpush3.bf16.msra.mxu0 %v9171_v30  ;;  %6570 = vmatprep.mubr.bf16.mxu0 %v1620_v18  ;;  %v9209_v30 = vld [vmem:[%s11562_s1 + $0xd88] sm:$0xff]   ;;  %v9247_v18 = vld [vmem:[%s11562_s1 + $0xe58] sm:$0xff]  }
 0x184   :  { %6531 = vmatmul.mubr.bf16.vlgmr.msra.gmra.mrb[44].mxu1 %v1580_v33  ;;  %8440 = vmatprep.subr.bf16.mxu0 %v9174_v34  ;;  %v9212_v33 = vld [vmem:[%s11562_s1 + $0xdd0] sm:$0xff]  }
 0x185   :  { %8461 = vmatpush3.bf16.msra.mxu1 %v9173_v32  ;;  %6610 = vmatprep.mubr.bf16.mxu1 %v1630_v22  ;;  %v9211_v32 = vld [vmem:[%s11562_s1 + $0xd10] sm:$0xff]   ;;  %v9251_v22 = vld [vmem:[%s11562_s1 + $0xe60] sm:$0xff]  }
 0x186   :  { %8462 = vmatprep.subr.bf16.mxu1 %v9176_v36  ;;  %v9213_v34 = vld [vmem:[%s11562_s1 + $0xd90] sm:$0xff]   ;;  %v9215_v36 = vld [vmem:[%s11562_s1 + $0xd18] sm:$0xff]  }
 0x187   :  { %8441 = vmatpush3.bf16.msra.mxu0 %v9175_v35  ;;  %v9214_v35 = vld [vmem:[%s11562_s1 + $0xd58] sm:$0xff]  }
 0x188   :  { %8442 = vmatprep.subr.bf16.mxu0 %v9178_v38  ;;  %v9217_v38 = vld [vmem:[%s11562_s1 + $0xd98] sm:$0xff]  }
 0x189   :  { %8463 = vmatpush3.bf16.msra.mxu1 %v9177_v37  ;;  %v9216_v37 = vld [vmem:[%s11562_s1 + $0xdd8] sm:$0xff]  }
 0x18a   :  { %8464 = vmatprep.subr.bf16.mxu1 %v9180_v40  ;;  %v9219_v40 = vld [vmem:[%s11562_s1 + $0xd20] sm:$0xff]  }
 0x18b   :  { %8443 = vmatpush3.bf16.msra.mxu0 %v9179_v39  ;;  %v9218_v39 = vld [vmem:[%s11562_s1 + $0xd60] sm:$0xff]  }
 0x18c   :  { %8444 = vmatprep.subr.bf16.mxu0 %v9182_v43  ;;  %v9221_v43 = vld [vmem:[%s11562_s1 + $0xda0] sm:$0xff]  }
 0x18d   :  { %8465 = vmatpush3.bf16.msra.mxu1 %v9181_v42  ;;  %v9220_v42 = vld [vmem:[%s11562_s1 + $0xde0] sm:$0xff]  }
 0x18e   :  { %8466 = vmatprep.subr.bf16.mxu1 %v9184_v45  ;;  %v9223_v45 = vld [vmem:[%s11562_s1 + $0xd28] sm:$0xff]  }
 0x18f   :  { %8445 = vmatpush3.bf16.msra.mxu0 %v9183_v44  ;;  %v9222_v44 = vld [vmem:[%s11562_s1 + $0xd68] sm:$0xff]  }
 0x190   :  { %8446 = vmatprep.subr.bf16.mxu0 %v9186_v47  ;;  %v9225_v47 = vld [vmem:[%s11562_s1 + $0xda8] sm:$0xff]  }
 0x191   :  { %8467 = vmatpush3.bf16.msra.mxu1 %v9185_v46  ;;  %v9224_v46 = vld [vmem:[%s11562_s1 + $0xde8] sm:$0xff]  }
 0x192   :  { %8468 = vmatprep.subr.bf16.mxu1 %v9188_v49 }
 0x193   :  { %8447 = vmatpush3.bf16.msra.mxu0 %v9187_v48  ;;  %v9226_v48 = vld [vmem:[%s11562_s1 + $0xd70] sm:$0xff]  }
 0x194   :  { %8448 = vmatprep.subr.bf16.mxu0 %v9190_v51 }
 0x195   :  { %v8146_v56 = vpop.f32.mrb[20].mxu0  ;;  %8469 = vmatpush3.bf16.msra.mxu1 %v9189_v50  ;;  %v9227_v50 = vld [vmem:[%s11562_s1 + $0xd30] sm:$0xff]  }
 0x196   :  { %v8147_v58 = vpop.f32.mrb[21].mxu0  ;;  %8470 = vmatprep.subr.bf16.mxu1 %v9192_v53 }
 0x197   :  { %v8148_v60 = vadd.f32 %v8147_v58, %v8146_v56  ;;  %v8149_v61 = vpop.f32.mrb[22].mxu0  ;;  %v8168_v62 = vpop.f32.mrb[20].mxu1  ;;  %8449 = vmatpush3.bf16.msra.mxu0 %v9191_v52  ;;  %v9228_v52 = vld [vmem:[%s11562_s1 + $0xdf0] sm:$0xff]  }
 0x198   :  { %v8150_v0 = vpop.f32.mrb[23].mxu0  ;;  %v8169_v1 = vpop.f32.mrb[21].mxu1  ;;  %8450 = vmatprep.subr.bf16.mxu0 %v9194_v55  ;;  %v9229_v56 = vld [vmem:[%s11562_s1 + $0xdb0] sm:$0xff]  }
 0x199   :  { %v6013_v4 = vadd.f32 %v8148_v60, %v10729_v26  ;;  %v8170_v5 = vadd.f32 %v8169_v1, %v8168_v62  ;;  %8471 = vmatpush3.bf16.msra.mxu1 %v9193_v54  ;;  %v8171_v8 = vpop.f32.mrb[22].mxu1  ;;  %v9206_v26 = vld [vmem:[%s11562_s1 + $0xd48] sm:$0xff]   ;;  %v9231_v62 = vld [vmem:[%s11562_s1 + $0xd38] sm:$0xff]  }
 0x19a   :  { %8472 = vmatprep.subr.bf16.mxu1 %v9196_v59  ;;  %v8172_v11 = vpop.f32.mrb[23].mxu1  ;;  %v9232_v0 = vld [vmem:[%s11562_s1 + $0xdf8] sm:$0xff]   ;;  %v9238_v8 = vld [vmem:[%s11562_s1 + $0xe80] sm:$0xff]  }
 0x19b   :  { %v10834_v12 = vadd.f32 %v8170_v5, %v6013_v4  ;;  %8451 = vmatpush3.bf16.msra.mxu0 %v9195_v57  ;;  %v9230_v57 = vld [vmem:[%s11562_s1 + $0xd78] sm:$0xff]   ;;  %v1613_v4 = vrot.slane %v10840_v15, %v9586_v41  ;;  %v9235_v5 = vld [vmem:[%s11562_s1 + $0xe40] sm:$0xff]   ;;  %v9240_v11 = vld [vmem:[%s11562_s1 + $0xe08] sm:$0xff]  }
 0x19c   :  { %8452 = vmatprep.subr.bf16.mxu0 %v9198_v2  ;;  %v9244_v15 = vld [vmem:[%s11562_s1 + $0xe10] sm:$0xff]  }
 0x19d   :  { %8473 = vmatpush3.bf16.msra.mxu1 %v9197_v63  ;;  %v1629_v9 = vcombine.high %v1613_v4, %v1613_v4 }
 0x19e   :  { %8474 = vmatprep.subr.bf16.mxu1 %v9200_v10  ;;  %v9239_v10 = vld [vmem:[%s11562_s1 + $0xe48] sm:$0xff]  }
 0x19f   :  { %8453 = vmatpush3.bf16.msra.mxu0 %v9199_v6  ;;  %v9236_v6 = vld [vmem:[%s11562_s1 + $0xe00] sm:$0xff]  }
 0x1a0   :  { %8482 = vmatprep.subr.bf16.mxu0 %v9202_v17  ;;  %v9246_v17 = vld [vmem:[%s11562_s1 + $0xe90] sm:$0xff]  }
 0x1a1   :  { %8475 = vmatpush3.bf16.msra.mxu1 %v9201_v14  ;;  %v9243_v14 = vld [vmem:[%s11562_s1 + $0xe50] sm:$0xff]  }
 0x1a2   :  { %6571 = vmatmul.mubr.bf16.vlgmr.msra.gmra.mrb[48].mxu0 %v1606_v16  ;;  %8504 = vmatprep.subr.bf16.mxu1 %v9204_v21  ;;  %v9245_v16 = vld [vmem:[%s11562_s1 + $0xed0] sm:$0xff]   ;;  %v9250_v21 = vld [vmem:[%s11562_s1 + $0xe98] sm:$0xff]  }
 0x1a3   :  { %8483 = vmatpush3.bf16.msra.mxu0 %v9203_v19  ;;  %6650 = vmatprep.mubr.bf16.mxu0 %v1627_v24  ;;  %v9248_v19 = vld [vmem:[%s11562_s1 + $0xe18] sm:$0xff]   ;;  %v9253_v24 = vld [vmem:[%s11562_s1 + $0xee0] sm:$0xff]  }
 0x1a4   :  { %6611 = vmatmul.mubr.bf16.vlgmr.msra.gmra.mrb[48].mxu1 %v1628_v25  ;;  %8484 = vmatprep.subr.bf16.mxu0 %v9206_v26  ;;  %v9254_v25 = vld [vmem:[%s11562_s1 + $0xea0] sm:$0xff]   ;;  %v9255_v26 = vld [vmem:[%s11562_s1 + $0xe68] sm:$0xff]  }
 0x1a5   :  { %8505 = vmatpush3.bf16.msra.mxu1 %v9205_v23  ;;  %6690 = vmatprep.mubr.bf16.mxu1 %v1631_v28  ;;  %v9252_v23 = vld [vmem:[%s11562_s1 + $0xe20] sm:$0xff]   ;;  %v9257_v28 = vld [vmem:[%s11562_s1 + $0xee8] sm:$0xff]  }
 0x1a6   :  { %8506 = vmatprep.subr.bf16.mxu1 %v9208_v29  ;;  %v9258_v29 = vld [vmem:[%s11562_s1 + $0xea8] sm:$0xff]  }
 0x1a7   :  { %8485 = vmatpush3.bf16.msra.mxu0 %v9207_v27  ;;  %v9256_v27 = vld [vmem:[%s11562_s1 + $0xe28] sm:$0xff]  }
 0x1a8   :  { %8486 = vmatprep.subr.bf16.mxu0 %v9210_v31 }
 0x1a9   :  { %8507 = vmatpush3.bf16.msra.mxu1 %v9209_v30  ;;  %v9259_v30 = vld [vmem:[%s11562_s1 + $0xe70] sm:$0xff]  }
 0x1aa   :  { %8508 = vmatprep.subr.bf16.mxu1 %v9212_v33 }
 0x1ab   :  { %8487 = vmatpush3.bf16.msra.mxu0 %v9211_v32  ;;  %v9260_v32 = vld [vmem:[%s11562_s1 + $0xe30] sm:$0xff]  }
 0x1ac   :  { %8488 = vmatprep.subr.bf16.mxu0 %v9214_v35 }
 0x1ad   :  { %8509 = vmatpush3.bf16.msra.mxu1 %v9213_v34  ;;  %v9261_v34 = vld [vmem:[%s11562_s1 + $0xef0] sm:$0xff]  }
 0x1ae   :  { %8510 = vmatprep.subr.bf16.mxu1 %v9216_v37 }
 0x1af   :  { %8489 = vmatpush3.bf16.msra.mxu0 %v9215_v36 }
 0x1b0   :  { %8490 = vmatprep.subr.bf16.mxu0 %v9218_v39 }
 0x1b1   :  { %8511 = vmatpush3.bf16.msra.mxu1 %v9217_v38 }
 0x1b2   :  { %8512 = vmatprep.subr.bf16.mxu1 %v9220_v42  ;;  %v9263_v42 = vld [vmem:[%s11562_s1 + $0xe78] sm:$0xff]  }
 0x1b3   :  { %8491 = vmatpush3.bf16.msra.mxu0 %v9219_v40  ;;  %v9262_v40 = vld [vmem:[%s11562_s1 + $0xeb0] sm:$0xff]  }
 0x1b4   :  { %8492 = vmatprep.subr.bf16.mxu0 %v9222_v44 }
 0x1b5   :  { %v8190_v49 = vpop.f32.mrb[24].mxu0  ;;  %8513 = vmatpush3.bf16.msra.mxu1 %v9221_v43 }
 0x1b6   :  { %v8191_v51 = vpop.f32.mrb[25].mxu0  ;;  %8514 = vmatprep.subr.bf16.mxu1 %v9224_v46  ;;  %v29_v46 = vld [vmem:[%s11561_s0 + $0x38] sm:$0xff] }
 0x1b7   :  { %v8192_v53 = vadd.f32 %v8191_v51, %v8190_v49  ;;  %v8193_v54 = vpop.f32.mrb[26].mxu0  ;;  %v8212_v55 = vpop.f32.mrb[24].mxu1  ;;  %8493 = vmatpush3.bf16.msra.mxu0 %v9223_v45  ;;  %v9264_v45 = vld [vmem:[%s11562_s1 + $0xe38] sm:$0xff]   ;;  %v1639_v49 = vrot.slane %v29_v46, %v9586_v41  ;;  %v1632_v51 = vcombine.high %v29_v46, %v29_v46  ;;  %v9301_v46 = vld [vmem:[%s11562_s1 + $0x1000] sm:$0xff]  }
 0x1b8   :  { %v8194_v58 = vpop.f32.mrb[27].mxu0  ;;  %v8213_v59 = vpop.f32.mrb[25].mxu1  ;;  %8494 = vmatprep.subr.bf16.mxu0 %v9226_v48  ;;  %v9265_v48 = vld [vmem:[%s11562_s1 + $0xef8] sm:$0xff]  }
 0x1b9   :  { %v6093_v60 = vadd.f32 %v8192_v53, %v10834_v12  ;;  %v8214_v61 = vadd.f32 %v8213_v59, %v8212_v55  ;;  %8515 = vmatpush3.bf16.msra.mxu1 %v9225_v47  ;;  %v8215_v63 = vpop.f32.mrb[26].mxu1  ;;  %v9241_v12 = vld [vmem:[%s11562_s1 + $0xec8] sm:$0xff]   ;;  %v9266_v53 = vld [vmem:[%s11562_s1 + $0xeb8] sm:$0xff]   ;;  %v1647_v54 = vcombine.high %v1639_v49, %v1639_v49  ;;  %v1655_v55 = vrot.slane %v1639_v49, %v9586_v41  ;;  %v9268_v58 = vld [vmem:[%s11562_s1 + $0xf00] sm:$0xff]  }
 0x1ba   :  { %8516 = vmatprep.subr.bf16.mxu1 %v9228_v52  ;;  %v8216_v1 = vpop.f32.mrb[27].mxu1 }
 0x1bb   :  { %v10941_v2 = vadd.f32 %v8214_v61, %v6093_v60  ;;  %8495 = vmatpush3.bf16.msra.mxu0 %v9227_v50  ;;  %v1669_v59 = vrot.slane %v1647_v54, %v9586_v41  ;;  %v9269_v60 = vld [vmem:[%s11562_s1 + $0xfc0] sm:$0xff]   ;;  %v9271_v1 = vld [vmem:[%s11562_s1 + $0xf48] sm:$0xff]   ;;  %v9308_v54 = vld [vmem:[%s11562_s1 + $0x1050] sm:$0xff]  }
 0x1bc   :  { %8496 = vmatprep.subr.bf16.mxu0 %v9230_v57  ;;  %v11056_v57 = vrot.slane %v1632_v51, %v9586_v41  ;;  %v9305_v51 = vld [vmem:[%s11562_s1 + $0x1008] sm:$0xff]  }
 0x1bd   :  { %8517 = vmatpush3.bf16.msra.mxu1 %v9229_v56  ;;  %v9267_v56 = vld [vmem:[%s11562_s1 + $0xf40] sm:$0xff]   ;;  %v1679_v63 = vcombine.high %v1669_v59, %v1669_v59 }
 0x1be   :  { %8518 = vmatprep.subr.bf16.mxu1 %v9232_v0  ;;  %v1648_v61 = vcombine.high %v11056_v57, %v11056_v57  ;;  %v1677_v0 = vcombine.high %v1655_v55, %v1655_v55 }
 0x1bf   :  { %8497 = vmatpush3.bf16.msra.mxu0 %v9231_v62  ;;  %v9270_v62 = vld [vmem:[%s11562_s1 + $0xf80] sm:$0xff]  }
 0x1c0   :  { %8526 = vmatprep.subr.bf16.mxu0 %v9235_v5 }
 0x1c1   :  { %8519 = vmatpush3.bf16.msra.mxu1 %v9234_v3  ;;  %v9272_v3 = vld [vmem:[%s11562_s1 + $0xf08] sm:$0xff]  }
 0x1c2   :  { %6651 = vmatmul.mubr.bf16.vlgmr.msra.gmra.mrb[52].mxu0 %v1613_v4  ;;  %8548 = vmatprep.subr.bf16.mxu1 %v9237_v7  ;;  %v9273_v4 = vld [vmem:[%s11562_s1 + $0xfc8] sm:$0xff]   ;;  %v9275_v7 = vld [vmem:[%s11562_s1 + $0xf50] sm:$0xff]  }
 0x1c3   :  { %8527 = vmatpush3.bf16.msra.mxu0 %v9236_v6  ;;  %6730 = vmatprep.mubr.bf16.mxu0 %v1669_v59  ;;  %v9274_v6 = vld [vmem:[%s11562_s1 + $0xf88] sm:$0xff]   ;;  %v9313_v59 = vld [vmem:[%s11562_s1 + $0x1018] sm:$0xff]  }
 0x1c4   :  { %6691 = vmatmul.mubr.bf16.vlgmr.msra.gmra.mrb[52].mxu1 %v1629_v9  ;;  %8528 = vmatprep.subr.bf16.mxu0 %v9239_v10  ;;  %v9277_v9 = vld [vmem:[%s11562_s1 + $0xfd0] sm:$0xff]  }
 0x1c5   :  { %8549 = vmatpush3.bf16.msra.mxu1 %v9238_v8  ;;  %6770 = vmatprep.mubr.bf16.mxu1 %v1679_v63  ;;  %v9276_v8 = vld [vmem:[%s11562_s1 + $0xf10] sm:$0xff]   ;;  %v9317_v63 = vld [vmem:[%s11562_s1 + $0x1020] sm:$0xff]  }
 0x1c6   :  { %8550 = vmatprep.subr.bf16.mxu1 %v9241_v12  ;;  %v9278_v10 = vld [vmem:[%s11562_s1 + $0xf90] sm:$0xff]   ;;  %v9280_v12 = vld [vmem:[%s11562_s1 + $0xf18] sm:$0xff]  }
 0x1c7   :  { %8529 = vmatpush3.bf16.msra.mxu0 %v9240_v11  ;;  %v9279_v11 = vld [vmem:[%s11562_s1 + $0xf58] sm:$0xff]  }
 0x1c8   :  { %8530 = vmatprep.subr.bf16.mxu0 %v9243_v14  ;;  %v9282_v14 = vld [vmem:[%s11562_s1 + $0xf98] sm:$0xff]  }
 0x1c9   :  { %8551 = vmatpush3.bf16.msra.mxu1 %v9242_v13  ;;  %v9281_v13 = vld [vmem:[%s11562_s1 + $0xfd8] sm:$0xff]  }
 0x1ca   :  { %8552 = vmatprep.subr.bf16.mxu1 %v9245_v16  ;;  %v9284_v16 = vld [vmem:[%s11562_s1 + $0xf20] sm:$0xff]  }
 0x1cb   :  { %8531 = vmatpush3.bf16.msra.mxu0 %v9244_v15  ;;  %v9283_v15 = vld [vmem:[%s11562_s1 + $0xf60] sm:$0xff]  }
 0x1cc   :  { %8532 = vmatprep.subr.bf16.mxu0 %v9247_v18  ;;  %v9286_v18 = vld [vmem:[%s11562_s1 + $0xfa0] sm:$0xff]  }
 0x1cd   :  { %8553 = vmatpush3.bf16.msra.mxu1 %v9246_v17  ;;  %v9285_v17 = vld [vmem:[%s11562_s1 + $0xfe0] sm:$0xff]  }
 0x1ce   :  { %8554 = vmatprep.subr.bf16.mxu1 %v9249_v20  ;;  %v9288_v20 = vld [vmem:[%s11562_s1 + $0xf28] sm:$0xff]  }
 0x1cf   :  { %8533 = vmatpush3.bf16.msra.mxu0 %v9248_v19  ;;  %v9287_v19 = vld [vmem:[%s11562_s1 + $0xf68] sm:$0xff]  }
 0x1d0   :  { %8534 = vmatprep.subr.bf16.mxu0 %v9251_v22  ;;  %v9290_v22 = vld [vmem:[%s11562_s1 + $0xfa8] sm:$0xff]  }
 0x1d1   :  { %8555 = vmatpush3.bf16.msra.mxu1 %v9250_v21  ;;  %v9289_v21 = vld [vmem:[%s11562_s1 + $0xfe8] sm:$0xff]  }
 0x1d2   :  { %8556 = vmatprep.subr.bf16.mxu1 %v9253_v24 }
 0x1d3   :  { %8535 = vmatpush3.bf16.msra.mxu0 %v9252_v23  ;;  %v9291_v23 = vld [vmem:[%s11562_s1 + $0xf70] sm:$0xff]  }
 0x1d4   :  { %8536 = vmatprep.subr.bf16.mxu0 %v9255_v26 }
 0x1d5   :  { %v8234_v31 = vpop.f32.mrb[28].mxu0  ;;  %8557 = vmatpush3.bf16.msra.mxu1 %v9254_v25  ;;  %v9292_v25 = vld [vmem:[%s11562_s1 + $0xf30] sm:$0xff]  }
 0x1d6   :  { %v8235_v33 = vpop.f32.mrb[29].mxu0  ;;  %8558 = vmatprep.subr.bf16.mxu1 %v9257_v28 }
 0x1d7   :  { %v8236_v35 = vadd.f32 %v8235_v33, %v8234_v31  ;;  %v8237_v36 = vpop.f32.mrb[30].mxu0  ;;  %v8256_v37 = vpop.f32.mrb[28].mxu1  ;;  %8537 = vmatpush3.bf16.msra.mxu0 %v9256_v27  ;;  %v9293_v27 = vld [vmem:[%s11562_s1 + $0xff0] sm:$0xff]  }
 0x1d8   :  { %v8238_v38 = vpop.f32.mrb[31].mxu0  ;;  %v8257_v39 = vpop.f32.mrb[29].mxu1  ;;  %8538 = vmatprep.subr.bf16.mxu0 %v9259_v30  ;;  %v9294_v31 = vld [vmem:[%s11562_s1 + $0xfb0] sm:$0xff]  }
 0x1d9   :  { %v6173_v43 = vadd.f32 %v8236_v35, %v10941_v2  ;;  %v8258_v44 = vadd.f32 %v8257_v39, %v8256_v37  ;;  %8559 = vmatpush3.bf16.msra.mxu1 %v9258_v29  ;;  %v8259_v47 = vpop.f32.mrb[30].mxu1  ;;  %v1676_v2 = vrot.slane %v1648_v61, %v9586_v41  ;;  %v9296_v37 = vld [vmem:[%s11562_s1 + $0xf38] sm:$0xff]  }
 0x1da   :  { %8560 = vmatprep.subr.bf16.mxu1 %v9261_v34  ;;  %v8260_v50 = vpop.f32.mrb[31].mxu1  ;;  %v9297_v39 = vld [vmem:[%s11562_s1 + $0xff8] sm:$0xff]   ;;  %v9302_v47 = vld [vmem:[%s11562_s1 + $0x10c0] sm:$0xff]  }
 0x1db   :  { %v11046_v52 = vadd.f32 %v8258_v44, %v6173_v43  ;;  %8539 = vmatpush3.bf16.msra.mxu0 %v9260_v32  ;;  %v1680_v5 = vcombine.high %v1676_v2, %v1676_v2  ;;  %v9295_v32 = vld [vmem:[%s11562_s1 + $0xf78] sm:$0xff]   ;;  %v1662_v44 = vrot.slane %v11056_v57, %v9586_v41  ;;  %v9304_v50 = vld [vmem:[%s11562_s1 + $0x1048] sm:$0xff]   ;;  %v9311_v57 = vld [vmem:[%s11562_s1 + $0x1090] sm:$0xff]  }
 0x1dc   :  { %8540 = vmatprep.subr.bf16.mxu0 %v9263_v42  ;;  %v9299_v43 = vld [vmem:[%s11562_s1 + $0xfb8] sm:$0xff]  }
 0x1dd   :  { %8561 = vmatpush3.bf16.msra.mxu1 %v9262_v40  ;;  %v1678_v49 = vcombine.high %v1662_v44, %v1662_v44  ;;  %v9315_v61 = vld [vmem:[%s11562_s1 + $0x1098] sm:$0xff]  }
 0x1de   :  { %8562 = vmatprep.subr.bf16.mxu1 %v9265_v48  ;;  %v9303_v48 = vld [vmem:[%s11562_s1 + $0x1080] sm:$0xff]  }
 0x1df   :  { %8541 = vmatpush3.bf16.msra.mxu0 %v9264_v45  ;;  %v9300_v45 = vld [vmem:[%s11562_s1 + $0x1040] sm:$0xff]  }
 0x1e0   :  { %8570 = vmatprep.subr.bf16.mxu0 %v9267_v56  ;;  %v9310_v56 = vld [vmem:[%s11562_s1 + $0x10d0] sm:$0xff]  }
 0x1e1   :  { %8563 = vmatpush3.bf16.msra.mxu1 %v9266_v53  ;;  %v9307_v53 = vld [vmem:[%s11562_s1 + $0x1088] sm:$0xff]  }
 0x1e2   :  { %6731 = vmatmul.mubr.bf16.vlgmr.msra.gmra.mrb[56].mxu0 %v1655_v55  ;;  %8592 = vmatprep.subr.bf16.mxu1 %v9269_v60  ;;  %v9309_v55 = vld [vmem:[%s11562_s1 + $0x1010] sm:$0xff]   ;;  %v9314_v60 = vld [vmem:[%s11562_s1 + $0x10d8] sm:$0xff]  }
 0x1e3   :  { %8571 = vmatpush3.bf16.msra.mxu0 %v9268_v58  ;;  %6810 = vmatprep.mubr.bf16.mxu0 %v1676_v2  ;;  %v9312_v58 = vld [vmem:[%s11562_s1 + $0x1058] sm:$0xff]   ;;  %v9320_v2 = vld [vmem:[%s11562_s1 + $0x1068] sm:$0xff]  }
 0x1e4   :  { %6771 = vmatmul.mubr.bf16.vlgmr.msra.gmra.mrb[56].mxu1 %v1677_v0  ;;  %8572 = vmatprep.subr.bf16.mxu0 %v9271_v1  ;;  %v9318_v0 = vld [vmem:[%s11562_s1 + $0x10e0] sm:$0xff]  }
 0x1e5   :  { %8593 = vmatpush3.bf16.msra.mxu1 %v9270_v62  ;;  %6850 = vmatprep.mubr.bf16.mxu1 %v1680_v5  ;;  %v9316_v62 = vld [vmem:[%s11562_s1 + $0x1060] sm:$0xff]   ;;  %v9323_v5 = vld [vmem:[%s11562_s1 + $0x10a8] sm:$0xff]  }
 0x1e6   :  { %8594 = vmatprep.subr.bf16.mxu1 %v9273_v4  ;;  %v9319_v1 = vld [vmem:[%s11562_s1 + $0x10a0] sm:$0xff]   ;;  %v9322_v4 = vld [vmem:[%s11562_s1 + $0x10e8] sm:$0xff]  }
 0x1e7   :  { %8573 = vmatpush3.bf16.msra.mxu0 %v9272_v3  ;;  %v9321_v3 = vld [vmem:[%s11562_s1 + $0x1028] sm:$0xff]  }
 0x1e8   :  { %8574 = vmatprep.subr.bf16.mxu0 %v9275_v7 }
 0x1e9   :  { %8595 = vmatpush3.bf16.msra.mxu1 %v9274_v6  ;;  %v9324_v6 = vld [vmem:[%s11562_s1 + $0x1070] sm:$0xff]  }
 0x1ea   :  { %8596 = vmatprep.subr.bf16.mxu1 %v9277_v9 }
 0x1eb   :  { %8575 = vmatpush3.bf16.msra.mxu0 %v9276_v8  ;;  %v9325_v8 = vld [vmem:[%s11562_s1 + $0x1030] sm:$0xff]  }
 0x1ec   :  { %8576 = vmatprep.subr.bf16.mxu0 %v9279_v11 }
 0x1ed   :  { %8597 = vmatpush3.bf16.msra.mxu1 %v9278_v10  ;;  %v9326_v10 = vld [vmem:[%s11562_s1 + $0x10f0] sm:$0xff]  }
 0x1ee   :  { %8598 = vmatprep.subr.bf16.mxu1 %v9281_v13 }
 0x1ef   :  { %8577 = vmatpush3.bf16.msra.mxu0 %v9280_v12 }
 0x1f0   :  { %8578 = vmatprep.subr.bf16.mxu0 %v9283_v15 }
 0x1f1   :  { %8599 = vmatpush3.bf16.msra.mxu1 %v9282_v14 }
 0x1f2   :  { %8600 = vmatprep.subr.bf16.mxu1 %v9285_v17  ;;  %v9328_v17 = vld [vmem:[%s11562_s1 + $0x1078] sm:$0xff]  }
 0x1f3   :  { %8579 = vmatpush3.bf16.msra.mxu0 %v9284_v16  ;;  %v9327_v16 = vld [vmem:[%s11562_s1 + $0x10b0] sm:$0xff]  }
 0x1f4   :  { %8580 = vmatprep.subr.bf16.mxu0 %v9287_v19 }
 0x1f5   :  { %v8278_v24 = vpop.f32.mrb[32].mxu0  ;;  %8601 = vmatpush3.bf16.msra.mxu1 %v9286_v18 }
 0x1f6   :  { %v8279_v26 = vpop.f32.mrb[33].mxu0  ;;  %8602 = vmatprep.subr.bf16.mxu1 %v9289_v21  ;;  %v9330_v21 = vld [vmem:[%s11562_s1 + $0x10f8] sm:$0xff]  }
 0x1f7   :  { %v8280_v28 = vadd.f32 %v8279_v26, %v8278_v24  ;;  %v8281_v29 = vpop.f32.mrb[34].mxu0  ;;  %v8300_v30 = vpop.f32.mrb[32].mxu1  ;;  %8581 = vmatpush3.bf16.msra.mxu0 %v9288_v20  ;;  %v9329_v20 = vld [vmem:[%s11562_s1 + $0x1038] sm:$0xff]  }
 0x1f8   :  { %v8282_v33 = vpop.f32.mrb[35].mxu0  ;;  %v8301_v34 = vpop.f32.mrb[33].mxu1  ;;  %8582 = vmatprep.subr.bf16.mxu0 %v9291_v23  ;;  %v9331_v26 = vld [vmem:[%s11562_s1 + $0x10b8] sm:$0xff]   ;;  %v9332_v29 = vld [vmem:[%s11562_s1 + $0x1140] sm:$0xff]  }
 0x1f9   :  { %v6253_v35 = vadd.f32 %v8280_v28, %v11046_v52  ;;  %v8302_v36 = vadd.f32 %v8301_v34, %v8300_v30  ;;  %8603 = vmatpush3.bf16.msra.mxu1 %v9290_v22  ;;  %v8303_v38 = vpop.f32.mrb[34].mxu1  ;;  %v9306_v52 = vld [vmem:[%s11562_s1 + $0x10c8] sm:$0xff]   ;;  %v30_v22 = vld [vmem:[%s11561_s0 + $0x40] sm:$0xff] }
 0x1fa   :  { %8604 = vmatprep.subr.bf16.mxu1 %v9293_v27  ;;  %v8304_v40 = vpop.f32.mrb[35].mxu1  ;;  %v1681_v28 = vcombine.high %v30_v22, %v30_v22  ;;  %v9334_v34 = vld [vmem:[%s11562_s1 + $0x11c0] sm:$0xff]  }
 0x1fb   :  { %v11153_v42 = vadd.f32 %v8302_v36, %v6253_v35  ;;  %8583 = vmatpush3.bf16.msra.mxu0 %v9292_v25  ;;  %v1688_v25 = vrot.slane %v30_v22, %v9586_v41  ;;  %v9335_v36 = vld [vmem:[%s11562_s1 + $0x1180] sm:$0xff]  }
 0x1fc   :  { %8584 = vmatprep.subr.bf16.mxu0 %v9295_v32  ;;  %v9333_v32 = vld [vmem:[%s11562_s1 + $0x1100] sm:$0xff]   ;;  %v11271_v33 = vrot.slane %v1681_v28, %v9586_v41  ;;  %v9372_v28 = vld [vmem:[%s11562_s1 + $0x1288] sm:$0xff]  }
 0x1fd   :  { %8605 = vmatpush3.bf16.msra.mxu1 %v9294_v31  ;;  %v1696_v30 = vcombine.high %v1688_v25, %v1688_v25  ;;  %v1704_v31 = vrot.slane %v1688_v25, %v9586_v41  ;;  %v9367_v22 = vld [vmem:[%s11562_s1 + $0x12c0] sm:$0xff]   ;;  %v9369_v25 = vld [vmem:[%s11562_s1 + $0x1248] sm:$0xff]  }
 0x1fe   :  { %8606 = vmatprep.subr.bf16.mxu1 %v9297_v39  ;;  %v9336_v39 = vld [vmem:[%s11562_s1 + $0x1148] sm:$0xff]  }
 0x1ff   :  { %8585 = vmatpush3.bf16.msra.mxu0 %v9296_v37  ;;  %v1718_v35 = vrot.slane %v1696_v30, %v9586_v41  ;;  %v1697_v37 = vcombine.high %v11271_v33, %v11271_v33  ;;  %v1726_v38 = vcombine.high %v1704_v31, %v1704_v31  ;;  %v9374_v30 = vld [vmem:[%s11562_s1 + $0x1210] sm:$0xff]  }
 0x200   :  { %8614 = vmatprep.subr.bf16.mxu0 %v9300_v45  ;;  %v9339_v45 = vld [vmem:[%s11562_s1 + $0x1188] sm:$0xff]  }
 0x201   :  { %8607 = vmatpush3.bf16.msra.mxu1 %v9299_v43  ;;  %v1728_v40 = vcombine.high %v1718_v35, %v1718_v35  ;;  %v1725_v43 = vrot.slane %v1697_v37, %v9586_v41  ;;  %v9381_v37 = vld [vmem:[%s11562_s1 + $0x1260] sm:$0xff]  }
 0x202   :  { %6811 = vmatmul.mubr.bf16.vlgmr.msra.gmra.mrb[60].mxu0 %v1662_v44  ;;  %8636 = vmatprep.subr.bf16.mxu1 %v9302_v47  ;;  %v9338_v44 = vld [vmem:[%s11562_s1 + $0x11c8] sm:$0xff]   ;;  %v9340_v47 = vld [vmem:[%s11562_s1 + $0x1150] sm:$0xff]  }
 0x203   :  { %8615 = vmatpush3.bf16.msra.mxu0 %v9301_v46  ;;  %6890 = vmatprep.mubr.bf16.mxu0 %v1718_v35  ;;  %v1729_v46 = vcombine.high %v1725_v43, %v1725_v43  ;;  %v9379_v35 = vld [vmem:[%s11562_s1 + $0x12d8] sm:$0xff]  }
 0x204   :  { %6851 = vmatmul.mubr.bf16.vlgmr.msra.gmra.mrb[60].mxu1 %v1678_v49  ;;  %8616 = vmatprep.subr.bf16.mxu0 %v9304_v50  ;;  %v9342_v49 = vld [vmem:[%s11562_s1 + $0x11d0] sm:$0xff]  }
 0x205   :  { %8637 = vmatpush3.bf16.msra.mxu1 %v9303_v48  ;;  %6930 = vmatprep.mubr.bf16.mxu1 %v1728_v40  ;;  %v9341_v48 = vld [vmem:[%s11562_s1 + $0x1110] sm:$0xff]   ;;  %v9384_v40 = vld [vmem:[%s11562_s1 + $0x12a0] sm:$0xff]  }
 0x206   :  { %8638 = vmatprep.subr.bf16.mxu1 %v9306_v52  ;;  %v9343_v50 = vld [vmem:[%s11562_s1 + $0x1190] sm:$0xff]   ;;  %v9345_v52 = vld [vmem:[%s11562_s1 + $0x1118] sm:$0xff]  }
 0x207   :  { %8617 = vmatpush3.bf16.msra.mxu0 %v9305_v51  ;;  %v9344_v51 = vld [vmem:[%s11562_s1 + $0x1158] sm:$0xff]  }
 0x208   :  { %8618 = vmatprep.subr.bf16.mxu0 %v9308_v54  ;;  %v9347_v54 = vld [vmem:[%s11562_s1 + $0x1198] sm:$0xff]  }
 0x209   :  { %8639 = vmatpush3.bf16.msra.mxu1 %v9307_v53  ;;  %v9346_v53 = vld [vmem:[%s11562_s1 + $0x11d8] sm:$0xff]  }
 0x20a   :  { %8640 = vmatprep.subr.bf16.mxu1 %v9310_v56  ;;  %v9349_v56 = vld [vmem:[%s11562_s1 + $0x1120] sm:$0xff]  }
 0x20b   :  { %8619 = vmatpush3.bf16.msra.mxu0 %v9309_v55  ;;  %v9348_v55 = vld [vmem:[%s11562_s1 + $0x1160] sm:$0xff]  }
 0x20c   :  { %8620 = vmatprep.subr.bf16.mxu0 %v9312_v58  ;;  %v9351_v58 = vld [vmem:[%s11562_s1 + $0x11a0] sm:$0xff]  }
 0x20d   :  { %8641 = vmatpush3.bf16.msra.mxu1 %v9311_v57  ;;  %v9350_v57 = vld [vmem:[%s11562_s1 + $0x11e0] sm:$0xff]  }
 0x20e   :  { %8642 = vmatprep.subr.bf16.mxu1 %v9314_v60  ;;  %v9353_v60 = vld [vmem:[%s11562_s1 + $0x1128] sm:$0xff]  }
 0x20f   :  { %8621 = vmatpush3.bf16.msra.mxu0 %v9313_v59  ;;  %v9352_v59 = vld [vmem:[%s11562_s1 + $0x1168] sm:$0xff]  }
 0x210   :  { %8622 = vmatprep.subr.bf16.mxu0 %v9316_v62  ;;  %v9355_v62 = vld [vmem:[%s11562_s1 + $0x11a8] sm:$0xff]  }
 0x211   :  { %8643 = vmatpush3.bf16.msra.mxu1 %v9315_v61  ;;  %v9354_v61 = vld [vmem:[%s11562_s1 + $0x11e8] sm:$0xff]  }
 0x212   :  { %8644 = vmatprep.subr.bf16.mxu1 %v9318_v0 }
 0x213   :  { %8623 = vmatpush3.bf16.msra.mxu0 %v9317_v63  ;;  %v9356_v63 = vld [vmem:[%s11562_s1 + $0x1170] sm:$0xff]  }
 0x214   :  { %8624 = vmatprep.subr.bf16.mxu0 %v9320_v2 }
 0x215   :  { %v8322_v7 = vpop.f32.mrb[36].mxu0  ;;  %8645 = vmatpush3.bf16.msra.mxu1 %v9319_v1  ;;  %v9357_v1 = vld [vmem:[%s11562_s1 + $0x1130] sm:$0xff]  }
 0x216   :  { %v8323_v9 = vpop.f32.mrb[37].mxu0  ;;  %8646 = vmatprep.subr.bf16.mxu1 %v9322_v4 }
 0x217   :  { %v8324_v11 = vadd.f32 %v8323_v9, %v8322_v7  ;;  %v8325_v12 = vpop.f32.mrb[38].mxu0  ;;  %v8344_v13 = vpop.f32.mrb[36].mxu1  ;;  %8625 = vmatpush3.bf16.msra.mxu0 %v9321_v3  ;;  %v9358_v3 = vld [vmem:[%s11562_s1 + $0x11f0] sm:$0xff]  }
 0x218   :  { %v8326_v14 = vpop.f32.mrb[39].mxu0  ;;  %v8345_v15 = vpop.f32.mrb[37].mxu1  ;;  %8626 = vmatprep.subr.bf16.mxu0 %v9324_v6  ;;  %v9359_v7 = vld [vmem:[%s11562_s1 + $0x11b0] sm:$0xff]  }
 0x219   :  { %v6333_v18 = vadd.f32 %v8324_v11, %v11153_v42  ;;  %v8346_v19 = vadd.f32 %v8345_v15, %v8344_v13  ;;  %8647 = vmatpush3.bf16.msra.mxu1 %v9323_v5  ;;  %v8347_v23 = vpop.f32.mrb[38].mxu1  ;;  %v9337_v42 = vld [vmem:[%s11562_s1 + $0x1108] sm:$0xff]   ;;  %v9361_v13 = vld [vmem:[%s11562_s1 + $0x1138] sm:$0xff]  }
 0x21a   :  { %8648 = vmatprep.subr.bf16.mxu1 %v9326_v10  ;;  %v8348_v27 = vpop.f32.mrb[39].mxu1  ;;  %v9362_v15 = vld [vmem:[%s11562_s1 + $0x11f8] sm:$0xff]   ;;  %v9368_v23 = vld [vmem:[%s11562_s1 + $0x1280] sm:$0xff]  }
 0x21b   :  { %v11257_v24 = vadd.f32 %v8346_v19, %v6333_v18  ;;  %8627 = vmatpush3.bf16.msra.mxu0 %v9325_v8  ;;  %v9360_v8 = vld [vmem:[%s11562_s1 + $0x1178] sm:$0xff]   ;;  %v1711_v19 = vrot.slane %v11271_v33, %v9586_v41  ;;  %v9371_v27 = vld [vmem:[%s11562_s1 + $0x12c8] sm:$0xff]  }
 0x21c   :  { %8628 = vmatprep.subr.bf16.mxu0 %v9328_v17  ;;  %v9364_v18 = vld [vmem:[%s11562_s1 + $0x11b8] sm:$0xff]  }
 0x21d   :  { %8649 = vmatpush3.bf16.msra.mxu1 %v9327_v16  ;;  %v9377_v33 = vld [vmem:[%s11562_s1 + $0x1258] sm:$0xff]  }
 0x21e   :  { %8650 = vmatprep.subr.bf16.mxu1 %v9330_v21  ;;  %v9366_v21 = vld [vmem:[%s11562_s1 + $0x1200] sm:$0xff]  }
 0x21f   :  { %8629 = vmatpush3.bf16.msra.mxu0 %v9329_v20  ;;  %v9365_v20 = vld [vmem:[%s11562_s1 + $0x1240] sm:$0xff]  }
 0x220   :  { %8658 = vmatprep.subr.bf16.mxu0 %v9332_v29  ;;  %v9373_v29 = vld [vmem:[%s11562_s1 + $0x1250] sm:$0xff]  }
 0x221   :  { %8651 = vmatpush3.bf16.msra.mxu1 %v9331_v26  ;;  %v9370_v26 = vld [vmem:[%s11562_s1 + $0x1208] sm:$0xff]  }
 0x222   :  { %6891 = vmatmul.mubr.bf16.vlgmr.msra.gmra.mrb[64].mxu0 %v1704_v31  ;;  %8680 = vmatprep.subr.bf16.mxu1 %v9334_v34  ;;  %v9375_v31 = vld [vmem:[%s11562_s1 + $0x12d0] sm:$0xff]   ;;  %v9378_v34 = vld [vmem:[%s11562_s1 + $0x1218] sm:$0xff]  }
 0x223   :  { %8659 = vmatpush3.bf16.msra.mxu0 %v9333_v32  ;;  %6970 = vmatprep.mubr.bf16.mxu0 %v1725_v43  ;;  %v9376_v32 = vld [vmem:[%s11562_s1 + $0x1290] sm:$0xff]   ;;  %v9386_v43 = vld [vmem:[%s11562_s1 + $0x1228] sm:$0xff]  }
 0x224   :  { %6931 = vmatmul.mubr.bf16.vlgmr.msra.gmra.mrb[64].mxu1 %v1726_v38  ;;  %8660 = vmatprep.subr.bf16.mxu0 %v9336_v39  ;;  %v9382_v38 = vld [vmem:[%s11562_s1 + $0x1220] sm:$0xff]  }
 0x225   :  { %8681 = vmatpush3.bf16.msra.mxu1 %v9335_v36  ;;  %7010 = vmatprep.mubr.bf16.mxu1 %v1729_v46  ;;  %v9380_v36 = vld [vmem:[%s11562_s1 + $0x1298] sm:$0xff]   ;;  %v9383_v39 = vld [vmem:[%s11562_s1 + $0x12e0] sm:$0xff]   ;;  %v9389_v46 = vld [vmem:[%s11562_s1 + $0x1270] sm:$0xff]  }
 0x226   :  { %8682 = vmatprep.subr.bf16.mxu1 %v9338_v44  ;;  %v9387_v44 = vld [vmem:[%s11562_s1 + $0x12e8] sm:$0xff]  }
 0x227   :  { %8661 = vmatpush3.bf16.msra.mxu0 %v9337_v42  ;;  %v9385_v42 = vld [vmem:[%s11562_s1 + $0x1268] sm:$0xff]  }
 0x228   :  { %8662 = vmatprep.subr.bf16.mxu0 %v9340_v47 }
 0x229   :  { %8683 = vmatpush3.bf16.msra.mxu1 %v9339_v45  ;;  %v9388_v45 = vld [vmem:[%s11562_s1 + $0x12a8] sm:$0xff]  }
 0x22a   :  { %8684 = vmatprep.subr.bf16.mxu1 %v9342_v49 }
 0x22b   :  { %8663 = vmatpush3.bf16.msra.mxu0 %v9341_v48  ;;  %v9390_v48 = vld [vmem:[%s11562_s1 + $0x1230] sm:$0xff]  }
 0x22c   :  { %8664 = vmatprep.subr.bf16.mxu0 %v9344_v51 }
 0x22d   :  { %8685 = vmatpush3.bf16.msra.mxu1 %v9343_v50  ;;  %v9391_v50 = vld [vmem:[%s11562_s1 + $0x12f0] sm:$0xff]  }
 0x22e   :  { %8686 = vmatprep.subr.bf16.mxu1 %v9346_v53 }
 0x22f   :  { %8665 = vmatpush3.bf16.msra.mxu0 %v9345_v52 }
 0x230   :  { %8666 = vmatprep.subr.bf16.mxu0 %v9348_v55 }
 0x231   :  { %8687 = vmatpush3.bf16.msra.mxu1 %v9347_v54 }
 0x232   :  { %8688 = vmatprep.subr.bf16.mxu1 %v9350_v57  ;;  %v9393_v57 = vld [vmem:[%s11562_s1 + $0x1278] sm:$0xff]  }
 0x233   :  { %8667 = vmatpush3.bf16.msra.mxu0 %v9349_v56  ;;  %v9392_v56 = vld [vmem:[%s11562_s1 + $0x12b0] sm:$0xff]  }
 0x234   :  { %8668 = vmatprep.subr.bf16.mxu0 %v9352_v59 }
 0x235   :  { %v8366_v0 = vpop.f32.mrb[40].mxu0  ;;  %8689 = vmatpush3.bf16.msra.mxu1 %v9351_v58 }
 0x236   :  { %v8367_v2 = vpop.f32.mrb[41].mxu0  ;;  %8690 = vmatprep.subr.bf16.mxu1 %v9354_v61 }
 0x237   :  { %v8368_v4 = vadd.f32 %v8367_v2, %v8366_v0  ;;  %v8369_v5 = vpop.f32.mrb[42].mxu0  ;;  %v8388_v6 = vpop.f32.mrb[40].mxu1  ;;  %8669 = vmatpush3.bf16.msra.mxu0 %v9353_v60  ;;  %v9394_v60 = vld [vmem:[%s11562_s1 + $0x1238] sm:$0xff]   ;;  %v31_v0 = vld [vmem:[%s11561_s0 + $0x48] sm:$0x3f] }
 0x238   :  { %v8370_v9 = vpop.f32.mrb[43].mxu0  ;;  %v8389_v10 = vpop.f32.mrb[41].mxu1  ;;  %8670 = vmatprep.subr.bf16.mxu0 %v9356_v63  ;;  %v9395_v63 = vld [vmem:[%s11562_s1 + $0x12f8] sm:$0xff]   ;;  %v1730_v2 = vcombine.high %v31_v0, %v31_v0 }
 0x239   :  { %v6413_v11 = vadd.f32 %v8368_v4, %v11257_v24  ;;  %v8390_v12 = vadd.f32 %v8389_v10, %v8388_v6  ;;  %8691 = vmatpush3.bf16.msra.mxu1 %v9355_v62  ;;  %v8391_v14 = vpop.f32.mrb[42].mxu1  ;;  %v1727_v24 = vcombine.high %v1711_v19, %v1711_v19  ;;  %v9397_v4 = vld [vmem:[%s11562_s1 + $0x12b8] sm:$0xff]   ;;  %v9447_v9 = vmov 0   ;;  %v9398_v10 = vld [vmem:[%s11562_s1 + $0x1300] sm:$0xff]  }
 0x23a   :  { %8692 = vmatprep.subr.bf16.mxu1 %v9358_v3  ;;  %v8392_v16 = vpop.f32.mrb[43].mxu1  ;;  %v1737_v3 = vrot.slane %v31_v0, %v9586_v41 }
 0x23b   :  { %v11365_v17 = vadd.f32 %v8390_v12, %v6413_v11  ;;  %8671 = vmatpush3.bf16.msra.mxu0 %v9357_v1  ;;  %v9400_v16 = vld [vmem:[%s11562_s1 + $0x1310] sm:$0xff]  }
 0x23c   :  { %8672 = vmatprep.subr.bf16.mxu0 %v9360_v8  ;;  %v1745_v5 = vcombine.high %v1737_v3, %v1737_v3  ;;  %v1753_v6 = vrot.slane %v1737_v3, %v9586_v41 }
 0x23d   :  { %8693 = vmatpush3.bf16.msra.mxu1 %v9359_v7  ;;  %v11475_v7 = vrot.slane %v1730_v2, %v9586_v41 }
 0x23e   :  { %8694 = vmatprep.subr.bf16.mxu1 %v9362_v15  ;;  %v1767_v8 = vrot.slane %v1745_v5, %v9586_v41  ;;  %v1775_v12 = vcombine.high %v1753_v6, %v1753_v6  ;;  %v9399_v15 = vld [vmem:[%s11562_s1 + $0x1308] sm:$0xff]  }
 0x23f   :  { %8673 = vmatpush3.bf16.msra.mxu0 %v9361_v13  ;;  %v1746_v11 = vcombine.high %v11475_v7, %v11475_v7 }
 0x240   :  { %8702 = vmatprep.subr.bf16.mxu0 %v9365_v20  ;;  %v1776_v13 = vcombine.high %v1767_v8, %v1767_v8 }
 0x241   :  { %8695 = vmatpush3.bf16.msra.mxu1 %v9364_v18  ;;  %v1774_v14 = vrot.slane %v1746_v11, %v9586_v41 }
 0x242   :  { %6971 = vmatmul.mubr.bf16.vlgmr.msra.gmra.mrb[68].mxu0 %v1711_v19  ;;  %8724 = vmatprep.subr.bf16.mxu1 %v9367_v22 }
 0x243   :  { %8703 = vmatpush3.bf16.msra.mxu0 %v9366_v21  ;;  %7050 = vmatprep.mubr.bf16.mxu0 %v1767_v8 }
 0x244   :  { %7011 = vmatmul.mubr.bf16.vlgmr.msra.gmra.mrb[68].mxu1 %v1727_v24  ;;  %8704 = vmatprep.subr.bf16.mxu0 %v9369_v25 }
 0x245   :  { %8725 = vmatpush3.bf16.msra.mxu1 %v9368_v23  ;;  %7090 = vmatprep.mubr.bf16.mxu1 %v1776_v13 }
 0x246   :  { %8726 = vmatprep.subr.bf16.mxu1 %v9371_v27 }
 0x247   :  { %8705 = vmatpush3.bf16.msra.mxu0 %v9370_v26 }
 0x248   :  { %8706 = vmatprep.subr.bf16.mxu0 %v9373_v29 }
 0x249   :  { %8727 = vmatpush3.bf16.msra.mxu1 %v9372_v28 }
 0x24a   :  { %8728 = vmatprep.subr.bf16.mxu1 %v9375_v31 }
 0x24b   :  { %8707 = vmatpush3.bf16.msra.mxu0 %v9374_v30 }
 0x24c   :  { %8708 = vmatprep.subr.bf16.mxu0 %v9377_v33 }
 0x24d   :  { %8729 = vmatpush3.bf16.msra.mxu1 %v9376_v32 }
 0x24e   :  { %8730 = vmatprep.subr.bf16.mxu1 %v9379_v35 }
 0x24f   :  { %8709 = vmatpush3.bf16.msra.mxu0 %v9378_v34 }
 0x250   :  { %8710 = vmatprep.subr.bf16.mxu0 %v9381_v37 }
 0x251   :  { %8731 = vmatpush3.bf16.msra.mxu1 %v9380_v36 }
 0x252   :  { %8732 = vmatprep.subr.bf16.mxu1 %v9383_v39 }
 0x253   :  { %8711 = vmatpush3.bf16.msra.mxu0 %v9382_v38 }
 0x254   :  { %8712 = vmatprep.subr.bf16.mxu0 %v9385_v42 }
 0x255   :  { %v8410_v47 = vpop.f32.mrb[44].mxu0  ;;  %8733 = vmatpush3.bf16.msra.mxu1 %v9384_v40 }
 0x256   :  { %v8411_v49 = vpop.f32.mrb[45].mxu0  ;;  %8734 = vmatprep.subr.bf16.mxu1 %v9387_v44 }
 0x257   :  { %v8412_v51 = vadd.f32 %v8411_v49, %v8410_v47  ;;  %v8413_v52 = vpop.f32.mrb[46].mxu0  ;;  %v8432_v53 = vpop.f32.mrb[44].mxu1  ;;  %8713 = vmatpush3.bf16.msra.mxu0 %v9386_v43 }
 0x258   :  { %v8414_v54 = vpop.f32.mrb[47].mxu0  ;;  %v8433_v55 = vpop.f32.mrb[45].mxu1  ;;  %8714 = vmatprep.subr.bf16.mxu0 %v9389_v46 }
 0x259   :  { %v6493_v58 = vadd.f32 %v8412_v51, %v11365_v17  ;;  %v8434_v59 = vadd.f32 %v8433_v55, %v8432_v53  ;;  %8735 = vmatpush3.bf16.msra.mxu1 %v9388_v45  ;;  %v8435_v61 = vpop.f32.mrb[46].mxu1  ;;  %v9401_v17 = vld [vmem:[%s11562_s1 + $0x1318] sm:$0xff]  }
 0x25a   :  { %8736 = vmatprep.subr.bf16.mxu1 %v9391_v50  ;;  %v8436_v1 = vpop.f32.mrb[47].mxu1 }
 0x25b   :  { %v6533_v62 = vadd.f32 %v8434_v59, %v6493_v58  ;;  %8715 = vmatpush3.bf16.msra.mxu0 %v9390_v48 }
 0x25c   :  { %8716 = vmatprep.subr.bf16.mxu0 %v9393_v57 }
 0x25d   :  { %8737 = vmatpush3.bf16.msra.mxu1 %v9392_v56 }
 0x25e   :  { %8738 = vmatprep.subr.bf16.mxu1 %v9395_v63 }
 0x25f   :  { %8717 = vmatpush3.bf16.msra.mxu0 %v9394_v60 }
 0x260   :  { %7098 = vmatprep.subr.bf16.mxu0 %v9447_v9 }
 0x261   :  { %8739 = vmatpush3.bf16.msra.mxu1 %v9397_v4 }
 0x262   :  { %7051 = vmatmul.mubr.bf16.vlgmr.msra.gmra.mrb[72].mxu0 %v1753_v6 }
 0x263   :  { %7099 = vmatpush1.bf16.msra.mxu0 %v9398_v10  ;;  %7900 = vmatprep.mubr.msk.bf16.mxu0 %vm5574_vm0, %v1774_v14 }
 0x264   :  { %7091 = vmatmul.mubr.bf16.vlgmr.msra.gmra.mrb[72].mxu1 %v1775_v12  ;;  %7100 = vmatprep.subr.bf16.mxu0 %v9447_v9 }
 0x267   :  { %7101 = vmatpush1.bf16.msra.mxu0 %v9399_v15 }
 0x268   :  { %7102 = vmatprep.subr.bf16.mxu0 %v9447_v9 }
 0x26b   :  { %7103 = vmatpush1.bf16.msra.mxu0 %v9400_v16 }
 0x26c   :  { %7104 = vmatprep.subr.bf16.mxu0 %v9447_v9 }
 0x26d   :  { %10 = vsyncpa [#allocation3], 0  ;;  %v9402_v18 = vld [vmem:[%s11562_s1 + $0x1320] sm:$0xff]   ;;  %v9403_v19 = vld [vmem:[%s11562_s1 + $0x1328] sm:$0xff]   ;;  %v1760_v38 = vrot.slane %v11475_v7, %v9586_v41  ;;  %v9448_v0 = vmov 0.0   ;;  %vm9449_vm1 = vmmov 0  }
 0x26e   :  { %v9404_v27 = vld [vmem:[%s11562_s1 + $0x1330] sm:$0xff]   ;;  %v9405_v33 = vld [vmem:[%s11562_s1 + $0x1338] sm:$0xff]   ;;  %v9406_v34 = vld [vmem:[%s11562_s1 + $0x1340] sm:$0xff]   ;;  %8755 = vmatprep.subr.bf16.mxu1 %v9448_v0  ;;  %8771 = vmatprep.mubr.msk.bf16.mxu1 %vm9449_vm1, %v9448_v0  ;;  %vm7251_vm2 = vcmask 74752  }
 0x26f   :  { %7105 = vmatpush1.bf16.msra.mxu0 %v9401_v17  ;;  %v9407_v35 = vld [vmem:[%s11562_s1 + $0x1348] sm:$0xff]   ;;  %v9408_v36 = vld [vmem:[%s11562_s1 + $0x1350] sm:$0xff]   ;;  %v9409_v37 = vld [vmem:[%s11562_s1 + $0x1358] sm:$0xff]  }
 0x270   :  { %7106 = vmatprep.subr.bf16.mxu0 %v9447_v9  ;;  %v9411_v1 = vld [vmem:[%s11564_s3 + $0x8] sm:$0xff]   ;;  %v9412_v2 = vld [vmem:[%s11564_s3 + $0x10] sm:$0xff]   ;;  %v9413_v3 = vld [vmem:[%s11564_s3 + $0x18] sm:$0xff]  }
 0x271   :  { %v9414_v4 = vld [vmem:[%s11564_s3 + $0x20] sm:$0xff]   ;;  %v9415_v5 = vld [vmem:[%s11564_s3 + $0x28] sm:$0xff]  }
 0x273   :  { %7107 = vmatpush1.bf16.msra.mxu0 %v9402_v18  ;;  %v9416_v18 = vld [vmem:[%s11564_s3 + $0x30] sm:$0xff]  }
 0x274   :  { %7108 = vmatprep.subr.bf16.mxu0 %v9447_v9 }
 0x275   :  { %v8454_v20 = vpop.f32.mrb[48].mxu0 }
 0x276   :  { %v8455_v21 = vpop.f32.mrb[49].mxu0 }
 0x277   :  { %v8456_v22 = vadd.f32 %v8455_v21, %v8454_v20  ;;  %v8457_v23 = vpop.f32.mrb[50].mxu0  ;;  %v8476_v24 = vpop.f32.mrb[48].mxu1  ;;  %7109 = vmatpush1.bf16.msra.mxu0 %v9403_v19  ;;  %v9417_v19 = vld [vmem:[%s11564_s3 + $0x38] sm:$0xff]  }
 0x278   :  { %v8458_v25 = vpop.f32.mrb[51].mxu0  ;;  %v8477_v26 = vpop.f32.mrb[49].mxu1  ;;  %7110 = vmatprep.subr.bf16.mxu0 %v9447_v9 }
 0x279   :  { %v6573_v28 = vadd.f32 %v8456_v22, %v6533_v62  ;;  %v8478_v29 = vadd.f32 %v8477_v26, %v8476_v24  ;;  %v8479_v30 = vpop.f32.mrb[50].mxu1  ;;  %v9410_v62 = vld [vmem:[%s11564_s3] sm:$0xff]  }
 0x27a   :  { %v8480_v31 = vpop.f32.mrb[51].mxu1  ;;  %8756 = vmatpush3.bf16.msra.mxu1 %v9410_v62 }
 0x27b   :  { %v6613_v32 = vadd.f32 %v8478_v29, %v6573_v28  ;;  %7111 = vmatpush1.bf16.msra.mxu0 %v9404_v27  ;;  %8757 = vmatprep.subr.bf16.mxu1 %v9448_v0 }
 0x27c   :  { %7112 = vmatprep.subr.bf16.mxu0 %v9447_v9 }
 0x27e   :  { %8758 = vmatpush3.bf16.msra.mxu1 %v9411_v1 }
 0x27f   :  { %7113 = vmatpush1.bf16.msra.mxu0 %v9405_v33  ;;  %8759 = vmatprep.subr.bf16.mxu1 %v9448_v0 }
 0x280   :  { %7114 = vmatprep.subr.bf16.mxu0 %v9447_v9 }
 0x282   :  { %8760 = vmatpush3.bf16.msra.mxu1 %v9412_v2 }
 0x283   :  { %7115 = vmatpush1.bf16.msra.mxu0 %v9406_v34  ;;  %8761 = vmatprep.subr.bf16.mxu1 %v9448_v0 }
 0x284   :  { %7116 = vmatprep.subr.bf16.mxu0 %v9447_v9 }
 0x286   :  { %8762 = vmatpush3.bf16.msra.mxu1 %v9413_v3 }
 0x287   :  { %7117 = vmatpush1.bf16.msra.mxu0 %v9407_v35  ;;  %8763 = vmatprep.subr.bf16.mxu1 %v9448_v0 }
 0x288   :  { %7118 = vmatprep.subr.bf16.mxu0 %v9447_v9 }
 0x28a   :  { %8764 = vmatpush3.bf16.msra.mxu1 %v9414_v4 }
 0x28b   :  { %7119 = vmatpush1.bf16.msra.mxu0 %v9408_v36  ;;  %8765 = vmatprep.subr.bf16.mxu1 %v9448_v0 }
 0x28c   :  { %7120 = vmatprep.subr.bf16.mxu0 %v9447_v9 }
 0x28e   :  { %8766 = vmatpush3.bf16.msra.mxu1 %v9415_v5 }
 0x28f   :  { %7121 = vmatpush1.bf16.msra.mxu0 %v9409_v37  ;;  %8767 = vmatprep.subr.bf16.mxu1 %v9448_v0 }
 0x292   :  { %7131 = vmatmul.mubr.bf16.vlgmr.msra.gmra.mrb[76].mxu0 %v1760_v38  ;;  %8768 = vmatpush3.bf16.msra.mxu1 %v9416_v18 }
 0x293   :  { %8769 = vmatprep.subr.bf16.mxu1 %v9448_v0 }
 0x295   :  { %v8498_v39 = vpop.f32.mrb[52].mxu0 }
 0x296   :  { %v8499_v40 = vpop.f32.mrb[53].mxu0  ;;  %8770 = vmatpush3.bf16.msra.mxu1 %v9417_v19 }
 0x297   :  { %v8500_v42 = vadd.f32 %v8499_v40, %v8498_v39  ;;  %v8501_v43 = vpop.f32.mrb[54].mxu0  ;;  %v8520_v44 = vpop.f32.mrb[52].mxu1 }
 0x298   :  { %v8502_v45 = vpop.f32.mrb[55].mxu0  ;;  %v8521_v46 = vpop.f32.mrb[53].mxu1 }
 0x299   :  { %v6653_v47 = vadd.f32 %v8500_v42, %v6613_v32  ;;  %v8522_v48 = vadd.f32 %v8521_v46, %v8520_v44  ;;  %v8523_v49 = vpop.f32.mrb[54].mxu1 }
 0x29a   :  { %v8524_v50 = vpop.f32.mrb[55].mxu1 }
 0x29b   :  { %v6693_v51 = vadd.f32 %v8522_v48, %v6653_v47 }
 0x2b5   :  { %v8542_v52 = vpop.f32.mrb[56].mxu0 }
 0x2b6   :  { %v8543_v53 = vpop.f32.mrb[57].mxu0 }
 0x2b7   :  { %v8544_v54 = vadd.f32 %v8543_v53, %v8542_v52  ;;  %v8545_v55 = vpop.f32.mrb[58].mxu0  ;;  %v8564_v56 = vpop.f32.mrb[56].mxu1 }
 0x2b8   :  { %v8546_v41 = vpop.f32.mrb[59].mxu0  ;;  %v8565_v57 = vpop.f32.mrb[57].mxu1 }
 0x2b9   :  { %v6733_v58 = vadd.f32 %v8544_v54, %v6693_v51  ;;  %v8566_v59 = vadd.f32 %v8565_v57, %v8564_v56  ;;  %v8567_v60 = vpop.f32.mrb[58].mxu1 }
 0x2ba   :  { %v8568_v61 = vpop.f32.mrb[59].mxu1 }
 0x2bb   :  { %v6773_v63 = vadd.f32 %v8566_v59, %v6733_v58 }
 0x2d5   :  { %v8586_v6 = vpop.f32.mrb[60].mxu0 }
 0x2d6   :  { %v8587_v7 = vpop.f32.mrb[61].mxu0 }
 0x2d7   :  { %v8588_v8 = vadd.f32 %v8587_v7, %v8586_v6  ;;  %v8589_v9 = vpop.f32.mrb[62].mxu0  ;;  %v8608_v10 = vpop.f32.mrb[60].mxu1 }
 0x2d8   :  { %v8590_v11 = vpop.f32.mrb[63].mxu0  ;;  %v8609_v12 = vpop.f32.mrb[61].mxu1 }
 0x2d9   :  { %v6813_v13 = vadd.f32 %v8588_v8, %v6773_v63  ;;  %v8610_v14 = vadd.f32 %v8609_v12, %v8608_v10  ;;  %v8611_v15 = vpop.f32.mrb[62].mxu1  ;;  %v7901_v63 = vld [vmem:[%s11565_s4] ss:$0 sm:$0xff]  ;;  %s9450_s4 = smov [#allocation2]  }
 0x2da   :  { %v8612_v16 = vpop.f32.mrb[63].mxu1  ;;  %s7271_s14 = sshll.u32 %s9450_s4, 4  ;;  %s7272_s14 = int_to_ptr.vmem [resolvable:$true] %s7271_s14 }
 0x2db   :  { %v6853_v17 = vadd.f32 %v8610_v14, %v6813_v13  ;;  %s9422_s15 = scalar_lea.vmem %s7272_s14, 32  ;;  %p9427_p1 = scmp.lt.s32.totalorder %s7272_s14, %s7272_s14 }
 0x2dc   :  { %p9423_p0 = scmp.ne.s32.totalorder %s7272_s14, %s9422_s15  ;;  %p9428_p2 = scmp.lt.s32.totalorder %s9422_s15, %s9422_s15 }
 0x2de   :  { %p9429_p3 = por %p9428_p2, %p9427_p1 }
 0x2e0   :  { %p9430_p4 = pnand %p9429_p3, %p9423_p0 }
 0x2f5   :  { %v8630_v20 = vpop.f32.mrb[64].mxu0 }
 0x2f6   :  { %v8631_v21 = vpop.f32.mrb[65].mxu0 }
 0x2f7   :  { %v8632_v22 = vadd.f32 %v8631_v21, %v8630_v20  ;;  %v8633_v23 = vpop.f32.mrb[66].mxu0  ;;  %v8652_v24 = vpop.f32.mrb[64].mxu1 }
 0x2f8   :  { %v8634_v25 = vpop.f32.mrb[67].mxu0  ;;  %v8653_v26 = vpop.f32.mrb[65].mxu1 }
 0x2f9   :  { %v6893_v27 = vadd.f32 %v8632_v22, %v6853_v17  ;;  %v8654_v28 = vadd.f32 %v8653_v26, %v8652_v24  ;;  %v8655_v29 = vpop.f32.mrb[66].mxu1 }
 0x2fa   :  { %v8656_v30 = vpop.f32.mrb[67].mxu1 }
 0x2fb   :  { %v6933_v31 = vadd.f32 %v8654_v28, %v6893_v27 }
 0x315   :  { %v8674_v32 = vpop.f32.mrb[68].mxu0 }
 0x316   :  { %v8675_v33 = vpop.f32.mrb[69].mxu0 }
 0x317   :  { %v8676_v34 = vadd.f32 %v8675_v33, %v8674_v32  ;;  %v8677_v35 = vpop.f32.mrb[70].mxu0  ;;  %v8696_v36 = vpop.f32.mrb[68].mxu1 }
 0x318   :  { %v8678_v37 = vpop.f32.mrb[71].mxu0  ;;  %v8697_v38 = vpop.f32.mrb[69].mxu1 }
 0x319   :  { %v6973_v39 = vadd.f32 %v8676_v34, %v6933_v31  ;;  %v8698_v40 = vadd.f32 %v8697_v38, %v8696_v36  ;;  %v8699_v42 = vpop.f32.mrb[70].mxu1 }
 0x31a   :  { %v8700_v43 = vpop.f32.mrb[71].mxu1 }
 0x31b   :  { %v7013_v44 = vadd.f32 %v8698_v40, %v6973_v39 }
 0x335   :  { %v8718_v45 = vpop.f32.mrb[72].mxu0 }
 0x336   :  { %v8719_v46 = vpop.f32.mrb[73].mxu0 }
 0x337   :  { %v8720_v47 = vadd.f32 %v8719_v46, %v8718_v45  ;;  %v8721_v48 = vpop.f32.mrb[74].mxu0  ;;  %v8740_v49 = vpop.f32.mrb[72].mxu1 }
 0x338   :  { %v8722_v50 = vpop.f32.mrb[75].mxu0  ;;  %v8741_v51 = vpop.f32.mrb[73].mxu1 }
 0x339   :  { %v7053_v52 = vadd.f32 %v8720_v47, %v7013_v44  ;;  %v8742_v53 = vadd.f32 %v8741_v51, %v8740_v49  ;;  %v8743_v54 = vpop.f32.mrb[74].mxu1 }
 0x33a   :  { %v8744_v55 = vpop.f32.mrb[75].mxu1 }
 0x33b   :  { %v7093_v56 = vadd.f32 %v8742_v53, %v7053_v52 }
 0x365   :  { %v7132_v41 = vpop.f32.mrb[76].mxu0 }
 0x366   :  { %v7133_v57 = vadd.f32 %v7132_v41, %v7093_v56  ;;  %v7134_v58 = vpop.f32.mrb[77].mxu0 }
 0x367   :  { %v7135_v59 = vpop.f32.mrb[78].mxu0 }
 0x368   :  { %v7138_v60 = vmax.f32 %v7133_v57, 0.0  ;;  %v7136_v61 = vpop.f32.mrb[79].mxu0 }
 0x36a   :  { %v7139_v62 = vpack.c.bf16 %v7138_v60, %v7138_v60 }
 0x36c   :  { %8772 = vmatmul.mubr.bf16.vlgmr.msra.gmra.mrb[76].mxu1 %v7139_v62 }
 0x43f   :  { %v7245_v0 = vpop.f32.mrb[76].mxu1 }
 0x440   :  { %v7246_v1 = vadd.f32 %v7901_v63, %v7245_v0  ;;  %v8773_v2 = vpop.f32.mrb[77].mxu1 }
 0x441   :  { %v7248_v3 = vpop.f32.mrb[78].mxu1 }
 0x442   :  { %v8774_v4 = vpop.f32.mrb[79].mxu1  ;;  %v7252_v5 = vsel %vm7251_vm2, %v7246_v1, -inf }
 0x443   :  { %7253 = vmax.xlane.f32.xlu0 %v7252_v5 }
 0x4d0   :  { %v7254_v6 = vpop.xlane.xlu0 %7253 }
 0x4d1   :  { %v7255_v7 = vsub.f32 %v7246_v1, %v7254_v6 }
 0x4d3   :  { %v7256_v8 = vmul.f32 1.442695, %v7255_v7 }
 0x4d5   :  { %9418 = vpow2.f32 %v7256_v8 }
 0x4df   :  { %v9419_v9 = vpop.eup %9418 }
 0x4e0   :  { %v7258_v10 = vsel %vm7251_vm2, %v9419_v9, 0.0 }
 0x4e1   :  { %7259 = vadd.xlane.f32.xlu0 %v7258_v10 }
 0x56e   :  { %v7260_v11 = vpop.xlane.xlu0 %7259 }
 0x56f   :  { %9420 = vlog2.f32 %v7260_v11 }
 0x579   :  { %v9421_v12 = vpop.eup %9420 }
 0x57a   :  { %v7262_v13 = vmul.f32 0.6931472, %v9421_v12 }
 0x57c   :  { %v7263_v14 = vsub.f32 %v7255_v7, %v7262_v13 }
 0x57e   :  { %7264 = vst.msk [vmem:[#allocation2] sm:$0x3] %vm7251_vm2, %v7263_v14 }
 0x57f   :  { %9433 = shalt.err (!%p9430_p4)
}
 0x580   :  { %s9434_s18 = scalar_lea.hbm %s11566_s5, 32 }
 0x581   :  { %p9435_p5 = scmp.ne.s32.totalorder %s11566_s5, %s9434_s18  ;;  %p9438_p6 = scmp.lt.u32.totalorder %s9434_s18, %s11566_s5 }
 0x583   :  { %p9440_p7 = pnand %p9438_p6, %p9435_p5 }
 0x585   :  { %9443 = shalt.err (!%p9440_p7)
}
 0x586   :  { %7274 = dma.vmem_to_hbm [thread:$0]  %s7272_s14, 32, %s11566_s5, [#allocation3]  }
 0x587   :  { %9444 = dma.done.wait [#allocation3], 32  }
 0x588   :  { %9445 = vsyncadd [#allocation3], 4294967264 }
 0x589   :  { %7278 = vsyncpa [#allocation3], 1 }

</bundles_post_ra>
